<compile_context>
chip_gen: v5e
topology: v5e:2x2
jax: 0.10.0
libtpu: 0.0.40
codegen_flags: <defaults>
</compile_context>

<pallas_src>
import functools

import jax
import jax.numpy as jnp
import numpy as np
from jax import lax
from jax.experimental import pallas as pl
from jax.experimental.pallas import tpu as pltpu


_RU_DILATIONS = (1, 3, 9)
_RU_KSIZE = 7
_DOT_PREC = lax.Precision.HIGHEST   # keep f32 matmuls at full precision


def _elu(v):
    # ELU(alpha=1); clamp the exp argument so the unselected branch can't overflow.
    return jnp.where(v > 0, v, jnp.exp(jnp.minimum(v, 0.0)) - 1.0)


def _shift_down(a, off):
    """b[p] = a[p - off] with zero-fill at the top (causal left padding)."""
    if off == 0:
        return a
    le, ch = a.shape
    return jnp.concatenate(
        [jnp.zeros((off, ch), a.dtype), a[:le - off, :]], axis=0)


def _conv7_im2col(a, w_ref, b_ref, dilation):
    """Causal dilated k=7 conv as a single im2col matmul.

    a: (LE, C) f32; w_ref: (7*C, C) flattened tap-major; b_ref: (1, C).
    y[p] = sum_k W[k] . a[p - dilation*(6-k)]
    """
    cols = [_shift_down(a, dilation * (_RU_KSIZE - 1 - k))
            for k in range(_RU_KSIZE)]
    im = jnp.concatenate(cols, axis=1)                     # (LE, 7*C)
    y = jnp.dot(im, w_ref[...], preferred_element_type=jnp.float32,
                precision=_DOT_PREC)
    return y + b_ref[...]


def _residual_unit(x, w1_ref, b1_ref, w2_ref, b2_ref, *, dilation):
    a = _elu(x)
    c1 = _conv7_im2col(a, w1_ref, b1_ref, dilation)
    a2 = _elu(c1)
    c2 = jnp.dot(a2, w2_ref[...], preferred_element_type=jnp.float32,
                 precision=_DOT_PREC) + b2_ref[...]
    return x + c2


def encoder_block_kernel(cur_ref, prev_ref,
                         w1a_ref, b1a_ref, w2a_ref, b2a_ref,
                         w1b_ref, b1b_ref, w2b_ref, b2b_ref,
                         w1c_ref, b1c_ref, w2c_ref, b2c_ref,
                         wf_ref, bf_ref,
                         o_ref, h3_ref, *, stride, halo, tile_l):
    lt = pl.program_id(1)
    ch = cur_ref.shape[2]

    cur = cur_ref[0].astype(jnp.float32)                   # (tile_l, C)

    # Left halo = tail of the previous tile; zeros for tile 0 (== the causal
    # zero padding of the reference module).
    hsz = min(halo, tile_l)
    gate = (lt > 0).astype(jnp.float32)
    prev_tail = prev_ref[0].astype(jnp.float32)[tile_l - hsz:, :] * gate
    if hsz < halo:                                         # single-tile case
        prev_tail = jnp.concatenate(
            [jnp.zeros((halo - hsz, ch), jnp.float32), prev_tail], axis=0)
    h = jnp.concatenate([prev_tail, cur], axis=0)          # (halo + tile_l, C)

    # Rows < halo correspond to positions before this tile.  For tile 0 those
    # positions are before the start of the sequence: the reference module
    # zero-pads at the input of EVERY causal conv, so after each residual unit
    # we force those rows back to zero (gate == 0).  For tiles > 0 the rows
    # hold real computed context and are kept (gate == 1).
    row = lax.broadcasted_iota(jnp.int32, (halo + tile_l, 1), 0)
    keep = jnp.where(row < halo, gate, 1.0)                # (halo+tile_l, 1)

    ru_params = [(w1a_ref, b1a_ref, w2a_ref, b2a_ref),
                 (w1b_ref, b1b_ref, w2b_ref, b2b_ref),
                 (w1c_ref, b1c_ref, w2c_ref, b2c_ref)]
    for dil, (w1, b1, w2, b2) in zip(_RU_DILATIONS, ru_params):
        h = _residual_unit(h, w1, b1, w2, b2, dilation=dil) * keep
    h = _elu(h)                                            # ELU(0) == 0

    # Final causal conv: kernel = 2*stride, stride = stride.  Stage the
    # activation in VMEM and pull the 2*stride taps with sublane-strided
    # loads, then one matmul with a 2*stride*C-deep contraction.
    h3_ref[...] = h
    to = tile_l // stride
    ksz = 2 * stride
    start0 = halo - (ksz - 1)
    taps = [h3_ref[pl.ds(start0 + m, to, stride=stride), :] for m in range(ksz)]
    im = jnp.concatenate(taps, axis=1)                     # (to, 2*stride*C)
    y = jnp.dot(im, wf_ref[...], preferred_element_type=jnp.float32,
                precision=_DOT_PREC) + bf_ref[...]
    o_ref[0] = y.astype(o_ref.dtype)


def _round_up(n, m):
    return ((n + m - 1) // m) * m


def encoder_block(x, params, *, stride, tile_l=None):
    """x: (B, L, C_in) channels-last.  Returns (B, (L-1)//stride + 1, C_out)."""
    B, L, Cin = x.shape
    k1 = params["ru0_w1"].shape[0]
    half = params["ru0_w1"].shape[2]
    assert Cin == half, "module requires in_channels == out_channels // 2"
    Kf, _, Cout = params["final_w"].shape
    assert Kf == 2 * stride

    rf = sum(d * (k1 - 1) for d in _RU_DILATIONS)          # 78 for k=7, d=1/3/9
    halo = rf + (Kf - 1)                                   # + 2*stride - 1

    quant = 8 * stride                                     # keeps (8,*)-aligned blocks
    if tile_l is None:
        tile_l = min(_round_up(L, quant), _round_up(2048, quant))
    assert tile_l % quant == 0
    Lpad = _round_up(L, tile_l)
    num_tiles = Lpad // tile_l
    if num_tiles > 1 and tile_l < halo:
        raise ValueError(f"tile_l must be >= halo ({halo}) when tiling over L")
    if Lpad != L:
        x = jnp.pad(x, ((0, 0), (0, Lpad - L), (0, 0)))
    Lout = (L - 1) // stride + 1
    to = tile_l // stride

    # Host-side im2col weight layout: (K, C_in, C_out) -> (K*C_in, C_out).
    def flat(w):
        K, ci, co = w.shape
        return w.reshape(K * ci, co)

    weights = []
    for i in range(3):
        weights += [flat(params[f"ru{i}_w1"]), params[f"ru{i}_b1"],
                    params[f"ru{i}_w2"][0], params[f"ru{i}_b2"]]
    weights += [flat(params["final_w"]), params["final_b"]]

    def w_spec(a):
        zeros = (0,) * a.ndim
        return pl.BlockSpec(a.shape, lambda b, l, _z=zeros: _z)

    kernel = functools.partial(encoder_block_kernel,
                               stride=stride, halo=halo, tile_l=tile_l)
    out = pl.pallas_call(
        kernel,
        out_shape=jax.ShapeDtypeStruct((B, Lpad // stride, Cout), x.dtype),
        grid=(B, num_tiles),
        in_specs=[pl.BlockSpec((1, tile_l, Cin), lambda b, l: (b, l, 0)),
                  pl.BlockSpec((1, tile_l, Cin),
                               lambda b, l: (b, jnp.maximum(l - 1, 0), 0))]
                 + [w_spec(w) for w in weights],
        out_specs=pl.BlockSpec((1, to, Cout), lambda b, l: (b, l, 0)),
        scratch_shapes=[pltpu.VMEM((halo + tile_l, half), jnp.float32)],
        compiler_params=pltpu.CompilerParams(
            dimension_semantics=("parallel", "parallel"),
            vmem_limit_bytes=32 * 1024 * 1024),
    )(x, x, *weights)
    return out[:, :Lout, :]


# ---------------- pure-JAX reference (for verification only) ----------------

def _causal_conv_ref(x, w, b, stride, dilation):
    k = w.shape[0]
    pad = dilation * (k - 1)
    xp = jnp.pad(x, ((0, 0), (pad, 0), (0, 0)))
    y = lax.conv_general_dilated(
        xp, w, window_strides=(stride,), padding="VALID",
        rhs_dilation=(dilation,), dimension_numbers=("NHC", "HIO", "NHC"),
        precision=_DOT_PREC)
    return y + b[None]


def _residual_unit_ref(x, w1, b1, w2, b2, dilation):
    h = _elu(x)
    h = _causal_conv_ref(h, w1, b1, 1, dilation)
    h = _elu(h)
    h = _causal_conv_ref(h, w2, b2, 1, 1)
    return x + h


def encoder_block_ref(x, p, stride):
    x = _residual_unit_ref(x, p["ru0_w1"], p["ru0_b1"], p["ru0_w2"], p["ru0_b2"], 1)
    x = _residual_unit_ref(x, p["ru1_w1"], p["ru1_b1"], p["ru1_w2"], p["ru1_b2"], 3)
    x = _residual_unit_ref(x, p["ru2_w1"], p["ru2_b1"], p["ru2_w2"], p["ru2_b2"], 9)
    x = _elu(x)
    return _causal_conv_ref(x, p["final_w"], p["final_b"], stride, 1)


if __name__ == "__main__":
    in_channels, out_channels, stride = 16, 32, 2
    half = out_channels // 2
    # The PyTorch module only works when in_channels == out_channels // 2.
    assert in_channels == half

    key = jax.random.PRNGKey(0)
    ks = jax.random.split(key, 16)

    def init(k, shape, scale=0.1):
        return (scale * jax.random.normal(k, shape)).astype(jnp.float32)

    params = {
        "ru0_w1": init(ks[0], (7, in_channels, half)),
        "ru0_b1": init(ks[1], (1, half)),
        "ru0_w2": init(ks[2], (1, half, half)),
        "ru0_b2": init(ks[3], (1, half)),
        "ru1_w1": init(ks[4], (7, half, half)),
        "ru1_b1": init(ks[5], (1, half)),
        "ru1_w2": init(ks[6], (1, half, half)),
        "ru1_b2": init(ks[7], (1, half)),
        "ru2_w1": init(ks[8], (7, half, half)),
        "ru2_b1": init(ks[9], (1, half)),
        "ru2_w2": init(ks[10], (1, half, half)),
        "ru2_b2": init(ks[11], (1, half)),
        "final_w": init(ks[12], (2 * stride, half, out_channels)),
        "final_b": init(ks[13], (1, out_channels)),
    }

    # Case 1: small single-tile shape.
    B, L = 2, 16
    x = jax.random.normal(ks[14], (B, L, in_channels), dtype=jnp.float32)
    out = jax.block_until_ready(encoder_block(x, params, stride=stride))
    ref = jax.block_until_ready(encoder_block_ref(x, params, stride))
    assert out.shape == (B, (L - 1) // stride + 1, out_channels), out.shape
    np.testing.assert_allclose(np.asarray(out), np.asarray(ref), rtol=1e-4, atol=1e-4)

    # Case 2: exercise the L-tiled path (halo across tile boundaries, ragged L).
    L2 = 200
    x2 = jax.random.normal(ks[15], (B, L2, in_channels), dtype=jnp.float32)
    out2 = jax.block_until_ready(encoder_block(x2, params, stride=stride, tile_l=96))
    ref2 = jax.block_until_ready(encoder_block_ref(x2, params, stride))
    assert out2.shape == ref2.shape, (out2.shape, ref2.shape)
    np.testing.assert_allclose(np.asarray(out2), np.asarray(ref2), rtol=1e-4, atol=1e-4)

    print("KERNEL_OK")
</pallas_src>

<mosaic_0001>
module attributes {stable_mosaic.version = 11 : i64} {
  func.func @encoder_block_kernel(%arg0: i32, %arg1: i32, %arg2: memref<1x16x16xf32, #tpu.memory_space<vmem>>, %arg3: memref<1x16x16xf32, #tpu.memory_space<vmem>>, %arg4: memref<112x16xf32, #tpu.memory_space<vmem>>, %arg5: memref<1x16xf32, #tpu.memory_space<vmem>>, %arg6: memref<16x16xf32, #tpu.memory_space<vmem>>, %arg7: memref<1x16xf32, #tpu.memory_space<vmem>>, %arg8: memref<112x16xf32, #tpu.memory_space<vmem>>, %arg9: memref<1x16xf32, #tpu.memory_space<vmem>>, %arg10: memref<16x16xf32, #tpu.memory_space<vmem>>, %arg11: memref<1x16xf32, #tpu.memory_space<vmem>>, %arg12: memref<112x16xf32, #tpu.memory_space<vmem>>, %arg13: memref<1x16xf32, #tpu.memory_space<vmem>>, %arg14: memref<16x16xf32, #tpu.memory_space<vmem>>, %arg15: memref<1x16xf32, #tpu.memory_space<vmem>>, %arg16: memref<64x32xf32, #tpu.memory_space<vmem>>, %arg17: memref<1x32xf32, #tpu.memory_space<vmem>>, %arg18: memref<1x8x32xf32, #tpu.memory_space<vmem>>, %arg19: memref<97x16xf32, #tpu.memory_space<vmem>>) attributes {dimension_semantics = [#tpu.dimension_semantics<parallel>, #tpu.dimension_semantics<parallel>], iteration_bounds = array<i64: 2, 1>, scalar_prefetch = 0 : i64, scratch_operands = 1 : i64, tpu.core_type = #tpu.core_type<tc>, window_params = [{transform_indices = @transform_0, window_bounds = array<i64: 1, 16, 16>}, {transform_indices = @transform_1, window_bounds = array<i64: 1, 16, 16>}, {pipeline_mode = #tpu.pipeline_mode<synchronous>, transform_indices = @transform_2, window_bounds = array<i64: 112, 16>}, {pipeline_mode = #tpu.pipeline_mode<synchronous>, transform_indices = @transform_3, window_bounds = array<i64: 1, 16>}, {pipeline_mode = #tpu.pipeline_mode<synchronous>, transform_indices = @transform_4, window_bounds = array<i64: 16, 16>}, {pipeline_mode = #tpu.pipeline_mode<synchronous>, transform_indices = @transform_5, window_bounds = array<i64: 1, 16>}, {pipeline_mode = #tpu.pipeline_mode<synchronous>, transform_indices = @transform_6, window_bounds = array<i64: 112, 16>}, {pipeline_mode = #tpu.pipeline_mode<synchronous>, transform_indices = @transform_7, window_bounds = array<i64: 1, 16>}, {pipeline_mode = #tpu.pipeline_mode<synchronous>, transform_indices = @transform_8, window_bounds = array<i64: 16, 16>}, {pipeline_mode = #tpu.pipeline_mode<synchronous>, transform_indices = @transform_9, window_bounds = array<i64: 1, 16>}, {pipeline_mode = #tpu.pipeline_mode<synchronous>, transform_indices = @transform_10, window_bounds = array<i64: 112, 16>}, {pipeline_mode = #tpu.pipeline_mode<synchronous>, transform_indices = @transform_11, window_bounds = array<i64: 1, 16>}, {pipeline_mode = #tpu.pipeline_mode<synchronous>, transform_indices = @transform_12, window_bounds = array<i64: 16, 16>}, {pipeline_mode = #tpu.pipeline_mode<synchronous>, transform_indices = @transform_13, window_bounds = array<i64: 1, 16>}, {pipeline_mode = #tpu.pipeline_mode<synchronous>, transform_indices = @transform_14, window_bounds = array<i64: 64, 32>}, {pipeline_mode = #tpu.pipeline_mode<synchronous>, transform_indices = @transform_15, window_bounds = array<i64: 1, 32>}, {transform_indices = @transform_16, window_bounds = array<i64: 1, 8, 32>}]} {
    %c0 = arith.constant 0 : index
    %c0_0 = arith.constant 0 : index
    %c0_1 = arith.constant 0 : index
    %0 = vector.load %arg2[%c0, %c0_0, %c0_1] : memref<1x16x16xf32, #tpu.memory_space<vmem>>, vector<1x16x16xf32>
    %1 = vector.shape_cast %0 : vector<1x16x16xf32> to vector<16x16xf32>
    %c0_i32 = arith.constant 0 : i32
    %2 = arith.cmpi sgt, %arg1, %c0_i32 : i32
    %3 = arith.extui %2 : i1 to i32
    %4 = arith.sitofp %3 : i32 to f32
    %c0_2 = arith.constant 0 : index
    %c0_3 = arith.constant 0 : index
    %c0_4 = arith.constant 0 : index
    %5 = vector.load %arg3[%c0_2, %c0_3, %c0_4] : memref<1x16x16xf32, #tpu.memory_space<vmem>>, vector<1x16x16xf32>
    %6 = vector.shape_cast %5 : vector<1x16x16xf32> to vector<16x16xf32>
    %7 = vector.broadcast %4 : f32 to vector<16x16xf32>
    %8 = arith.mulf %6, %7 : vector<16x16xf32>
    %cst = arith.constant 0.000000e+00 : f32
    %9 = vector.broadcast %cst : f32 to vector<65x16xf32>
    %10 = tpu.concatenate %9, %8 in 0 : vector<65x16xf32>, vector<16x16xf32> -> vector<81x16xf32>
    %11 = tpu.concatenate %10, %1 in 0 : vector<81x16xf32>, vector<16x16xf32> -> vector<97x16xf32>
    %12 = tpu.iota {dimensions = array<i32: 0>} : vector<97x1xi32>
    %c81_i32 = arith.constant 81 : i32
    %13 = vector.broadcast %c81_i32 : i32 to vector<97x1xi32>
    %14 = arith.cmpi slt, %12, %13 : vector<97x1xi32>
    %cst_5 = arith.constant 1.000000e+00 : f32
    %15 = vector.broadcast %4 : f32 to vector<97x1xf32>
    %16 = vector.broadcast %cst_5 : f32 to vector<97x1xf32>
    %17 = arith.select %14, %15, %16 : vector<97x1xi1>, vector<97x1xf32>
    %cst_6 = arith.constant 0.000000e+00 : f32
    %18 = vector.broadcast %cst_6 : f32 to vector<97x16xf32>
    %19 = arith.cmpf ogt, %11, %18 : vector<97x16xf32>
    %cst_7 = arith.constant 0.000000e+00 : f32
    %20 = vector.broadcast %cst_7 : f32 to vector<97x16xf32>
    %21 = arith.minimumf %11, %20 : vector<97x16xf32>
    %22 = math.exp %21 : vector<97x16xf32>
    %cst_8 = arith.constant 1.000000e+00 : f32
    %23 = vector.broadcast %cst_8 : f32 to vector<97x16xf32>
    %24 = arith.subf %22, %23 : vector<97x16xf32>
    %25 = arith.select %19, %11, %24 : vector<97x16xi1>, vector<97x16xf32>
    %cst_9 = arith.constant 0.000000e+00 : f32
    %26 = vector.broadcast %cst_9 : f32 to vector<6x16xf32>
    %27 = vector.extract_strided_slice %25 {offsets = [0, 0], sizes = [91, 16], strides = [1, 1]} : vector<97x16xf32> to vector<91x16xf32>
    %28 = tpu.concatenate %26, %27 in 0 : vector<6x16xf32>, vector<91x16xf32> -> vector<97x16xf32>
    %cst_10 = arith.constant 0.000000e+00 : f32
    %29 = vector.broadcast %cst_10 : f32 to vector<5x16xf32>
    %30 = vector.extract_strided_slice %25 {offsets = [0, 0], sizes = [92, 16], strides = [1, 1]} : vector<97x16xf32> to vector<92x16xf32>
    %31 = tpu.concatenate %29, %30 in 0 : vector<5x16xf32>, vector<92x16xf32> -> vector<97x16xf32>
    %cst_11 = arith.constant 0.000000e+00 : f32
    %32 = vector.broadcast %cst_11 : f32 to vector<4x16xf32>
    %33 = vector.extract_strided_slice %25 {offsets = [0, 0], sizes = [93, 16], strides = [1, 1]} : vector<97x16xf32> to vector<93x16xf32>
    %34 = tpu.concatenate %32, %33 in 0 : vector<4x16xf32>, vector<93x16xf32> -> vector<97x16xf32>
    %cst_12 = arith.constant 0.000000e+00 : f32
    %35 = vector.broadcast %cst_12 : f32 to vector<3x16xf32>
    %36 = vector.extract_strided_slice %25 {offsets = [0, 0], sizes = [94, 16], strides = [1, 1]} : vector<97x16xf32> to vector<94x16xf32>
    %37 = tpu.concatenate %35, %36 in 0 : vector<3x16xf32>, vector<94x16xf32> -> vector<97x16xf32>
    %cst_13 = arith.constant 0.000000e+00 : f32
    %38 = vector.broadcast %cst_13 : f32 to vector<2x16xf32>
    %39 = vector.extract_strided_slice %25 {offsets = [0, 0], sizes = [95, 16], strides = [1, 1]} : vector<97x16xf32> to vector<95x16xf32>
    %40 = tpu.concatenate %38, %39 in 0 : vector<2x16xf32>, vector<95x16xf32> -> vector<97x16xf32>
    %cst_14 = arith.constant 0.000000e+00 : f32
    %41 = vector.broadcast %cst_14 : f32 to vector<1x16xf32>
    %42 = vector.extract_strided_slice %25 {offsets = [0, 0], sizes = [96, 16], strides = [1, 1]} : vector<97x16xf32> to vector<96x16xf32>
    %43 = tpu.concatenate %41, %42 in 0 : vector<1x16xf32>, vector<96x16xf32> -> vector<97x16xf32>
    %44 = tpu.concatenate %28, %31, %34, %37, %40, %43, %25 in 1 : vector<97x16xf32>, vector<97x16xf32>, vector<97x16xf32>, vector<97x16xf32>, vector<97x16xf32>, vector<97x16xf32>, vector<97x16xf32> -> vector<97x112xf32>
    %c0_15 = arith.constant 0 : index
    %c0_16 = arith.constant 0 : index
    %45 = vector.load %arg4[%c0_15, %c0_16] : memref<112x16xf32, #tpu.memory_space<vmem>>, vector<112x16xf32>
    %cst_17 = arith.constant dense<0.000000e+00> : vector<97x16xf32>
    %46 = tpu.matmul %44, %45, %cst_17 {dimension_numbers = #tpu.dot_dimension_numbers<[1], [0], [0], [1], [0, 0, 1, 1], [], []>, precision = #tpu.contract_precision<fp32>} : vector<97x112xf32>, vector<112x16xf32>, vector<97x16xf32> -> vector<97x16xf32>
    %c0_18 = arith.constant 0 : index
    %c0_19 = arith.constant 0 : index
    %47 = vector.load %arg5[%c0_18, %c0_19] : memref<1x16xf32, #tpu.memory_space<vmem>>, vector<1x16xf32>
    %48 = vector.broadcast %47 : vector<1x16xf32> to vector<97x16xf32>
    %49 = arith.addf %46, %48 : vector<97x16xf32>
    %cst_20 = arith.constant 0.000000e+00 : f32
    %50 = vector.broadcast %cst_20 : f32 to vector<97x16xf32>
    %51 = arith.cmpf ogt, %49, %50 : vector<97x16xf32>
    %cst_21 = arith.constant 0.000000e+00 : f32
    %52 = vector.broadcast %cst_21 : f32 to vector<97x16xf32>
    %53 = arith.minimumf %49, %52 : vector<97x16xf32>
    %54 = math.exp %53 : vector<97x16xf32>
    %cst_22 = arith.constant 1.000000e+00 : f32
    %55 = vector.broadcast %cst_22 : f32 to vector<97x16xf32>
    %56 = arith.subf %54, %55 : vector<97x16xf32>
    %57 = arith.select %51, %49, %56 : vector<97x16xi1>, vector<97x16xf32>
    %c0_23 = arith.constant 0 : index
    %c0_24 = arith.constant 0 : index
    %58 = vector.load %arg6[%c0_23, %c0_24] : memref<16x16xf32, #tpu.memory_space<vmem>>, vector<16x16xf32>
    %cst_25 = arith.constant dense<0.000000e+00> : vector<97x16xf32>
    %59 = tpu.matmul %57, %58, %cst_25 {dimension_numbers = #tpu.dot_dimension_numbers<[1], [0], [0], [1], [0, 0, 1, 1], [], []>, precision = #tpu.contract_precision<fp32>} : vector<97x16xf32>, vector<16x16xf32>, vector<97x16xf32> -> vector<97x16xf32>
    %c0_26 = arith.constant 0 : index
    %c0_27 = arith.constant 0 : index
    %60 = vector.load %arg7[%c0_26, %c0_27] : memref<1x16xf32, #tpu.memory_space<vmem>>, vector<1x16xf32>
    %61 = vector.broadcast %60 : vector<1x16xf32> to vector<97x16xf32>
    %62 = arith.addf %59, %61 : vector<97x16xf32>
    %63 = arith.addf %11, %62 : vector<97x16xf32>
    %64 = vector.broadcast %17 : vector<97x1xf32> to vector<97x16xf32>
    %65 = arith.mulf %63, %64 : vector<97x16xf32>
    %cst_28 = arith.constant 0.000000e+00 : f32
    %66 = vector.broadcast %cst_28 : f32 to vector<97x16xf32>
    %67 = arith.cmpf ogt, %65, %66 : vector<97x16xf32>
    %cst_29 = arith.constant 0.000000e+00 : f32
    %68 = vector.broadcast %cst_29 : f32 to vector<97x16xf32>
    %69 = arith.minimumf %65, %68 : vector<97x16xf32>
    %70 = math.exp %69 : vector<97x16xf32>
    %cst_30 = arith.constant 1.000000e+00 : f32
    %71 = vector.broadcast %cst_30 : f32 to vector<97x16xf32>
    %72 = arith.subf %70, %71 : vector<97x16xf32>
    %73 = arith.select %67, %65, %72 : vector<97x16xi1>, vector<97x16xf32>
    %cst_31 = arith.constant 0.000000e+00 : f32
    %74 = vector.broadcast %cst_31 : f32 to vector<18x16xf32>
    %75 = vector.extract_strided_slice %73 {offsets = [0, 0], sizes = [79, 16], strides = [1, 1]} : vector<97x16xf32> to vector<79x16xf32>
    %76 = tpu.concatenate %74, %75 in 0 : vector<18x16xf32>, vector<79x16xf32> -> vector<97x16xf32>
    %cst_32 = arith.constant 0.000000e+00 : f32
    %77 = vector.broadcast %cst_32 : f32 to vector<15x16xf32>
    %78 = vector.extract_strided_slice %73 {offsets = [0, 0], sizes = [82, 16], strides = [1, 1]} : vector<97x16xf32> to vector<82x16xf32>
    %79 = tpu.concatenate %77, %78 in 0 : vector<15x16xf32>, vector<82x16xf32> -> vector<97x16xf32>
    %cst_33 = arith.constant 0.000000e+00 : f32
    %80 = vector.broadcast %cst_33 : f32 to vector<12x16xf32>
    %81 = vector.extract_strided_slice %73 {offsets = [0, 0], sizes = [85, 16], strides = [1, 1]} : vector<97x16xf32> to vector<85x16xf32>
    %82 = tpu.concatenate %80, %81 in 0 : vector<12x16xf32>, vector<85x16xf32> -> vector<97x16xf32>
    %cst_34 = arith.constant 0.000000e+00 : f32
    %83 = vector.broadcast %cst_34 : f32 to vector<9x16xf32>
    %84 = vector.extract_strided_slice %73 {offsets = [0, 0], sizes = [88, 16], strides = [1, 1]} : vector<97x16xf32> to vector<88x16xf32>
    %85 = tpu.concatenate %83, %84 in 0 : vector<9x16xf32>, vector<88x16xf32> -> vector<97x16xf32>
    %cst_35 = arith.constant 0.000000e+00 : f32
    %86 = vector.broadcast %cst_35 : f32 to vector<6x16xf32>
    %87 = vector.extract_strided_slice %73 {offsets = [0, 0], sizes = [91, 16], strides = [1, 1]} : vector<97x16xf32> to vector<91x16xf32>
    %88 = tpu.concatenate %86, %87 in 0 : vector<6x16xf32>, vector<91x16xf32> -> vector<97x16xf32>
    %cst_36 = arith.constant 0.000000e+00 : f32
    %89 = vector.broadcast %cst_36 : f32 to vector<3x16xf32>
    %90 = vector.extract_strided_slice %73 {offsets = [0, 0], sizes = [94, 16], strides = [1, 1]} : vector<97x16xf32> to vector<94x16xf32>
    %91 = tpu.concatenate %89, %90 in 0 : vector<3x16xf32>, vector<94x16xf32> -> vector<97x16xf32>
    %92 = tpu.concatenate %76, %79, %82, %85, %88, %91, %73 in 1 : vector<97x16xf32>, vector<97x16xf32>, vector<97x16xf32>, vector<97x16xf32>, vector<97x16xf32>, vector<97x16xf32>, vector<97x16xf32> -> vector<97x112xf32>
    %c0_37 = arith.constant 0 : index
    %c0_38 = arith.constant 0 : index
    %93 = vector.load %arg8[%c0_37, %c0_38] : memref<112x16xf32, #tpu.memory_space<vmem>>, vector<112x16xf32>
    %cst_39 = arith.constant dense<0.000000e+00> : vector<97x16xf32>
    %94 = tpu.matmul %92, %93, %cst_39 {dimension_numbers = #tpu.dot_dimension_numbers<[1], [0], [0], [1], [0, 0, 1, 1], [], []>, precision = #tpu.contract_precision<fp32>} : vector<97x112xf32>, vector<112x16xf32>, vector<97x16xf32> -> vector<97x16xf32>
    %c0_40 = arith.constant 0 : index
    %c0_41 = arith.constant 0 : index
    %95 = vector.load %arg9[%c0_40, %c0_41] : memref<1x16xf32, #tpu.memory_space<vmem>>, vector<1x16xf32>
    %96 = vector.broadcast %95 : vector<1x16xf32> to vector<97x16xf32>
    %97 = arith.addf %94, %96 : vector<97x16xf32>
    %cst_42 = arith.constant 0.000000e+00 : f32
    %98 = vector.broadcast %cst_42 : f32 to vector<97x16xf32>
    %99 = arith.cmpf ogt, %97, %98 : vector<97x16xf32>
    %cst_43 = arith.constant 0.000000e+00 : f32
    %100 = vector.broadcast %cst_43 : f32 to vector<97x16xf32>
    %101 = arith.minimumf %97, %100 : vector<97x16xf32>
    %102 = math.exp %101 : vector<97x16xf32>
    %cst_44 = arith.constant 1.000000e+00 : f32
    %103 = vector.broadcast %cst_44 : f32 to vector<97x16xf32>
    %104 = arith.subf %102, %103 : vector<97x16xf32>
    %105 = arith.select %99, %97, %104 : vector<97x16xi1>, vector<97x16xf32>
    %c0_45 = arith.constant 0 : index
    %c0_46 = arith.constant 0 : index
    %106 = vector.load %arg10[%c0_45, %c0_46] : memref<16x16xf32, #tpu.memory_space<vmem>>, vector<16x16xf32>
    %cst_47 = arith.constant dense<0.000000e+00> : vector<97x16xf32>
    %107 = tpu.matmul %105, %106, %cst_47 {dimension_numbers = #tpu.dot_dimension_numbers<[1], [0], [0], [1], [0, 0, 1, 1], [], []>, precision = #tpu.contract_precision<fp32>} : vector<97x16xf32>, vector<16x16xf32>, vector<97x16xf32> -> vector<97x16xf32>
    %c0_48 = arith.constant 0 : index
    %c0_49 = arith.constant 0 : index
    %108 = vector.load %arg11[%c0_48, %c0_49] : memref<1x16xf32, #tpu.memory_space<vmem>>, vector<1x16xf32>
    %109 = vector.broadcast %108 : vector<1x16xf32> to vector<97x16xf32>
    %110 = arith.addf %107, %109 : vector<97x16xf32>
    %111 = arith.addf %65, %110 : vector<97x16xf32>
    %112 = vector.broadcast %17 : vector<97x1xf32> to vector<97x16xf32>
    %113 = arith.mulf %111, %112 : vector<97x16xf32>
    %cst_50 = arith.constant 0.000000e+00 : f32
    %114 = vector.broadcast %cst_50 : f32 to vector<97x16xf32>
    %115 = arith.cmpf ogt, %113, %114 : vector<97x16xf32>
    %cst_51 = arith.constant 0.000000e+00 : f32
    %116 = vector.broadcast %cst_51 : f32 to vector<97x16xf32>
    %117 = arith.minimumf %113, %116 : vector<97x16xf32>
    %118 = math.exp %117 : vector<97x16xf32>
    %cst_52 = arith.constant 1.000000e+00 : f32
    %119 = vector.broadcast %cst_52 : f32 to vector<97x16xf32>
    %120 = arith.subf %118, %119 : vector<97x16xf32>
    %121 = arith.select %115, %113, %120 : vector<97x16xi1>, vector<97x16xf32>
    %cst_53 = arith.constant 0.000000e+00 : f32
    %122 = vector.broadcast %cst_53 : f32 to vector<54x16xf32>
    %123 = vector.extract_strided_slice %121 {offsets = [0, 0], sizes = [43, 16], strides = [1, 1]} : vector<97x16xf32> to vector<43x16xf32>
    %124 = tpu.concatenate %122, %123 in 0 : vector<54x16xf32>, vector<43x16xf32> -> vector<97x16xf32>
    %cst_54 = arith.constant 0.000000e+00 : f32
    %125 = vector.broadcast %cst_54 : f32 to vector<45x16xf32>
    %126 = vector.extract_strided_slice %121 {offsets = [0, 0], sizes = [52, 16], strides = [1, 1]} : vector<97x16xf32> to vector<52x16xf32>
    %127 = tpu.concatenate %125, %126 in 0 : vector<45x16xf32>, vector<52x16xf32> -> vector<97x16xf32>
    %cst_55 = arith.constant 0.000000e+00 : f32
    %128 = vector.broadcast %cst_55 : f32 to vector<36x16xf32>
    %129 = vector.extract_strided_slice %121 {offsets = [0, 0], sizes = [61, 16], strides = [1, 1]} : vector<97x16xf32> to vector<61x16xf32>
    %130 = tpu.concatenate %128, %129 in 0 : vector<36x16xf32>, vector<61x16xf32> -> vector<97x16xf32>
    %cst_56 = arith.constant 0.000000e+00 : f32
    %131 = vector.broadcast %cst_56 : f32 to vector<27x16xf32>
    %132 = vector.extract_strided_slice %121 {offsets = [0, 0], sizes = [70, 16], strides = [1, 1]} : vector<97x16xf32> to vector<70x16xf32>
    %133 = tpu.concatenate %131, %132 in 0 : vector<27x16xf32>, vector<70x16xf32> -> vector<97x16xf32>
    %cst_57 = arith.constant 0.000000e+00 : f32
    %134 = vector.broadcast %cst_57 : f32 to vector<18x16xf32>
    %135 = vector.extract_strided_slice %121 {offsets = [0, 0], sizes = [79, 16], strides = [1, 1]} : vector<97x16xf32> to vector<79x16xf32>
    %136 = tpu.concatenate %134, %135 in 0 : vector<18x16xf32>, vector<79x16xf32> -> vector<97x16xf32>
    %cst_58 = arith.constant 0.000000e+00 : f32
    %137 = vector.broadcast %cst_58 : f32 to vector<9x16xf32>
    %138 = vector.extract_strided_slice %121 {offsets = [0, 0], sizes = [88, 16], strides = [1, 1]} : vector<97x16xf32> to vector<88x16xf32>
    %139 = tpu.concatenate %137, %138 in 0 : vector<9x16xf32>, vector<88x16xf32> -> vector<97x16xf32>
    %140 = tpu.concatenate %124, %127, %130, %133, %136, %139, %121 in 1 : vector<97x16xf32>, vector<97x16xf32>, vector<97x16xf32>, vector<97x16xf32>, vector<97x16xf32>, vector<97x16xf32>, vector<97x16xf32> -> vector<97x112xf32>
    %c0_59 = arith.constant 0 : index
    %c0_60 = arith.constant 0 : index
    %141 = vector.load %arg12[%c0_59, %c0_60] : memref<112x16xf32, #tpu.memory_space<vmem>>, vector<112x16xf32>
    %cst_61 = arith.constant dense<0.000000e+00> : vector<97x16xf32>
    %142 = tpu.matmul %140, %141, %cst_61 {dimension_numbers = #tpu.dot_dimension_numbers<[1], [0], [0], [1], [0, 0, 1, 1], [], []>, precision = #tpu.contract_precision<fp32>} : vector<97x112xf32>, vector<112x16xf32>, vector<97x16xf32> -> vector<97x16xf32>
    %c0_62 = arith.constant 0 : index
    %c0_63 = arith.constant 0 : index
    %143 = vector.load %arg13[%c0_62, %c0_63] : memref<1x16xf32, #tpu.memory_space<vmem>>, vector<1x16xf32>
    %144 = vector.broadcast %143 : vector<1x16xf32> to vector<97x16xf32>
    %145 = arith.addf %142, %144 : vector<97x16xf32>
    %cst_64 = arith.constant 0.000000e+00 : f32
    %146 = vector.broadcast %cst_64 : f32 to vector<97x16xf32>
    %147 = arith.cmpf ogt, %145, %146 : vector<97x16xf32>
    %cst_65 = arith.constant 0.000000e+00 : f32
    %148 = vector.broadcast %cst_65 : f32 to vector<97x16xf32>
    %149 = arith.minimumf %145, %148 : vector<97x16xf32>
    %150 = math.exp %149 : vector<97x16xf32>
    %cst_66 = arith.constant 1.000000e+00 : f32
    %151 = vector.broadcast %cst_66 : f32 to vector<97x16xf32>
    %152 = arith.subf %150, %151 : vector<97x16xf32>
    %153 = arith.select %147, %145, %152 : vector<97x16xi1>, vector<97x16xf32>
    %c0_67 = arith.constant 0 : index
    %c0_68 = arith.constant 0 : index
    %154 = vector.load %arg14[%c0_67, %c0_68] : memref<16x16xf32, #tpu.memory_space<vmem>>, vector<16x16xf32>
    %cst_69 = arith.constant dense<0.000000e+00> : vector<97x16xf32>
    %155 = tpu.matmul %153, %154, %cst_69 {dimension_numbers = #tpu.dot_dimension_numbers<[1], [0], [0], [1], [0, 0, 1, 1], [], []>, precision = #tpu.contract_precision<fp32>} : vector<97x16xf32>, vector<16x16xf32>, vector<97x16xf32> -> vector<97x16xf32>
    %c0_70 = arith.constant 0 : index
    %c0_71 = arith.constant 0 : index
    %156 = vector.load %arg15[%c0_70, %c0_71] : memref<1x16xf32, #tpu.memory_space<vmem>>, vector<1x16xf32>
    %157 = vector.broadcast %156 : vector<1x16xf32> to vector<97x16xf32>
    %158 = arith.addf %155, %157 : vector<97x16xf32>
    %159 = arith.addf %113, %158 : vector<97x16xf32>
    %160 = vector.broadcast %17 : vector<97x1xf32> to vector<97x16xf32>
    %161 = arith.mulf %159, %160 : vector<97x16xf32>
    %cst_72 = arith.constant 0.000000e+00 : f32
    %162 = vector.broadcast %cst_72 : f32 to vector<97x16xf32>
    %163 = arith.cmpf ogt, %161, %162 : vector<97x16xf32>
    %cst_73 = arith.constant 0.000000e+00 : f32
    %164 = vector.broadcast %cst_73 : f32 to vector<97x16xf32>
    %165 = arith.minimumf %161, %164 : vector<97x16xf32>
    %166 = math.exp %165 : vector<97x16xf32>
    %cst_74 = arith.constant 1.000000e+00 : f32
    %167 = vector.broadcast %cst_74 : f32 to vector<97x16xf32>
    %168 = arith.subf %166, %167 : vector<97x16xf32>
    %169 = arith.select %163, %161, %168 : vector<97x16xi1>, vector<97x16xf32>
    %c0_75 = arith.constant 0 : index
    %c0_76 = arith.constant 0 : index
    %170 = vector.load %arg19[%c0_75, %c0_76] : memref<97x16xf32, #tpu.memory_space<vmem>>, vector<97x16xf32>
    tpu.vector_store %arg19[%c0_75, %c0_76], %169 {strides = array<i32>} : memref<97x16xf32, #tpu.memory_space<vmem>>, vector<97x16xf32>,
    %c78 = arith.constant 78 : index
    %c0_77 = arith.constant 0 : index
    %171 = tpu.strided_load %arg19[%c78, %c0_77] {strides = array<i32: 2, 1>} : memref<97x16xf32, #tpu.memory_space<vmem>>, vector<8x16xf32>
    %c79 = arith.constant 79 : index
    %c0_78 = arith.constant 0 : index
    %172 = tpu.strided_load %arg19[%c79, %c0_78] {strides = array<i32: 2, 1>} : memref<97x16xf32, #tpu.memory_space<vmem>>, vector<8x16xf32>
    %c80 = arith.constant 80 : index
    %c0_79 = arith.constant 0 : index
    %173 = tpu.strided_load %arg19[%c80, %c0_79] {strides = array<i32: 2, 1>} : memref<97x16xf32, #tpu.memory_space<vmem>>, vector<8x16xf32>
    %c81 = arith.constant 81 : index
    %c0_80 = arith.constant 0 : index
    %174 = tpu.strided_load %arg19[%c81, %c0_80] {strides = array<i32: 2, 1>} : memref<97x16xf32, #tpu.memory_space<vmem>>, vector<8x16xf32>
    %175 = tpu.concatenate %171, %172, %173, %174 in 1 : vector<8x16xf32>, vector<8x16xf32>, vector<8x16xf32>, vector<8x16xf32> -> vector<8x64xf32>
    %c0_81 = arith.constant 0 : index
    %c0_82 = arith.constant 0 : index
    %176 = vector.load %arg16[%c0_81, %c0_82] : memref<64x32xf32, #tpu.memory_space<vmem>>, vector<64x32xf32>
    %cst_83 = arith.constant dense<0.000000e+00> : vector<8x32xf32>
    %177 = tpu.matmul %175, %176, %cst_83 {dimension_numbers = #tpu.dot_dimension_numbers<[1], [0], [0], [1], [0, 0, 1, 1], [], []>, precision = #tpu.contract_precision<fp32>} : vector<8x64xf32>, vector<64x32xf32>, vector<8x32xf32> -> vector<8x32xf32>
    %c0_84 = arith.constant 0 : index
    %c0_85 = arith.constant 0 : index
    %178 = vector.load %arg17[%c0_84, %c0_85] : memref<1x32xf32, #tpu.memory_space<vmem>>, vector<1x32xf32>
    %179 = vector.broadcast %178 : vector<1x32xf32> to vector<8x32xf32>
    %180 = arith.addf %177, %179 : vector<8x32xf32>
    %c0_86 = arith.constant 0 : index
    %c0_87 = arith.constant 0 : index
    %c0_88 = arith.constant 0 : index
    %181 = vector.load %arg18[%c0_86, %c0_87, %c0_88] : memref<1x8x32xf32, #tpu.memory_space<vmem>>, vector<1x8x32xf32>
    %182 = vector.shape_cast %181 : vector<1x8x32xf32> to vector<8x32xf32>
    %183 = vector.shape_cast %180 : vector<8x32xf32> to vector<1x8x32xf32>
    tpu.vector_store %arg18[%c0_86, %c0_87, %c0_88], %183 {strides = array<i32>} : memref<1x8x32xf32, #tpu.memory_space<vmem>>, vector<1x8x32xf32>,
    return
  }
  func.func @transform_0(%arg0: i32, %arg1: i32) -> (i32, i32, i32) {
    %c0_i32 = arith.constant 0 : i32
    %c0_i32_0 = arith.constant 0 : i32
    return %arg0, %arg1, %c0_i32 : i32, i32, i32
  }
  func.func @transform_1(%arg0: i32, %arg1: i32) -> (i32, i32, i32) {
    %c1_i32 = arith.constant 1 : i32
    %0 = arith.subi %arg1, %c1_i32 : i32
    %c0_i32 = arith.constant 0 : i32
    %1 = arith.maxsi %0, %c0_i32 : i32
    %c0_i32_0 = arith.constant 0 : i32
    %c0_i32_1 = arith.constant 0 : i32
    return %arg0, %1, %c0_i32_0 : i32, i32, i32
  }
  func.func @transform_2(%arg0: i32, %arg1: i32) -> (i32, i32) {
    %c0_i32 = arith.constant 0 : i32
    %c0_i32_0 = arith.constant 0 : i32
    %c0_i32_1 = arith.constant 0 : i32
    return %c0_i32, %c0_i32_0 : i32, i32
  }
  func.func @transform_3(%arg0: i32, %arg1: i32) -> (i32, i32) {
    %c0_i32 = arith.constant 0 : i32
    %c0_i32_0 = arith.constant 0 : i32
    %c0_i32_1 = arith.constant 0 : i32
    return %c0_i32, %c0_i32_0 : i32, i32
  }
  func.func @transform_4(%arg0: i32, %arg1: i32) -> (i32, i32) {
    %c0_i32 = arith.constant 0 : i32
    %c0_i32_0 = arith.constant 0 : i32
    %c0_i32_1 = arith.constant 0 : i32
    return %c0_i32, %c0_i32_0 : i32, i32
  }
  func.func @transform_5(%arg0: i32, %arg1: i32) -> (i32, i32) {
    %c0_i32 = arith.constant 0 : i32
    %c0_i32_0 = arith.constant 0 : i32
    %c0_i32_1 = arith.constant 0 : i32
    return %c0_i32, %c0_i32_0 : i32, i32
  }
  func.func @transform_6(%arg0: i32, %arg1: i32) -> (i32, i32) {
    %c0_i32 = arith.constant 0 : i32
    %c0_i32_0 = arith.constant 0 : i32
    %c0_i32_1 = arith.constant 0 : i32
    return %c0_i32, %c0_i32_0 : i32, i32
  }
  func.func @transform_7(%arg0: i32, %arg1: i32) -> (i32, i32) {
    %c0_i32 = arith.constant 0 : i32
    %c0_i32_0 = arith.constant 0 : i32
    %c0_i32_1 = arith.constant 0 : i32
    return %c0_i32, %c0_i32_0 : i32, i32
  }
  func.func @transform_8(%arg0: i32, %arg1: i32) -> (i32, i32) {
    %c0_i32 = arith.constant 0 : i32
    %c0_i32_0 = arith.constant 0 : i32
    %c0_i32_1 = arith.constant 0 : i32
    return %c0_i32, %c0_i32_0 : i32, i32
  }
  func.func @transform_9(%arg0: i32, %arg1: i32) -> (i32, i32) {
    %c0_i32 = arith.constant 0 : i32
    %c0_i32_0 = arith.constant 0 : i32
    %c0_i32_1 = arith.constant 0 : i32
    return %c0_i32, %c0_i32_0 : i32, i32
  }
  func.func @transform_10(%arg0: i32, %arg1: i32) -> (i32, i32) {
    %c0_i32 = arith.constant 0 : i32
    %c0_i32_0 = arith.constant 0 : i32
    %c0_i32_1 = arith.constant 0 : i32
    return %c0_i32, %c0_i32_0 : i32, i32
  }
  func.func @transform_11(%arg0: i32, %arg1: i32) -> (i32, i32) {
    %c0_i32 = arith.constant 0 : i32
    %c0_i32_0 = arith.constant 0 : i32
    %c0_i32_1 = arith.constant 0 : i32
    return %c0_i32, %c0_i32_0 : i32, i32
  }
  func.func @transform_12(%arg0: i32, %arg1: i32) -> (i32, i32) {
    %c0_i32 = arith.constant 0 : i32
    %c0_i32_0 = arith.constant 0 : i32
    %c0_i32_1 = arith.constant 0 : i32
    return %c0_i32, %c0_i32_0 : i32, i32
  }
  func.func @transform_13(%arg0: i32, %arg1: i32) -> (i32, i32) {
    %c0_i32 = arith.constant 0 : i32
    %c0_i32_0 = arith.constant 0 : i32
    %c0_i32_1 = arith.constant 0 : i32
    return %c0_i32, %c0_i32_0 : i32, i32
  }
  func.func @transform_14(%arg0: i32, %arg1: i32) -> (i32, i32) {
    %c0_i32 = arith.constant 0 : i32
    %c0_i32_0 = arith.constant 0 : i32
    %c0_i32_1 = arith.constant 0 : i32
    return %c0_i32, %c0_i32_0 : i32, i32
  }
  func.func @transform_15(%arg0: i32, %arg1: i32) -> (i32, i32) {
    %c0_i32 = arith.constant 0 : i32
    %c0_i32_0 = arith.constant 0 : i32
    %c0_i32_1 = arith.constant 0 : i32
    return %c0_i32, %c0_i32_0 : i32, i32
  }
  func.func @transform_16(%arg0: i32, %arg1: i32) -> (i32, i32, i32) {
    %c0_i32 = arith.constant 0 : i32
    %c0_i32_0 = arith.constant 0 : i32
    return %arg0, %arg1, %c0_i32 : i32, i32, i32
  }
}

</mosaic_0001>

<bundles_post_ra>
// kernel: tpu_custom_call.1
= control target key start
LH: loop header
LB: loop body
LE: loop exit
PB: predicated region body
PF: predicated region fallthrough
CT: control target
= control target key end

     0   :  { %s10782_s0 = inlined_call_operand.vmem [shape: f32[2,16,16], index: 0, kind: input, shape index: {}]   ;;  %s10783_s1 = inlined_call_operand.vmem [shape: f32[2,16,16], index: 1, kind: input, shape index: {}]   ;;  %s10784_s2 = inlined_call_operand.vmem [shape: f32[112,16], index: 2, kind: input, shape index: {}]   ;;  %s10785_s3 = inlined_call_operand.vmem [shape: f32[1,16], index: 3, kind: input, shape index: {}]   ;;  %s10786_s4 = inlined_call_operand.vmem [shape: f32[16,16], index: 4, kind: input, shape index: {}]   ;;  %s10787_s5 = inlined_call_operand.vmem [shape: f32[1,16], index: 5, kind: input, shape index: {}]   ;;  %s10788_s6 = inlined_call_operand.vmem [shape: f32[112,16], index: 6, kind: input, shape index: {}]   ;;  %s10789_s7 = inlined_call_operand.vmem [shape: f32[1,16], index: 7, kind: input, shape index: {}]   ;;  %s10790_s8 = inlined_call_operand.vmem [shape: f32[16,16], index: 8, kind: input, shape index: {}]   ;;  %s10791_s9 = inlined_call_operand.vmem [shape: f32[1,16], index: 9, kind: input, shape index: {}]   ;;  %s10792_s10 = inlined_call_operand.vmem [shape: f32[112,16], index: 10, kind: input, shape index: {}]   ;;  %s10793_s11 = inlined_call_operand.vmem [shape: f32[1,16], index: 11, kind: input, shape index: {}]   ;;  %s10794_s12 = inlined_call_operand.vmem [shape: f32[16,16], index: 12, kind: input, shape index: {}]   ;;  %s10795_s13 = inlined_call_operand.vmem [shape: f32[1,16], index: 13, kind: input, shape index: {}]   ;;  %s10796_s14 = inlined_call_operand.vmem [shape: f32[64,32], index: 14, kind: input, shape index: {}]   ;;  %s10797_s15 = inlined_call_operand.vmem [shape: f32[1,32], index: 15, kind: input, shape index: {}]   ;;  %s10798_s16 = inlined_call_operand.hbm [shape: f32[2,8,32], index: 16, kind: output, shape index: {}]  }
   0x1   :  { %10875 = sst [smem:[#allocation27_spill]] %s10782_s0 }
   0x2   :  { %10876 = sst [smem:[#allocation28_spill]] %s10783_s1 }
   0x3   :  { %10877 = sst [smem:[#allocation29_spill]] %s10784_s2 }
   0x4   :  { %21 = vsyncpa [#allocation4], 0 }
   0x5   :  { %23 = vsyncpa [#allocation4 + $0x1], 0  ;;  %s7280_s21 = smov 0   ;;  %s7282_s22 = smov 0  }
   0x6   :  { %s7284_s23 = smov 0   ;;  %s7286_s24 = smov 0  }
   0x7   :  { %s7288_s25 = smov 0   ;;  %s7290_s26 = smov 0  }
   0x8 LB: > { %10878 = sst [smem:[#allocation6_spill]] %s7173_s23  ;;  %s6732_s27 = sadd.s32 4294967295, %s7185_s26   ;;  %s7185_s26 = sphi %s7290_s26, %s29_s26   ;;  %s7181_s25 = sphi %s7288_s25, %s11026_s25   ;;  %s7177_s24 = sphi %s7286_s24, %s11025_s24   ;;  %s7173_s23 = sphi %s7284_s23, %s11024_s23   ;;  %s7169_s22 = sphi %s7282_s22, %s11028_s22   ;;  %s7165_s21 = sphi %s7280_s21, %s11027_s21  }
   0x9   : > { %10879 = sst [smem:[#allocation7_spill]] %s7181_s25  ;;  %s6733_s28 = sadd.s32 4294967294, %s7185_s26  }
   0xa   : > { %s41_s29 = sadd.s32 1, %s7181_s25  ;;  %s406_s30 = sadd.s32 1, %s7173_s23 }
   0xb   : > { %p43_p0 = scmp.ge.s32.totalorder %s41_s29, 2  ;;  %p416_p1 = scmp.ne.s32.totalorder %s7173_s23, %s7169_s22 }
   0xc   : > { %p417_p2 = scmp.eq.s32.totalorder %s6732_s27, 1  ;;  %p422_p3 = scmp.ne.s32.totalorder %s7169_s22, %s7165_s21 }
   0xd   : > { %s11030_s29 = smov (%p43_p0, %s41_s29), 0  ;;  %p423_p5 = scmp.eq.s32.totalorder %s6733_s28, 1 }
   0xe   : > { %10880 = sst [smem:[#allocation8_spill]] %s11030_s29  ;;  %p7320_p4 = por %p417_p2, %p416_p1 }
   0xf   : > { %s401_s17 = ssub.s32 %s7181_s25, %s11030_s29  ;;  %p6736_p6 = scmp.ge.s32.totalorder %s7185_s26, 1 }
  0x10   : > { %p404_p7 = scmp.eq.s32.totalorder %s401_s17, 0  ;;  %p7327_p8 = por %p423_p5, %p422_p3 }
  0x11   : > { %p515_p9 = scmp.lt.s32.totalorder %s7185_s26, 3 }
  0x12   : > { %s10882_s18 = scalar_select %p7327_p8, 1, 0 }
  0x13   : > { %s7333_s19 = scalar_select %p404_p7, %s7173_s23, %s406_s30  }
  0x14   : > { %10883 = sst [smem:[#allocation9_spill]] %s10882_s18  ;;  %p516_p10 = pnand %p6736_p6, %p515_p9 }
  0x15   : > { %10884 = sst [smem:[#allocation10_spill]] %s7333_s19 }
  0x16   : > { %519 = sbr.rel (%p516_p10) target bundleno = 2513 (0x9d1), region = 84 }
  0x1b   : > { %vm730_vm0 = vcmask 1044480   ;;  %vm756_vm1 = vcmask 1042432   ;;  %v10815_v0 = vmov 0.0   ;;  %p582_p11 = scmp.lt.s32.totalorder %s7177_s24, 1  ;;  %vm619_vm2 = vcmask 1040384   ;;  %s10799_s20 = smov 48  }
  0x1c   : > { %v731_v1 = vrot.slane %v10815_v0, 3  ;;  %v7337_v2 = vrot.slane %v10815_v0, 5  ;;  %v7340_v3 = vrot.slane %v10815_v0, 7  ;;  %v744_v6 = vrot.slane %v10815_v0, 4  ;;  %s10803_s28 = smov 80   ;;  %s10805_s30 = smov 16  }
  0x1d   : > { %vm743_vm3 = vcmask 1043456   ;;  %v770_v8 = vrot.slane %v10815_v0, 6  ;;  %s7352_s27 = scalar_select %p582_p11, %s7177_s24, 1  ;;  %vm769_vm4 = vcmask 1041408   ;;  %vm711_vm10 = vcmask 1045504  }
  0x1e   : > { %v742_v4 = vsel %vm730_vm0, 0.0, %v731_v1  ;;  %v768_v5 = vsel %vm756_vm1, 0.0, %v7337_v2  ;;  %v793_v9 = vsel %vm619_vm2, 0.0, %v7340_v3  ;;  %v755_v10 = vsel %vm743_vm3, 0.0, %v744_v6  ;;  %s10885_s1 = sld [smem:[#allocation28_spill]]  ;;  %s10889_s19 = smov 48  }
  0x1f   : > { %v6922_v7 = vpack.i.bf16 %v731_v1, %v742_v4  ;;  %839 = vrot.lane.b32.xlu1 %v768_v5, %s10799_s20  ;;  %883 = vrot.lane.b32.xlu2 %v793_v9, %s10803_s28  ;;  %s6829_s17 = sshll.u32 %s7352_s27, 4  ;;  %v781_v13 = vsel %vm769_vm4, 0.0, %v770_v8  ;;  %v6927_v16 = vpack.i.bf16 %v744_v6, %v755_v10  ;;  %s10807_s28 = smov 64   ;;  %vm923_vm11 = vcmask 130048  }
  0x20   : > { %s10809_s27 = smov 96   ;;  %s10892_s2 = sld [smem:[#allocation29_spill]]  ;;  %vm931_vm12 = vcmask 261120   ;;  %vm939_vm13 = vcmask 392192   ;;  %vm947_vm14 = vcmask 523264   ;;  %vm955_vm15 = vcmask 654336  }
  0x21   : > { %6923 = vrot.lane.b32.xlu0 %v6922_v7, %s10805_s30  ;;  %s10886_s30 = sld [smem:[#allocation27_spill]]  ;;  %s10893_s23 = smov 32  }
  0x22   : > { %s6826_s20 = sshll.u32 %s7177_s24, 3 }
  0x24   : > { %s602_s25 = scalar_lea.vmem %s10885_s1, %s6829_s17  ;;  %s10887_s1 = smov 64  }
  0x25   : > { %v612_v11 = vld [vmem:[%s602_s25] sm:$0xff]  ;;  %v613_v12 = vld [vmem:[%s602_s25 + $0x8] sm:$0xff]  ;;  %s10811_s25 = smov 32  }
  0x26   : > { %v615_v14 = vmul.f32 0.0, %v612_v11  ;;  %v616_v15 = vmul.f32 0.0, %v613_v12 }
  0x27   : > { %861 = vrot.lane.b32.xlu1 %v781_v13, %s10807_s28  ;;  %905 = vrot.lane.b32.xlu2 %v10815_v0, %s10809_s27  ;;  %s7377_s28 = scalar_lea.vmem %s10886_s30, %s6829_s17  ;;  %s10888_s27 = smov 80  }
  0x28   : > { %v620_v17 = vrot.slane %v615_v14, 7  ;;  %v621_v18 = vrot.slane %v616_v15, 7  ;;  %v607_v25 = vld [vmem:[%s7377_s28] sm:$0xff]  ;;  %s10890_s30 = smov 16   ;;  %v608_v46 = vld [vmem:[%s7377_s28 + $0x8] sm:$0xff]  ;;  %s10891_s17 = smov 96  }
  0x29   : > { %6928 = vrot.lane.b32.xlu0 %v6927_v16, %s10811_s25  ;;  %v629_v28 = vrot.slane %v607_v25, 7  ;;  %v7417_v49 = vrot.slane %v608_v46, 7  ;;  %v984_v14 = vld [vmem:[%s10892_s2 + $0x68] sm:$0xff]  ;;  %v981_v25 = vld [vmem:[%s10892_s2 + $0x50] sm:$0xff] }
  0x2a   : > { %v7364_v19 = vsel %vm619_vm2, 0.0, %v620_v17  ;;  %v7369_v20 = vsel %vm619_vm2, %v620_v17, %v621_v18  ;;  %v7469_v15 = vand.u32 4294901760, %v984_v14  ;;  %v983_v17 = vld [vmem:[%s10892_s2 + $0x60] sm:$0xff] }
  0x2b   : > { %v681_v21 = vmin.f32 %v7364_v19, 0.0  ;;  %v682_v23 = vmin.f32 %v7369_v20, 0.0  ;;  %vm676_vm5 = vcmp.gt.f32.partialorder %v7364_v19, 0.0  ;;  %v7393_v33 = vsel %vm619_vm2, %v621_v18, %v629_v28  ;;  %v982_v18 = vld [vmem:[%s10892_s2 + $0x58] sm:$0xff] }
  0x2c   : > { %v683_v40 = vmin.f32 %v7393_v33, 0.0  ;;  %vm677_vm6 = vcmp.gt.f32.partialorder %v7369_v20, 0.0  ;;  %v7426_v53 = vsel %vm619_vm2, %v629_v28, %v7417_v49  ;;  %vm678_vm7 = vcmp.gt.f32.partialorder %v7393_v33, 0.0  ;;  %1398 = vmatpush.msra.mxu3 %v7469_v15  ;;  %1014 = vmatpush.msra.mxu0 %v7469_v15 }
  0x2d   : > { %v686_v22 = vmul.f32 1.442695, %v681_v21  ;;  %v688_v24 = vmul.f32 1.442695, %v682_v23  ;;  %v684_v56 = vmin.f32 %v7426_v53, 0.0  ;;  %vm679_vm8 = vcmp.gt.f32.partialorder %v7426_v53, 0.0 }
  0x2e   : > { %v690_v44 = vmul.f32 1.442695, %v683_v40  ;;  %v7482_v23 = vand.u32 4294901760, %v983_v17  ;;  %vm680_vm9 = vcmp.gt.f32.partialorder %v7417_v49, 0.0 }
  0x2f   : > { %6939 = vpow2.f32 %v686_v22  ;;  %863 = vrot.lane.b32.xlu1 %v770_v8, %s10887_s1  ;;  %885 = vrot.lane.b32.xlu2 %v7340_v3, %s10888_s27  ;;  %v692_v60 = vmul.f32 1.442695, %v684_v56  ;;  %v1149_v22 = vsub.f32 %v984_v14, %v7469_v15 }
  0x30   : > { %6941 = vpow2.f32 %v688_v24  ;;  %v7484_v24 = vand.u32 4294901760, %v982_v18  ;;  %1400 = vmatpush.msra.mxu3 %v7482_v23  ;;  %1016 = vmatpush.msra.mxu0 %v7482_v23 }
  0x31   : > { %841 = vrot.lane.b32.xlu0 %v7337_v2, %s10889_s19  ;;  %6943 = vpow2.f32 %v690_v44  ;;  %1289 = vmatpush.msra.mxu2 %v1149_v22 }
  0x32   : > { %6945 = vpow2.f32 %v692_v60  ;;  %1402 = vmatpush.msra.mxu3 %v7484_v24  ;;  %1018 = vmatpush.msra.mxu0 %v7484_v24 }
  0x35   : > { %v6940_v26 = vpop.eup %6939 }
  0x36   : > { %v6742_v27 = vadd.f32 -1.0, %v6940_v26  ;;  %v6942_v34 = vpop.eup %6941  ;;  %v980_v26 = vld [vmem:[%s10892_s2 + $0x48] sm:$0xff] }
  0x37   : > { %v6743_v41 = vadd.f32 -1.0, %v6942_v34  ;;  %v6944_v54 = vpop.eup %6943  ;;  %v7498_v28 = vand.u32 4294901760, %v980_v26  ;;  %v1161_v34 = vsub.f32 %v982_v18, %v7484_v24 }
  0x38   : > { %v7387_v29 = vsel %vm676_vm5, %v7364_v19, %v6742_v27  ;;  %v6744_v59 = vadd.f32 -1.0, %v6944_v54  ;;  %v7496_v27 = vand.u32 4294901760, %v981_v25  ;;  %v979_v54 = vld [vmem:[%s10892_s2 + $0x40] sm:$0xff]  ;;  %vm963_vm5 = vcmask 785408  }
  0x39   : > { %v733_v30 = vrot.slane %v7387_v29, 3  ;;  %v746_v31 = vrot.slane %v7387_v29, 4  ;;  %v759_v32 = vrot.slane %v7387_v29, 5  ;;  %v772_v37 = vrot.slane %v7387_v29, 6 }
  0x3a   : > { %v784_v38 = vrot.slane %v7387_v29, 7  ;;  %v7410_v45 = vsel %vm677_vm6, %v7369_v20, %v6743_v41  ;;  %v7439_v63 = vsel %vm678_vm7, %v7393_v33, %v6744_v59  ;;  %v7518_v41 = vand.u32 4294901760, %v1161_v34  ;;  %1404 = vmatpush.msra.mxu3 %v7496_v27  ;;  %v978_v59 = vld [vmem:[%s10892_s2 + $0x38] sm:$0xff]  ;;  %1020 = vmatpush.msra.mxu0 %v7496_v27 }
  0x3b   : > { %v734_v35 = vsel %vm730_vm0, %v731_v1, %v733_v30  ;;  %v747_v36 = vsel %vm743_vm3, %v744_v6, %v746_v31  ;;  %v760_v39 = vsel %vm756_vm1, %v7337_v2, %v759_v32  ;;  %v773_v42 = vsel %vm769_vm4, %v770_v8, %v772_v37  ;;  %v6946_v6 = vpop.eup %6945 }
  0x3c   : > { %799 = vrot.lane.b32.xlu0 %v734_v35, %s10890_s30  ;;  %821 = vrot.lane.b32.xlu1 %v747_v36, %s10811_s25  ;;  %v785_v43 = vsel %vm619_vm2, %v7340_v3, %v784_v38  ;;  %v735_v47 = vrot.slane %v7410_v45, 3  ;;  %v748_v48 = vrot.slane %v7410_v45, 4  ;;  %v761_v50 = vrot.slane %v7410_v45, 5 }
  0x3d   : > { %843 = vrot.lane.b32.xlu2 %v760_v39, %s10889_s19  ;;  %v774_v57 = vrot.slane %v7410_v45, 6  ;;  %v786_v58 = vrot.slane %v7410_v45, 7  ;;  %v737_v1 = vrot.slane %v7439_v63, 3  ;;  %v750_v2 = vrot.slane %v7439_v63, 4  ;;  %1406 = vmatpush.msra.mxu3 %v7498_v28 }
  0x3e   : > { %v736_v51 = vsel %vm730_vm0, %v733_v30, %v735_v47  ;;  %v749_v52 = vsel %vm743_vm3, %v746_v31, %v748_v48  ;;  %v762_v55 = vsel %vm756_vm1, %v759_v32, %v761_v50  ;;  %v763_v3 = vrot.slane %v7439_v63, 5  ;;  %1022 = vmatpush.msra.mxu0 %v7498_v28 }
  0x3f   : > { %v775_v61 = vsel %vm769_vm4, %v772_v37, %v774_v57  ;;  %v787_v62 = vsel %vm619_vm2, %v784_v38, %v786_v58  ;;  %v738_v4 = vsel %vm730_vm0, %v735_v47, %v737_v1  ;;  %v751_v5 = vsel %vm743_vm3, %v748_v48, %v750_v2 }
  0x40   : > { %v764_v7 = vsel %vm756_vm1, %v761_v50, %v763_v3  ;;  %v776_v8 = vrot.slane %v7439_v63, 6  ;;  %v788_v9 = vrot.slane %v7439_v63, 7  ;;  %v6745_v10 = vadd.f32 -1.0, %v6946_v6 }
  0x41   : > { %v7501_v31 = vand.u32 4294901760, %v1149_v22  ;;  %v1155_v32 = vsub.f32 %v983_v17, %v7482_v23  ;;  %v1167_v36 = vsub.f32 %v981_v25, %v7496_v27  ;;  %v1173_v37 = vsub.f32 %v980_v26, %v7498_v28  ;;  %v975_v17 = vld [vmem:[%s10892_s2 + $0x20] sm:$0xff] }
  0x42   : > { %v777_v11 = vsel %vm769_vm4, %v774_v57, %v776_v8  ;;  %v789_v12 = vsel %vm619_vm2, %v786_v58, %v788_v9  ;;  %v7464_v13 = vsel %vm679_vm8, %v7426_v53, %v6745_v10  ;;  %v1163_v48 = vsub.f32 %v1161_v34, %v7518_v41 }
  0x43   : > { %v739_v16 = vrot.slane %v7464_v13, 3  ;;  %v752_v21 = vrot.slane %v7464_v13, 4  ;;  %v765_v30 = vrot.slane %v7464_v13, 5  ;;  %v1151_v39 = vsub.f32 %v1149_v22, %v7501_v31  ;;  %1292 = vmatpush.msra.mxu2 %v1155_v32 }
  0x44   : > { %865 = vrot.lane.b32.xlu0 %v773_v42, %s10887_s1  ;;  %887 = vrot.lane.b32.xlu1 %v785_v43, %s10888_s27  ;;  %v7516_v40 = vand.u32 4294901760, %v1155_v32  ;;  %v7521_v42 = vand.u32 4294901760, %v1167_v36  ;;  %v7523_v43 = vand.u32 4294901760, %v1173_v37  ;;  %v778_v50 = vrot.slane %v7464_v13, 6 }
  0x45   : > { %907 = vrot.lane.b32.xlu2 %v7387_v29, %s10891_s17  ;;  %v740_v35 = vsel %vm730_vm0, %v737_v1, %v739_v16  ;;  %v753_v38 = vsel %vm743_vm3, %v750_v2, %v752_v21  ;;  %v766_v44 = vsel %vm756_vm1, %v763_v3, %v765_v30  ;;  %v1152_v46 = vand.u32 4294901760, %v1151_v39  ;;  %1295 = vmatpush.msra.mxu2 %v1161_v34  ;;  %v977_v3 = vld [vmem:[%s10892_s2 + $0x30] sm:$0xff] }
  0x46   : > { %v1157_v47 = vsub.f32 %v1155_v32, %v7516_v40  ;;  %v1164_v56 = vand.u32 4294901760, %v1163_v48  ;;  %v1175_v57 = vsub.f32 %v1173_v37, %v7523_v43  ;;  %v7541_v58 = vand.u32 4294901760, %v979_v54 }
  0x47   : > { %1153 = vmatpush.msra.mxu1 %v1152_v46  ;;  %1298 = vmatpush.msra.mxu2 %v1167_v36  ;;  %v779_v1 = vsel %vm769_vm4, %v776_v8, %v778_v50  ;;  %v976_v8 = vld [vmem:[%s10892_s2 + $0x28] sm:$0xff]  ;;  %v7595_v34 = vand.u32 4294901760, %v975_v17  ;;  %v973_v46 = vld [vmem:[%s10892_s2 + $0x10] sm:$0xff]  ;;  %vm989_vm6 = vcmask 916480  }
  0x48   : > { %1408 = vmatpush.msra.mxu3 %v7541_v58  ;;  %v7581_v14 = vand.u32 4294901760, %v976_v8  ;;  %1024 = vmatpush.msra.mxu0 %v7541_v58 }
  0x49   : > { %1301 = vmatpush.msra.mxu2 %v1173_v37 }
  0x4a   : > { %v1197_v32 = vsub.f32 %v976_v8, %v7581_v14 }
  0x4c   : > { %801 = vrot.lane.b32.xlu0 %v736_v51, %s10890_s30  ;;  %823 = vrot.lane.b32.xlu1 %v749_v52, %s10811_s25  ;;  %v790_v51 = vrot.slane %v7464_v13, 7  ;;  %v1169_v52 = vsub.f32 %v1167_v36, %v7521_v42  ;;  %v7604_v39 = vand.u32 4294901760, %v1197_v32 }
  0x4d   : > { %845 = vrot.lane.b32.xlu2 %v762_v55, %s10889_s19  ;;  %v1158_v55 = vand.u32 4294901760, %v1157_v47 }
  0x4e   : > { %v1170_v60 = vand.u32 4294901760, %v1169_v52  ;;  %v791_v2 = vsel %vm619_vm2, %v788_v9, %v790_v51  ;;  %v685_v9 = vmin.f32 %v7417_v49, 0.0  ;;  %v7613_v52 = vand.u32 4294901760, %v973_v46 }
  0x4f   : > { %1159 = vmatpush.msra.mxu1 %v1158_v55 }
  0x50   : > { %v694_v18 = vmul.f32 1.442695, %v685_v9 }
  0x51   : > { %1165 = vmatpush.msra.mxu1 %v1164_v56  ;;  %v972_v56 = vld [vmem:[%s10892_s2 + $0x8] sm:$0xff] }
  0x52   : > { %6947 = vpow2.f32 %v694_v18 }
  0x53   : > { %1171 = vmatpush.msra.mxu1 %v1170_v60  ;;  %v7626_v60 = vand.u32 4294901760, %v972_v56 }
  0x54   : > { %867 = vrot.lane.b32.xlu0 %v775_v61, %s10887_s1  ;;  %889 = vrot.lane.b32.xlu1 %v787_v62, %s10888_s27  ;;  %v1179_v61 = vsub.f32 %v979_v54, %v7541_v58  ;;  %v7549_v62 = vand.u32 4294901760, %v978_v59  ;;  %v1199_v54 = vsub.f32 %v1197_v32, %v7604_v39 }
  0x55   : > { %909 = vrot.lane.b32.xlu2 %v7410_v45, %s10891_s17 }
  0x56   : > { %v1185_v6 = vsub.f32 %v978_v59, %v7549_v62  ;;  %1304 = vmatpush.msra.mxu2 %v1179_v61  ;;  %1410 = vmatpush.msra.mxu3 %v7549_v62  ;;  %v1215_v59 = vsub.f32 %v973_v46, %v7613_v52 }
  0x57   : > { %1026 = vmatpush.msra.mxu0 %v7549_v62 }
  0x58   : > { %1307 = vmatpush.msra.mxu2 %v1185_v6 }
  0x5c   : > { %803 = vrot.lane.b32.xlu0 %v738_v4, %s10890_s30  ;;  %825 = vrot.lane.b32.xlu1 %v751_v5, %s10811_s25  ;;  %v1176_v4 = vand.u32 4294901760, %v1175_v57  ;;  %v7566_v5 = vand.u32 4294901760, %v1179_v61 }
  0x5d   : > { %847 = vrot.lane.b32.xlu2 %v764_v7, %s10889_s19  ;;  %v7569_v7 = vand.u32 4294901760, %v977_v3 }
  0x5e   : > { %v1181_v10 = vsub.f32 %v1179_v61, %v7566_v5  ;;  %1177 = vmatpush.msra.mxu1 %v1176_v4  ;;  %v6948_v61 = vpop.eup %6947  ;;  %v7636_v4 = vand.u32 4294901760, %v1215_v59 }
  0x5f   : > { %1412 = vmatpush.msra.mxu3 %v7569_v7  ;;  %1028 = vmatpush.msra.mxu0 %v7569_v7  ;;  %v6746_v9 = vadd.f32 -1.0, %v6948_v61 }
  0x60   : > { %v1182_v22 = vand.u32 4294901760, %v1181_v10 }
  0x61   : > { %1414 = vmatpush.msra.mxu3 %v7581_v14  ;;  %1030 = vmatpush.msra.mxu0 %v7581_v14 }
  0x62   : > { %1183 = vmatpush.msra.mxu1 %v1182_v22 }
  0x63   : > { %1416 = vmatpush.msra.mxu3 %v7595_v34  ;;  %1032 = vmatpush.msra.mxu0 %v7595_v34 }
  0x64   : > { %869 = vrot.lane.b32.xlu0 %v777_v11, %s10887_s1  ;;  %891 = vrot.lane.b32.xlu1 %v789_v12, %s10888_s27  ;;  %v7578_v11 = vand.u32 4294901760, %v1185_v6  ;;  %v1191_v12 = vsub.f32 %v977_v3, %v7569_v7 }
  0x65   : > { %911 = vrot.lane.b32.xlu2 %v7439_v63, %s10891_s17 }
  0x66   : > { %v1187_v25 = vsub.f32 %v1185_v6, %v7578_v11  ;;  %v7589_v26 = vand.u32 4294901760, %v1191_v12  ;;  %1310 = vmatpush.msra.mxu2 %v1191_v12  ;;  %v1221_v6 = vsub.f32 %v972_v56, %v7626_v60 }
  0x68   : > { %v1188_v36 = vand.u32 4294901760, %v1187_v25  ;;  %v1193_v37 = vsub.f32 %v1191_v12, %v7589_v26  ;;  %1313 = vmatpush.msra.mxu2 %v1197_v32  ;;  %v1217_v12 = vsub.f32 %v1215_v59, %v7636_v4  ;;  %v705_v32 = vsel %vm680_vm9, %v7417_v49, %v6746_v9 }
  0x6a   : > { %1189 = vmatpush.msra.mxu1 %v1188_v36  ;;  %v1194_v47 = vand.u32 4294901760, %v1193_v37 }
  0x6c   : > { %805 = vrot.lane.b32.xlu0 %v740_v35, %s10890_s30  ;;  %827 = vrot.lane.b32.xlu1 %v753_v38, %s10893_s23  ;;  %v974_v35 = vld [vmem:[%s10892_s2 + $0x18] sm:$0xff] }
  0x6d   : > { %849 = vrot.lane.b32.xlu2 %v766_v44, %s10889_s19  ;;  %v7602_v38 = vand.u32 4294901760, %v974_v35  ;;  %v1203_v44 = vsub.f32 %v975_v17, %v7595_v34  ;;  %1195 = vmatpush.msra.mxu1 %v1194_v47  ;;  %v7651_v17 = vand.u32 4294901760, %v1221_v6 }
  0x6f   : > { %v1209_v48 = vsub.f32 %v974_v35, %v7602_v38  ;;  %v7616_v55 = vand.u32 4294901760, %v1203_v44  ;;  %1316 = vmatpush.msra.mxu2 %v1203_v44  ;;  %1418 = vmatpush.msra.mxu3 %v7602_v38  ;;  %v1223_v22 = vsub.f32 %v1221_v6, %v7651_v17 }
  0x70   : > { %1034 = vmatpush.msra.mxu0 %v7602_v38 }
  0x71   : > { %v7622_v57 = vand.u32 4294901760, %v1209_v48  ;;  %1319 = vmatpush.msra.mxu2 %v1209_v48  ;;  %1420 = vmatpush.msra.mxu3 %v7613_v52  ;;  %v1224_v35 = vand.u32 4294901760, %v1223_v22 }
  0x72   : > { %1036 = vmatpush.msra.mxu0 %v7613_v52 }
  0x73   : > { %v1211_v3 = vsub.f32 %v1209_v48, %v7622_v57  ;;  %1322 = vmatpush.msra.mxu2 %v1215_v59  ;;  %1422 = vmatpush.msra.mxu3 %v7626_v60 }
  0x74   : > { %871 = vrot.lane.b32.xlu0 %v779_v1, %s10887_s1  ;;  %893 = vrot.lane.b32.xlu1 %v791_v2, %s10888_s27  ;;  %v1200_v1 = vand.u32 4294901760, %v1199_v54  ;;  %v1205_v2 = vsub.f32 %v1203_v44, %v7616_v55 }
  0x75   : > { %913 = vrot.lane.b32.xlu2 %v7464_v13, %s10891_s17  ;;  %v1212_v10 = vand.u32 4294901760, %v1211_v3  ;;  %1325 = vmatpush.msra.mxu2 %v1221_v6 }
  0x76   : > { %1201 = vmatpush.msra.mxu1 %v1200_v1  ;;  %v1206_v8 = vand.u32 4294901760, %v1205_v2  ;;  %1038 = vmatpush.msra.mxu0 %v7626_v60 }
  0x78   : > { %1207 = vmatpush.msra.mxu1 %v1206_v8 }
  0x7a   : > { %1213 = vmatpush.msra.mxu1 %v1212_v10 }
  0x7c   : > { %807 = vrot.lane.b32.xlu0 %v739_v16, %s10890_s30  ;;  %829 = vrot.lane.b32.xlu1 %v752_v21, %s10893_s23  ;;  %v971_v16 = vld [vmem:[%s10892_s2] sm:$0xff]  ;;  %v7646_v21 = vpop.permute.xlu2 %883 }
  0x7d   : > { %851 = vrot.lane.b32.xlu2 %v765_v30, %s10889_s19  ;;  %v7654_v18 = vand.u32 4294901760, %v971_v16  ;;  %v1218_v30 = vand.u32 4294901760, %v1217_v12 }
  0x7f   : > { %v1227_v25 = vsub.f32 %v971_v16, %v7654_v18  ;;  %1219 = vmatpush.msra.mxu1 %v1218_v30  ;;  %1424 = vmatpush.msra.mxu3 %v7654_v18 }
  0x80   : > { %1040 = vmatpush.msra.mxu0 %v7654_v18 }
  0x81   : > { %v7667_v36 = vand.u32 4294901760, %v1227_v25  ;;  %1328 = vmatpush.msra.mxu2 %v1227_v25  ;;  %1225 = vmatpush.msra.mxu1 %v1224_v35 }
  0x82   : > { %6845 = vmatpush.msrb.mxu3 %v7469_v15  ;;  %1509 = vmatpush.msrb.mxu0 %v7501_v31 }
  0x83   : > { %v1229_v37 = vsub.f32 %v1227_v25, %v7667_v36  ;;  %6831 = vmatpush.msrb.mxu2 %v7501_v31  ;;  %v714_v25 = vrot.slane %v7387_v29, 2 }
  0x84   : > { %873 = vrot.lane.b32.xlu0 %v778_v50, %s10887_s1  ;;  %895 = vrot.lane.b32.xlu1 %v790_v51, %s10888_s27  ;;  %v7675_v50 = vpop.permute.xlu2 %905 }
  0x85   : > { %915 = vrot.lane.b32.xlu2 %v705_v32, %s10891_s17  ;;  %v1230_v44 = vand.u32 4294901760, %v1229_v37  ;;  %6832 = vmatpush.msrb.mxu2 %v7516_v40 }
  0x86   : > { %6846 = vmatpush.msrb.mxu3 %v7482_v23  ;;  %1513 = vmatpush.msrb.mxu0 %v7516_v40 }
  0x87   : > { %1231 = vmatpush.msra.mxu1 %v1230_v44  ;;  %6833 = vmatpush.msrb.mxu2 %v7518_v41 }
  0x88   : > { %6847 = vmatpush.msrb.mxu3 %v7484_v24  ;;  %1517 = vmatpush.msrb.mxu0 %v7518_v41 }
  0x89   : > { %1618 = vmatpush.msrb.mxu1 %v7469_v15  ;;  %6834 = vmatpush.msrb.mxu2 %v7521_v42 }
  0x8a   : > { %6848 = vmatpush.msrb.mxu3 %v7496_v27  ;;  %1521 = vmatpush.msrb.mxu0 %v7521_v42 }
  0x8b   : > { %1620 = vmatpush.msrb.mxu1 %v7482_v23  ;;  %6835 = vmatpush.msrb.mxu2 %v7523_v43 }
  0x8c   : > { %v7696_v23 = vpop.permute.xlu2 %885  ;;  %6849 = vmatpush.msrb.mxu3 %v7498_v28  ;;  %1525 = vmatpush.msrb.mxu0 %v7523_v43 }
  0x8d   : > { %1622 = vmatpush.msrb.mxu1 %v7484_v24  ;;  %6836 = vmatpush.msrb.mxu2 %v7566_v5 }
  0x8e   : > { %6850 = vmatpush.msrb.mxu3 %v7541_v58  ;;  %1529 = vmatpush.msrb.mxu0 %v7566_v5 }
  0x8f   : > { %1624 = vmatpush.msrb.mxu1 %v7496_v27  ;;  %6837 = vmatpush.msrb.mxu2 %v7578_v11  ;;  %v7709_v27 = vrot.slane %v10815_v0, 2 }
  0x90   : > { %6851 = vmatpush.msrb.mxu3 %v7549_v62  ;;  %1533 = vmatpush.msrb.mxu0 %v7578_v11 }
  0x91   : > { %v840_v15 = vpop.permute.xlu1 %839  ;;  %1626 = vmatpush.msrb.mxu1 %v7498_v28  ;;  %6838 = vmatpush.msrb.mxu2 %v7589_v26  ;;  %v729_v41 = vsel %vm711_vm10, 0.0, %v7709_v27  ;;  %v715_v35 = vsel %vm711_vm10, %v7709_v27, %v714_v25 }
  0x92   : > { %6852 = vmatpush.msrb.mxu3 %v7569_v7  ;;  %1537 = vmatpush.msrb.mxu0 %v7589_v26 }
  0x93   : > { %v6924_v24 = vpop.permute.xlu0 %6923  ;;  %1628 = vmatpush.msrb.mxu1 %v7541_v58  ;;  %6839 = vmatpush.msrb.mxu2 %v7604_v39 }
  0x94   : > { %v6925_v28 = vunpack.i.l.bf16 %v6924_v24  ;;  %6853 = vmatpush.msrb.mxu3 %v7581_v14  ;;  %1541 = vmatpush.msrb.mxu0 %v7604_v39  ;;  %v6926_v58 = vunpack.i.h.bf16 %v6924_v24 }
  0x95   : > { %1630 = vmatpush.msrb.mxu1 %v7549_v62  ;;  %6840 = vmatpush.msrb.mxu2 %v7616_v55 }
  0x96   : > { %6854 = vmatpush.msrb.mxu3 %v7595_v34  ;;  %1545 = vmatpush.msrb.mxu0 %v7616_v55  ;;  %v924_v51 = vsel %vm923_vm11, %v729_v41, %v6925_v28  ;;  %v718_v41 = vrot.slane %v7439_v63, 2 }
  0x97   : > { %1632 = vmatpush.msrb.mxu1 %v7569_v7  ;;  %v7717_v40 = vpop.permute.xlu2 %843  ;;  %6841 = vmatpush.msrb.mxu2 %v7622_v57 }
  0x98   : > { %6855 = vmatpush.msrb.mxu3 %v7602_v38  ;;  %1549 = vmatpush.msrb.mxu0 %v7622_v57 }
  0x99   : > { %v862_v31 = vpop.permute.xlu1 %861  ;;  %1634 = vmatpush.msrb.mxu1 %v7581_v14  ;;  %6842 = vmatpush.msrb.mxu2 %v7636_v4 }
  0x9a   : > { %6856 = vmatpush.msrb.mxu3 %v7613_v52  ;;  %1553 = vmatpush.msrb.mxu0 %v7636_v4 }
  0x9b   : > { %v6929_v42 = vpop.permute.xlu0 %6928  ;;  %1636 = vmatpush.msrb.mxu1 %v7595_v34  ;;  %6843 = vmatpush.msrb.mxu2 %v7651_v17  ;;  %v925_v34 = vsel %vm923_vm11, %v7709_v27, %v6926_v58 }
  0x9c   : > { %v6930_v43 = vunpack.i.l.bf16 %v6929_v42  ;;  %v6931_v5 = vunpack.i.h.bf16 %v6929_v42  ;;  %6857 = vmatpush.msrb.mxu3 %v7626_v60  ;;  %1557 = vmatpush.msrb.mxu0 %v7651_v17 }
  0x9d   : > { %1638 = vmatpush.msrb.mxu1 %v7602_v38  ;;  %6844 = vmatpush.msrb.mxu2 %v7667_v36 }
  0x9e   : > { %v932_v62 = vsel %vm931_vm12, %v924_v51, %v6930_v43  ;;  %2700 = vrot.lane.b32.xlu2 %v10815_v0, %s10889_s19  ;;  %v933_v47 = vsel %vm931_vm12, %v925_v34, %v6931_v5  ;;  %6858 = vmatpush.msrb.mxu3 %v7654_v18 }
  0x9f   : > { %v940_v7 = vsel %vm939_vm13, %v932_v62, %v840_v15  ;;  %1640 = vmatpush.msrb.mxu1 %v7613_v52  ;;  %v7754_v48 = vpop.permute.xlu2 %907  ;;  %1561 = vmatpush.msrb.mxu0 %v7667_v36 }
  0xa0   : > { %v948_v11 = vsel %vm947_vm14, %v940_v7, %v862_v31  ;;  %2660 = vrot.lane.b32.xlu1 %v10815_v0, %s10893_s23  ;;  %2620 = vrot.lane.b32.xlu0 %v10815_v0, %s10890_s30 }
  0xa1   : > { %v956_v14 = vsel %vm955_vm15, %v948_v11, %v7646_v21  ;;  %1642 = vmatpush.msrb.mxu1 %v7626_v60  ;;  %v864_v38 = vpop.permute.xlu1 %863 }
  0xa2   : > { %v964_v26 = vsel %vm963_vm5, %v956_v14, %v7675_v50  ;;  %v720_v14 = vrot.slane %v7464_v13, 2 }
  0xa3   : > { %v991_v39 = vsel %vm989_vm6, %v964_v26, 0  ;;  %v842_v46 = vpop.permute.xlu0 %841  ;;  %1644 = vmatpush.msrb.mxu1 %v7654_v18 }
  0xa4   : > { %v7758_v52 = vand.u32 4294901760, %v991_v39  ;;  %v941_v54 = vsel %vm939_vm13, %v933_v47, %v842_v46  ;;  %v721_v47 = vsel %vm711_vm10, %v718_v41, %v720_v14 }
  0xa5   : > { %v949_v55 = vsel %vm947_vm14, %v941_v54, %v864_v38 }
  0xa6   : > { %v957_v56 = vsel %vm955_vm15, %v949_v55, %v7696_v23  ;;  %1233 = vmatmul.f32.vlgmr.msra.gmra.mxu1 %v7758_v52  ;;  %v1042_v57 = vsub.f32 %v991_v39, %v7758_v52 }
  0xa7   : > { %v965_v59 = vsel %vm963_vm5, %v957_v56, %v7675_v50  ;;  %v846_v8 = vpop.permute.xlu2 %845  ;;  %v716_v50 = vrot.slane %v7410_v45, 2 }
  0xa8   : > { %v994_v60 = vsel %vm989_vm6, %v965_v59, 0  ;;  %1331 = vmatmul.f32.vlgmr.msra.gmra.mxu2 %v1042_v57  ;;  %v1043_v61 = vand.u32 4294901760, %v1042_v57 }
  0xa9   : > { %v7774_v1 = vand.u32 4294901760, %v994_v60  ;;  %v717_v23 = vsel %vm711_vm10, %v714_v25, %v716_v50 }
  0xaa   : > { %1428 = vmatmul.f32.vlgmr.msra.gmra.mxu3 %v1043_v61  ;;  %v1044_v2 = vsub.f32 %v1042_v57, %v1043_v61 }
  0xab   : > { %v7777_v3 = vsub.f32 %v994_v60, %v7774_v1 }
  0xac   : > { %v1045_v4 = vand.u32 4294901760, %v1044_v2 }
  0xad   : > { %v7780_v21 = vand.u32 4294901760, %v7777_v3 }
  0xae   : > { %v800_v6 = vpop.permute.xlu0 %799  ;;  %v822_v16 = vpop.permute.xlu1 %821  ;;  %1046 = vmatmul.f32.vlgmr.msra.gmra.mxu0 %v1045_v4  ;;  %1237 = vmatmul.f32.gmra.mxu1 %v7774_v1 }
  0xaf   : > { %v1052_v9 = vsub.f32 %v7777_v3, %v7780_v21  ;;  %v910_v18 = vpop.permute.xlu2 %909  ;;  %v926_v44 = vsel %vm923_vm11, %v715_v35, %v800_v6 }
  0xb0   : > { %1336 = vmatmul.f32.gmra.mxu2 %v7777_v3  ;;  %v934_v29 = vsel %vm931_vm12, %v926_v44, %v822_v16 }
  0xb1   : > { %v7787_v10 = vand.u32 4294901760, %v1052_v9  ;;  %v942_v28 = vsel %vm939_vm13, %v934_v29, %v7717_v40  ;;  %v719_v40 = vsel %vm711_vm10, %v716_v50, %v718_v41 }
  0xb2   : > { %1434 = vmatmul.f32.gmra.mxu3 %v7780_v21 }
  0xb6   : > { %v866_v12 = vpop.permute.xlu0 %865  ;;  %v888_v17 = vpop.permute.xlu1 %887  ;;  %1054 = vmatmul.f32.gmra.mxu0 %v7787_v10  ;;  %1241 = vmatmul.f32.gmra.mxu1 %v7774_v1 }
  0xb7   : > { %v848_v32 = vpop.permute.xlu2 %847  ;;  %v950_v31 = vsel %vm947_vm14, %v942_v28, %v866_v12 }
  0xb8   : > { %1341 = vmatmul.f32.gmra.mxu2 %v7777_v3  ;;  %v958_v43 = vsel %vm955_vm15, %v950_v31, %v888_v17 }
  0xb9   : > { %v966_v7 = vsel %vm963_vm5, %v958_v43, %v7754_v48 }
  0xba   : > { %1440 = vmatmul.f32.gmra.mxu3 %v7780_v21  ;;  %v997_v26 = vsel %vm989_vm6, %v966_v7, 0 }
  0xbb   : > { %v7833_v39 = vand.u32 4294901760, %v997_v26 }
  0xbd   : > { %v1106_v57 = vsub.f32 %v997_v26, %v7833_v39 }
  0xbe   : > { %v802_v30 = vpop.permute.xlu0 %801  ;;  %v824_v22 = vpop.permute.xlu1 %823  ;;  %1062 = vmatmul.f32.gmra.mxu0 %v7787_v10  ;;  %1245 = vmatmul.f32.gmra.mxu1 %v7774_v1 }
  0xbf   : > { %v912_v15 = vpop.permute.xlu2 %911  ;;  %v927_v45 = vsel %vm923_vm11, %v717_v23, %v802_v30 }
  0xc0   : > { %1346 = vmatmul.f32.gmra.mxu2 %v7777_v3  ;;  %v935_v42 = vsel %vm931_vm12, %v927_v45, %v824_v22 }
  0xc1   : > { %v943_v62 = vsel %vm939_vm13, %v935_v42, %v846_v8  ;;  %v1107_v8 = vand.u32 4294901760, %v1106_v57 }
  0xc2   : > { %1446 = vmatmul.f32.gmra.mxu3 %v7780_v21 }
  0xc6   : > { %v868_v36 = vpop.permute.xlu0 %867  ;;  %v890_v37 = vpop.permute.xlu1 %889  ;;  %1070 = vmatmul.f32.gmra.mxu0 %v7787_v10  ;;  %1249 = vmatmul.f32.gmra.mxu1 %v7774_v1 }
  0xc7   : > { %v850_v5 = vpop.permute.xlu2 %849  ;;  %v951_v11 = vsel %vm947_vm14, %v943_v62, %v868_v36 }
  0xc8   : > { %1351 = vmatmul.f32.gmra.mxu2 %v7777_v3  ;;  %v959_v38 = vsel %vm955_vm15, %v951_v11, %v890_v37 }
  0xc9   : > { %v967_v55 = vsel %vm963_vm5, %v959_v38, %v910_v18 }
  0xca   : > { %1452 = vmatmul.f32.gmra.mxu3 %v7780_v21  ;;  %v1000_v60 = vsel %vm989_vm6, %v967_v55, 0 }
  0xcb   : > { %v7848_v4 = vand.u32 4294901760, %v1000_v60 }
  0xce   : > { %v804_v24 = vpop.permute.xlu0 %803  ;;  %v826_v27 = vpop.permute.xlu1 %825  ;;  %1078 = vmatmul.f32.gmra.mxu0 %v7787_v10  ;;  %1253 = vmatmul.f32.gmra.mxu1 %v7774_v1 }
  0xcf   : > { %v928_v63 = vsel %vm923_vm11, %v719_v40, %v804_v24  ;;  %v914_v56 = vpop.permute.xlu2 %913 }
  0xd0   : > { %1356 = vmatmul.f32.gmra.mxu2 %v7777_v3  ;;  %v936_v34 = vsel %vm931_vm12, %v928_v63, %v826_v27 }
  0xd1   : > { %v944_v54 = vsel %vm939_vm13, %v936_v34, %v848_v32 }
  0xd2   : > { %1458 = vmatmul.f32.gmra.mxu3 %v7780_v21 }
  0xd6   : > { %v870_v51 = vpop.permute.xlu0 %869  ;;  %v892_v58 = vpop.permute.xlu1 %891  ;;  %1086 = vmatmul.f32.gmra.mxu0 %v7787_v10  ;;  %1257 = vmatmul.f32.gmra.mxu1 %v7774_v1 }
  0xd7   : > { %v952_v59 = vsel %vm947_vm14, %v944_v54, %v870_v51  ;;  %v852_v30 = vpop.permute.xlu2 %851 }
  0xd8   : > { %1361 = vmatmul.f32.gmra.mxu2 %v7777_v3  ;;  %v960_v2 = vsel %vm955_vm15, %v952_v59, %v892_v58 }
  0xd9   : > { %v968_v12 = vsel %vm963_vm5, %v960_v2, %v912_v15 }
  0xda   : > { %1464 = vmatmul.f32.gmra.mxu3 %v7780_v21  ;;  %v1003_v18 = vsel %vm989_vm6, %v968_v12, 0 }
  0xdb   : > { %v7858_v25 = vand.u32 4294901760, %v1003_v18 }
  0xdd   : > { %v1122_v29 = vsub.f32 %v1003_v18, %v7858_v25 }
  0xde   : > { %v806_v46 = vpop.permute.xlu0 %805  ;;  %v828_v48 = vpop.permute.xlu1 %827  ;;  %1094 = vmatmul.f32.gmra.mxu0 %v7787_v10  ;;  %1261 = vmatmul.f32.gmra.mxu1 %v7774_v1 }
  0xdf   : > { %v929_v13 = vsel %vm923_vm11, %v721_v47, %v806_v46  ;;  %v916_v27 = vpop.permute.xlu2 %915  ;;  %v1123_v42 = vand.u32 4294901760, %v1122_v29 }
  0xe0   : > { %1366 = vmatmul.f32.gmra.mxu2 %v7777_v3  ;;  %v937_v61 = vsel %vm931_vm12, %v929_v13, %v828_v48  ;;  %v1114_v3 = vsub.f32 %v1000_v60, %v7848_v4 }
  0xe1   : > { %v945_v9 = vsel %vm939_vm13, %v937_v61, %v850_v5  ;;  %v1124_v62 = vsub.f32 %v1122_v29, %v1123_v42 }
  0xe2   : > { %1470 = vmatmul.f32.gmra.mxu3 %v7780_v21  ;;  %v1108_v21 = vsub.f32 %v1106_v57, %v1107_v8 }
  0xe3   : > { %v1125_v63 = vand.u32 4294901760, %v1124_v62 }
  0xe4   : > { %v1109_v32 = vand.u32 4294901760, %v1108_v21 }
  0xe6   : > { %v872_v6 = vpop.permute.xlu0 %871  ;;  %v894_v16 = vpop.permute.xlu1 %893  ;;  %1102 = vmatmul.f32.gmra.mxu0 %v7787_v10  ;;  %1265 = vmatmul.f32.gmra.mxu1 %v7833_v39  ;;  %v1115_v10 = vand.u32 4294901760, %v1114_v3 }
  0xe7   : > { %v953_v17 = vsel %vm947_vm14, %v945_v9, %v872_v6 }
  0xe8   : > { %1371 = vmatmul.f32.gmra.mxu2 %v1106_v57  ;;  %v961_v22 = vsel %vm955_vm15, %v953_v17, %v894_v16  ;;  %v1116_v15 = vsub.f32 %v1114_v3, %v1115_v10 }
  0xe9   : > { %v969_v44 = vsel %vm963_vm5, %v961_v22, %v914_v56 }
  0xea   : > { %1476 = vmatmul.f32.gmra.mxu3 %v1107_v8  ;;  %v1006_v23 = vsel %vm989_vm6, %v969_v44, 0  ;;  %v1117_v45 = vand.u32 4294901760, %v1116_v15  ;;  %v1777_v44 = vld [vmem:[%s10786_s4 + $0x8] sm:$0xff]  ;;  %v1776_v15 = vld [vmem:[%s10786_s4] sm:$0xff] }
  0xeb   : > { %v7867_v28 = vand.u32 4294901760, %v1006_v23 }
  0xed   : > { %v1130_v58 = vsub.f32 %v1006_v23, %v7867_v28 }
  0xee   : > { %v808_v35 = vpop.permute.xlu0 %807  ;;  %v830_v36 = vpop.permute.xlu1 %829  ;;  %1110 = vmatmul.f32.gmra.mxu0 %v1109_v32  ;;  %1269 = vmatmul.f32.gmra.mxu1 %v7848_v4 }
  0xef   : > { %v930_v37 = vsel %vm923_vm11, %v720_v14, %v808_v35  ;;  %v1131_v11 = vand.u32 4294901760, %v1130_v58 }
  0xf0   : > { %v938_v50 = vsel %vm931_vm12, %v930_v37, %v830_v36  ;;  %1376 = vmatmul.f32.gmra.mxu2 %v1114_v3 }
  0xf1   : > { %v946_v24 = vsel %vm939_vm13, %v938_v50, %v852_v30  ;;  %v1132_v26 = vsub.f32 %v1130_v58, %v1131_v11  ;;  %v1835_v50 = vand.u32 4294901760, %v1777_v44 }
  0xf2   : > { %1482 = vmatmul.f32.gmra.mxu3 %v1115_v10 }
  0xf3   : > { %v1133_v34 = vand.u32 4294901760, %v1132_v26  ;;  %v1959_v23 = vsub.f32 %v1777_v44, %v1835_v50  ;;  %1836 = vmatpush.msra.mxu2 %v1835_v50  ;;  %2124 = vmatpush.msra.mxu1 %v1835_v50 }
  0xf5   : > { %2039 = vmatpush.msra.mxu0 %v1959_v23 }
  0xf6   : > { %v874_v31 = vpop.permute.xlu0 %873  ;;  %v896_v41 = vpop.permute.xlu1 %895  ;;  %1118 = vmatmul.f32.gmra.mxu0 %v1117_v45  ;;  %1273 = vmatmul.f32.gmra.mxu1 %v7858_v25  ;;  %v7965_v45 = vld [vmem:[%s10785_s3] ss:$0 sm:$0xff] }
  0xf7   : > { %v954_v43 = vsel %vm947_vm14, %v946_v24, %v874_v31  ;;  %v1837_v24 = vand.u32 4294901760, %v1776_v15 }
  0xf8   : > { %v962_v40 = vsel %vm955_vm15, %v954_v43, %v896_v41  ;;  %1381 = vmatmul.f32.gmra.mxu2 %v1122_v29 }
  0xf9   : > { %v970_v51 = vsel %vm963_vm5, %v962_v40, %v916_v27  ;;  %v1960_v27 = vand.u32 4294901760, %v1959_v23  ;;  %2126 = vmatpush.msra.mxu1 %v1837_v24  ;;  %1838 = vmatpush.msra.mxu2 %v1837_v24 }
  0xfa   : > { %v1009_v5 = vsel %vm989_vm6, %v970_v51, 0  ;;  %1488 = vmatmul.f32.gmra.mxu3 %v1123_v42 }
  0xfb   : > { %v1137_v7 = vand.u32 4294901760, %v1009_v5  ;;  %v1961_v43 = vsub.f32 %v1959_v23, %v1960_v27 }
  0xfd   : > { %v1138_v14 = vsub.f32 %v1009_v5, %v1137_v7  ;;  %v1962_v51 = vand.u32 4294901760, %v1961_v43 }
  0xfe   : > { %1126 = vmatmul.f32.gmra.mxu0 %v1125_v63  ;;  %1277 = vmatmul.f32.gmra.mxu1 %v7867_v28 }
  0xff   : > { %v1139_v38 = vand.u32 4294901760, %v1138_v14  ;;  %1963 = vmatpush.msra.mxu3 %v1962_v51 }
 0x100   : > { %1386 = vmatmul.f32.gmra.mxu2 %v1130_v58 }
 0x101   : > { %v1140_v46 = vsub.f32 %v1138_v14, %v1139_v38 }
 0x102   : > { %1494 = vmatmul.f32.gmra.mxu3 %v1131_v11 }
 0x103   : > { %v1141_v47 = vand.u32 4294901760, %v1140_v46 }
 0x106   : > { %1134 = vmatmul.f32.gmra.mxu0 %v1133_v34  ;;  %1281 = vmatmul.f32.gmra.mxu1 %v1137_v7 }
 0x108   : > { %1391 = vmatmul.f32.gmra.mxu2 %v1138_v14 }
 0x10a   : > { %1500 = vmatmul.f32.gmra.mxu3 %v1139_v38 }
 0x10e   : > { %1142 = vmatmul.f32.gmra.mxu0 %v1141_v47  ;;  %1646 = vmatmul.f32.vlgmr.msrb.gmra.mxu1 %v7758_v52 }
 0x110   : > { %1611 = vmatmul.f32.vlgmr.msrb.gmra.mxu2 %v1137_v7 }
 0x111   : > { %2223 = vmatpush.msrb.mxu2 %v1960_v27 }
 0x112   : > { %1694 = vmatmul.f32.vlgmr.msrb.gmra.mxu3 %v1137_v7 }
 0x116   : > { %1563 = vmatmul.f32.vlgmr.msrb.gmra.mxu0 %v7758_v52  ;;  %1650 = vmatmul.f32.gmra.mxu1 %v7774_v1 }
 0x11e   : > { %1567 = vmatmul.f32.gmra.mxu0 %v7774_v1  ;;  %1654 = vmatmul.f32.gmra.mxu1 %v7774_v1 }
 0x123   : > { %v7881_v48 = vpop.f32.mrf.mxu1 }
 0x126   : > { %1571 = vmatmul.f32.gmra.mxu0 %v7774_v1  ;;  %1658 = vmatmul.f32.gmra.mxu1 %v7774_v1 }
 0x12b   : > { %v7885_v54 = vpop.f32.mrf.mxu0  ;;  %v7887_v55 = vpop.f32.mrf.mxu1 }
 0x12c   : > { %v1332_v8 = vpop.f32.mrf.mxu2  ;;  %v1048_v62 = vadd.f32 %v7965_v45, %v7885_v54 }
 0x12d   : > { %v1429_v9 = vpop.f32.mrf.mxu3 }
 0x12e   : > { %1575 = vmatmul.f32.gmra.mxu0 %v7774_v1  ;;  %1662 = vmatmul.f32.gmra.mxu1 %v7774_v1  ;;  %v1235_v63 = vadd.f32 %v7881_v48, %v1048_v62 }
 0x130   : > { %v1333_v34 = vadd.f32 %v1332_v8, %v1235_v63 }
 0x132   : > { %v1430_v46 = vadd.f32 %v1429_v9, %v1333_v34 }
 0x133   : > { %v7891_v52 = vpop.f32.mrf.mxu0  ;;  %v7893_v13 = vpop.f32.mrf.mxu1 }
 0x134   : > { %v1056_v38 = vadd.f32 %v7965_v45, %v7891_v52 }
 0x135   : > { %v1435_v18 = vpop.f32.mrf.mxu3 }
 0x136   : > { %1579 = vmatmul.f32.gmra.mxu0 %v7774_v1  ;;  %1666 = vmatmul.f32.gmra.mxu1 %v7774_v1  ;;  %v1239_v47 = vadd.f32 %v7887_v55, %v1056_v38 }
 0x13b   : > { %v7897_v56 = vpop.f32.mrf.mxu0  ;;  %v7899_v57 = vpop.f32.mrf.mxu1 }
 0x13d   : > { %v7939_v32 = vpop.f32.mrf.mxu3 }
 0x13e   : > { %1583 = vmatmul.f32.gmra.mxu0 %v7774_v1  ;;  %1670 = vmatmul.f32.gmra.mxu1 %v7774_v1 }
 0x143   : > { %v7903_v59 = vpop.f32.mrf.mxu0  ;;  %v7905_v60 = vpop.f32.mrf.mxu1 }
 0x145   : > { %v7948_v10 = vpop.f32.mrf.mxu3 }
 0x146   : > { %1587 = vmatmul.f32.gmra.mxu0 %v7774_v1  ;;  %1674 = vmatmul.f32.gmra.mxu1 %v7774_v1 }
 0x14b   : > { %v7909_v61 = vpop.f32.mrf.mxu0  ;;  %v7911_v2 = vpop.f32.mrf.mxu1 }
 0x14d   : > { %v7967_v31 = vpop.f32.mrf.mxu3 }
 0x14e   : > { %1591 = vmatmul.f32.gmra.mxu0 %v7774_v1  ;;  %1678 = vmatmul.f32.gmra.mxu1 %v7833_v39  ;;  %v1337_v1 = vpop.f32.mrf.mxu2 }
 0x14f   : > { %v1338_v48 = vadd.f32 %v1337_v1, %v1239_v47  ;;  %v1072_v1 = vadd.f32 %v7965_v45, %v7903_v59  ;;  %v1080_v59 = vadd.f32 %v7965_v45, %v7909_v61 }
 0x151   : > { %v1436_v8 = vadd.f32 %v1435_v18, %v1338_v48 }
 0x153   : > { %v7915_v6 = vpop.f32.mrf.mxu0  ;;  %v7917_v16 = vpop.f32.mrf.mxu1 }
 0x155   : > { %v7980_v26 = vpop.f32.mrf.mxu3 }
 0x156   : > { %1595 = vmatmul.f32.gmra.mxu0 %v7833_v39  ;;  %1682 = vmatmul.f32.gmra.mxu1 %v7848_v4  ;;  %v7933_v39 = vpop.f32.mrf.mxu2 }
 0x15b   : > { %v7921_v12 = vpop.f32.mrf.mxu0  ;;  %v7923_v3 = vpop.f32.mrf.mxu1 }
 0x15d   : > { %v7989_v27 = vpop.f32.mrf.mxu3 }
 0x15e   : > { %1599 = vmatmul.f32.gmra.mxu0 %v7848_v4  ;;  %1686 = vmatmul.f32.gmra.mxu1 %v7858_v25  ;;  %v7946_v36 = vpop.f32.mrf.mxu2 }
 0x163   : > { %v7927_v17 = vpop.f32.mrf.mxu0  ;;  %v7929_v21 = vpop.f32.mrf.mxu1 }
 0x165   : > { %v7997_v62 = vpop.f32.mrf.mxu3 }
 0x166   : > { %1603 = vmatmul.f32.gmra.mxu0 %v7858_v25  ;;  %1690 = vmatmul.f32.gmra.mxu1 %v7867_v28  ;;  %v7957_v29 = vpop.f32.mrf.mxu2 }
 0x16b   : > { %v7935_v30 = vpop.f32.mrf.mxu0  ;;  %v7937_v22 = vpop.f32.mrf.mxu1 }
 0x16e   : > { %1607 = vmatmul.f32.gmra.mxu0 %v7867_v28  ;;  %v1965_v28 = vsub.f32 %v1776_v15, %v1837_v24  ;;  %v7975_v7 = vpop.f32.mrf.mxu2 }
 0x170   : > { %v1966_v40 = vand.u32 4294901760, %v1965_v28  ;;  %2042 = vmatpush.msra.mxu0 %v1965_v28 }
 0x172   : > { %v1967_v58 = vsub.f32 %v1965_v28, %v1966_v40  ;;  %2227 = vmatpush.msrb.mxu2 %v1966_v40 }
 0x173   : > { %v7942_v4 = vpop.f32.mrf.mxu0  ;;  %v7944_v35 = vpop.f32.mrf.mxu1 }
 0x174   : > { %v1968_v5 = vand.u32 4294901760, %v1967_v58 }
 0x176   : > { %1969 = vmatpush.msra.mxu3 %v1968_v5  ;;  %v7985_v54 = vpop.f32.mrf.mxu2 }
 0x178   : > { %2296 = vmatpush.msrb.mxu3 %v1835_v50  ;;  %v1064_v50 = vadd.f32 %v7965_v45, %v7897_v56 }
 0x17a   : > { %2298 = vmatpush.msrb.mxu3 %v1837_v24  ;;  %v1243_v43 = vadd.f32 %v7893_v13, %v1064_v50  ;;  %v1247_v13 = vadd.f32 %v7899_v57, %v1072_v1 }
 0x17b   : > { %v7950_v25 = vpop.f32.mrf.mxu0  ;;  %v7952_v37 = vpop.f32.mrf.mxu1 }
 0x17c   : > { %v1343_v58 = vadd.f32 %v7933_v39, %v1243_v43 }
 0x17e   : > { %v7992_v55 = vpop.f32.mrf.mxu2  ;;  %v1442_v18 = vadd.f32 %v7939_v32, %v1343_v58 }
 0x183   : > { %v7969_v41 = vpop.f32.mrf.mxu0  ;;  %v7971_v42 = vpop.f32.mrf.mxu1 }
 0x18b   : > { %v7978_v11 = vpop.f32.mrf.mxu0  ;;  %v1647_v14 = vpop.f32.mrf.mxu1 }
 0x193   : > { %v1564_v44 = vpop.f32.mrf.mxu0  ;;  %v1651_v15 = vpop.f32.mrf.mxu1 }
 0x194   : > { %v1565_v23 = vadd.f32 %v1564_v44, %v1430_v46  ;;  %v1348_v44 = vadd.f32 %v7946_v36, %v1247_v13  ;;  %v1251_v36 = vadd.f32 %v7905_v60, %v1080_v59 }
 0x196   : > { %v1648_v28 = vadd.f32 %v1647_v14, %v1565_v23 }
 0x198   : > { %v1711_v24 = vmin.f32 %v1648_v28, 0.0  ;;  %vm1698_vm7 = vcmp.gt.f32.partialorder %v1648_v28, 0.0 }
 0x19a   : > { %v1724_v52 = vmul.f32 1.442695, %v1711_v24 }
 0x19b   : > { %v1568_v9 = vpop.f32.mrf.mxu0  ;;  %v1655_v40 = vpop.f32.mrf.mxu1 }
 0x19c   : > { %6949 = vpow2.f32 %v1724_v52  ;;  %v1569_v51 = vadd.f32 %v1568_v9, %v1436_v8  ;;  %v8013_v8 = vpop.f32.mrf.mxu3 }
 0x19e   : > { %v1652_v56 = vadd.f32 %v1651_v15, %v1569_v51  ;;  %v8004_v15 = vpop.f32.mrf.mxu2 }
 0x1a0   : > { %v1712_v5 = vmin.f32 %v1652_v56, 0.0  ;;  %vm1699_vm8 = vcmp.gt.f32.partialorder %v1652_v56, 0.0 }
 0x1a2   : > { %v6950_v63 = vpop.eup %6949  ;;  %v1726_v14 = vmul.f32 1.442695, %v1712_v5  ;;  %v1353_v5 = vadd.f32 %v7957_v29, %v1251_v36 }
 0x1a3   : > { %v6747_v34 = vadd.f32 -1.0, %v6950_v63  ;;  %v1572_v38 = vpop.f32.mrf.mxu0  ;;  %v1659_v46 = vpop.f32.mrf.mxu1 }
 0x1a4   : > { %6951 = vpow2.f32 %v1726_v14  ;;  %v1573_v47 = vadd.f32 %v1572_v38, %v1442_v18  ;;  %v1454_v29 = vadd.f32 %v7967_v31, %v1353_v5  ;;  %v1096_v31 = vadd.f32 %v7965_v45, %v7921_v12 }
 0x1a5   : > { %v1763_v39 = vsel %vm1698_vm7, %v1648_v28, %v6747_v34  ;;  %v1448_v28 = vadd.f32 %v7948_v10, %v1348_v44  ;;  %v1088_v10 = vadd.f32 %v7965_v45, %v7915_v6 }
 0x1a6   : > { %v1656_v23 = vadd.f32 %v1655_v40, %v1573_v47  ;;  %v1783_v32 = vsel %vm923_vm11, %v1763_v39, 0  ;;  %v8021_v14 = vpop.f32.mrf.mxu2 }
 0x1a7   : > { %v8007_v48 = vand.u32 4294901760, %v1783_v32  ;;  %v1255_v47 = vadd.f32 %v7911_v2, %v1088_v10 }
 0x1a8   : > { %v1713_v57 = vmin.f32 %v1656_v23, 0.0  ;;  %vm1700_vm9 = vcmp.gt.f32.partialorder %v1656_v23, 0.0 }
 0x1a9   : > { %v1840_v50 = vsub.f32 %v1783_v32, %v8007_v48  ;;  %1971 = vmatmul.f32.vlgmr.msra.gmra.mxu3 %v8007_v48  ;;  %v8027_v32 = vpop.f32.mrf.mxu3 }
 0x1aa   : > { %v6952_v24 = vpop.eup %6951  ;;  %v1728_v61 = vmul.f32 1.442695, %v1713_v57 }
 0x1ab   : > { %v6748_v43 = vadd.f32 -1.0, %v6952_v24  ;;  %v1576_v52 = vpop.f32.mrf.mxu0  ;;  %v1663_v9 = vpop.f32.mrf.mxu1  ;;  %2045 = vmatmul.f32.vlgmr.msra.gmra.mxu0 %v1840_v50  ;;  %v1841_v40 = vand.u32 4294901760, %v1840_v50 }
 0x1ac   : > { %6953 = vpow2.f32 %v1728_v61  ;;  %v1577_v51 = vadd.f32 %v1576_v52, %v1448_v28  ;;  %v1358_v28 = vadd.f32 %v7975_v7, %v1255_v47  ;;  %v1259_v7 = vadd.f32 %v7917_v16, %v1096_v31 }
 0x1ad   : > { %v1764_v58 = vsel %vm1699_vm8, %v1652_v56, %v6748_v43  ;;  %2130 = vmatmul.f32.vlgmr.msra.gmra.mxu1 %v1841_v40  ;;  %v1842_v1 = vsub.f32 %v1840_v50, %v1841_v40 }
 0x1ae   : > { %v1660_v60 = vadd.f32 %v1659_v46, %v1577_v51  ;;  %v1786_v63 = vsel %vm923_vm11, %v1764_v58, 0  ;;  %v1460_v51 = vadd.f32 %v7980_v26, %v1358_v28  ;;  %v8039_v58 = vpop.f32.mrf.mxu2  ;;  %v1104_v26 = vadd.f32 %v7965_v45, %v7927_v17 }
 0x1af   : > { %v1843_v18 = vand.u32 4294901760, %v1842_v1  ;;  %v8019_v13 = vand.u32 4294901760, %v1786_v63 }
 0x1b0   : > { %v1714_v34 = vmin.f32 %v1660_v60, 0.0  ;;  %vm1701_vm7 = vcmp.gt.f32.partialorder %v1660_v60, 0.0 }
 0x1b1   : > { %1844 = vmatmul.f32.vlgmr.msra.gmra.mxu2 %v1843_v18  ;;  %1975 = vmatmul.f32.gmra.mxu3 %v8019_v13  ;;  %v1848_v56 = vsub.f32 %v1786_v63, %v8019_v13  ;;  %v8044_v16 = vpop.f32.mrf.mxu3 }
 0x1b2   : > { %v6954_v38 = vpop.eup %6953  ;;  %v1730_v6 = vmul.f32 1.442695, %v1714_v34 }
 0x1b3   : > { %v6749_v46 = vadd.f32 -1.0, %v6954_v38  ;;  %v1580_v39 = vpop.f32.mrf.mxu0  ;;  %v1667_v44 = vpop.f32.mrf.mxu1  ;;  %2050 = vmatmul.f32.gmra.mxu0 %v1848_v56  ;;  %v1849_v59 = vand.u32 4294901760, %v1848_v56 }
 0x1b4   : > { %6955 = vpow2.f32 %v1730_v6  ;;  %v1581_v57 = vadd.f32 %v1580_v39, %v1454_v29 }
 0x1b5   : > { %v1765_v50 = vsel %vm1700_vm9, %v1656_v23, %v6749_v46  ;;  %2136 = vmatmul.f32.gmra.mxu1 %v1849_v59  ;;  %v1850_v24 = vsub.f32 %v1848_v56, %v1849_v59  ;;  %v1363_v56 = vadd.f32 %v7985_v54, %v1259_v7  ;;  %v1263_v59 = vadd.f32 %v7923_v3, %v1104_v26 }
 0x1b6   : > { %v1664_v2 = vadd.f32 %v1663_v9, %v1581_v57  ;;  %v1789_v36 = vsel %vm923_vm11, %v1765_v50, 0 }
 0x1b7   : > { %v1851_v61 = vand.u32 4294901760, %v1850_v24  ;;  %v8033_v43 = vand.u32 4294901760, %v1789_v36  ;;  %v1466_v54 = vadd.f32 %v7989_v27, %v1363_v56  ;;  %v8053_v24 = vpop.f32.mrf.mxu2  ;;  %v1112_v27 = vadd.f32 %v7965_v45, %v7935_v30 }
 0x1b8   : > { %v1715_v52 = vmin.f32 %v1664_v2, 0.0  ;;  %vm1702_vm8 = vcmp.gt.f32.partialorder %v1664_v2, 0.0 }
 0x1b9   : > { %1852 = vmatmul.f32.gmra.mxu2 %v1851_v61  ;;  %1979 = vmatmul.f32.gmra.mxu3 %v8033_v43  ;;  %v1856_v40 = vsub.f32 %v1789_v36, %v8033_v43  ;;  %v8061_v7 = vpop.f32.mrf.mxu3 }
 0x1ba   : > { %v6956_v23 = vpop.eup %6955  ;;  %v1732_v12 = vmul.f32 1.442695, %v1715_v52  ;;  %v1368_v52 = vadd.f32 %v7992_v55, %v1263_v59 }
 0x1bb   : > { %v6750_v9 = vadd.f32 -1.0, %v6956_v23  ;;  %v1584_v1 = vpop.f32.mrf.mxu0  ;;  %v1671_v5 = vpop.f32.mrf.mxu1  ;;  %2055 = vmatmul.f32.gmra.mxu0 %v1856_v40  ;;  %v1857_v10 = vand.u32 4294901760, %v1856_v40 }
 0x1bc   : > { %6957 = vpow2.f32 %v1732_v12  ;;  %v1585_v63 = vadd.f32 %v1584_v1, %v1460_v51  ;;  %v1472_v55 = vadd.f32 %v7997_v62, %v1368_v52  ;;  %v1267_v1 = vadd.f32 %v7929_v21, %v1112_v27 }
 0x1bd   : > { %v1766_v18 = vsel %vm1701_vm7, %v1660_v60, %v6750_v9  ;;  %2142 = vmatmul.f32.gmra.mxu1 %v1857_v10  ;;  %v1858_v34 = vsub.f32 %v1856_v40, %v1857_v10  ;;  %v1120_v62 = vadd.f32 %v7965_v45, %v7942_v4 }
 0x1be   : > { %v1668_v38 = vadd.f32 %v1667_v44, %v1585_v63  ;;  %v1792_v29 = vsel %vm923_vm11, %v1766_v18, 0 }
 0x1bf   : > { %v1859_v47 = vand.u32 4294901760, %v1858_v34  ;;  %v8047_v6 = vand.u32 4294901760, %v1792_v29  ;;  %v1392_v21 = vpop.f32.mrf.mxu2  ;;  %v1271_v4 = vadd.f32 %v7937_v22, %v1120_v62 }
 0x1c0   : > { %v1716_v46 = vmin.f32 %v1668_v38, 0.0  ;;  %vm1703_vm9 = vcmp.gt.f32.partialorder %v1668_v38, 0.0 }
 0x1c1   : > { %1860 = vmatmul.f32.gmra.mxu2 %v1859_v47  ;;  %1983 = vmatmul.f32.gmra.mxu3 %v8047_v6  ;;  %v1864_v60 = vsub.f32 %v1792_v29, %v8047_v6  ;;  %v1373_v29 = vadd.f32 %v8004_v15, %v1267_v1  ;;  %v1378_v27 = vadd.f32 %v8021_v14, %v1271_v4 }
 0x1c2   : > { %v6958_v39 = vpop.eup %6957  ;;  %v1734_v17 = vmul.f32 1.442695, %v1716_v46 }
 0x1c3   : > { %v6751_v57 = vadd.f32 -1.0, %v6958_v39  ;;  %v1588_v50 = vpop.f32.mrf.mxu0  ;;  %2060 = vmatmul.f32.gmra.mxu0 %v1864_v60  ;;  %v1865_v44 = vand.u32 4294901760, %v1864_v60  ;;  %v1675_v36 = vpop.f32.mrf.mxu1  ;;  %v1484_v14 = vadd.f32 %v8027_v32, %v1378_v27  ;;  %v1136_v32 = vadd.f32 %v7965_v45, %v7969_v41 }
 0x1c4   : > { %6959 = vpow2.f32 %v1734_v17  ;;  %v1589_v28 = vadd.f32 %v1588_v50, %v1466_v54  ;;  %v1478_v17 = vadd.f32 %v8013_v8, %v1373_v29  ;;  %v1128_v8 = vadd.f32 %v7965_v45, %v7950_v25 }
 0x1c5   : > { %v1767_v31 = vsel %vm1702_vm8, %v1664_v2, %v6751_v57  ;;  %2148 = vmatmul.f32.gmra.mxu1 %v1865_v44  ;;  %v1866_v61 = vsub.f32 %v1864_v60, %v1865_v44  ;;  %v1501_v57 = vpop.f32.mrf.mxu3 }
 0x1c6   : > { %v1672_v3 = vadd.f32 %v1671_v5, %v1589_v28  ;;  %v1795_v40 = vsel %vm923_vm11, %v1767_v31, 0  ;;  %v1144_v5 = vadd.f32 %v7965_v45, %v7978_v11  ;;  %v1275_v25 = vadd.f32 %v7944_v35, %v1128_v8 }
 0x1c7   : > { %v1867_v23 = vand.u32 4294901760, %v1866_v61  ;;  %v8059_v51 = vand.u32 4294901760, %v1795_v40 }
 0x1c8   : > { %v1717_v12 = vmin.f32 %v1672_v3, 0.0  ;;  %v1283_v11 = vadd.f32 %v7971_v42, %v1144_v5  ;;  %vm1704_vm7 = vcmp.gt.f32.partialorder %v1672_v3, 0.0 }
 0x1c9   : > { %1868 = vmatmul.f32.gmra.mxu2 %v1867_v23  ;;  %1987 = vmatmul.f32.gmra.mxu3 %v8059_v51  ;;  %v1872_v2 = vsub.f32 %v1795_v40, %v8059_v51 }
 0x1ca   : > { %v6960_v9 = vpop.eup %6959  ;;  %v1736_v30 = vmul.f32 1.442695, %v1717_v12  ;;  %v1393_v44 = vadd.f32 %v1392_v21, %v1283_v11  ;;  %v1383_v21 = vadd.f32 %v8039_v58, %v1275_v25 }
 0x1cb   : > { %v6752_v10 = vadd.f32 -1.0, %v6960_v9  ;;  %v1592_v63 = vpop.f32.mrf.mxu0  ;;  %2065 = vmatmul.f32.gmra.mxu0 %v1872_v2  ;;  %v1873_v18 = vand.u32 4294901760, %v1872_v2  ;;  %v1679_v60 = vpop.f32.mrf.mxu1 }
 0x1cc   : > { %6961 = vpow2.f32 %v1736_v30  ;;  %v1593_v34 = vadd.f32 %v1592_v63, %v1472_v55  ;;  %v1502_v23 = vadd.f32 %v1501_v57, %v1393_v44  ;;  %v1612_v9 = vpop.f32.mrf.mxu2  ;;  %v1490_v58 = vadd.f32 %v8044_v16, %v1383_v21 }
 0x1cd   : > { %v1768_v56 = vsel %vm1703_vm9, %v1668_v38, %v6752_v10  ;;  %2154 = vmatmul.f32.gmra.mxu1 %v1873_v18  ;;  %v1874_v26 = vsub.f32 %v1872_v2, %v1873_v18 }
 0x1ce   : > { %v1676_v47 = vadd.f32 %v1675_v36, %v1593_v34  ;;  %v1798_v46 = vsel %vm923_vm11, %v1768_v56, 0  ;;  %v1613_v10 = vadd.f32 %v1612_v9, %v1502_v23  ;;  %v1695_v56 = vpop.f32.mrf.mxu3 }
 0x1cf   : > { %v1875_v39 = vand.u32 4294901760, %v1874_v26  ;;  %v8074_v54 = vand.u32 4294901760, %v1798_v46 }
 0x1d0   : > { %v1718_v59 = vmin.f32 %v1676_v47, 0.0  ;;  %vm1705_vm8 = vcmp.gt.f32.partialorder %v1676_v47, 0.0  ;;  %v8094_v11 = vadd.f32 %v1695_v56, %v1613_v10 }
 0x1d1   : > { %1876 = vmatmul.f32.gmra.mxu2 %v1875_v39  ;;  %1991 = vmatmul.f32.gmra.mxu3 %v8074_v54  ;;  %v1880_v38 = vsub.f32 %v1798_v46, %v8074_v54 }
 0x1d2   : > { %v6962_v15 = vpop.eup %6961  ;;  %v1738_v50 = vmul.f32 1.442695, %v1718_v59  ;;  %v1723_v41 = vmin.f32 %v8094_v11, 0.0 }
 0x1d3   : > { %v6753_v28 = vadd.f32 -1.0, %v6962_v15  ;;  %v1596_v42 = vpop.f32.mrf.mxu0  ;;  %2070 = vmatmul.f32.gmra.mxu0 %v1880_v38  ;;  %v1881_v31 = vand.u32 4294901760, %v1880_v38  ;;  %v1683_v1 = vpop.f32.mrf.mxu1  ;;  %v1279_v15 = vadd.f32 %v7952_v37, %v1136_v32 }
 0x1d4   : > { %6963 = vpow2.f32 %v1738_v50  ;;  %v1597_v36 = vadd.f32 %v1596_v42, %v1478_v17  ;;  %v1748_v37 = vmul.f32 1.442695, %v1723_v41 }
 0x1d5   : > { %v1769_v61 = vsel %vm1704_vm7, %v1672_v3, %v6753_v28  ;;  %2160 = vmatmul.f32.gmra.mxu1 %v1881_v31  ;;  %v1882_v52 = vsub.f32 %v1880_v38, %v1881_v31  ;;  %v1388_v31 = vadd.f32 %v8053_v24, %v1279_v15 }
 0x1d6   : > { %v1680_v40 = vadd.f32 %v1679_v60, %v1597_v36  ;;  %v1801_v22 = vsel %vm923_vm11, %v1769_v61, 0 }
 0x1d7   : > { %v1883_v12 = vand.u32 4294901760, %v1882_v52  ;;  %v8084_v2 = vand.u32 4294901760, %v1801_v22 }
 0x1d8   : > { %v1719_v55 = vmin.f32 %v1680_v40, 0.0  ;;  %vm1706_vm9 = vcmp.gt.f32.partialorder %v1680_v40, 0.0 }
 0x1d9   : > { %1884 = vmatmul.f32.gmra.mxu2 %v1883_v12  ;;  %1995 = vmatmul.f32.gmra.mxu3 %v8084_v2  ;;  %v1888_v3 = vsub.f32 %v1801_v22, %v8084_v2 }
 0x1da   : > { %v6964_v30 = vpop.eup %6963  ;;  %v1740_v5 = vmul.f32 1.442695, %v1719_v55 }
 0x1db   : > { %v6754_v63 = vadd.f32 -1.0, %v6964_v30  ;;  %v1600_v18 = vpop.f32.mrf.mxu0  ;;  %2075 = vmatmul.f32.gmra.mxu0 %v1888_v3  ;;  %v1889_v34 = vand.u32 4294901760, %v1888_v3  ;;  %v1687_v4 = vpop.f32.mrf.mxu1 }
 0x1dc   : > { %6965 = vpow2.f32 %v1740_v5  ;;  %v1601_v26 = vadd.f32 %v1600_v18, %v1484_v14 }
 0x1dd   : > { %v1770_v29 = vsel %vm1705_vm8, %v1676_v47, %v6754_v63  ;;  %2166 = vmatmul.f32.gmra.mxu1 %v1889_v34  ;;  %v1890_v62 = vsub.f32 %v1888_v3, %v1889_v34 }
 0x1de   : > { %v1684_v46 = vadd.f32 %v1683_v1, %v1601_v26  ;;  %v1804_v35 = vsel %vm923_vm11, %v1770_v29, 0 }
 0x1df   : > { %v1891_v60 = vand.u32 4294901760, %v1890_v62  ;;  %v8096_v39 = vand.u32 4294901760, %v1804_v35 }
 0x1e0   : > { %v1720_v59 = vmin.f32 %v1684_v46, 0.0  ;;  %vm1707_vm7 = vcmp.gt.f32.partialorder %v1684_v46, 0.0 }
 0x1e1   : > { %1892 = vmatmul.f32.gmra.mxu2 %v1891_v60  ;;  %1999 = vmatmul.f32.gmra.mxu3 %v8096_v39  ;;  %v1896_v47 = vsub.f32 %v1804_v35, %v8096_v39 }
 0x1e2   : > { %v6966_v38 = vpop.eup %6965  ;;  %v1742_v45 = vmul.f32 1.442695, %v1720_v59 }
 0x1e3   : > { %v6755_v17 = vadd.f32 -1.0, %v6966_v38  ;;  %v1604_v57 = vpop.f32.mrf.mxu0  ;;  %2080 = vmatmul.f32.gmra.mxu0 %v1896_v47  ;;  %v1897_v50 = vand.u32 4294901760, %v1896_v47  ;;  %v1691_v3 = vpop.f32.mrf.mxu1 }
 0x1e4   : > { %6967 = vpow2.f32 %v1742_v45  ;;  %v1605_v44 = vadd.f32 %v1604_v57, %v1490_v58 }
 0x1e5   : > { %v1771_v28 = vsel %vm1706_vm9, %v1680_v40, %v6755_v17  ;;  %2172 = vmatmul.f32.gmra.mxu1 %v1897_v50  ;;  %v1898_v42 = vsub.f32 %v1896_v47, %v1897_v50  ;;  %v1496_v40 = vadd.f32 %v8061_v7, %v1388_v31  ;;  %6969 = vpow2.f32 %v1748_v37 }
 0x1e6   : > { %v1688_v36 = vadd.f32 %v1687_v4, %v1605_v44  ;;  %v1807_v16 = vsel %vm923_vm11, %v1771_v28, 0  ;;  %vm1710_vm9 = vcmp.gt.f32.partialorder %v8094_v11, 0.0 }
 0x1e7   : > { %v1899_v61 = vand.u32 4294901760, %v1898_v42  ;;  %v8105_v52 = vand.u32 4294901760, %v1807_v16 }
 0x1e8   : > { %v1721_v27 = vmin.f32 %v1688_v36, 0.0  ;;  %vm1708_vm8 = vcmp.gt.f32.partialorder %v1688_v36, 0.0 }
 0x1e9   : > { %1900 = vmatmul.f32.gmra.mxu2 %v1899_v61  ;;  %2003 = vmatmul.f32.gmra.mxu3 %v8105_v52  ;;  %v1904_v8 = vsub.f32 %v1807_v16, %v8105_v52 }
 0x1ea   : > { %v6968_v22 = vpop.eup %6967  ;;  %v1744_v23 = vmul.f32 1.442695, %v1721_v27 }
 0x1eb   : > { %v6756_v12 = vadd.f32 -1.0, %v6968_v22  ;;  %v1608_v24 = vpop.f32.mrf.mxu0  ;;  %2085 = vmatmul.f32.gmra.mxu0 %v1904_v8  ;;  %v1905_v9 = vand.u32 4294901760, %v1904_v8  ;;  %v6970_v63 = vpop.eup %6969 }
 0x1ec   : > { %6971 = vpow2.f32 %v1744_v23  ;;  %v1609_v55 = vadd.f32 %v1608_v24, %v1496_v40  ;;  %v6759_v62 = vadd.f32 -1.0, %v6970_v63 }
 0x1ed   : > { %v1772_v1 = vsel %vm1707_vm7, %v1684_v46, %v6756_v12  ;;  %2178 = vmatmul.f32.gmra.mxu1 %v1905_v9  ;;  %v1906_v30 = vsub.f32 %v1904_v8, %v1905_v9  ;;  %v8144_v8 = vld [vmem:[%s10787_s5] ss:$0 sm:$0xff] }
 0x1ee   : > { %v1692_v14 = vadd.f32 %v1691_v3, %v1609_v55  ;;  %v1810_v25 = vsel %vm923_vm11, %v1772_v1, 0  ;;  %v1775_v59 = vsel %vm1710_vm9, %v8094_v11, %v6759_v62 }
 0x1ef   : > { %v1907_v5 = vand.u32 4294901760, %v1906_v30  ;;  %v8111_v10 = vand.u32 4294901760, %v1810_v25  ;;  %v1819_v45 = vsel %vm923_vm11, %v1775_v59, 0 }
 0x1f0   : > { %v1722_v7 = vmin.f32 %v1692_v14, 0.0  ;;  %vm1709_vm7 = vcmp.gt.f32.partialorder %v1692_v14, 0.0  ;;  %v8126_v11 = vand.u32 4294901760, %v1819_v45 }
 0x1f1   : > { %1908 = vmatmul.f32.gmra.mxu2 %v1907_v5  ;;  %2007 = vmatmul.f32.gmra.mxu3 %v8111_v10  ;;  %v1912_v18 = vsub.f32 %v1810_v25, %v8111_v10 }
 0x1f2   : > { %v6972_v34 = vpop.eup %6971  ;;  %v1746_v56 = vmul.f32 1.442695, %v1722_v7  ;;  %v1936_v42 = vsub.f32 %v1819_v45, %v8126_v11 }
 0x1f3   : > { %v6757_v26 = vadd.f32 -1.0, %v6972_v34  ;;  %2090 = vmatmul.f32.gmra.mxu0 %v1912_v18  ;;  %v1913_v29 = vand.u32 4294901760, %v1912_v18 }
 0x1f4   : > { %6973 = vpow2.f32 %v1746_v56  ;;  %v1937_v16 = vand.u32 4294901760, %v1936_v42 }
 0x1f5   : > { %v1773_v21 = vsel %vm1708_vm8, %v1688_v36, %v6757_v26  ;;  %2184 = vmatmul.f32.gmra.mxu1 %v1913_v29  ;;  %v1914_v32 = vsub.f32 %v1912_v18, %v1913_v29 }
 0x1f6   : > { %v1813_v46 = vsel %vm923_vm11, %v1773_v21, 0  ;;  %v1938_v37 = vsub.f32 %v1936_v42, %v1937_v16 }
 0x1f7   : > { %v1915_v35 = vand.u32 4294901760, %v1914_v32  ;;  %v8116_v60 = vand.u32 4294901760, %v1813_v46 }
 0x1f8   : > { %v1939_v61 = vand.u32 4294901760, %v1938_v37 }
 0x1f9   : > { %1916 = vmatmul.f32.gmra.mxu2 %v1915_v35  ;;  %2011 = vmatmul.f32.gmra.mxu3 %v8116_v60  ;;  %v1920_v47 = vsub.f32 %v1813_v46, %v8116_v60 }
 0x1fa   : > { %v6974_v38 = vpop.eup %6973 }
 0x1fb   : > { %v6758_v58 = vadd.f32 -1.0, %v6974_v38  ;;  %2095 = vmatmul.f32.gmra.mxu0 %v1920_v47  ;;  %v1921_v15 = vand.u32 4294901760, %v1920_v47 }
 0x1fd   : > { %v1774_v41 = vsel %vm1709_vm7, %v1692_v14, %v6758_v58  ;;  %2190 = vmatmul.f32.gmra.mxu1 %v1921_v15  ;;  %v1922_v17 = vsub.f32 %v1920_v47, %v1921_v15  ;;  %vm2498_vm7 = vcmask 1046528  }
 0x1fe   : > { %v1816_v4 = vsel %vm923_vm11, %v1774_v41, 0 }
 0x1ff   : > { %v1923_v57 = vand.u32 4294901760, %v1922_v17  ;;  %v8124_v50 = vand.u32 4294901760, %v1816_v4 }
 0x201   : > { %1924 = vmatmul.f32.gmra.mxu2 %v1923_v57  ;;  %2015 = vmatmul.f32.gmra.mxu3 %v8124_v50  ;;  %v1928_v44 = vsub.f32 %v1816_v4, %v8124_v50 }
 0x203   : > { %2100 = vmatmul.f32.gmra.mxu0 %v1928_v44  ;;  %v1929_v28 = vand.u32 4294901760, %v1928_v44 }
 0x205   : > { %2196 = vmatmul.f32.gmra.mxu1 %v1929_v28  ;;  %v1930_v31 = vsub.f32 %v1928_v44, %v1929_v28 }
 0x207   : > { %v1931_v36 = vand.u32 4294901760, %v1930_v31 }
 0x209   : > { %1932 = vmatmul.f32.gmra.mxu2 %v1931_v36  ;;  %2019 = vmatmul.f32.gmra.mxu3 %v8126_v11 }
 0x20b   : > { %2105 = vmatmul.f32.gmra.mxu0 %v1936_v42 }
 0x20d   : > { %2202 = vmatmul.f32.gmra.mxu1 %v1937_v16 }
 0x211   : > { %1940 = vmatmul.f32.gmra.mxu2 %v1939_v61  ;;  %2300 = vmatmul.f32.vlgmr.msrb.gmra.mxu3 %v8007_v48 }
 0x219   : > { %2229 = vmatmul.f32.vlgmr.msrb.gmra.mxu2 %v8007_v48  ;;  %2304 = vmatmul.f32.gmra.mxu3 %v8019_v13 }
 0x221   : > { %2233 = vmatmul.f32.gmra.mxu2 %v8019_v13  ;;  %2308 = vmatmul.f32.gmra.mxu3 %v8033_v43 }
 0x228   : > { %v2046_v63 = vpop.f32.mrf.mxu0 }
 0x229   : > { %2237 = vmatmul.f32.gmra.mxu2 %v8033_v43  ;;  %2312 = vmatmul.f32.gmra.mxu3 %v8047_v6 }
 0x22a   : > { %v2131_v56 = vpop.f32.mrf.mxu1 }
 0x22c   : > { %v1972_v27 = vpop.f32.mrf.mxu3 }
 0x230   : > { %v2051_v62 = vpop.f32.mrf.mxu0 }
 0x231   : > { %2241 = vmatmul.f32.gmra.mxu2 %v8047_v6  ;;  %2316 = vmatmul.f32.gmra.mxu3 %v8059_v51 }
 0x232   : > { %v2137_v21 = vpop.f32.mrf.mxu1 }
 0x234   : > { %v1845_v48 = vpop.f32.mrf.mxu2  ;;  %v1976_v22 = vpop.f32.mrf.mxu3 }
 0x235   : > { %v1846_v13 = vadd.f32 %v8144_v8, %v1845_v48 }
 0x237   : > { %v1973_v40 = vadd.f32 %v1972_v27, %v1846_v13 }
 0x238   : > { %v2056_v35 = vpop.f32.mrf.mxu0 }
 0x239   : > { %2245 = vmatmul.f32.gmra.mxu2 %v8059_v51  ;;  %2320 = vmatmul.f32.gmra.mxu3 %v8074_v54 }
 0x23a   : > { %v2143_v59 = vpop.f32.mrf.mxu1 }
 0x23c   : > { %v1853_v43 = vpop.f32.mrf.mxu2  ;;  %v1980_v23 = vpop.f32.mrf.mxu3 }
 0x23d   : > { %v1854_v6 = vadd.f32 %v8144_v8, %v1853_v43 }
 0x23f   : > { %v1977_v12 = vadd.f32 %v1976_v22, %v1854_v6 }
 0x240   : > { %v2061_v4 = vpop.f32.mrf.mxu0 }
 0x241   : > { %2249 = vmatmul.f32.gmra.mxu2 %v8074_v54  ;;  %2324 = vmatmul.f32.gmra.mxu3 %v8084_v2  ;;  %v2052_v17 = vadd.f32 %v2051_v62, %v1977_v12 }
 0x242   : > { %v2149_v16 = vpop.f32.mrf.mxu1 }
 0x243   : > { %v2138_v44 = vadd.f32 %v2137_v21, %v2052_v17 }
 0x244   : > { %v1861_v24 = vpop.f32.mrf.mxu2  ;;  %v8152_v9 = vpop.f32.mrf.mxu3 }
 0x245   : > { %v1862_v45 = vadd.f32 %v8144_v8, %v1861_v24 }
 0x248   : > { %v2066_v22 = vpop.f32.mrf.mxu0 }
 0x249   : > { %2253 = vmatmul.f32.gmra.mxu2 %v8084_v2  ;;  %2328 = vmatmul.f32.gmra.mxu3 %v8096_v39 }
 0x24c   : > { %v1869_v55 = vpop.f32.mrf.mxu2  ;;  %v8156_v51 = vpop.f32.mrf.mxu3 }
 0x24d   : > { %v1870_v37 = vadd.f32 %v8144_v8, %v1869_v55 }
 0x24f   : > { %v1985_v13 = vadd.f32 %v8152_v9, %v1870_v37 }
 0x251   : > { %2257 = vmatmul.f32.gmra.mxu2 %v8096_v39  ;;  %2332 = vmatmul.f32.gmra.mxu3 %v8105_v52  ;;  %v2062_v21 = vadd.f32 %v2061_v4, %v1985_v13 }
 0x254   : > { %v8160_v1 = vpop.f32.mrf.mxu2  ;;  %v8162_v3 = vpop.f32.mrf.mxu3 }
 0x259   : > { %2261 = vmatmul.f32.gmra.mxu2 %v8105_v52  ;;  %2336 = vmatmul.f32.gmra.mxu3 %v8111_v10 }
 0x25c   : > { %v8166_v54 = vpop.f32.mrf.mxu2  ;;  %v8168_v2 = vpop.f32.mrf.mxu3 }
 0x261   : > { %2265 = vmatmul.f32.gmra.mxu2 %v8111_v10  ;;  %2340 = vmatmul.f32.gmra.mxu3 %v8116_v60 }
 0x264   : > { %v8172_v30 = vpop.f32.mrf.mxu2  ;;  %v8174_v39 = vpop.f32.mrf.mxu3 }
 0x269   : > { %2269 = vmatmul.f32.gmra.mxu2 %v8116_v60  ;;  %2344 = vmatmul.f32.gmra.mxu3 %v8124_v50  ;;  %v2047_v60 = vadd.f32 %v2046_v63, %v1973_v40 }
 0x26b   : > { %v2132_v47 = vadd.f32 %v2131_v56, %v2047_v60  ;;  %v1878_v56 = vadd.f32 %v8144_v8, %v8160_v1 }
 0x26c   : > { %v8178_v14 = vpop.f32.mrf.mxu2  ;;  %v8180_v52 = vpop.f32.mrf.mxu3 }
 0x26d   : > { %v1989_v1 = vadd.f32 %v8156_v51, %v1878_v56  ;;  %v1886_v51 = vadd.f32 %v8144_v8, %v8166_v54 }
 0x271   : > { %2273 = vmatmul.f32.gmra.mxu2 %v8124_v50  ;;  %2348 = vmatmul.f32.gmra.mxu3 %v8126_v11  ;;  %v1981_v50 = vadd.f32 %v1980_v23, %v1862_v45 }
 0x273   : > { %v2057_v27 = vadd.f32 %v2056_v35, %v1981_v50  ;;  %v2071_v50 = vpop.f32.mrf.mxu0 }
 0x274   : > { %v8184_v25 = vpop.f32.mrf.mxu2  ;;  %v8186_v5 = vpop.f32.mrf.mxu3 }
 0x275   : > { %v2144_v43 = vadd.f32 %v2143_v59, %v2057_v27 }
 0x279   : > { %2277 = vmatmul.f32.gmra.mxu2 %v8126_v11 }
 0x27c   : > { %v8189_v10 = vpop.f32.mrf.mxu2  ;;  %v8191_v7 = vpop.f32.mrf.mxu3 }
 0x284   : > { %v8193_v18 = vpop.f32.mrf.mxu2  ;;  %v8195_v34 = vpop.f32.mrf.mxu3 }
 0x28c   : > { %v8197_v26 = vpop.f32.mrf.mxu2  ;;  %v8199_v29 = vpop.f32.mrf.mxu3 }
 0x294   : > { %v8201_v32 = vpop.f32.mrf.mxu2  ;;  %v2301_v46 = vpop.f32.mrf.mxu3 }
 0x29c   : > { %v2230_v38 = vpop.f32.mrf.mxu2  ;;  %v2305_v58 = vpop.f32.mrf.mxu3 }
 0x29d   : > { %v2231_v15 = vadd.f32 %v2230_v38, %v2132_v47  ;;  %v2150_v38 = vadd.f32 %v2149_v16, %v2062_v21 }
 0x29f   : > { %v2302_v41 = vadd.f32 %v2301_v46, %v2231_v15  ;;  %v2155_v46 = vpop.f32.mrf.mxu1 }
 0x2a1   : > { %v8204_v57 = vmul.f32 0.0, %v2302_v41 }
 0x2a3   : > { %10894 = vst [vmem:[#allocation11_spill] sm:$0xff] %v8204_v57  ;;  %v2391_v11 = vmin.f32 %v8204_v57, 0.0  ;;  %vm2378_vm8 = vcmp.gt.f32.partialorder %v8204_v57, 0.0 }
 0x2a4   : > { %v2234_v28 = vpop.f32.mrf.mxu2  ;;  %v2309_v42 = vpop.f32.mrf.mxu3 }
 0x2a5   : > { %v2404_v31 = vmul.f32 1.442695, %v2391_v11  ;;  %v2235_v36 = vadd.f32 %v2234_v28, %v2138_v44 }
 0x2a7   : > { %6975 = vpow2.f32 %v2404_v31  ;;  %v2306_v61 = vadd.f32 %v2305_v58, %v2235_v36  ;;  %v2161_v54 = vpop.f32.mrf.mxu1 }
 0x2a9   : > { %v8208_v48 = vmul.f32 0.0, %v2306_v61 }
 0x2ab   : > { %10895 = vst [vmem:[#allocation12_spill] sm:$0xff] %v8208_v48  ;;  %v2392_v40 = vmin.f32 %v8208_v48, 0.0  ;;  %vm2379_vm9 = vcmp.gt.f32.partialorder %v8208_v48, 0.0 }
 0x2ac   : > { %v2238_v23 = vpop.f32.mrf.mxu2  ;;  %v2313_v6 = vpop.f32.mrf.mxu3 }
 0x2ad   : > { %v6976_v12 = vpop.eup %6975  ;;  %v2406_v24 = vmul.f32 1.442695, %v2392_v40  ;;  %v2239_v63 = vadd.f32 %v2238_v23, %v2144_v43 }
 0x2ae   : > { %v6760_v55 = vadd.f32 -1.0, %v6976_v12 }
 0x2af   : > { %6977 = vpow2.f32 %v2406_v24  ;;  %v2310_v62 = vadd.f32 %v2309_v42, %v2239_v63  ;;  %v2067_v42 = vadd.f32 %v2066_v22, %v1989_v1  ;;  %v1993_v22 = vadd.f32 %v8162_v3, %v1886_v51 }
 0x2b0   : > { %v8216_v9 = vsel %vm2378_vm8, %v8204_v57, %v6760_v55 }
 0x2b1   : > { %v8218_v35 = vmul.f32 0.0, %v2310_v62  ;;  %2820 = vrot.lane.b32.xlu2 %v8216_v9, %s10891_s17  ;;  %v2594_v60 = vrot.slane %v8216_v9, 5  ;;  %v2569_v59 = vrot.slane %v8216_v9, 2  ;;  %v2545_v17 = vrot.slane %v8216_v9, 7 }
 0x2b2   : > { %v2522_v36 = vrot.slane %v8216_v9, 4  ;;  %v2499_v16 = vrot.slane %v8216_v9, 1  ;;  %v2156_v13 = vadd.f32 %v2155_v46, %v2067_v42  ;;  %v10817_v12 = vrot.slane %v8216_v9, 6 }
 0x2b3   : > { %10896 = vst [vmem:[#allocation13_spill] sm:$0xff] %v8218_v35  ;;  %v2393_v47 = vmin.f32 %v8218_v35, 0.0  ;;  %v2618_v58 = vsel %vm756_vm1, 0.0, %v2594_v60  ;;  %v2593_v15 = vsel %vm711_vm10, 0.0, %v2569_v59  ;;  %v2567_v37 = vsel %vm619_vm2, 0.0, %v2545_v17 }
 0x2b4   : > { %v2242_v45 = vpop.f32.mrf.mxu2  ;;  %v2317_v41 = vpop.f32.mrf.mxu3  ;;  %2780 = vrot.lane.b32.xlu1 %v2618_v58, %s10888_s27  ;;  %2740 = vrot.lane.b32.xlu0 %v2593_v15, %s10887_s1  ;;  %v2544_v23 = vsel %vm743_vm3, 0.0, %v2522_v36  ;;  %v1894_v62 = vadd.f32 %v8144_v8, %v8172_v30  ;;  %vm2380_vm8 = vcmp.gt.f32.partialorder %v8218_v35, 0.0  ;;  %v2072_v1 = vadd.f32 %v2071_v50, %v1993_v22 }
 0x2b5   : > { %v6978_v4 = vpop.eup %6977  ;;  %v2408_v11 = vmul.f32 1.442695, %v2393_v47  ;;  %v2243_v44 = vadd.f32 %v2242_v45, %v2150_v38  ;;  %v2076_v47 = vpop.f32.mrf.mxu0 }
 0x2b6   : > { %v6761_v28 = vadd.f32 -1.0, %v6978_v4  ;;  %v1997_v30 = vadd.f32 %v8168_v2, %v1894_v62 }
 0x2b7   : > { %6979 = vpow2.f32 %v2408_v11  ;;  %v2314_v31 = vadd.f32 %v2313_v6, %v2243_v44  ;;  %v2521_v6 = vsel %vm2498_vm7, 0.0, %v2499_v16  ;;  %v2162_v44 = vadd.f32 %v2161_v54, %v2072_v1 }
 0x2b8   : > { %v8240_v61 = vsel %vm2379_vm9, %v8208_v48, %v6761_v28  ;;  %v2167_v28 = vpop.f32.mrf.mxu1 }
 0x2b9   : > { %v8242_v27 = vmul.f32 0.0, %v2314_v31  ;;  %2702 = vrot.lane.b32.xlu2 %v2567_v37, %s10889_s19  ;;  %v2467_v40 = vrot.slane %v8240_v61, 6  ;;  %v2595_v58 = vrot.slane %v8240_v61, 5  ;;  %v2570_v15 = vrot.slane %v8240_v61, 2 }
 0x2ba   : > { %v2546_v2 = vrot.slane %v8240_v61, 7 }
 0x2bb   : > { %10897 = vst [vmem:[#allocation14_spill] sm:$0xff] %v8242_v27  ;;  %v2394_v43 = vmin.f32 %v8242_v27, 0.0  ;;  %v8260_v55 = vsel %vm769_vm4, %v10817_v12, %v2467_v40  ;;  %v2571_v51 = vsel %vm711_vm10, %v2569_v59, %v2570_v15  ;;  %v2523_v59 = vrot.slane %v8240_v61, 4 }
 0x2bc   : > { %v2246_v24 = vpop.f32.mrf.mxu2  ;;  %2662 = vrot.lane.b32.xlu1 %v2544_v23, %s10893_s23  ;;  %2622 = vrot.lane.b32.xlu0 %v2521_v6, %s10890_s30  ;;  %v2321_v46 = vpop.f32.mrf.mxu3  ;;  %vm2381_vm9 = vcmp.gt.f32.partialorder %v8242_v27, 0.0  ;;  %v2500_v6 = vrot.slane %v8240_v61, 1 }
 0x2bd   : > { %v6980_v3 = vpop.eup %6979  ;;  %v2410_v63 = vmul.f32 1.442695, %v2394_v43  ;;  %v2247_v56 = vadd.f32 %v2246_v24, %v2156_v13  ;;  %v2077_v43 = vadd.f32 %v2076_v47, %v1997_v30 }
 0x2be   : > { %v6762_v21 = vadd.f32 -1.0, %v6980_v3  ;;  %v2501_v1 = vsel %vm2498_vm7, %v2499_v16, %v2500_v6 }
 0x2bf   : > { %6981 = vpow2.f32 %v2410_v63  ;;  %v2318_v38 = vadd.f32 %v2317_v41, %v2247_v56  ;;  %v2596_v41 = vsel %vm756_vm1, %v2594_v60, %v2595_v58  ;;  %v1902_v60 = vadd.f32 %v8144_v8, %v8178_v14  ;;  %v2081_v14 = vpop.f32.mrf.mxu0 }
 0x2c0   : > { %v8268_v45 = vsel %vm2380_vm8, %v8218_v35, %v6762_v21 }
 0x2c1   : > { %v8270_v4 = vmul.f32 0.0, %v2318_v38  ;;  %2822 = vrot.lane.b32.xlu2 %v8240_v61, %s10891_s17  ;;  %v2469_v11 = vrot.slane %v8268_v45, 6  ;;  %v2001_v56 = vadd.f32 %v8174_v39, %v1902_v60  ;;  %v2572_v16 = vrot.slane %v8268_v45, 2 }
 0x2c3   : > { %10898 = vst [vmem:[#allocation15_spill] sm:$0xff] %v8270_v4  ;;  %v2395_v50 = vmin.f32 %v8270_v4, 0.0  ;;  %v8287_v54 = vsel %vm769_vm4, %v2467_v40, %v2469_v11  ;;  %v2547_v40 = vsel %vm619_vm2, %v2545_v17, %v2546_v2  ;;  %v2524_v17 = vsel %vm743_vm3, %v2522_v36, %v2523_v59 }
 0x2c4   : > { %v2250_v42 = vpop.f32.mrf.mxu2  ;;  %2782 = vrot.lane.b32.xlu1 %v2596_v41, %s10888_s27  ;;  %2742 = vrot.lane.b32.xlu0 %v2571_v51, %s10887_s1  ;;  %v2325_v24 = vpop.f32.mrf.mxu3  ;;  %v2082_v36 = vadd.f32 %v2081_v14, %v2001_v56  ;;  %vm2382_vm8 = vcmp.gt.f32.partialorder %v8270_v4, 0.0 }
 0x2c5   : > { %v6982_v31 = vpop.eup %6981  ;;  %v2412_v37 = vmul.f32 1.442695, %v2395_v50  ;;  %v2251_v22 = vadd.f32 %v2250_v42, %v2162_v44  ;;  %v2173_v44 = vpop.f32.mrf.mxu1  ;;  %v1910_v42 = vadd.f32 %v8144_v8, %v8184_v25  ;;  %v2573_v25 = vsel %vm711_vm10, %v2570_v15, %v2572_v16 }
 0x2c6   : > { %v6763_v13 = vadd.f32 -1.0, %v6982_v31  ;;  %v2525_v15 = vrot.slane %v8268_v45, 4 }
 0x2c7   : > { %6983 = vpow2.f32 %v2412_v37  ;;  %v2322_v23 = vadd.f32 %v2321_v46, %v2251_v22  ;;  %v2168_v46 = vadd.f32 %v2167_v28, %v2077_v43  ;;  %v2597_v28 = vrot.slane %v8268_v45, 5  ;;  %v2086_v22 = vpop.f32.mrf.mxu0 }
 0x2c8   : > { %v8300_v3 = vsel %vm2381_vm9, %v8242_v27, %v6763_v13  ;;  %v2174_v13 = vadd.f32 %v2173_v44, %v2082_v36  ;;  %v2005_v56 = vadd.f32 %v8180_v52, %v1910_v42 }
 0x2c9   : > { %v8302_v63 = vmul.f32 0.0, %v2322_v23  ;;  %2704 = vrot.lane.b32.xlu2 %v2547_v40, %s10889_s19  ;;  %v2471_v62 = vrot.slane %v8300_v3, 6  ;;  %v2598_v43 = vsel %vm756_vm1, %v2595_v58, %v2597_v28  ;;  %v2599_v61 = vrot.slane %v8300_v3, 5 }
 0x2ca   : > { %v2087_v44 = vadd.f32 %v2086_v22, %v2005_v56 }
 0x2cb   : > { %10899 = vst [vmem:[#allocation16_spill] sm:$0xff] %v8302_v63  ;;  %v2396_v21 = vmin.f32 %v8302_v63, 0.0  ;;  %v8321_v50 = vsel %vm769_vm4, %v2469_v11, %v2471_v62  ;;  %vm2383_vm9 = vcmp.gt.f32.partialorder %v8302_v63, 0.0 }
 0x2cc   : > { %v2254_v47 = vpop.f32.mrf.mxu2  ;;  %2664 = vrot.lane.b32.xlu1 %v2524_v17, %s10893_s23  ;;  %2624 = vrot.lane.b32.xlu0 %v2501_v1, %s10890_s30  ;;  %v2329_v37 = vpop.f32.mrf.mxu3 }
 0x2cd   : > { %v6984_v39 = vpop.eup %6983  ;;  %v2414_v38 = vmul.f32 1.442695, %v2396_v21  ;;  %v2255_v30 = vadd.f32 %v2254_v47, %v2168_v46  ;;  %v1918_v46 = vadd.f32 %v8144_v8, %v8189_v10 }
 0x2ce   : > { %v6764_v41 = vadd.f32 -1.0, %v6984_v39  ;;  %v2502_v39 = vrot.slane %v8268_v45, 1 }
 0x2cf   : > { %6985 = vpow2.f32 %v2414_v38  ;;  %v2326_v51 = vadd.f32 %v2325_v24, %v2255_v30  ;;  %v2548_v24 = vrot.slane %v8268_v45, 7  ;;  %v2179_v38 = vpop.f32.mrf.mxu1  ;;  %v2091_v22 = vpop.f32.mrf.mxu0 }
 0x2d0   : > { %v8333_v11 = vsel %vm2382_vm8, %v8270_v4, %v6764_v41 }
 0x2d1   : > { %v8328_v31 = vmul.f32 0.0, %v2326_v51  ;;  %2824 = vrot.lane.b32.xlu2 %v8268_v45, %s10891_s17  ;;  %v2473_v40 = vrot.slane %v8333_v11, 6  ;;  %v2549_v52 = vsel %vm619_vm2, %v2546_v2, %v2548_v24  ;;  %v2526_v51 = vsel %vm743_vm3, %v2523_v59, %v2525_v15 }
 0x2d2   : > { %v2503_v2 = vsel %vm2498_vm7, %v2500_v6, %v2502_v39  ;;  %v2574_v59 = vrot.slane %v8300_v3, 2  ;;  %v10909_v4 = vrot.slane %v8333_v11, 5 }
 0x2d3   : > { %10900 = vst [vmem:[#allocation17_spill] sm:$0xff] %v8328_v31  ;;  %v2397_v60 = vmin.f32 %v8328_v31, 0.0  ;;  %v8355_v1 = vsel %vm769_vm4, %v2471_v62, %v2473_v40  ;;  %v2009_v62 = vadd.f32 %v8186_v5, %v1918_v46  ;;  %vm2384_vm8 = vcmp.gt.f32.partialorder %v8328_v31, 0.0 }
 0x2d4   : > { %v2258_v23 = vpop.f32.mrf.mxu2  ;;  %2784 = vrot.lane.b32.xlu1 %v2598_v43, %s10888_s27  ;;  %2744 = vrot.lane.b32.xlu0 %v2573_v25, %s10887_s1  ;;  %v2333_v42 = vpop.f32.mrf.mxu3  ;;  %v2180_v25 = vadd.f32 %v2179_v38, %v2087_v44  ;;  %v2575_v46 = vsel %vm711_vm10, %v2572_v16, %v2574_v59  ;;  %v2527_v16 = vrot.slane %v8300_v3, 4 }
 0x2d5   : > { %v6986_v14 = vpop.eup %6985  ;;  %v2416_v21 = vmul.f32 1.442695, %v2397_v60  ;;  %v2259_v58 = vadd.f32 %v2258_v23, %v2174_v13  ;;  %v2092_v23 = vadd.f32 %v2091_v22, %v2009_v62 }
 0x2d6   : > { %v6765_v17 = vadd.f32 -1.0, %v6986_v14  ;;  %v2528_v45 = vsel %vm743_vm3, %v2525_v15, %v2527_v16 }
 0x2d7   : > { %6987 = vpow2.f32 %v2416_v21  ;;  %v2330_v47 = vadd.f32 %v2329_v37, %v2259_v58  ;;  %v2185_v56 = vpop.f32.mrf.mxu1  ;;  %v2600_v58 = vsel %vm756_vm1, %v2597_v28, %v2599_v61 }
 0x2d8   : > { %v8365_v10 = vsel %vm2383_vm9, %v8302_v63, %v6765_v17  ;;  %v2186_v21 = vadd.f32 %v2185_v56, %v2092_v23 }
 0x2d9   : > { %v8367_v30 = vmul.f32 0.0, %v2330_v47  ;;  %2706 = vrot.lane.b32.xlu2 %v2549_v52, %s10889_s19  ;;  %v2475_v41 = vrot.slane %v8365_v10, 6  ;;  %v2550_v47 = vrot.slane %v8300_v3, 7  ;;  %v10908_v63 = vrot.slane %v8365_v10, 5 }
 0x2db   : > { %10901 = vst [vmem:[#allocation18_spill] sm:$0xff] %v8367_v30  ;;  %v2398_v36 = vmin.f32 %v8367_v30, 0.0  ;;  %v8382_v13 = vsel %vm769_vm4, %v2473_v40, %v2475_v41  ;;  %vm2385_vm9 = vcmp.gt.f32.partialorder %v8367_v30, 0.0  ;;  %v2604_v27 = vsel %vm756_vm1, %v10909_v4, %v10908_v63 }
 0x2dc   : > { %v2262_v37 = vpop.f32.mrf.mxu2  ;;  %2666 = vrot.lane.b32.xlu1 %v2526_v51, %s10893_s23  ;;  %2626 = vrot.lane.b32.xlu0 %v2503_v2, %s10890_s30  ;;  %10902 = vst [vmem:[#allocation19_spill] sm:$0xff] %v8382_v13  ;;  %v10825_v2 = vrot.slane %v8300_v3, 1 }
 0x2dd   : > { %v6988_v5 = vpop.eup %6987  ;;  %v2418_v60 = vmul.f32 1.442695, %v2398_v36  ;;  %v2263_v14 = vadd.f32 %v2262_v37, %v2180_v25  ;;  %v2337_v36 = vpop.f32.mrf.mxu3  ;;  %v2551_v37 = vsel %vm619_vm2, %v2548_v24, %v2550_v47 }
 0x2de   : > { %v6766_v43 = vadd.f32 -1.0, %v6988_v5  ;;  %v2950_v5 = vld [vmem:[%s10788_s6 + $0x68] sm:$0xff]  ;;  %v2505_v24 = vsel %vm2498_vm7, %v2502_v39, %v10825_v2  ;;  %v2948_v39 = vld [vmem:[%s10788_s6 + $0x58] sm:$0xff] }
 0x2df   : > { %6989 = vpow2.f32 %v2418_v60  ;;  %v2334_v62 = vadd.f32 %v2333_v42, %v2263_v14  ;;  %v8425_v22 = vand.u32 4294901760, %v2950_v5  ;;  %v8457_v56 = vand.u32 4294901760, %v2948_v39 }
 0x2e0   : > { %v8388_v6 = vsel %vm2384_vm8, %v8328_v31, %v6766_v43 }
 0x2e1   : > { %2826 = vrot.lane.b32.xlu2 %v8300_v3, %s10891_s17  ;;  %v2477_v40 = vrot.slane %v8388_v6, 6  ;;  %v2360_v42 = vadd.f32 %v2334_v62, %v7364_v19  ;;  %v2949_v19 = vld [vmem:[%s10788_s6 + $0x60] sm:$0xff]  ;;  %3381 = vmatpush.msra.mxu3 %v8425_v22 }
 0x2e2   : > { %v8443_v25 = vand.u32 4294901760, %v2949_v19  ;;  %2997 = vmatpush.msrb.mxu0 %v8425_v22 }
 0x2e3   : > { %v8407_v38 = vsel %vm769_vm4, %v2475_v41, %v2477_v40  ;;  %v8445_v15 = vmul.f32 0.0, %v2360_v42 }
 0x2e4   : > { %v2266_v17 = vpop.f32.mrf.mxu2  ;;  %2786 = vrot.lane.b32.xlu1 %v2600_v58, %s10888_s27  ;;  %2746 = vrot.lane.b32.xlu0 %v2575_v46, %s10887_s1  ;;  %10903 = vst [vmem:[#allocation20_spill] sm:$0xff] %v8407_v38  ;;  %v8454_v14 = vsub.f32 %v2949_v19, %v8443_v25  ;;  %v10824_v46 = vrot.slane %v8333_v11, 5 }
 0x2e5   : > { %v6990_v52 = vpop.eup %6989  ;;  %v2267_v44 = vadd.f32 %v2266_v17, %v2186_v21  ;;  %10904 = vst [vmem:[#allocation21_spill] sm:$0xff] %v8445_v15  ;;  %v10823_v17 = vrot.slane %v8333_v11, 2  ;;  %3383 = vmatpush.msra.mxu3 %v8443_v25  ;;  %2999 = vmatpush.msrb.mxu0 %v8443_v25  ;;  %vm2386_vm8 = vcmp.gt.f32.partialorder %v8445_v15, 0.0 }
 0x2e6   : > { %v6767_v28 = vadd.f32 -1.0, %v6990_v52  ;;  %v2947_v52 = vld [vmem:[%s10788_s6 + $0x50] sm:$0xff]  ;;  %v2602_v19 = vsel %vm756_vm1, %v2599_v61, %v10824_v46 }
 0x2e7   : > { %v2338_v51 = vadd.f32 %v2337_v36, %v2267_v44  ;;  %v8478_v44 = vsub.f32 %v2948_v39, %v8457_v56  ;;  %v2399_v36 = vmin.f32 %v8445_v15, 0.0  ;;  %3385 = vmatpush.msra.mxu3 %v8457_v56  ;;  %3001 = vmatpush.msrb.mxu0 %v8457_v56  ;;  %v2577_v39 = vsel %vm711_vm10, %v2574_v59, %v10823_v17 }
 0x2e8   : > { %v8418_v41 = vsel %vm2385_vm9, %v8367_v30, %v6767_v28  ;;  %v8481_v28 = vand.u32 4294901760, %v2947_v52  ;;  %v10910_v30 = vrot.slane %v8365_v10, 2 }
 0x2e9   : > { %2708 = vrot.lane.b32.xlu2 %v2551_v37, %s10889_s19  ;;  %v2361_v60 = vadd.f32 %v2338_v51, %v7369_v20  ;;  %v10820_v43 = vrot.slane %v8418_v41, 6  ;;  %v8441_v20 = vsub.f32 %v2950_v5, %v8425_v22  ;;  %v10828_v51 = vrot.slane %v8333_v11, 7  ;;  %v2946_v37 = vld [vmem:[%s10788_s6 + $0x48] sm:$0xff] }
 0x2ea   : > { %3387 = vmatpush.msra.mxu3 %v8481_v28  ;;  %3003 = vmatpush.msrb.mxu0 %v8481_v28 }
 0x2eb   : > { %v10819_v23 = vand.u32 4294901760, %v8441_v20  ;;  %3272 = vmatpush.msra.mxu2 %v8441_v20  ;;  %v8462_v21 = vsel %vm769_vm4, %v2477_v40, %v10820_v43  ;;  %v8464_v58 = vmul.f32 0.0, %v2361_v60  ;;  %v10818_v40 = vand.u32 4294901760, %v8454_v14 }
 0x2ec   : > { %2668 = vrot.lane.b32.xlu1 %v2528_v45, %s10893_s23  ;;  %2628 = vrot.lane.b32.xlu0 %v2505_v24, %s10890_s30  ;;  %10905 = vst [vmem:[#allocation22_spill] sm:$0xff] %v8462_v21  ;;  %v10821_v60 = vand.u32 4294901760, %v8478_v44  ;;  %v8496_v45 = vsub.f32 %v2947_v52, %v8481_v28  ;;  %v8511_v52 = vand.u32 4294901760, %v2946_v37 }
 0x2ed   : > { %10906 = vst [vmem:[#allocation23_spill] sm:$0xff] %v8464_v58  ;;  %v3134_v62 = vsub.f32 %v8441_v20, %v10819_v23  ;;  %3275 = vmatpush.msra.mxu2 %v8454_v14  ;;  %v3140_v5 = vsub.f32 %v8454_v14, %v10818_v40  ;;  %v2400_v24 = vmin.f32 %v8464_v58, 0.0  ;;  %v2420_v40 = vmul.f32 1.442695, %v2399_v36 }
 0x2ee   : > { %v3146_v61 = vsub.f32 %v8478_v44, %v10821_v60  ;;  %v10822_v12 = vand.u32 4294901760, %v8496_v45  ;;  %v10832_v23 = vrot.slane %v8333_v11, 4  ;;  %v8527_v43 = vsub.f32 %v2946_v37, %v8511_v52  ;;  %3389 = vmatpush.msra.mxu3 %v8511_v52  ;;  %3005 = vmatpush.msrb.mxu0 %v8511_v52 }
 0x2ef   : > { %v3135_v42 = vand.u32 4294901760, %v3134_v62  ;;  %3278 = vmatpush.msra.mxu2 %v8478_v44  ;;  %v2945_v62 = vld [vmem:[%s10788_s6 + $0x40] sm:$0xff]  ;;  %v3141_v0 = vand.u32 4294901760, %v3140_v5  ;;  %v2944_v5 = vld [vmem:[%s10788_s6 + $0x38] sm:$0xff]  ;;  %v2422_v37 = vmul.f32 1.442695, %v2400_v24  ;;  %6991 = vpow2.f32 %v2420_v40 }
 0x2f0   : > { %v8523_v59 = vand.u32 4294901760, %v2945_v62  ;;  %v8539_v36 = vand.u32 4294901760, %v2944_v5  ;;  %vm2387_vm9 = vcmp.gt.f32.partialorder %v8464_v58, 0.0 }
 0x2f1   : > { %2828 = vrot.lane.b32.xlu2 %v8333_v11, %s10891_s17  ;;  %3136 = vmatpush.msrb.mxu1 %v3135_v42  ;;  %v2553_v42 = vsel %vm619_vm2, %v2550_v47, %v10828_v51  ;;  %v2942_v47 = vld [vmem:[%s10788_s6 + $0x28] sm:$0xff]  ;;  %6993 = vpow2.f32 %v2422_v37  ;;  %v2941_v37 = vld [vmem:[%s10788_s6 + $0x20] sm:$0xff] }
 0x2f2   : > { %3281 = vmatpush.msra.mxu2 %v8496_v45  ;;  %v8537_v60 = vsub.f32 %v2945_v62, %v8523_v59  ;;  %v2943_v62 = vld [vmem:[%s10788_s6 + $0x30] sm:$0xff]  ;;  %v8556_v46 = vsub.f32 %v2944_v5, %v8539_v36  ;;  %3391 = vmatpush.msra.mxu3 %v8523_v59 }
 0x2f3   : > { %3142 = vmatpush.msrb.mxu1 %v3141_v0  ;;  %v8558_v2 = vand.u32 4294901760, %v2943_v62  ;;  %3007 = vmatpush.msrb.mxu0 %v8523_v59 }
 0x2f4   : > { %2788 = vrot.lane.b32.xlu1 %v2602_v19, %s10888_s27  ;;  %2748 = vrot.lane.b32.xlu0 %v2577_v39, %s10887_s1  ;;  %v3147_v19 = vand.u32 4294901760, %v3146_v61  ;;  %v3152_v39 = vsub.f32 %v8496_v45, %v10822_v12  ;;  %v10830_v61 = vrot.slane %v8333_v11, 1  ;;  %v10827_v12 = vand.u32 4294901760, %v8527_v43 }
 0x2f5   : > { %3284 = vmatpush.msra.mxu2 %v8527_v43  ;;  %v10826_v24 = vand.u32 4294901760, %v8537_v60  ;;  %v8575_v40 = vsub.f32 %v2943_v62, %v8558_v2  ;;  %3393 = vmatpush.msra.mxu3 %v8539_v36 }
 0x2f6   : > { %v3153_v17 = vand.u32 4294901760, %v3152_v39  ;;  %3148 = vmatpush.msrb.mxu1 %v3147_v19  ;;  %v3158_v0 = vsub.f32 %v8527_v43, %v10827_v12  ;;  %v10829_v39 = vand.u32 4294901760, %v8556_v46  ;;  %v8577_v19 = vand.u32 4294901760, %v2942_v47  ;;  %3009 = vmatpush.msrb.mxu0 %v8539_v36 }
 0x2f7   : > { %v3164_v5 = vsub.f32 %v8537_v60, %v10826_v24  ;;  %3287 = vmatpush.msra.mxu2 %v8537_v60  ;;  %v10907_v24 = vrot.slane %v8300_v3, 1  ;;  %v10831_v3 = vand.u32 4294901760, %v8575_v40  ;;  %3395 = vmatpush.msra.mxu3 %v8558_v2 }
 0x2f8   : > { %3154 = vmatpush.msrb.mxu1 %v3153_v17  ;;  %v3159_v62 = vand.u32 4294901760, %v3158_v0  ;;  %v8601_v17 = vsub.f32 %v2942_v47, %v8577_v19  ;;  %v2940_v0 = vld [vmem:[%s10788_s6 + $0x18] sm:$0xff]  ;;  %v6992_v47 = vpop.eup %6991  ;;  %3011 = vmatpush.msrb.mxu0 %v8558_v2 }
 0x2f9   : > { %2710 = vrot.lane.b32.xlu2 %v2553_v42, %s10889_s19  ;;  %v2530_v42 = vsel %vm743_vm3, %v2527_v16, %v10832_v23  ;;  %v2507_v12 = vsel %vm2498_vm7, %v10907_v24, %v10830_v61  ;;  %v3165_v51 = vand.u32 4294901760, %v3164_v5  ;;  %v3170_v16 = vsub.f32 %v8556_v46, %v10829_v39  ;;  %3290 = vmatpush.msra.mxu2 %v8556_v46 }
 0x2fa   : > { %3160 = vmatpush.msrb.mxu1 %v3159_v62  ;;  %v8604_v24 = vand.u32 4294901760, %v2941_v37  ;;  %v10835_v39 = vand.u32 4294901760, %v8601_v17  ;;  %3397 = vmatpush.msra.mxu3 %v8577_v19  ;;  %v6994_v62 = vpop.eup %6993 }
 0x2fb   : > { %v3171_v5 = vand.u32 4294901760, %v3170_v16  ;;  %3293 = vmatpush.msra.mxu2 %v8575_v40  ;;  %v8621_v16 = vand.u32 4294901760, %v2940_v0  ;;  %3013 = vmatpush.msrb.mxu0 %v8577_v19 }
 0x2fc   : > { %2670 = vrot.lane.b32.xlu1 %v2530_v42, %s10893_s23  ;;  %2630 = vrot.lane.b32.xlu0 %v2507_v12, %s10890_s30  ;;  %v3176_v42 = vsub.f32 %v8575_v40, %v10831_v3  ;;  %v8619_v61 = vsub.f32 %v2941_v37, %v8604_v24  ;;  %v2939_v3 = vld [vmem:[%s10788_s6 + $0x10] sm:$0xff]  ;;  %v3182_v12 = vsub.f32 %v8601_v17, %v10835_v39  ;;  %v8635_v37 = vpop.permute.xlu2 %2700  ;;  %v2938_v39 = vld [vmem:[%s10788_s6 + $0x8] sm:$0xff] }
 0x2fd   : > { %3166 = vmatpush.msrb.mxu1 %v3165_v51  ;;  %v8631_v51 = vand.u32 4294901760, %v2939_v3  ;;  %v8640_v31 = vsub.f32 %v2940_v0, %v8621_v16  ;;  %3296 = vmatpush.msra.mxu2 %v8601_v17  ;;  %v8655_v0 = vand.u32 4294901760, %v2938_v39 }
 0x2fe   : > { %v3177_v23 = vand.u32 4294901760, %v3176_v42  ;;  %v3183_v35 = vand.u32 4294901760, %v3182_v12  ;;  %3399 = vmatpush.msra.mxu3 %v8604_v24  ;;  %v10911_v42 = vrot.slane %v8333_v11, 2  ;;  %v10912_v57 = vand.u32 4294901760, %v8619_v61  ;;  %3015 = vmatpush.msrb.mxu0 %v8604_v24 }
 0x2ff   : > { %3172 = vmatpush.msrb.mxu1 %v3171_v5  ;;  %v8652_v5 = vsub.f32 %v2939_v3, %v8631_v51  ;;  %v2937_v3 = vld [vmem:[%s10788_s6] sm:$0xff]  ;;  %v6768_v12 = vadd.f32 -1.0, %v6992_v47  ;;  %v10913_v47 = vand.u32 4294901760, %v8640_v31  ;;  %3299 = vmatpush.msra.mxu2 %v8619_v61 }
 0x300   : > { %v2579_v48 = vsel %vm711_vm10, %v10911_v42, %v10910_v30  ;;  %v3188_v4 = vsub.f32 %v8619_v61, %v10912_v57  ;;  %v8676_v42 = vand.u32 4294901760, %v2937_v3  ;;  %v6769_v57 = vadd.f32 -1.0, %v6994_v62  ;;  %3401 = vmatpush.msra.mxu3 %v8621_v16  ;;  %3017 = vmatpush.msrb.mxu0 %v8621_v16 }
 0x301   : > { %2830 = vrot.lane.b32.xlu2 %v8365_v10, %s10891_s17  ;;  %3178 = vmatpush.msrb.mxu1 %v3177_v23  ;;  %v10842_v30 = vand.u32 4294901760, %v8652_v5  ;;  %v8674_v23 = vsub.f32 %v2938_v39, %v8655_v0 }
 0x302   : > { %v3189_v38 = vand.u32 4294901760, %v3188_v4  ;;  %v8691_v62 = vsub.f32 %v2937_v3, %v8676_v42  ;;  %v10915_v4 = vrot.slane %v8333_v11, 7  ;;  %3302 = vmatpush.msra.mxu2 %v8640_v31  ;;  %3403 = vmatpush.msra.mxu3 %v8631_v51 }
 0x303   : > { %3184 = vmatpush.msrb.mxu1 %v3183_v35  ;;  %v10843_v39 = vand.u32 4294901760, %v8674_v23  ;;  %v10914_v35 = vrot.slane %v8365_v10, 7  ;;  %3019 = vmatpush.msrb.mxu0 %v8631_v51 }
 0x304   : > { %2790 = vrot.lane.b32.xlu1 %v2604_v27, %s10888_s27  ;;  %2750 = vrot.lane.b32.xlu0 %v2579_v48, %s10887_s1  ;;  %v3194_v27 = vsub.f32 %v8640_v31, %v10913_v47  ;;  %v3200_v48 = vsub.f32 %v8652_v5, %v10842_v30  ;;  %v8701_v30 = vsel %vm2386_vm8, %v8445_v15, %v6768_v12  ;;  %v10844_v13 = vand.u32 4294901760, %v8691_v62 }
 0x305   : > { %v2555_v47 = vsel %vm619_vm2, %v10915_v4, %v10914_v35  ;;  %3190 = vmatpush.msrb.mxu1 %v3189_v38  ;;  %v3206_v3 = vsub.f32 %v8674_v23, %v10843_v39  ;;  %v8711_v38 = vsel %vm2387_vm9, %v8464_v58, %v6769_v57  ;;  %3305 = vmatpush.msra.mxu2 %v8652_v5  ;;  %v10916_v4 = vrot.slane %v8365_v10, 4 }
 0x306   : > { %v3195_v21 = vand.u32 4294901760, %v3194_v27  ;;  %v3201_v63 = vand.u32 4294901760, %v3200_v48  ;;  %v3212_v27 = vsub.f32 %v8691_v62, %v10844_v13  ;;  %3405 = vmatpush.msra.mxu3 %v8655_v0  ;;  %v2481_v48 = vrot.slane %v8701_v30, 6  ;;  %3021 = vmatpush.msrb.mxu0 %v8655_v0 }
 0x307   : > { %v3207_v12 = vand.u32 4294901760, %v3206_v3  ;;  %v10917_v57 = vrot.slane %v8333_v11, 4  ;;  %v10919_v3 = vrot.slane %v8333_v11, 1  ;;  %v2483_v13 = vrot.slane %v8711_v38, 6  ;;  %3308 = vmatpush.msra.mxu2 %v8674_v23 }
 0x308   : > { %3196 = vmatpush.msrb.mxu1 %v3195_v21  ;;  %v10918_v21 = vrot.slane %v8365_v10, 1  ;;  %v3213_v58 = vand.u32 4294901760, %v3212_v27  ;;  %v10920_v15 = vrot.slane %v8418_v41, 6  ;;  %3407 = vmatpush.msra.mxu3 %v8676_v42  ;;  %v10922_v27 = vrot.slane %v8365_v10, 5 }
 0x309   : > { %2712 = vrot.lane.b32.xlu2 %v2555_v47, %s10889_s19  ;;  %v2532_v47 = vsel %vm743_vm3, %v10917_v57, %v10916_v4  ;;  %v8745_v11 = vsel %vm769_vm4, %v2481_v48, %v2483_v13  ;;  %3311 = vmatpush.msra.mxu2 %v8691_v62 }
 0x30a   : > { %v2509_v39 = vsel %vm2498_vm7, %v10919_v3, %v10918_v21  ;;  %3202 = vmatpush.msrb.mxu1 %v3201_v63  ;;  %v8739_v4 = vsel %vm769_vm4, %v10920_v15, %v2481_v48  ;;  %v2605_v63 = vrot.slane %v8388_v6, 5  ;;  %3023 = vmatpush.msrb.mxu0 %v8676_v42  ;;  %v10921_v15 = vand.u32 4294901760, %v8441_v20 }
 0x30b   : > { %v8720_v35 = vpop.permute.xlu2 %2820  ;;  %v10923_v48 = vrot.slane %v8365_v10, 2  ;;  %v2556_v20 = vrot.slane %v8388_v6, 7  ;;  %v2510_v21 = vrot.slane %v8388_v6, 1  ;;  %v10926_v3 = vand.u32 4294901760, %v8496_v45 }
 0x30c   : > { %2672 = vrot.lane.b32.xlu1 %v2532_v47, %s10893_s23  ;;  %2632 = vrot.lane.b32.xlu0 %v2509_v39, %s10890_s30  ;;  %v2580_v39 = vrot.slane %v8388_v6, 2  ;;  %v2533_v47 = vrot.slane %v8388_v6, 4  ;;  %v10929_v45 = vrot.slane %v8365_v10, 4 }
 0x30d   : > { %3208 = vmatpush.msrb.mxu1 %v3207_v12  ;;  %3492 = vmatpush.msra.mxu0 %v10921_v15 }
 0x30e   : > { %v2581_v57 = vsel %vm711_vm10, %v10923_v48, %v2580_v39  ;;  %v2621_v48 = vpop.permute.xlu0 %2620 }
 0x30f   : > { %3214 = vmatpush.msrb.mxu1 %v3213_v58  ;;  %v2606_v58 = vsel %vm756_vm1, %v10922_v27, %v2605_v63  ;;  %v2534_v27 = vsel %vm743_vm3, %v10929_v45, %v2533_v47  ;;  %v2191_v45 = vpop.f32.mrf.mxu1 }
 0x311   : > { %3601 = vmatpush.msra.mxu1 %v8425_v22  ;;  %2832 = vrot.lane.b32.xlu2 %v8388_v6, %s10891_s17  ;;  %v10924_v22 = vand.u32 4294901760, %v8454_v14  ;;  %v10927_v14 = vrot.slane %v8365_v10, 7 }
 0x313   : > { %3603 = vmatpush.msra.mxu1 %v8443_v25  ;;  %v8759_v12 = vpop.permute.xlu2 %2702  ;;  %3496 = vmatpush.msra.mxu0 %v10924_v22  ;;  %v10925_v25 = vand.u32 4294901760, %v8478_v44  ;;  %v2557_v15 = vsel %vm619_vm2, %v10927_v14, %v2556_v20  ;;  %v10928_v44 = vand.u32 4294901760, %v8527_v43  ;;  %v1926_v43 = vadd.f32 %v8144_v8, %v8193_v18 }
 0x314   : > { %2792 = vrot.lane.b32.xlu1 %v2606_v58, %s10888_s27  ;;  %2752 = vrot.lane.b32.xlu0 %v2581_v57, %s10887_s1  ;;  %v10931_v57 = vand.u32 4294901760, %v8537_v60  ;;  %v2607_v22 = vrot.slane %v8418_v41, 5  ;;  %v8813_v18 = vsel %vm923_vm11, 0.0, %v2621_v48  ;;  %v10934_v60 = vand.u32 4294901760, %v8575_v40 }
 0x315   : > { %3500 = vmatpush.msra.mxu0 %v10925_v25  ;;  %3605 = vmatpush.msra.mxu1 %v8457_v56  ;;  %v10932_v25 = vand.u32 4294901760, %v8556_v46  ;;  %v2013_v8 = vadd.f32 %v8191_v7, %v1926_v43  ;;  %10933 = vst [vmem:[#allocation24_spill] sm:$0xff] %v8813_v18  ;;  %v10936_v40 = vand.u32 4294901760, %v8601_v17  ;;  %v2535_v43 = vrot.slane %v8418_v41, 4 }
 0x316   : > { %v2608_v7 = vsel %vm756_vm1, %v2605_v63, %v2607_v22 }
 0x317   : > { %3504 = vmatpush.msra.mxu0 %v10926_v3  ;;  %3607 = vmatpush.msra.mxu1 %v8481_v28  ;;  %v10930_v28 = vrot.slane %v8365_v10, 1  ;;  %v2582_v10 = vrot.slane %v8418_v41, 2  ;;  %v636_v3 = vlaneseq }
 0x319   : > { %2714 = vrot.lane.b32.xlu2 %v2557_v15, %s10889_s19  ;;  %3508 = vmatpush.msra.mxu0 %v10928_v44  ;;  %v2511_v58 = vsel %vm2498_vm7, %v10930_v28, %v2510_v21  ;;  %v2583_v14 = vsel %vm711_vm10, %v2580_v39, %v2582_v10  ;;  %v2558_v15 = vrot.slane %v8418_v41, 7  ;;  %v10937_v44 = vand.u32 4294901760, %v8619_v61  ;;  %v2270_v28 = vpop.f32.mrf.mxu2 }
 0x31a   : > { %3609 = vmatpush.msra.mxu1 %v8511_v52  ;;  %v2661_v52 = vpop.permute.xlu1 %2660  ;;  %v10938_v61 = vand.u32 4294901760, %v8640_v31  ;;  %v10939_v31 = vand.u32 4294901760, %v8652_v5  ;;  %v2341_v5 = vpop.f32.mrf.mxu3 }
 0x31b   : > { %v8787_v56 = vpop.permute.xlu2 %2822  ;;  %3512 = vmatpush.msra.mxu0 %v10931_v57  ;;  %v8822_v46 = vsel %vm931_vm12, %v8813_v18, %v2661_v52  ;;  %v2559_v48 = vsel %vm619_vm2, %v2556_v20, %v2558_v15 }
 0x31c   : > { %2674 = vrot.lane.b32.xlu1 %v2534_v27, %s10893_s23  ;;  %2634 = vrot.lane.b32.xlu0 %v2511_v58, %s10890_s30  ;;  %10935 = vst [vmem:[#allocation25_spill] sm:$0xff] %v8822_v46  ;;  %v8843_v39 = vsel %vm939_vm13, %v8822_v46, %v8635_v37  ;;  %v637_v27 = vshrl.u32 %v636_v3, 7  ;;  %v10940_v3 = vand.u32 4294901760, %v8674_v23 }
 0x31d   : > { %3611 = vmatpush.msra.mxu1 %v8523_v59  ;;  %3516 = vmatpush.msra.mxu0 %v10932_v25  ;;  %v2096_v59 = vpop.f32.mrf.mxu0 }
 0x31f   : > { %3613 = vmatpush.msra.mxu1 %v8539_v36  ;;  %3520 = vmatpush.msra.mxu0 %v10934_v60 }
 0x321   : > { %2834 = vrot.lane.b32.xlu2 %v8418_v41, %s10891_s17  ;;  %3615 = vmatpush.msra.mxu1 %v8558_v2  ;;  %v2097_v2 = vadd.f32 %v2096_v59, %v2013_v8  ;;  %v647_v8 = vadd.s32 80, %v637_v27 }
 0x322   : > { %3524 = vmatpush.msra.mxu0 %v10936_v40  ;;  %v10941_v40 = vand.u32 4294901760, %v8691_v62 }
 0x323   : > { %v8824_v36 = vpop.permute.xlu2 %2704  ;;  %3617 = vmatpush.msra.mxu1 %v8577_v19  ;;  %v2512_v19 = vrot.slane %v8418_v41, 1  ;;  %v2192_v52 = vadd.f32 %v2191_v45, %v2097_v2  ;;  %vm660_vm8 = vcmp.lt.s32.totalorder %v647_v8, 81  ;;  %v10942_v41 = vrot.slane %v8216_v9, 6 }
 0x324   : > { %2794 = vrot.lane.b32.xlu1 %v2608_v7, %s10888_s27  ;;  %2754 = vrot.lane.b32.xlu0 %v2583_v14, %s10887_s1 }
 0x325   : > { %3528 = vmatpush.msra.mxu0 %v10937_v44  ;;  %3619 = vmatpush.msra.mxu1 %v8604_v24  ;;  %v2271_v25 = vadd.f32 %v2270_v28, %v2192_v52 }
 0x326   : > { %v2781_v63 = vpop.permute.xlu1 %2780  ;;  %v2741_v17 = vpop.permute.xlu0 %2740 }
 0x327   : > { %v2898_v58 = vsel %vm947_vm14, %v8843_v39, %v2741_v17  ;;  %3532 = vmatpush.msra.mxu0 %v10938_v61  ;;  %3621 = vmatpush.msra.mxu1 %v8621_v16  ;;  %v2513_v16 = vsel %vm2498_vm7, %v2510_v21, %v2512_v19  ;;  %v2584_v21 = vrot.slane %v8701_v30, 2 }
 0x328   : > { %v2911_v37 = vsel %vm955_vm15, %v2898_v58, %v2781_v63  ;;  %v2560_v58 = vrot.slane %v8701_v30, 7 }
 0x329   : > { %v2924_v57 = vsel %vm963_vm5, %v2911_v37, %v8720_v35  ;;  %2716 = vrot.lane.b32.xlu2 %v2559_v48, %s10889_s19  ;;  %3536 = vmatpush.msra.mxu0 %v10939_v31  ;;  %v2536_v35 = vsel %vm743_vm3, %v2533_v47, %v2535_v43  ;;  %v2342_v47 = vadd.f32 %v2341_v5, %v2271_v25  ;;  %v2537_v48 = vrot.slane %v8701_v30, 4 }
 0x32a   : > { %v2956_v24 = vsel %vm989_vm6, %v2924_v57, 0  ;;  %3623 = vmatpush.msra.mxu1 %v8631_v51  ;;  %v2609_v51 = vrot.slane %v8701_v30, 5  ;;  %v2585_v62 = vsel %vm711_vm10, %v2582_v10, %v2584_v21 }
 0x32b   : > { %v8863_v60 = vand.u32 4294901760, %v2956_v24  ;;  %v8865_v59 = vpop.permute.xlu2 %2824  ;;  %3540 = vmatpush.msra.mxu0 %v10940_v3  ;;  %v2362_v63 = vadd.f32 %v2342_v47, %v7393_v33  ;;  %v7105_v33 = vld [vmem:[%s10787_s5] ss:$0 sm:$0xff] }
 0x32c   : > { %2676 = vrot.lane.b32.xlu1 %v2536_v35, %s10893_s23  ;;  %2636 = vrot.lane.b32.xlu0 %v2513_v16, %s10890_s30  ;;  %v1934_v28 = vadd.f32 %v7105_v33, %v8197_v26  ;;  %v2514_v26 = vrot.slane %v8701_v30, 1  ;;  %v2101_v35 = vpop.f32.mrf.mxu0 }
 0x32d   : > { %v3025_v20 = vsub.f32 %v2956_v24, %v8863_v60  ;;  %3216 = vmatmul.f32.vlgmr.msrb.gmra.mxu1 %v8863_v60  ;;  %3544 = vmatpush.msra.mxu0 %v10941_v40  ;;  %v2561_v24 = vsel %vm619_vm2, %v2558_v15, %v2560_v58  ;;  %v2611_v40 = vrot.slane %v8711_v38, 5 }
 0x32e   : > { %v2663_v7 = vpop.permute.xlu1 %2662  ;;  %v2623_v14 = vpop.permute.xlu0 %2622  ;;  %3625 = vmatpush.msra.mxu1 %v8655_v0  ;;  %v7194_v0 = vmov 1.0   ;;  %v2017_v57 = vadd.f32 %v8195_v34, %v1934_v28  ;;  %v2538_v34 = vsel %vm743_vm3, %v2535_v43, %v2537_v48 }
 0x32f   : > { %3314 = vmatmul.f32.vlgmr.msra.gmra.mxu2 %v3025_v20  ;;  %v3026_v6 = vand.u32 4294901760, %v3025_v20  ;;  %v2860_v2 = vsel %vm923_vm11, 0.0, %v2623_v14  ;;  %v8893_v44 = vsel %vm660_vm8, 0.0, %v7194_v0  ;;  %v2274_v14 = vpop.f32.mrf.mxu2 }
 0x330   : > { %3627 = vmatpush.msra.mxu1 %v8676_v42  ;;  %v2873_v17 = vsel %vm931_vm12, %v2860_v2, %v2663_v7  ;;  %v2610_v42 = vsel %vm756_vm1, %v2607_v22, %v2609_v51  ;;  %v8917_v22 = vmul.f32 %v2362_v63, %v8893_v44  ;;  %v2102_v5 = vadd.f32 %v2101_v35, %v2017_v57  ;;  %v2197_v7 = vpop.f32.mrf.mxu1 }
 0x331   : > { %3411 = vmatmul.f32.vlgmr.msra.gmra.mxu3 %v3026_v6  ;;  %2836 = vrot.lane.b32.xlu2 %v8701_v30, %s10891_s17  ;;  %v3027_v23 = vsub.f32 %v3025_v20, %v3026_v6  ;;  %v2886_v10 = vsel %vm939_vm13, %v2873_v17, %v8759_v12  ;;  %v2586_v2 = vrot.slane %v8711_v38, 2 }
 0x332   : > { %v2401_v8 = vmin.f32 %v8917_v22, 0.0  ;;  %v2198_v0 = vadd.f32 %v2197_v7, %v2102_v5  ;;  %vm2388_vm9 = vcmp.gt.f32.partialorder %v8917_v22, 0.0 }
 0x333   : > { %v8897_v45 = vpop.permute.xlu2 %2706  ;;  %v3028_v27 = vand.u32 4294901760, %v3027_v23  ;;  %v1942_v23 = vadd.f32 %v7105_v33, %v8201_v32  ;;  %v2612_v32 = vsel %vm756_vm1, %v2609_v51, %v2611_v40 }
 0x334   : > { %2796 = vrot.lane.b32.xlu1 %v2610_v42, %s10888_s27  ;;  %2756 = vrot.lane.b32.xlu0 %v2585_v62, %s10887_s1  ;;  %v2424_v43 = vmul.f32 1.442695, %v2401_v8  ;;  %v2275_v42 = vadd.f32 %v2274_v14, %v2198_v0 }
 0x335   : > { %3029 = vmatmul.f32.vlgmr.msrb.gmra.mxu0 %v3028_v27  ;;  %v2587_v27 = vsel %vm711_vm10, %v2584_v21, %v2586_v2  ;;  %v2021_v28 = vadd.f32 %v8199_v29, %v1942_v23  ;;  %v2516_v29 = vrot.slane %v8711_v38, 1 }
 0x336   : > { %v2783_v61 = vpop.permute.xlu1 %2782  ;;  %v2743_v52 = vpop.permute.xlu0 %2742  ;;  %6995 = vpow2.f32 %v2424_v43 }
 0x337   : > { %v2899_v37 = vsel %vm947_vm14, %v2886_v10, %v2743_v52  ;;  %v2345_v10 = vpop.f32.mrf.mxu3 }
 0x338   : > { %v2912_v25 = vsel %vm955_vm15, %v2899_v37, %v2783_v61  ;;  %v2562_v61 = vrot.slane %v8711_v38, 7  ;;  %v2346_v52 = vadd.f32 %v2345_v10, %v2275_v42 }
 0x339   : > { %v2925_v12 = vsel %vm963_vm5, %v2912_v25, %v8787_v56  ;;  %2718 = vrot.lane.b32.xlu2 %v2561_v24, %s10889_s19  ;;  %v2515_v56 = vsel %vm2498_vm7, %v2512_v19, %v2514_v26  ;;  %v2496_v19 = vsel %vm769_vm4, 0.0, %v10942_v41  ;;  %v2106_v25 = vpop.f32.mrf.mxu0  ;;  %v2539_v24 = vrot.slane %v8711_v38, 4 }
 0x33a   : > { %v2959_v31 = vsel %vm989_vm6, %v2925_v12, 0  ;;  %v2563_v35 = vsel %vm619_vm2, %v2560_v58, %v2562_v61 }
 0x33b   : > { %v8936_v16 = vpop.permute.xlu2 %2826  ;;  %v8948_v15 = vand.u32 4294901760, %v2959_v31  ;;  %v2540_v58 = vsel %vm743_vm3, %v2537_v48, %v2539_v24 }
 0x33c   : > { %2678 = vrot.lane.b32.xlu1 %v2538_v34, %s10893_s23  ;;  %2638 = vrot.lane.b32.xlu0 %v2515_v56, %s10890_s30  ;;  %v6996_v12 = vpop.eup %6995  ;;  %v2203_v34 = vpop.f32.mrf.mxu1  ;;  %v8995_v56 = vadd.f32 %v2346_v52, %v7426_v53 }
 0x33d   : > { %3220 = vmatmul.f32.gmra.mxu1 %v8948_v15  ;;  %v3033_v20 = vsub.f32 %v2959_v31, %v8948_v15  ;;  %v2107_v31 = vadd.f32 %v2106_v25, %v2021_v28  ;;  %v6770_v53 = vadd.f32 -1.0, %v6996_v12 }
 0x33e   : > { %v2665_v3 = vpop.permute.xlu1 %2664  ;;  %v2625_v47 = vpop.permute.xlu0 %2624  ;;  %v2402_v30 = vmin.f32 %v8995_v56, 0.0  ;;  %vm2389_vm8 = vcmp.gt.f32.partialorder %v8995_v56, 0.0 }
 0x33f   : > { %3319 = vmatmul.f32.gmra.mxu2 %v3033_v20  ;;  %v3034_v6 = vand.u32 4294901760, %v3033_v20  ;;  %v2861_v63 = vsel %vm923_vm11, %v2496_v19, %v2625_v47  ;;  %v2204_v43 = vadd.f32 %v2203_v34, %v2107_v31  ;;  %v2349_v23 = vpop.f32.mrf.mxu3 }
 0x340   : > { %v2874_v9 = vsel %vm931_vm12, %v2861_v63, %v2665_v3 }
 0x341   : > { %2838 = vrot.lane.b32.xlu2 %v8711_v38, %s10891_s17  ;;  %3417 = vmatmul.f32.gmra.mxu3 %v3034_v6  ;;  %v3035_v17 = vsub.f32 %v3033_v20, %v3034_v6  ;;  %v2887_v57 = vsel %vm939_vm13, %v2874_v9, %v8824_v36  ;;  %v2278_v20 = vpop.f32.mrf.mxu2  ;;  %v2426_v9 = vmul.f32 1.442695, %v2402_v30 }
 0x342   : > { %v2279_v14 = vadd.f32 %v2278_v20, %v2204_v43 }
 0x343   : > { %v8964_v62 = vpop.permute.xlu2 %2708  ;;  %v3036_v33 = vand.u32 4294901760, %v3035_v17  ;;  %6997 = vpow2.f32 %v2426_v9 }
 0x344   : > { %2798 = vrot.lane.b32.xlu1 %v2612_v32, %s10888_s27  ;;  %2758 = vrot.lane.b32.xlu0 %v2587_v27, %s10887_s1  ;;  %v2350_v63 = vadd.f32 %v2349_v23, %v2279_v14 }
 0x345   : > { %3037 = vmatmul.f32.gmra.mxu0 %v3036_v33 }
 0x346   : > { %v2785_v37 = vpop.permute.xlu1 %2784  ;;  %v2745_v51 = vpop.permute.xlu0 %2744 }
 0x347   : > { %v2900_v21 = vsel %vm947_vm14, %v2887_v57, %v2745_v51 }
 0x348   : > { %v2913_v8 = vsel %vm955_vm15, %v2900_v21, %v2785_v37 }
 0x349   : > { %v2926_v36 = vsel %vm963_vm5, %v2913_v8, %v8865_v59  ;;  %2720 = vrot.lane.b32.xlu2 %v2563_v35, %s10889_s19  ;;  %v2517_v59 = vsel %vm2498_vm7, %v2514_v26, %v2516_v29  ;;  %v9019_v26 = vsel %vm2388_vm9, %v8917_v22, %v6770_v53  ;;  %v6998_v34 = vpop.eup %6997 }
 0x34a   : > { %v2962_v5 = vsel %vm989_vm6, %v2926_v36, 0  ;;  %v2541_v17 = vrot.slane %v9019_v26, 4  ;;  %v2518_v42 = vrot.slane %v9019_v26, 1  ;;  %v2564_v51 = vrot.slane %v9019_v26, 7 }
 0x34b   : > { %v8998_v3 = vpop.permute.xlu2 %2828  ;;  %v9010_v47 = vand.u32 4294901760, %v2962_v5  ;;  %v2613_v57 = vrot.slane %v9019_v26, 5  ;;  %v2588_v25 = vrot.slane %v9019_v26, 2  ;;  %v6771_v53 = vadd.f32 -1.0, %v6998_v34 }
 0x34c   : > { %2680 = vrot.lane.b32.xlu1 %v2540_v58, %s10893_s23  ;;  %2640 = vrot.lane.b32.xlu0 %v2517_v59, %s10890_s30  ;;  %v2542_v14 = vsel %vm743_vm3, %v2539_v24, %v2541_v17 }
 0x34d   : > { %3224 = vmatmul.f32.gmra.mxu1 %v9010_v47  ;;  %v3041_v7 = vsub.f32 %v2962_v5, %v9010_v47  ;;  %v2614_v8 = vsel %vm756_vm1, %v2611_v40, %v2613_v57  ;;  %v2589_v35 = vsel %vm711_vm10, %v2586_v2, %v2588_v25  ;;  %v2565_v2 = vsel %vm619_vm2, %v2562_v61, %v2564_v51 }
 0x34e   : > { %v2667_v48 = vpop.permute.xlu1 %2666  ;;  %v2627_v41 = vpop.permute.xlu0 %2626  ;;  %v2454_v61 = vsel %vm2389_vm8, %v8995_v56, %v6771_v53 }
 0x34f   : > { %3324 = vmatmul.f32.gmra.mxu2 %v3041_v7  ;;  %v3042_v19 = vand.u32 4294901760, %v3041_v7  ;;  %v2862_v6 = vsel %vm923_vm11, %v8260_v55, %v2627_v41  ;;  %v9033_v55 = vadd.f32 %v2350_v63, %v7417_v49  ;;  %v2615_v23 = vrot.slane %v2454_v61, 5 }
 0x350   : > { %v2875_v32 = vsel %vm931_vm12, %v2862_v6, %v2667_v48  ;;  %v2590_v6 = vrot.slane %v2454_v61, 2 }
 0x351   : > { %2840 = vrot.lane.b32.xlu2 %v9019_v26, %s10891_s17  ;;  %3423 = vmatmul.f32.gmra.mxu3 %v3042_v19  ;;  %v3043_v0 = vsub.f32 %v3041_v7, %v3042_v19  ;;  %10943 = vst [vmem:[#allocation26_spill] sm:$0xff] %v9033_v55  ;;  %v2888_v52 = vsel %vm939_vm13, %v2875_v32, %v8897_v45  ;;  %v2403_v45 = vmin.f32 %v9033_v55, 0.0 }
 0x352   : > { %v2591_v9 = vsel %vm711_vm10, %v2588_v25, %v2590_v6 }
 0x353   : > { %v9028_v27 = vpop.permute.xlu2 %2710  ;;  %v3044_v33 = vand.u32 4294901760, %v3043_v0  ;;  %v2428_v58 = vmul.f32 1.442695, %v2403_v45 }
 0x354   : > { %2684 = vrot.lane.b32.xlu1 %v2541_v17, %s10893_s23  ;;  %2644 = vrot.lane.b32.xlu0 %v2518_v42, %s10890_s30 }
 0x355   : > { %3045 = vmatmul.f32.gmra.mxu0 %v3044_v33  ;;  %6999 = vpow2.f32 %v2428_v58 }
 0x356   : > { %v2787_v28 = vpop.permute.xlu1 %2786  ;;  %v2747_v10 = vpop.permute.xlu0 %2746 }
 0x357   : > { %v2901_v37 = vsel %vm947_vm14, %v2888_v52, %v2747_v10 }
 0x358   : > { %v2914_v21 = vsel %vm955_vm15, %v2901_v37, %v2787_v28 }
 0x359   : > { %v2927_v49 = vsel %vm963_vm5, %v2914_v21, %v8936_v16  ;;  %2724 = vrot.lane.b32.xlu2 %v2564_v51, %s10889_s19 }
 0x35a   : > { %v2965_v12 = vsel %vm989_vm6, %v2927_v49, 0 }
 0x35b   : > { %v9047_v31 = vpop.permute.xlu2 %2830  ;;  %v9055_v36 = vand.u32 4294901760, %v2965_v12 }
 0x35c   : > { %2800 = vrot.lane.b32.xlu1 %v2614_v8, %s10888_s27  ;;  %2760 = vrot.lane.b32.xlu0 %v2589_v35, %s10887_s1 }
 0x35d   : > { %3228 = vmatmul.f32.gmra.mxu1 %v9055_v36  ;;  %v3049_v16 = vsub.f32 %v2965_v12, %v9055_v36 }
 0x35e   : > { %v2669_v5 = vpop.permute.xlu1 %2668  ;;  %v2629_v20 = vpop.permute.xlu0 %2628 }
 0x35f   : > { %3329 = vmatmul.f32.gmra.mxu2 %v3049_v16  ;;  %v3050_v40 = vand.u32 4294901760, %v3049_v16  ;;  %v2863_v59 = vsel %vm923_vm11, %v8287_v54, %v2629_v20  ;;  %v2519_v54 = vsel %vm2498_vm7, %v2516_v29, %v2518_v42  ;;  %v7000_v29 = vpop.eup %6999  ;;  %v2616_v42 = vsel %vm756_vm1, %v2613_v57, %v2615_v23 }
 0x360   : > { %v2876_v7 = vsel %vm931_vm12, %v2863_v59, %v2669_v5  ;;  %v6772_v32 = vadd.f32 -1.0, %v7000_v29  ;;  %vm2390_vm7 = vcmp.gt.f32.partialorder %v9033_v55, 0.0  ;;  %v10944_v20 = vmov 0.0  }
 0x361   : > { %2722 = vrot.lane.b32.xlu2 %v2565_v2, %s10889_s19  ;;  %3429 = vmatmul.f32.gmra.mxu3 %v3050_v40  ;;  %v3051_v43 = vsub.f32 %v3049_v16, %v3050_v40  ;;  %v2889_v26 = vsel %vm939_vm13, %v2876_v7, %v8964_v62 }
 0x362   : > { %v2455_v51 = vsel %vm2390_vm7, %v9033_v55, %v6772_v32 }
 0x363   : > { %v3052_v48 = vand.u32 4294901760, %v3051_v43  ;;  %v9078_v41 = vpop.permute.xlu2 %2712 }
 0x364   : > { %2682 = vrot.lane.b32.xlu1 %v2542_v14, %s10893_s23  ;;  %2642 = vrot.lane.b32.xlu0 %v2519_v54, %s10890_s30 }
 0x365   : > { %3053 = vmatmul.f32.gmra.mxu0 %v3052_v48 }
 0x366   : > { %v2789_v30 = vpop.permute.xlu1 %2788  ;;  %v2749_v19 = vpop.permute.xlu0 %2748 }
 0x367   : > { %v2902_v24 = vsel %vm947_vm14, %v2889_v26, %v2749_v19 }
 0x368   : > { %v2915_v0 = vsel %vm955_vm15, %v2902_v24, %v2789_v30 }
 0x369   : > { %v2928_v63 = vsel %vm963_vm5, %v2915_v0, %v8998_v3  ;;  %2842 = vrot.lane.b32.xlu2 %v2454_v61, %s10891_s17  ;;  %v10945_v0 = vld [vmem:[#allocation19_spill] sm:$0xff] }
 0x36a   : > { %v2968_v17 = vsel %vm989_vm6, %v2928_v63, 0 }
 0x36b   : > { %v9090_v62 = vand.u32 4294901760, %v2968_v17  ;;  %v2833_v10 = vpop.permute.xlu2 %2832 }
 0x36c   : > { %2802 = vrot.lane.b32.xlu1 %v2616_v42, %s10888_s27  ;;  %2762 = vrot.lane.b32.xlu0 %v2591_v9, %s10887_s1 }
 0x36d   : > { %3232 = vmatmul.f32.gmra.mxu1 %v9090_v62  ;;  %v3057_v33 = vsub.f32 %v2968_v17, %v9090_v62 }
 0x36e   : > { %v2671_v3 = vpop.permute.xlu1 %2670  ;;  %v2631_v28 = vpop.permute.xlu0 %2630 }
 0x36f   : > { %3334 = vmatmul.f32.gmra.mxu2 %v3057_v33  ;;  %v3058_v52 = vand.u32 4294901760, %v3057_v33  ;;  %v2864_v37 = vsel %vm923_vm11, %v8321_v50, %v2631_v28 }
 0x370   : > { %v2877_v25 = vsel %vm931_vm12, %v2864_v37, %v2671_v3 }
 0x371   : > { %3435 = vmatmul.f32.gmra.mxu3 %v3058_v52  ;;  %2844 = vrot.lane.b32.xlu2 %v2455_v51, %s10891_s17  ;;  %v3059_v57 = vsub.f32 %v3057_v33, %v3058_v52  ;;  %v2890_v12 = vsel %vm939_vm13, %v2877_v25, %v9028_v27 }
 0x373   : > { %v3060_v21 = vand.u32 4294901760, %v3059_v57  ;;  %v2715_v35 = vpop.permute.xlu2 %2714 }
 0x374   : > { %2804 = vrot.lane.b32.xlu1 %v2615_v23, %s10888_s27  ;;  %2764 = vrot.lane.b32.xlu0 %v2590_v6, %s10887_s1 }
 0x375   : > { %3061 = vmatmul.f32.gmra.mxu0 %v3060_v21 }
 0x376   : > { %v2791_v49 = vpop.permute.xlu1 %2790  ;;  %v2751_v45 = vpop.permute.xlu0 %2750 }
 0x377   : > { %v2903_v50 = vsel %vm947_vm14, %v2890_v12, %v2751_v45  ;;  %v10946_v45 = vld [vmem:[#allocation20_spill] sm:$0xff] }
 0x378   : > { %v2916_v8 = vsel %vm955_vm15, %v2903_v50, %v2791_v49 }
 0x379   : > { %v2929_v34 = vsel %vm963_vm5, %v2916_v8, %v9047_v31 }
 0x37a   : > { %v2971_v16 = vsel %vm989_vm6, %v2929_v34, 0 }
 0x37b   : > { %v9111_v5 = vand.u32 4294901760, %v2971_v16  ;;  %v2835_v53 = vpop.permute.xlu2 %2834 }
 0x37c   : > { %4649 = vrot.lane.b32.xlu0 %v10944_v20, %s10887_s1  ;;  %4686 = vrot.lane.b32.xlu1 %v10944_v20, %s10888_s27 }
 0x37d   : > { %3236 = vmatmul.f32.gmra.mxu1 %v9111_v5  ;;  %v3065_v27 = vsub.f32 %v2971_v16, %v9111_v5 }
 0x37e   : > { %v2673_v58 = vpop.permute.xlu1 %2672  ;;  %v2633_v40 = vpop.permute.xlu0 %2632 }
 0x37f   : > { %3339 = vmatmul.f32.gmra.mxu2 %v3065_v27  ;;  %v3066_v59 = vand.u32 4294901760, %v3065_v27  ;;  %v2865_v31 = vsel %vm923_vm11, %v8355_v1, %v2633_v40 }
 0x380   : > { %v2878_v43 = vsel %vm931_vm12, %v2865_v31, %v2673_v58 }
 0x381   : > { %3441 = vmatmul.f32.gmra.mxu3 %v3066_v59  ;;  %v3067_v2 = vsub.f32 %v3065_v27, %v3066_v59  ;;  %v2891_v54 = vsel %vm939_vm13, %v2878_v43, %v9078_v41 }
 0x383   : > { %v3068_v7 = vand.u32 4294901760, %v3067_v2  ;;  %v2717_v24 = vpop.permute.xlu2 %2716 }
 0x385   : > { %3069 = vmatmul.f32.gmra.mxu0 %v3068_v7 }
 0x386   : > { %v2793_v14 = vpop.permute.xlu1 %2792  ;;  %v2753_v48 = vpop.permute.xlu0 %2752 }
 0x387   : > { %v2904_v61 = vsel %vm947_vm14, %v2891_v54, %v2753_v48 }
 0x388   : > { %v2917_v30 = vsel %vm955_vm15, %v2904_v61, %v2793_v14  ;;  %v10947_v61 = vld [vmem:[#allocation22_spill] sm:$0xff] }
 0x389   : > { %v2930_v26 = vsel %vm963_vm5, %v2917_v30, %v2833_v10 }
 0x38a   : > { %v2974_v1 = vsel %vm989_vm6, %v2930_v26, 0 }
 0x38b   : > { %v9128_v19 = vand.u32 4294901760, %v2974_v1  ;;  %v2837_v28 = vpop.permute.xlu2 %2836 }
 0x38d   : > { %3240 = vmatmul.f32.gmra.mxu1 %v9128_v19  ;;  %v3073_v6 = vsub.f32 %v2974_v1, %v9128_v19 }
 0x38e   : > { %v2675_v23 = vpop.permute.xlu1 %2674  ;;  %v2635_v29 = vpop.permute.xlu0 %2634 }
 0x38f   : > { %3344 = vmatmul.f32.gmra.mxu2 %v3073_v6  ;;  %v3074_v41 = vand.u32 4294901760, %v3073_v6  ;;  %v2866_v63 = vsel %vm923_vm11, %v10945_v0, %v2635_v29 }
 0x390   : > { %v2879_v42 = vsel %vm931_vm12, %v2866_v63, %v2675_v23 }
 0x391   : > { %3447 = vmatmul.f32.gmra.mxu3 %v3074_v41  ;;  %v3075_v17 = vsub.f32 %v3073_v6, %v3074_v41  ;;  %v2892_v33 = vsel %vm939_vm13, %v2879_v42, %v2715_v35 }
 0x393   : > { %v3076_v9 = vand.u32 4294901760, %v3075_v17  ;;  %v2719_v8 = vpop.permute.xlu2 %2718 }
 0x395   : > { %3077 = vmatmul.f32.gmra.mxu0 %v3076_v9 }
 0x396   : > { %v2795_v32 = vpop.permute.xlu1 %2794  ;;  %v2755_v3 = vpop.permute.xlu0 %2754 }
 0x397   : > { %v2905_v10 = vsel %vm947_vm14, %v2892_v33, %v2755_v3 }
 0x398   : > { %v2918_v52 = vsel %vm955_vm15, %v2905_v10, %v2795_v32 }
 0x399   : > { %v2931_v37 = vsel %vm963_vm5, %v2918_v52, %v2835_v53 }
 0x39a   : > { %v2977_v51 = vsel %vm989_vm6, %v2931_v37, 0 }
 0x39b   : > { %v9140_v57 = vand.u32 4294901760, %v2977_v51  ;;  %v2839_v53 = vpop.permute.xlu2 %2838 }
 0x39d   : > { %3244 = vmatmul.f32.gmra.mxu1 %v9140_v57  ;;  %v3081_v25 = vsub.f32 %v2977_v51, %v9140_v57 }
 0x39e   : > { %v2677_v21 = vpop.permute.xlu1 %2676  ;;  %v2637_v49 = vpop.permute.xlu0 %2636 }
 0x39f   : > { %3349 = vmatmul.f32.gmra.mxu2 %v3081_v25  ;;  %v3082_v12 = vand.u32 4294901760, %v3081_v25  ;;  %v2867_v50 = vsel %vm923_vm11, %v10946_v45, %v2637_v49 }
 0x3a0   : > { %v2880_v34 = vsel %vm931_vm12, %v2867_v50, %v2677_v21 }
 0x3a1   : > { %3453 = vmatmul.f32.gmra.mxu3 %v3082_v12  ;;  %v3083_v35 = vsub.f32 %v3081_v25, %v3082_v12  ;;  %v2893_v27 = vsel %vm939_vm13, %v2880_v34, %v2717_v24 }
 0x3a3   : > { %v3084_v16 = vand.u32 4294901760, %v3083_v35  ;;  %v2721_v6 = vpop.permute.xlu2 %2720 }
 0x3a5   : > { %3085 = vmatmul.f32.gmra.mxu0 %v3084_v16 }
 0x3a6   : > { %v2797_v20 = vpop.permute.xlu1 %2796  ;;  %v2757_v58 = vpop.permute.xlu0 %2756 }
 0x3a7   : > { %v2906_v40 = vsel %vm947_vm14, %v2893_v27, %v2757_v58 }
 0x3a8   : > { %v2919_v59 = vsel %vm955_vm15, %v2906_v40, %v2797_v20 }
 0x3a9   : > { %v2932_v31 = vsel %vm963_vm5, %v2919_v59, %v2837_v28 }
 0x3aa   : > { %v2980_v2 = vsel %vm989_vm6, %v2932_v31, 0 }
 0x3ab   : > { %v9152_v43 = vand.u32 4294901760, %v2980_v2  ;;  %v2841_v28 = vpop.permute.xlu2 %2840 }
 0x3ad   : > { %3248 = vmatmul.f32.gmra.mxu1 %v9152_v43  ;;  %v3089_v7 = vsub.f32 %v2980_v2, %v9152_v43 }
 0x3ae   : > { %v2679_v14 = vpop.permute.xlu1 %2678  ;;  %v2639_v54 = vpop.permute.xlu0 %2638 }
 0x3af   : > { %3354 = vmatmul.f32.gmra.mxu2 %v3089_v7  ;;  %v3090_v48 = vand.u32 4294901760, %v3089_v7  ;;  %v2868_v30 = vsel %vm923_vm11, %v10947_v61, %v2639_v54 }
 0x3b0   : > { %v2881_v1 = vsel %vm931_vm12, %v2868_v30, %v2679_v14 }
 0x3b1   : > { %3459 = vmatmul.f32.gmra.mxu3 %v3090_v48  ;;  %v3091_v26 = vsub.f32 %v3089_v7, %v3090_v48  ;;  %v2894_v29 = vsel %vm939_vm13, %v2881_v1, %v2719_v8 }
 0x3b3   : > { %v3092_v24 = vand.u32 4294901760, %v3091_v26  ;;  %v2725_v49 = vpop.permute.xlu2 %2724 }
 0x3b5   : > { %3093 = vmatmul.f32.gmra.mxu0 %v3092_v24 }
 0x3b6   : > { %v2799_v23 = vpop.permute.xlu1 %2798  ;;  %v2759_v41 = vpop.permute.xlu0 %2758 }
 0x3b7   : > { %v2907_v0 = vsel %vm947_vm14, %v2894_v29, %v2759_v41 }
 0x3b8   : > { %v2920_v63 = vsel %vm955_vm15, %v2907_v0, %v2799_v23 }
 0x3b9   : > { %v2933_v17 = vsel %vm963_vm5, %v2920_v63, %v2839_v53 }
 0x3ba   : > { %v2983_v42 = vsel %vm989_vm6, %v2933_v17, 0 }
 0x3bb   : > { %v9164_v9 = vand.u32 4294901760, %v2983_v42  ;;  %v2723_v27 = vpop.permute.xlu2 %2722 }
 0x3bd   : > { %3252 = vmatmul.f32.gmra.mxu1 %v9164_v9  ;;  %v3097_v32 = vsub.f32 %v2983_v42, %v9164_v9 }
 0x3be   : > { %v2681_v33 = vpop.permute.xlu1 %2680  ;;  %v2641_v3 = vpop.permute.xlu0 %2640 }
 0x3bf   : > { %3359 = vmatmul.f32.gmra.mxu2 %v3097_v32  ;;  %v3098_v10 = vand.u32 4294901760, %v3097_v32  ;;  %v2869_v21 = vsel %vm923_vm11, %v8739_v4, %v2641_v3 }
 0x3c0   : > { %v2882_v12 = vsel %vm931_vm12, %v2869_v21, %v2681_v33 }
 0x3c1   : > { %3465 = vmatmul.f32.gmra.mxu3 %v3098_v10  ;;  %v3099_v52 = vsub.f32 %v3097_v32, %v3098_v10  ;;  %v2895_v50 = vsel %vm939_vm13, %v2882_v12, %v2721_v6  ;;  %v3760_v12 = vld [vmem:[%s10790_s8 + $0x8] sm:$0xff] }
 0x3c3   : > { %v3100_v37 = vand.u32 4294901760, %v3099_v52  ;;  %v2843_v54 = vpop.permute.xlu2 %2842 }
 0x3c5   : > { %3101 = vmatmul.f32.gmra.mxu0 %v3100_v37 }
 0x3c6   : > { %v2685_v51 = vpop.permute.xlu1 %2684  ;;  %v2645_v25 = vpop.permute.xlu0 %2644 }
 0x3c7   : > { %v2871_v1 = vsel %vm923_vm11, %v2483_v13, %v2645_v25 }
 0x3c8   : > { %v2884_v23 = vsel %vm931_vm12, %v2871_v1, %v2685_v51 }
 0x3c9   : > { %v2897_v63 = vsel %vm939_vm13, %v2884_v23, %v2725_v49  ;;  %v9210_v49 = vpop.f32.mrf.mxu1 }
 0x3cb   : > { %v2845_v42 = vpop.permute.xlu2 %2844 }
 0x3ce   : > { %v2801_v45 = vpop.permute.xlu1 %2800  ;;  %v2761_v8 = vpop.permute.xlu0 %2760 }
 0x3cf   : > { %v2908_v35 = vsel %vm947_vm14, %v2895_v50, %v2761_v8 }
 0x3d0   : > { %v2921_v34 = vsel %vm955_vm15, %v2908_v35, %v2801_v45  ;;  %v3818_v45 = vand.u32 4294901760, %v3760_v12 }
 0x3d1   : > { %v2934_v16 = vsel %vm963_vm5, %v2921_v34, %v2841_v28  ;;  %v9219_v8 = vpop.f32.mrf.mxu1 }
 0x3d2   : > { %v2986_v20 = vsel %vm989_vm6, %v2934_v16, 0  ;;  %3819 = vmatpush.msrb.mxu2 %v3818_v45  ;;  %v3942_v50 = vsub.f32 %v3760_v12, %v3818_v45  ;;  %4107 = vmatpush.msrb.mxu1 %v3818_v45 }
 0x3d3   : > { %v9176_v58 = vand.u32 4294901760, %v2986_v20 }
 0x3d4   : > { %4022 = vmatpush.msrb.mxu0 %v3942_v50 }
 0x3d5   : > { %3256 = vmatmul.f32.gmra.mxu1 %v9176_v58  ;;  %v3105_v4 = vsub.f32 %v2986_v20, %v9176_v58 }
 0x3d6   : > { %v2683_v40 = vpop.permute.xlu1 %2682  ;;  %v2643_v59 = vpop.permute.xlu0 %2642 }
 0x3d7   : > { %3364 = vmatmul.f32.gmra.mxu2 %v3105_v4  ;;  %v3106_v31 = vand.u32 4294901760, %v3105_v4  ;;  %v2870_v2 = vsel %vm923_vm11, %v8745_v11, %v2643_v59 }
 0x3d8   : > { %v2883_v7 = vsel %vm931_vm12, %v2870_v2, %v2683_v40  ;;  %v3759_v2 = vld [vmem:[%s10790_s8] sm:$0xff] }
 0x3d9   : > { %3471 = vmatmul.f32.gmra.mxu3 %v3106_v31  ;;  %v3107_v53 = vsub.f32 %v3105_v4, %v3106_v31  ;;  %v2896_v61 = vsel %vm939_vm13, %v2883_v7, %v2723_v27  ;;  %v9223_v34 = vpop.f32.mrf.mxu1 }
 0x3db   : > { %v3108_v14 = vand.u32 4294901760, %v3107_v53  ;;  %v3820_v53 = vand.u32 4294901760, %v3759_v2 }
 0x3dd   : > { %3109 = vmatmul.f32.gmra.mxu0 %v3108_v14  ;;  %3821 = vmatpush.msrb.mxu2 %v3820_v53 }
 0x3de   : > { %v2803_v48 = vpop.permute.xlu1 %2802  ;;  %v2763_v30 = vpop.permute.xlu0 %2762  ;;  %4109 = vmatpush.msrb.mxu1 %v3820_v53 }
 0x3df   : > { %v2909_v26 = vsel %vm947_vm14, %v2896_v61, %v2763_v30 }
 0x3e0   : > { %v2922_v24 = vsel %vm955_vm15, %v2909_v26, %v2803_v48 }
 0x3e1   : > { %v2935_v11 = vsel %vm963_vm5, %v2922_v24, %v2843_v54  ;;  %v9229_v27 = vpop.f32.mrf.mxu1  ;;  %v9284_v24 = vld [vmem:[%s10789_s7] ss:$0 sm:$0xff] }
 0x3e2   : > { %v2989_v6 = vsel %vm989_vm6, %v2935_v11, 0 }
 0x3e3   : > { %v9192_v29 = vand.u32 4294901760, %v2989_v6 }
 0x3e5   : > { %3260 = vmatmul.f32.gmra.mxu1 %v9192_v29  ;;  %v3113_v41 = vsub.f32 %v2989_v6, %v9192_v29 }
 0x3e6   : > { %v2805_v0 = vpop.permute.xlu1 %2804  ;;  %v2765_v38 = vpop.permute.xlu0 %2764 }
 0x3e7   : > { %v2910_v13 = vsel %vm947_vm14, %v2897_v63, %v2765_v38  ;;  %3369 = vmatmul.f32.gmra.mxu2 %v3113_v41  ;;  %v3114_v17 = vand.u32 4294901760, %v3113_v41 }
 0x3e8   : > { %v2923_v32 = vsel %vm955_vm15, %v2910_v13, %v2805_v0 }
 0x3e9   : > { %v2936_v33 = vsel %vm963_vm5, %v2923_v32, %v2845_v42  ;;  %3477 = vmatmul.f32.gmra.mxu3 %v3114_v17  ;;  %v3115_v3 = vsub.f32 %v3113_v41, %v3114_v17  ;;  %v3315_v41 = vpop.f32.mrf.mxu2  ;;  %v3412_v17 = vpop.f32.mrf.mxu3 }
 0x3ea   : > { %v2992_v28 = vsel %vm989_vm6, %v2936_v33, 0  ;;  %v9235_v4 = vpop.f32.mrf.mxu1 }
 0x3eb   : > { %v3116_v10 = vand.u32 4294901760, %v3115_v3  ;;  %v9201_v52 = vand.u32 4294901760, %v2992_v28 }
 0x3ed   : > { %3117 = vmatmul.f32.gmra.mxu0 %v3116_v10  ;;  %3264 = vmatmul.f32.gmra.mxu1 %v9201_v52  ;;  %v3121_v37 = vsub.f32 %v2992_v28, %v9201_v52 }
 0x3ef   : > { %3374 = vmatmul.f32.gmra.mxu2 %v3121_v37  ;;  %v3122_v51 = vand.u32 4294901760, %v3121_v37 }
 0x3f1   : > { %3483 = vmatmul.f32.gmra.mxu3 %v3122_v51  ;;  %v3123_v25 = vsub.f32 %v3121_v37, %v3122_v51  ;;  %v3320_v33 = vpop.f32.mrf.mxu2 }
 0x3f3   : > { %v3124_v21 = vand.u32 4294901760, %v3123_v25  ;;  %v3418_v25 = vpop.f32.mrf.mxu3 }
 0x3f5   : > { %3125 = vmatmul.f32.gmra.mxu0 %v3124_v21  ;;  %3629 = vmatmul.f32.vlgmr.msra.gmra.mxu1 %v8863_v60 }
 0x3fa   : > { %v9241_v40 = vpop.f32.mrf.mxu1 }
 0x3fd   : > { %3546 = vmatmul.f32.vlgmr.msra.gmra.mxu0 %v8863_v60  ;;  %3633 = vmatmul.f32.gmra.mxu1 %v8948_v15  ;;  %v9217_v60 = vpop.f32.mrf.mxu0 }
 0x3fe   : > { %v3031_v23 = vadd.f32 %v9284_v24, %v9217_v60 }
 0x405   : > { %3550 = vmatmul.f32.gmra.mxu0 %v8948_v15  ;;  %3637 = vmatmul.f32.gmra.mxu1 %v9010_v47  ;;  %v3943_v15 = vand.u32 4294901760, %v3942_v50  ;;  %v3038_v35 = vpop.f32.mrf.mxu0 }
 0x406   : > { %v3039_v13 = vadd.f32 %v9284_v24, %v3038_v35 }
 0x407   : > { %4206 = vmatpush.msra.mxu2 %v3943_v15 }
 0x408   : > { %v3222_v32 = vadd.f32 %v9219_v8, %v3039_v13 }
 0x40d   : > { %3554 = vmatmul.f32.gmra.mxu0 %v9010_v47  ;;  %3641 = vmatmul.f32.gmra.mxu1 %v9055_v36  ;;  %v3944_v47 = vsub.f32 %v3942_v50, %v3943_v15  ;;  %v9227_v20 = vpop.f32.mrf.mxu0 }
 0x40e   : > { %v3047_v37 = vadd.f32 %v9284_v24, %v9227_v20 }
 0x40f   : > { %v3945_v16 = vand.u32 4294901760, %v3944_v47 }
 0x410   : > { %v3226_v12 = vadd.f32 %v9223_v34, %v3047_v37 }
 0x411   : > { %3946 = vmatpush.msrb.mxu3 %v3945_v16 }
 0x415   : > { %3558 = vmatmul.f32.gmra.mxu0 %v9055_v36  ;;  %3645 = vmatmul.f32.gmra.mxu1 %v9090_v62  ;;  %v9233_v36 = vpop.f32.mrf.mxu0 }
 0x416   : > { %v3055_v35 = vadd.f32 %v9284_v24, %v9233_v36 }
 0x41d   : > { %3562 = vmatmul.f32.gmra.mxu0 %v9090_v62  ;;  %3649 = vmatmul.f32.gmra.mxu1 %v9111_v5  ;;  %v9239_v62 = vpop.f32.mrf.mxu0 }
 0x41e   : > { %v3063_v36 = vadd.f32 %v9284_v24, %v9239_v62 }
 0x425   : > { %3566 = vmatmul.f32.gmra.mxu0 %v9111_v5  ;;  %3653 = vmatmul.f32.gmra.mxu1 %v9128_v19  ;;  %v9245_v59 = vpop.f32.mrf.mxu0  ;;  %v9247_v5 = vpop.f32.mrf.mxu1 }
 0x42d   : > { %3570 = vmatmul.f32.gmra.mxu0 %v9128_v19  ;;  %3657 = vmatmul.f32.gmra.mxu1 %v9140_v57  ;;  %v9251_v31 = vpop.f32.mrf.mxu0  ;;  %v9253_v19 = vpop.f32.mrf.mxu1 }
 0x435   : > { %3574 = vmatmul.f32.gmra.mxu0 %v9140_v57  ;;  %3661 = vmatmul.f32.gmra.mxu1 %v9152_v43  ;;  %v3948_v57 = vsub.f32 %v3759_v2, %v3820_v53  ;;  %v9260_v14 = vpop.f32.mrf.mxu0  ;;  %v9262_v54 = vpop.f32.mrf.mxu1 }
 0x436   : > { %v3424_v2 = vpop.f32.mrf.mxu3 }
 0x437   : > { %v3949_v7 = vand.u32 4294901760, %v3948_v57  ;;  %4025 = vmatpush.msrb.mxu0 %v3948_v57 }
 0x439   : > { %4210 = vmatpush.msra.mxu2 %v3949_v7 }
 0x43d   : > { %3578 = vmatmul.f32.gmra.mxu0 %v9152_v43  ;;  %3665 = vmatmul.f32.gmra.mxu1 %v9164_v9  ;;  %v3950_v43 = vsub.f32 %v3948_v57, %v3949_v7  ;;  %v9268_v61 = vpop.f32.mrf.mxu1  ;;  %v3230_v7 = vadd.f32 %v9229_v27, %v3055_v35 }
 0x43f   : > { %v3951_v48 = vand.u32 4294901760, %v3950_v43 }
 0x441   : > { %3952 = vmatpush.msrb.mxu3 %v3951_v48 }
 0x443   : > { %4279 = vmatpush.msra.mxu3 %v3818_v45  ;;  %v3325_v45 = vpop.f32.mrf.mxu2 }
 0x444   : > { %v3326_v47 = vadd.f32 %v3325_v45, %v3226_v12 }
 0x445   : > { %3582 = vmatmul.f32.gmra.mxu0 %v9164_v9  ;;  %3669 = vmatmul.f32.gmra.mxu1 %v9176_v58  ;;  %v9266_v9 = vpop.f32.mrf.mxu0 }
 0x446   : > { %4281 = vmatpush.msra.mxu3 %v3820_v53  ;;  %v3425_v57 = vadd.f32 %v3424_v2, %v3326_v47 }
 0x44b   : > { %v3330_v43 = vpop.f32.mrf.mxu2 }
 0x44d   : > { %3586 = vmatmul.f32.gmra.mxu0 %v9176_v58  ;;  %3673 = vmatmul.f32.gmra.mxu1 %v9192_v29  ;;  %v9272_v30 = vpop.f32.mrf.mxu0 }
 0x452   : > { %v9274_v26 = vpop.f32.mrf.mxu1 }
 0x455   : > { %3590 = vmatmul.f32.gmra.mxu0 %v9192_v29  ;;  %3677 = vmatmul.f32.gmra.mxu1 %v9201_v52  ;;  %v3218_v29 = vadd.f32 %v9210_v49, %v3031_v23 }
 0x457   : > { %v3316_v38 = vadd.f32 %v3315_v41, %v3218_v29 }
 0x459   : > { %v3413_v42 = vadd.f32 %v3412_v17, %v3316_v38  ;;  %v3331_v38 = vadd.f32 %v3330_v43, %v3230_v7 }
 0x45a   : > { %v9277_v58 = vpop.f32.mrf.mxu0 }
 0x45d   : > { %3594 = vmatmul.f32.gmra.mxu0 %v9201_v52  ;;  %v3321_v52 = vadd.f32 %v3320_v33, %v3222_v32 }
 0x45f   : > { %v3419_v49 = vadd.f32 %v3418_v25, %v3321_v52  ;;  %v3335_v52 = vpop.f32.mrf.mxu2 }
 0x462   : > { %v9279_v1 = vpop.f32.mrf.mxu1 }
 0x467   : > { %v3340_v7 = vpop.f32.mrf.mxu2 }
 0x46a   : > { %v9286_v11 = vpop.f32.mrf.mxu0  ;;  %v9288_v6 = vpop.f32.mrf.mxu1 }
 0x472   : > { %v9293_v0 = vpop.f32.mrf.mxu0  ;;  %v3630_v63 = vpop.f32.mrf.mxu1 }
 0x47a   : > { %v3547_v3 = vpop.f32.mrf.mxu0  ;;  %v3634_v28 = vpop.f32.mrf.mxu1 }
 0x47b   : > { %v3548_v10 = vadd.f32 %v3547_v3, %v3413_v42  ;;  %v3430_v42 = vpop.f32.mrf.mxu3 }
 0x47d   : > { %v3631_v51 = vadd.f32 %v3630_v63, %v3548_v10  ;;  %v3234_v10 = vadd.f32 %v9235_v4, %v3063_v36  ;;  %v3079_v36 = vadd.f32 %v9284_v24, %v9251_v31 }
 0x47f   : > { %v3694_v21 = vmin.f32 %v3631_v51, 0.0  ;;  %vm3681_vm9 = vcmp.gt.f32.partialorder %v3631_v51, 0.0 }
 0x481   : > { %v3707_v50 = vmul.f32 1.442695, %v3694_v21 }
 0x482   : > { %v3551_v60 = vpop.f32.mrf.mxu0  ;;  %v3638_v15 = vpop.f32.mrf.mxu1 }
 0x483   : > { %7001 = vpow2.f32 %v3707_v50  ;;  %v3552_v8 = vadd.f32 %v3551_v60, %v3419_v49  ;;  %v3336_v50 = vadd.f32 %v3335_v52, %v3234_v10  ;;  %v3071_v60 = vadd.f32 %v9284_v24, %v9245_v59 }
 0x484   : > { %v3242_v52 = vadd.f32 %v9247_v5, %v3079_v36 }
 0x485   : > { %v3635_v16 = vadd.f32 %v3634_v28, %v3552_v8  ;;  %v3431_v28 = vadd.f32 %v3430_v42, %v3331_v38  ;;  %v3436_v8 = vpop.f32.mrf.mxu3 }
 0x487   : > { %v3695_v53 = vmin.f32 %v3635_v16, 0.0  ;;  %vm3682_vm8 = vcmp.gt.f32.partialorder %v3635_v16, 0.0 }
 0x489   : > { %v7002_v20 = vpop.eup %7001  ;;  %v3709_v48 = vmul.f32 1.442695, %v3695_v53 }
 0x48a   : > { %v6773_v34 = vadd.f32 -1.0, %v7002_v20  ;;  %v3555_v23 = vpop.f32.mrf.mxu0  ;;  %v3642_v29 = vpop.f32.mrf.mxu1  ;;  %v3437_v20 = vadd.f32 %v3436_v8, %v3336_v50 }
 0x48b   : > { %7003 = vpow2.f32 %v3709_v48  ;;  %v3556_v41 = vadd.f32 %v3555_v23, %v3425_v57  ;;  %v3238_v57 = vadd.f32 %v9241_v40, %v3071_v60  ;;  %v3087_v60 = vadd.f32 %v9284_v24, %v9260_v14 }
 0x48c   : > { %v3746_v63 = vsel %vm3681_vm9, %v3631_v51, %v6773_v34 }
 0x48d   : > { %v3766_v13 = vsel %vm923_vm11, %v3746_v63, 0  ;;  %v3639_v17 = vadd.f32 %v3638_v15, %v3556_v41  ;;  %v3341_v38 = vadd.f32 %v3340_v7, %v3238_v57  ;;  %v3442_v42 = vpop.f32.mrf.mxu3  ;;  %v3246_v57 = vadd.f32 %v9253_v19, %v3087_v60 }
 0x48e   : > { %v9306_v32 = vand.u32 4294901760, %v3766_v13 }
 0x48f   : > { %v3696_v27 = vmin.f32 %v3639_v17, 0.0  ;;  %vm3683_vm7 = vcmp.gt.f32.partialorder %v3639_v17, 0.0  ;;  %v3443_v10 = vadd.f32 %v3442_v42, %v3341_v38  ;;  %v3095_v38 = vadd.f32 %v9284_v24, %v9266_v9 }
 0x490   : > { %v3823_v33 = vsub.f32 %v3766_v13, %v9306_v32  ;;  %3954 = vmatmul.f32.vlgmr.msrb.gmra.mxu3 %v9306_v32 }
 0x491   : > { %v7004_v3 = vpop.eup %7003  ;;  %v3711_v37 = vmul.f32 1.442695, %v3696_v27 }
 0x492   : > { %v6774_v51 = vadd.f32 -1.0, %v7004_v3  ;;  %v3559_v25 = vpop.f32.mrf.mxu0  ;;  %v3646_v62 = vpop.f32.mrf.mxu1  ;;  %4028 = vmatmul.f32.vlgmr.msrb.gmra.mxu0 %v3823_v33  ;;  %v3824_v21 = vand.u32 4294901760, %v3823_v33 }
 0x493   : > { %7005 = vpow2.f32 %v3711_v37  ;;  %v3560_v49 = vadd.f32 %v3559_v25, %v3431_v28  ;;  %v3345_v37 = vpop.f32.mrf.mxu2 }
 0x494   : > { %v3747_v12 = vsel %vm3682_vm8, %v3635_v16, %v6774_v51  ;;  %4113 = vmatmul.f32.vlgmr.msrb.gmra.mxu1 %v3824_v21  ;;  %v3825_v45 = vsub.f32 %v3823_v33, %v3824_v21  ;;  %v3346_v50 = vadd.f32 %v3345_v37, %v3242_v52 }
 0x495   : > { %v3643_v15 = vadd.f32 %v3642_v29, %v3560_v49  ;;  %v3769_v4 = vsel %vm923_vm11, %v3747_v12, 0  ;;  %v3448_v8 = vpop.f32.mrf.mxu3 }
 0x496   : > { %v3826_v47 = vand.u32 4294901760, %v3825_v45  ;;  %v9314_v35 = vand.u32 4294901760, %v3769_v4 }
 0x497   : > { %v3697_v2 = vmin.f32 %v3643_v15, 0.0  ;;  %vm3684_vm9 = vcmp.gt.f32.partialorder %v3643_v15, 0.0 }
 0x498   : > { %3827 = vmatmul.f32.vlgmr.msrb.gmra.mxu2 %v3826_v47  ;;  %3958 = vmatmul.f32.gmra.mxu3 %v9314_v35  ;;  %v3831_v53 = vsub.f32 %v3769_v4, %v9314_v35 }
 0x499   : > { %v7006_v16 = vpop.eup %7005  ;;  %v3713_v43 = vmul.f32 1.442695, %v3697_v2 }
 0x49a   : > { %v6775_v59 = vadd.f32 -1.0, %v7006_v16  ;;  %v3563_v48 = vpop.f32.mrf.mxu0  ;;  %v3650_v34 = vpop.f32.mrf.mxu1  ;;  %4033 = vmatmul.f32.gmra.mxu0 %v3831_v53  ;;  %v3832_v23 = vand.u32 4294901760, %v3831_v53 }
 0x49b   : > { %7007 = vpow2.f32 %v3713_v43  ;;  %v3564_v29 = vadd.f32 %v3563_v48, %v3437_v20  ;;  %v3449_v20 = vadd.f32 %v3448_v8, %v3346_v50  ;;  %v3350_v7 = vpop.f32.mrf.mxu2 }
 0x49c   : > { %v3748_v41 = vsel %vm3683_vm7, %v3639_v17, %v6775_v59  ;;  %4119 = vmatmul.f32.gmra.mxu1 %v3832_v23  ;;  %v3833_v63 = vsub.f32 %v3831_v53, %v3832_v23 }
 0x49d   : > { %v3647_v13 = vadd.f32 %v3646_v62, %v3564_v29  ;;  %v3772_v40 = vsel %vm923_vm11, %v3748_v41, 0 }
 0x49e   : > { %v3834_v27 = vand.u32 4294901760, %v3833_v63  ;;  %v9322_v33 = vand.u32 4294901760, %v3772_v40  ;;  %v3351_v63 = vadd.f32 %v3350_v7, %v3246_v57 }
 0x49f   : > { %v3698_v3 = vmin.f32 %v3647_v13, 0.0  ;;  %vm3685_vm8 = vcmp.gt.f32.partialorder %v3647_v13, 0.0 }
 0x4a0   : > { %3835 = vmatmul.f32.gmra.mxu2 %v3834_v27  ;;  %3962 = vmatmul.f32.gmra.mxu3 %v9322_v33  ;;  %v3839_v28 = vsub.f32 %v3772_v40, %v9322_v33  ;;  %v3454_v40 = vpop.f32.mrf.mxu3 }
 0x4a1   : > { %v7008_v17 = vpop.eup %7007  ;;  %v3715_v51 = vmul.f32 1.442695, %v3698_v3 }
 0x4a2   : > { %v6776_v31 = vadd.f32 -1.0, %v7008_v17  ;;  %v3567_v25 = vpop.f32.mrf.mxu0  ;;  %v3654_v62 = vpop.f32.mrf.mxu1  ;;  %4038 = vmatmul.f32.gmra.mxu0 %v3839_v28  ;;  %v3840_v21 = vand.u32 4294901760, %v3839_v28  ;;  %v3455_v17 = vadd.f32 %v3454_v40, %v3351_v63 }
 0x4a3   : > { %7009 = vpow2.f32 %v3715_v51  ;;  %v3568_v49 = vadd.f32 %v3567_v25, %v3443_v10  ;;  %v3250_v10 = vadd.f32 %v9262_v54, %v3095_v38  ;;  %v3355_v37 = vpop.f32.mrf.mxu2 }
 0x4a4   : > { %v3749_v12 = vsel %vm3684_vm9, %v3643_v15, %v6776_v31  ;;  %4125 = vmatmul.f32.gmra.mxu1 %v3840_v21  ;;  %v3841_v45 = vsub.f32 %v3839_v28, %v3840_v21 }
 0x4a5   : > { %v3651_v4 = vadd.f32 %v3650_v34, %v3568_v49  ;;  %v3775_v5 = vsel %vm923_vm11, %v3749_v12, 0  ;;  %v3356_v12 = vadd.f32 %v3355_v37, %v3250_v10 }
 0x4a6   : > { %v3842_v47 = vand.u32 4294901760, %v3841_v45  ;;  %v9330_v2 = vand.u32 4294901760, %v3775_v5  ;;  %v3103_v45 = vadd.f32 %v9284_v24, %v9272_v30 }
 0x4a7   : > { %v3699_v53 = vmin.f32 %v3651_v4, 0.0  ;;  %vm3686_vm7 = vcmp.gt.f32.partialorder %v3651_v4, 0.0 }
 0x4a8   : > { %3843 = vmatmul.f32.gmra.mxu2 %v3842_v47  ;;  %3966 = vmatmul.f32.gmra.mxu3 %v9330_v2  ;;  %v3847_v16 = vsub.f32 %v3775_v5, %v9330_v2  ;;  %v3460_v60 = vpop.f32.mrf.mxu3 }
 0x4a9   : > { %v7010_v15 = vpop.eup %7009  ;;  %v3717_v43 = vmul.f32 1.442695, %v3699_v53 }
 0x4aa   : > { %v6777_v14 = vadd.f32 -1.0, %v7010_v15  ;;  %v3571_v59 = vpop.f32.mrf.mxu0  ;;  %v3658_v48 = vpop.f32.mrf.mxu1  ;;  %4043 = vmatmul.f32.gmra.mxu0 %v3847_v16  ;;  %v3848_v34 = vand.u32 4294901760, %v3847_v16  ;;  %v3254_v15 = vadd.f32 %v9268_v61, %v3103_v45 }
 0x4ab   : > { %7011 = vpow2.f32 %v3717_v43  ;;  %v3572_v23 = vadd.f32 %v3571_v59, %v3449_v20  ;;  %v3360_v57 = vpop.f32.mrf.mxu2 }
 0x4ac   : > { %v3750_v29 = vsel %vm3685_vm8, %v3647_v13, %v6777_v14  ;;  %4131 = vmatmul.f32.gmra.mxu1 %v3848_v34  ;;  %v3849_v41 = vsub.f32 %v3847_v16, %v3848_v34  ;;  %v3461_v16 = vadd.f32 %v3460_v60, %v3356_v12  ;;  %v3361_v34 = vadd.f32 %v3360_v57, %v3254_v15 }
 0x4ad   : > { %v3655_v36 = vadd.f32 %v3654_v62, %v3572_v23  ;;  %v3778_v19 = vsel %vm923_vm11, %v3750_v29, 0  ;;  %v3111_v23 = vadd.f32 %v9284_v24, %v9277_v58 }
 0x4ae   : > { %v3850_v42 = vand.u32 4294901760, %v3849_v41  ;;  %v9338_v27 = vand.u32 4294901760, %v3778_v19 }
 0x4af   : > { %v3700_v3 = vmin.f32 %v3655_v36, 0.0  ;;  %vm3687_vm9 = vcmp.gt.f32.partialorder %v3655_v36, 0.0 }
 0x4b0   : > { %3851 = vmatmul.f32.gmra.mxu2 %v3850_v42  ;;  %3970 = vmatmul.f32.gmra.mxu3 %v9338_v27  ;;  %v3855_v28 = vsub.f32 %v3778_v19, %v9338_v27  ;;  %v3466_v61 = vpop.f32.mrf.mxu3 }
 0x4b1   : > { %v7012_v13 = vpop.eup %7011  ;;  %v3719_v52 = vmul.f32 1.442695, %v3700_v3  ;;  %v3467_v3 = vadd.f32 %v3466_v61, %v3361_v34 }
 0x4b2   : > { %v6778_v9 = vadd.f32 -1.0, %v7012_v13  ;;  %v3575_v51 = vpop.f32.mrf.mxu0  ;;  %4048 = vmatmul.f32.gmra.mxu0 %v3855_v28  ;;  %v3856_v31 = vand.u32 4294901760, %v3855_v28  ;;  %v3662_v21 = vpop.f32.mrf.mxu1 }
 0x4b3   : > { %7013 = vpow2.f32 %v3719_v52  ;;  %v3576_v25 = vadd.f32 %v3575_v51, %v3455_v17  ;;  %v3365_v58 = vpop.f32.mrf.mxu2 }
 0x4b4   : > { %v3751_v62 = vsel %vm3686_vm7, %v3651_v4, %v6778_v9  ;;  %4137 = vmatmul.f32.gmra.mxu1 %v3856_v31  ;;  %v3857_v49 = vsub.f32 %v3855_v28, %v3856_v31  ;;  %v3258_v28 = vadd.f32 %v9274_v26, %v3111_v23 }
 0x4b5   : > { %v3659_v50 = vadd.f32 %v3658_v48, %v3576_v25  ;;  %v3781_v54 = vsel %vm923_vm11, %v3751_v62, 0  ;;  %v3119_v25 = vadd.f32 %v9284_v24, %v9286_v11 }
 0x4b6   : > { %v3858_v5 = vand.u32 4294901760, %v3857_v49  ;;  %v9346_v8 = vand.u32 4294901760, %v3781_v54  ;;  %v3366_v31 = vadd.f32 %v3365_v58, %v3258_v28 }
 0x4b7   : > { %v3701_v47 = vmin.f32 %v3659_v50, 0.0  ;;  %vm3688_vm8 = vcmp.gt.f32.partialorder %v3659_v50, 0.0 }
 0x4b8   : > { %3859 = vmatmul.f32.gmra.mxu2 %v3858_v5  ;;  %3974 = vmatmul.f32.gmra.mxu3 %v9346_v8  ;;  %v3863_v4 = vsub.f32 %v3781_v54, %v9346_v8  ;;  %v3472_v26 = vpop.f32.mrf.mxu3 }
 0x4b9   : > { %v7014_v53 = vpop.eup %7013  ;;  %v3721_v20 = vmul.f32 1.442695, %v3701_v47  ;;  %v3473_v5 = vadd.f32 %v3472_v26, %v3366_v31  ;;  %v3262_v47 = vadd.f32 %v9279_v1, %v3119_v25 }
 0x4ba   : > { %v6779_v30 = vadd.f32 -1.0, %v7014_v53  ;;  %v3579_v7 = vpop.f32.mrf.mxu0  ;;  %4053 = vmatmul.f32.gmra.mxu0 %v3863_v4  ;;  %v3864_v43 = vand.u32 4294901760, %v3863_v4  ;;  %v3666_v63 = vpop.f32.mrf.mxu1 }
 0x4bb   : > { %7015 = vpow2.f32 %v3721_v20  ;;  %v3580_v14 = vadd.f32 %v3579_v7, %v3461_v16  ;;  %v3370_v11 = vpop.f32.mrf.mxu2 }
 0x4bc   : > { %v3752_v59 = vsel %vm3687_vm9, %v3655_v36, %v6779_v30  ;;  %4143 = vmatmul.f32.gmra.mxu1 %v3864_v43  ;;  %v3865_v48 = vsub.f32 %v3863_v4, %v3864_v43  ;;  %v3371_v7 = vadd.f32 %v3370_v11, %v3262_v47  ;;  %v3127_v43 = vadd.f32 %v9284_v24, %v9293_v0 }
 0x4bd   : > { %v3663_v29 = vadd.f32 %v3662_v21, %v3580_v14  ;;  %v3784_v41 = vsel %vm923_vm11, %v3752_v59, 0 }
 0x4be   : > { %v3866_v38 = vand.u32 4294901760, %v3865_v48  ;;  %v9354_v19 = vand.u32 4294901760, %v3784_v41 }
 0x4bf   : > { %v3702_v40 = vmin.f32 %v3663_v29, 0.0  ;;  %vm3689_vm7 = vcmp.gt.f32.partialorder %v3663_v29, 0.0 }
 0x4c0   : > { %3867 = vmatmul.f32.gmra.mxu2 %v3866_v38  ;;  %3978 = vmatmul.f32.gmra.mxu3 %v9354_v19  ;;  %v3871_v36 = vsub.f32 %v3784_v41, %v9354_v19  ;;  %v3478_v1 = vpop.f32.mrf.mxu3 }
 0x4c1   : > { %v7016_v42 = vpop.eup %7015  ;;  %v3723_v13 = vmul.f32 1.442695, %v3702_v40  ;;  %v3479_v61 = vadd.f32 %v3478_v1, %v3371_v7 }
 0x4c2   : > { %v6780_v17 = vadd.f32 -1.0, %v7016_v42  ;;  %v3583_v10 = vpop.f32.mrf.mxu0  ;;  %4058 = vmatmul.f32.gmra.mxu0 %v3871_v36  ;;  %v3872_v52 = vand.u32 4294901760, %v3871_v36  ;;  %v3670_v54 = vpop.f32.mrf.mxu1 }
 0x4c3   : > { %7017 = vpow2.f32 %v3723_v13  ;;  %v3584_v37 = vadd.f32 %v3583_v10, %v3467_v3  ;;  %v3375_v3 = vpop.f32.mrf.mxu2 }
 0x4c4   : > { %v3753_v9 = vsel %vm3688_vm8, %v3659_v50, %v6780_v17  ;;  %4149 = vmatmul.f32.gmra.mxu1 %v3872_v52  ;;  %v3873_v51 = vsub.f32 %v3871_v36, %v3872_v52 }
 0x4c5   : > { %v3667_v62 = vadd.f32 %v3666_v63, %v3584_v37  ;;  %v3787_v21 = vsel %vm923_vm11, %v3753_v9, 0  ;;  %v3266_v63 = vadd.f32 %v9288_v6, %v3127_v43 }
 0x4c6   : > { %v3874_v49 = vand.u32 4294901760, %v3873_v51  ;;  %v9362_v12 = vand.u32 4294901760, %v3787_v21 }
 0x4c7   : > { %v3703_v45 = vmin.f32 %v3667_v62, 0.0  ;;  %vm3690_vm9 = vcmp.gt.f32.partialorder %v3667_v62, 0.0  ;;  %v3376_v58 = vadd.f32 %v3375_v3, %v3266_v63 }
 0x4c8   : > { %3875 = vmatmul.f32.gmra.mxu2 %v3874_v49  ;;  %3982 = vmatmul.f32.gmra.mxu3 %v9362_v12  ;;  %v3879_v50 = vsub.f32 %v3787_v21, %v9362_v12  ;;  %v3484_v9 = vpop.f32.mrf.mxu3 }
 0x4c9   : > { %v7018_v60 = vpop.eup %7017  ;;  %v3725_v4 = vmul.f32 1.442695, %v3703_v45  ;;  %v3485_v25 = vadd.f32 %v3484_v9, %v3376_v58 }
 0x4ca   : > { %v6781_v53 = vadd.f32 -1.0, %v7018_v60  ;;  %v3587_v16 = vpop.f32.mrf.mxu0  ;;  %4063 = vmatmul.f32.gmra.mxu0 %v3879_v50  ;;  %v3880_v15 = vand.u32 4294901760, %v3879_v50  ;;  %v3674_v24 = vpop.f32.mrf.mxu1 }
 0x4cb   : > { %7019 = vpow2.f32 %v3725_v4  ;;  %v3588_v20 = vadd.f32 %v3587_v16, %v3473_v5 }
 0x4cc   : > { %v3754_v57 = vsel %vm3689_vm7, %v3663_v29, %v6781_v53  ;;  %4155 = vmatmul.f32.gmra.mxu1 %v3880_v15  ;;  %v3881_v30 = vsub.f32 %v3879_v50, %v3880_v15 }
 0x4cd   : > { %v3671_v14 = vadd.f32 %v3670_v54, %v3588_v20  ;;  %v3790_v59 = vsel %vm923_vm11, %v3754_v57, 0 }
 0x4ce   : > { %v3882_v48 = vand.u32 4294901760, %v3881_v30  ;;  %v9370_v34 = vand.u32 4294901760, %v3790_v59 }
 0x4cf   : > { %v3704_v23 = vmin.f32 %v3671_v14, 0.0  ;;  %vm3691_vm8 = vcmp.gt.f32.partialorder %v3671_v14, 0.0 }
 0x4d0   : > { %3883 = vmatmul.f32.gmra.mxu2 %v3882_v48  ;;  %3986 = vmatmul.f32.gmra.mxu3 %v9370_v34  ;;  %v3887_v41 = vsub.f32 %v3790_v59, %v9370_v34 }
 0x4d1   : > { %v7020_v29 = vpop.eup %7019  ;;  %v3727_v38 = vmul.f32 1.442695, %v3704_v23 }
 0x4d2   : > { %v6782_v40 = vadd.f32 -1.0, %v7020_v29  ;;  %v3591_v0 = vpop.f32.mrf.mxu0  ;;  %4068 = vmatmul.f32.gmra.mxu0 %v3887_v41  ;;  %v3888_v36 = vand.u32 4294901760, %v3887_v41  ;;  %v3678_v50 = vpop.f32.mrf.mxu1 }
 0x4d3   : > { %7021 = vpow2.f32 %v3727_v38  ;;  %v3592_v42 = vadd.f32 %v3591_v0, %v3479_v61 }
 0x4d4   : > { %v3755_v28 = vsel %vm3690_vm9, %v3667_v62, %v6782_v40  ;;  %4161 = vmatmul.f32.gmra.mxu1 %v3888_v36  ;;  %v3889_v13 = vsub.f32 %v3887_v41, %v3888_v36 }
 0x4d5   : > { %v3675_v17 = vadd.f32 %v3674_v24, %v3592_v42  ;;  %v3793_v10 = vsel %vm923_vm11, %v3755_v28, 0 }
 0x4d6   : > { %v3890_v52 = vand.u32 4294901760, %v3889_v13  ;;  %v9376_v37 = vand.u32 4294901760, %v3793_v10  ;;  %v9403_v13 = vld [vmem:[%s10791_s9] ss:$0 sm:$0xff] }
 0x4d7   : > { %v3705_v6 = vmin.f32 %v3675_v17, 0.0  ;;  %vm3692_vm7 = vcmp.gt.f32.partialorder %v3675_v17, 0.0 }
 0x4d8   : > { %3891 = vmatmul.f32.gmra.mxu2 %v3890_v52  ;;  %3990 = vmatmul.f32.gmra.mxu3 %v9376_v37  ;;  %v3895_v51 = vsub.f32 %v3793_v10, %v9376_v37 }
 0x4d9   : > { %v7022_v31 = vpop.eup %7021  ;;  %v3729_v21 = vmul.f32 1.442695, %v3705_v6 }
 0x4da   : > { %v6783_v62 = vadd.f32 -1.0, %v7022_v31  ;;  %v3595_v26 = vpop.f32.mrf.mxu0  ;;  %4073 = vmatmul.f32.gmra.mxu0 %v3895_v51  ;;  %v3896_v49 = vand.u32 4294901760, %v3895_v51 }
 0x4db   : > { %7023 = vpow2.f32 %v3729_v21  ;;  %v3596_v45 = vadd.f32 %v3595_v26, %v3485_v25 }
 0x4dc   : > { %v3756_v54 = vsel %vm3691_vm8, %v3671_v14, %v6783_v62  ;;  %4167 = vmatmul.f32.gmra.mxu1 %v3896_v49  ;;  %v3897_v60 = vsub.f32 %v3895_v51, %v3896_v49 }
 0x4dd   : > { %v3679_v5 = vadd.f32 %v3678_v50, %v3596_v45  ;;  %v3796_v47 = vsel %vm923_vm11, %v3756_v54, 0 }
 0x4de   : > { %v3898_v4 = vand.u32 4294901760, %v3897_v60  ;;  %v9381_v11 = vand.u32 4294901760, %v3796_v47 }
 0x4df   : > { %v3706_v53 = vmin.f32 %v3679_v5, 0.0  ;;  %vm3693_vm9 = vcmp.gt.f32.partialorder %v3679_v5, 0.0 }
 0x4e0   : > { %3899 = vmatmul.f32.gmra.mxu2 %v3898_v4  ;;  %3994 = vmatmul.f32.gmra.mxu3 %v9381_v11  ;;  %v3903_v16 = vsub.f32 %v3796_v47, %v9381_v11 }
 0x4e1   : > { %v7024_v15 = vpop.eup %7023  ;;  %v3731_v20 = vmul.f32 1.442695, %v3706_v53 }
 0x4e2   : > { %v6784_v57 = vadd.f32 -1.0, %v7024_v15  ;;  %4078 = vmatmul.f32.gmra.mxu0 %v3903_v16  ;;  %v3904_v30 = vand.u32 4294901760, %v3903_v16 }
 0x4e3   : > { %7025 = vpow2.f32 %v3731_v20 }
 0x4e4   : > { %v3757_v7 = vsel %vm3692_vm7, %v3675_v17, %v6784_v57  ;;  %4173 = vmatmul.f32.gmra.mxu1 %v3904_v30  ;;  %v3905_v43 = vsub.f32 %v3903_v16, %v3904_v30 }
 0x4e5   : > { %v3799_v14 = vsel %vm923_vm11, %v3757_v7, 0 }
 0x4e6   : > { %v3906_v59 = vand.u32 4294901760, %v3905_v43  ;;  %v9386_v1 = vand.u32 4294901760, %v3799_v14 }
 0x4e8   : > { %3907 = vmatmul.f32.gmra.mxu2 %v3906_v59  ;;  %3998 = vmatmul.f32.gmra.mxu3 %v9386_v1  ;;  %v3911_v48 = vsub.f32 %v3799_v14, %v9386_v1 }
 0x4e9   : > { %v7026_v23 = vpop.eup %7025 }
 0x4ea   : > { %v6785_v41 = vadd.f32 -1.0, %v7026_v23  ;;  %4083 = vmatmul.f32.gmra.mxu0 %v3911_v48  ;;  %v3912_v29 = vand.u32 4294901760, %v3911_v48 }
 0x4ec   : > { %v3758_v61 = vsel %vm3693_vm9, %v3679_v5, %v6785_v41  ;;  %4179 = vmatmul.f32.gmra.mxu1 %v3912_v29  ;;  %v3913_v63 = vsub.f32 %v3911_v48, %v3912_v29  ;;  %v10948_v48 = vld [vmem:[#allocation11_spill] sm:$0xff] }
 0x4ed   : > { %v3802_v38 = vsel %vm923_vm11, %v3758_v61, 0 }
 0x4ee   : > { %v3914_v40 = vand.u32 4294901760, %v3913_v63  ;;  %v3918_v24 = vand.u32 4294901760, %v3802_v38 }
 0x4f0   : > { %3915 = vmatmul.f32.gmra.mxu2 %v3914_v40  ;;  %4002 = vmatmul.f32.gmra.mxu3 %v3918_v24  ;;  %v3919_v0 = vsub.f32 %v3802_v38, %v3918_v24 }
 0x4f2   : > { %4088 = vmatmul.f32.gmra.mxu0 %v3919_v0  ;;  %v3920_v36 = vand.u32 4294901760, %v3919_v0 }
 0x4f4   : > { %4185 = vmatmul.f32.gmra.mxu1 %v3920_v36  ;;  %v3921_v42 = vsub.f32 %v3919_v0, %v3920_v36 }
 0x4f6   : > { %v3922_v3 = vand.u32 4294901760, %v3921_v42 }
 0x4f8   : > { %3923 = vmatmul.f32.gmra.mxu2 %v3922_v3  ;;  %4283 = vmatmul.f32.vlgmr.msra.gmra.mxu3 %v9306_v32 }
 0x500   : > { %4212 = vmatmul.f32.vlgmr.msra.gmra.mxu2 %v9306_v32  ;;  %4287 = vmatmul.f32.gmra.mxu3 %v9314_v35 }
 0x508   : > { %4216 = vmatmul.f32.gmra.mxu2 %v9314_v35  ;;  %4291 = vmatmul.f32.gmra.mxu3 %v9322_v33 }
 0x50f   : > { %v4029_v47 = vpop.f32.mrf.mxu0 }
 0x510   : > { %4220 = vmatmul.f32.gmra.mxu2 %v9322_v33  ;;  %4295 = vmatmul.f32.gmra.mxu3 %v9330_v2 }
 0x511   : > { %v4114_v4 = vpop.f32.mrf.mxu1 }
 0x513   : > { %v3955_v28 = vpop.f32.mrf.mxu3 }
 0x517   : > { %v4034_v15 = vpop.f32.mrf.mxu0 }
 0x518   : > { %4224 = vmatmul.f32.gmra.mxu2 %v9330_v2  ;;  %4299 = vmatmul.f32.gmra.mxu3 %v9338_v27 }
 0x519   : > { %v4120_v57 = vpop.f32.mrf.mxu1 }
 0x51b   : > { %v3828_v32 = vpop.f32.mrf.mxu2  ;;  %v3959_v58 = vpop.f32.mrf.mxu3 }
 0x51c   : > { %v3829_v35 = vadd.f32 %v9403_v13, %v3828_v32  ;;  %v10950_v32 = vld [vmem:[#allocation12_spill] sm:$0xff] }
 0x51e   : > { %v3956_v17 = vadd.f32 %v3955_v28, %v3829_v35 }
 0x51f   : > { %v4039_v41 = vpop.f32.mrf.mxu0 }
 0x520   : > { %4228 = vmatmul.f32.gmra.mxu2 %v9338_v27  ;;  %4303 = vmatmul.f32.gmra.mxu3 %v9346_v8  ;;  %v4030_v16 = vadd.f32 %v4029_v47, %v3956_v17 }
 0x521   : > { %v4126_v0 = vpop.f32.mrf.mxu1 }
 0x522   : > { %v4115_v20 = vadd.f32 %v4114_v4, %v4030_v16 }
 0x523   : > { %v3836_v33 = vpop.f32.mrf.mxu2  ;;  %v3963_v10 = vpop.f32.mrf.mxu3 }
 0x524   : > { %v3837_v2 = vadd.f32 %v9403_v13, %v3836_v33 }
 0x526   : > { %v3960_v52 = vadd.f32 %v3959_v58, %v3837_v2 }
 0x527   : > { %v4044_v2 = vpop.f32.mrf.mxu0 }
 0x528   : > { %4232 = vmatmul.f32.gmra.mxu2 %v9346_v8  ;;  %4307 = vmatmul.f32.gmra.mxu3 %v9354_v19  ;;  %v4035_v59 = vadd.f32 %v4034_v15, %v3960_v52 }
 0x52a   : > { %v4121_v63 = vadd.f32 %v4120_v57, %v4035_v59 }
 0x52b   : > { %v3844_v6 = vpop.f32.mrf.mxu2  ;;  %v3967_v9 = vpop.f32.mrf.mxu3 }
 0x52c   : > { %v3845_v43 = vadd.f32 %v9403_v13, %v3844_v6 }
 0x52e   : > { %v3964_v29 = vadd.f32 %v3963_v10, %v3845_v43 }
 0x530   : > { %4236 = vmatmul.f32.gmra.mxu2 %v9354_v19  ;;  %4311 = vmatmul.f32.gmra.mxu3 %v9362_v12  ;;  %v4040_v28 = vadd.f32 %v4039_v41, %v3964_v29 }
 0x532   : > { %v4127_v10 = vadd.f32 %v4126_v0, %v4040_v28 }
 0x533   : > { %v3852_v51 = vpop.f32.mrf.mxu2  ;;  %v9413_v31 = vpop.f32.mrf.mxu3 }
 0x534   : > { %v3853_v36 = vadd.f32 %v9403_v13, %v3852_v51 }
 0x536   : > { %v3968_v17 = vadd.f32 %v3967_v9, %v3853_v36 }
 0x538   : > { %4240 = vmatmul.f32.gmra.mxu2 %v9362_v12  ;;  %4315 = vmatmul.f32.gmra.mxu3 %v9370_v34  ;;  %v4045_v15 = vadd.f32 %v4044_v2, %v3968_v17 }
 0x53b   : > { %v9417_v27 = vpop.f32.mrf.mxu2  ;;  %v9419_v25 = vpop.f32.mrf.mxu3 }
 0x53c   : > { %v3861_v51 = vadd.f32 %v9403_v13, %v9417_v27 }
 0x53e   : > { %v3972_v43 = vadd.f32 %v9413_v31, %v3861_v51 }
 0x540   : > { %4244 = vmatmul.f32.gmra.mxu2 %v9370_v34  ;;  %4319 = vmatmul.f32.gmra.mxu3 %v9376_v37 }
 0x543   : > { %v9423_v8 = vpop.f32.mrf.mxu2  ;;  %v9425_v19 = vpop.f32.mrf.mxu3 }
 0x548   : > { %4248 = vmatmul.f32.gmra.mxu2 %v9376_v37  ;;  %4323 = vmatmul.f32.gmra.mxu3 %v9381_v11 }
 0x54b   : > { %v9429_v21 = vpop.f32.mrf.mxu2  ;;  %v9431_v12 = vpop.f32.mrf.mxu3 }
 0x550   : > { %4252 = vmatmul.f32.gmra.mxu2 %v9381_v11  ;;  %4327 = vmatmul.f32.gmra.mxu3 %v9386_v1 }
 0x553   : > { %v9435_v62 = vpop.f32.mrf.mxu2  ;;  %v9437_v34 = vpop.f32.mrf.mxu3 }
 0x558   : > { %4256 = vmatmul.f32.gmra.mxu2 %v9386_v1  ;;  %4331 = vmatmul.f32.gmra.mxu3 %v3918_v24 }
 0x55b   : > { %v9440_v26 = vpop.f32.mrf.mxu2  ;;  %v9442_v37 = vpop.f32.mrf.mxu3 }
 0x560   : > { %4260 = vmatmul.f32.gmra.mxu2 %v3918_v24 }
 0x563   : > { %v9444_v49 = vpop.f32.mrf.mxu2  ;;  %v9446_v45 = vpop.f32.mrf.mxu3 }
 0x56b   : > { %v9448_v54 = vpop.f32.mrf.mxu2  ;;  %v9450_v50 = vpop.f32.mrf.mxu3 }
 0x573   : > { %v9452_v60 = vpop.f32.mrf.mxu2  ;;  %v9454_v5 = vpop.f32.mrf.mxu3 }
 0x57b   : > { %v9456_v11 = vpop.f32.mrf.mxu2  ;;  %v4284_v53 = vpop.f32.mrf.mxu3 }
 0x583   : > { %v4213_v30 = vpop.f32.mrf.mxu2  ;;  %v4288_v1 = vpop.f32.mrf.mxu3 }
 0x584   : > { %v4214_v7 = vadd.f32 %v4213_v30, %v4115_v20  ;;  %v4132_v20 = vpop.f32.mrf.mxu1  ;;  %v10952_v30 = vld [vmem:[#allocation13_spill] sm:$0xff] }
 0x585   : > { %v4133_v27 = vadd.f32 %v4132_v20, %v4045_v15 }
 0x586   : > { %v4285_v14 = vadd.f32 %v4284_v53, %v4214_v7 }
 0x588   : > { %v4335_v23 = vadd.f32 %v4285_v14, %v10948_v48 }
 0x58a   : > { %v9460_v61 = vmul.f32 0.0, %v4335_v23 }
 0x58b   : > { %v4217_v38 = vpop.f32.mrf.mxu2  ;;  %v4292_v35 = vpop.f32.mrf.mxu3 }
 0x58c   : > { %10949 = vst [vmem:[#allocation19_spill] sm:$0xff] %v9460_v61  ;;  %v4374_v40 = vmin.f32 %v9460_v61, 0.0  ;;  %v4218_v24 = vadd.f32 %v4217_v38, %v4121_v63  ;;  %vm4361_vm8 = vcmp.gt.f32.partialorder %v9460_v61, 0.0  ;;  %v4049_v63 = vpop.f32.mrf.mxu0 }
 0x58d   : > { %v4050_v0 = vadd.f32 %v4049_v63, %v3972_v43 }
 0x58e   : > { %v4387_v42 = vmul.f32 1.442695, %v4374_v40  ;;  %v4289_v3 = vadd.f32 %v4288_v1, %v4218_v24 }
 0x590   : > { %7027 = vpow2.f32 %v4387_v42  ;;  %v4336_v58 = vadd.f32 %v4289_v3, %v10950_v32  ;;  %v10954_v42 = vld [vmem:[#allocation14_spill] sm:$0xff]  ;;  %v4138_v32 = vpop.f32.mrf.mxu1 }
 0x592   : > { %v9465_v33 = vmul.f32 0.0, %v4336_v58 }
 0x593   : > { %v4221_v52 = vpop.f32.mrf.mxu2  ;;  %v4296_v1 = vpop.f32.mrf.mxu3 }
 0x594   : > { %10951 = vst [vmem:[#allocation20_spill] sm:$0xff] %v9465_v33  ;;  %v4375_v6 = vmin.f32 %v9465_v33, 0.0  ;;  %v4222_v47 = vadd.f32 %v4221_v52, %v4127_v10  ;;  %vm4362_vm7 = vcmp.gt.f32.partialorder %v9465_v33, 0.0  ;;  %v4139_v10 = vadd.f32 %v4138_v32, %v4050_v0 }
 0x596   : > { %v7028_v4 = vpop.eup %7027  ;;  %v4389_v53 = vmul.f32 1.442695, %v4375_v6  ;;  %v4293_v16 = vadd.f32 %v4292_v35, %v4222_v47 }
 0x597   : > { %v6786_v57 = vadd.f32 -1.0, %v7028_v4 }
 0x598   : > { %7029 = vpow2.f32 %v4389_v53  ;;  %v4337_v9 = vadd.f32 %v4293_v16, %v10952_v30  ;;  %v3869_v53 = vadd.f32 %v9403_v13, %v9423_v8 }
 0x599   : > { %v9473_v7 = vsel %vm4361_vm8, %v9460_v61, %v6786_v57 }
 0x59a   : > { %v9476_v14 = vmul.f32 0.0, %v4337_v9  ;;  %4727 = vrot.lane.b32.xlu2 %v9473_v7, %s10891_s17  ;;  %v4541_v59 = vrot.slane %v9473_v7, 7  ;;  %v4519_v31 = vrot.slane %v9473_v7, 6  ;;  %v4481_v28 = vrot.slane %v9473_v7, 4 }
 0x59b   : > { %v4225_v48 = vpop.f32.mrf.mxu2  ;;  %v10847_v51 = vrot.slane %v9473_v7, 2  ;;  %v4300_v16 = vpop.f32.mrf.mxu3  ;;  %v4499_v15 = vrot.slane %v9473_v7, 5 }
 0x59c   : > { %10953 = vst [vmem:[#allocation22_spill] sm:$0xff] %v9476_v14  ;;  %v4376_v23 = vmin.f32 %v9476_v14, 0.0  ;;  %v4226_v41 = vadd.f32 %v4225_v48, %v4133_v27  ;;  %v4563_v29 = vsel %vm619_vm2, 0.0, %v4541_v59  ;;  %v4539_v35 = vsel %vm769_vm4, 0.0, %v4519_v31 }
 0x59d   : > { %4688 = vrot.lane.b32.xlu0 %v4563_v29, %s10888_s27  ;;  %v4497_v4 = vsel %vm743_vm3, 0.0, %v4481_v28  ;;  %vm4363_vm9 = vcmp.gt.f32.partialorder %v9476_v14, 0.0 }
 0x59e   : > { %v7030_v38 = vpop.eup %7029  ;;  %v4391_v40 = vmul.f32 1.442695, %v4376_v23  ;;  %v4297_v24 = vadd.f32 %v4296_v1, %v4226_v41  ;;  %v10956_v1 = vld [vmem:[#allocation15_spill] sm:$0xff]  ;;  %v3976_v23 = vadd.f32 %v9419_v25, %v3869_v53  ;;  %v4517_v41 = vsel %vm756_vm1, 0.0, %v4499_v15 }
 0x59f   : > { %v6787_v36 = vadd.f32 -1.0, %v7030_v38 }
 0x5a0   : > { %7031 = vpow2.f32 %v4391_v40  ;;  %v4338_v3 = vadd.f32 %v4297_v24, %v10954_v42  ;;  %v4054_v24 = vpop.f32.mrf.mxu0  ;;  %v4465_v42 = vrot.slane %v9473_v7, 3 }
 0x5a1   : > { %v9489_v58 = vsel %vm4362_vm7, %v9465_v33, %v6787_v36  ;;  %v4055_v36 = vadd.f32 %v4054_v24, %v3976_v23 }
 0x5a2   : > { %v9494_v17 = vmul.f32 0.0, %v4338_v3  ;;  %4729 = vrot.lane.b32.xlu1 %v9489_v58, %s10891_s17  ;;  %4651 = vrot.lane.b32.xlu2 %v4539_v35, %s10887_s1  ;;  %v4446_v52 = vrot.slane %v9489_v58, 2  ;;  %v4500_v20 = vrot.slane %v9489_v58, 5  ;;  %v4542_v8 = vrot.slane %v9489_v58, 7 }
 0x5a3   : > { %v4229_v2 = vpop.f32.mrf.mxu2  ;;  %v4479_v53 = vsel %vm730_vm0, 0.0, %v4465_v42 }
 0x5a4   : > { %10955 = vst [vmem:[#allocation11_spill] sm:$0xff] %v9494_v17  ;;  %v4377_v6 = vmin.f32 %v9494_v17, 0.0  ;;  %v4230_v47 = vadd.f32 %v4229_v2, %v4139_v10  ;;  %v9513_v43 = vsel %vm711_vm10, %v10847_v51, %v4446_v52  ;;  %v4501_v29 = vsel %vm756_vm1, %v4499_v15, %v4500_v20  ;;  %v4144_v2 = vpop.f32.mrf.mxu1 }
 0x5a5   : > { %4590 = vrot.lane.b32.xlu0 %v4497_v4, %s10893_s23  ;;  %v4543_v0 = vsel %vm619_vm2, %v4541_v59, %v4542_v8  ;;  %vm4364_vm8 = vcmp.gt.f32.partialorder %v9494_v17, 0.0  ;;  %v4145_v4 = vadd.f32 %v4144_v2, %v4055_v36  ;;  %v3877_v36 = vadd.f32 %v9403_v13, %v9429_v21 }
 0x5a6   : > { %v7032_v57 = vpop.eup %7031  ;;  %v4393_v30 = vmul.f32 1.442695, %v4377_v6  ;;  %v4301_v9 = vadd.f32 %v4300_v16, %v4230_v47  ;;  %v4520_v47 = vrot.slane %v9489_v58, 6 }
 0x5a7   : > { %v6788_v27 = vadd.f32 -1.0, %v7032_v57  ;;  %v3980_v2 = vadd.f32 %v9425_v19, %v3877_v36 }
 0x5a8   : > { %7033 = vpow2.f32 %v4393_v30  ;;  %v4339_v48 = vadd.f32 %v4301_v9, %v10956_v1  ;;  %v4521_v15 = vsel %vm769_vm4, %v4519_v31, %v4520_v47  ;;  %v4466_v30 = vrot.slane %v9489_v58, 3 }
 0x5a9   : > { %v9524_v63 = vsel %vm4363_vm9, %v9476_v14, %v6788_v27  ;;  %v4304_v27 = vpop.f32.mrf.mxu3 }
 0x5aa   : > { %v9526_v38 = vmul.f32 0.0, %v4339_v48  ;;  %4618 = vrot.lane.b32.xlu2 %v4517_v41, %s10889_s19  ;;  %4620 = vrot.lane.b32.xlu1 %v4501_v29, %s10889_s19  ;;  %v4448_v40 = vrot.slane %v9524_v63, 2  ;;  %v4544_v57 = vrot.slane %v9524_v63, 7  ;;  %v4482_v41 = vrot.slane %v9489_v58, 4 }
 0x5ab   : > { %v4233_v6 = vpop.f32.mrf.mxu2  ;;  %v4467_v29 = vsel %vm730_vm0, %v4465_v42, %v4466_v30  ;;  %v4502_v42 = vrot.slane %v9524_v63, 5 }
 0x5ac   : > { %10957 = vst [vmem:[#allocation12_spill] sm:$0xff] %v9526_v38  ;;  %v4378_v25 = vmin.f32 %v9526_v38, 0.0  ;;  %v9536_v35 = vsel %vm711_vm10, %v4446_v52, %v4448_v40  ;;  %v4234_v52 = vadd.f32 %v4233_v6, %v4145_v4  ;;  %vm4365_vm7 = vcmp.gt.f32.partialorder %v9526_v38, 0.0  ;;  %v4844_v6 = vld [vmem:[%s10792_s10 + $0x68] sm:$0xff]  ;;  %v4843_v4 = vld [vmem:[%s10792_s10 + $0x60] sm:$0xff] }
 0x5ad   : > { %4690 = vrot.lane.b32.xlu0 %v4543_v0, %s10888_s27  ;;  %10958 = vst [vmem:[#allocation13_spill] sm:$0xff] %v9536_v35  ;;  %v4545_v31 = vsel %vm619_vm2, %v4542_v8, %v4544_v57  ;;  %v4483_v8 = vsel %vm743_vm3, %v4481_v28, %v4482_v41  ;;  %v4503_v21 = vsel %vm756_vm1, %v4500_v20, %v4502_v42  ;;  %v10856_v28 = vrot.slane %v9524_v63, 4 }
 0x5ae   : > { %v7034_v3 = vpop.eup %7033  ;;  %v4395_v32 = vmul.f32 1.442695, %v4378_v25  ;;  %v4305_v48 = vadd.f32 %v4304_v27, %v4234_v52  ;;  %v9602_v58 = vand.u32 4294901760, %v4844_v6  ;;  %v9604_v20 = vand.u32 4294901760, %v4843_v4 }
 0x5af   : > { %v6789_v10 = vadd.f32 -1.0, %v7034_v3  ;;  %v10853_v3 = vrot.slane %v9524_v63, 6 }
 0x5b0   : > { %7035 = vpow2.f32 %v4395_v32  ;;  %v9615_v27 = vsub.f32 %v4843_v4, %v9604_v20  ;;  %5275 = vmatpush.msrb.mxu3 %v9602_v58  ;;  %4891 = vmatpush.msra.mxu0 %v9602_v58 }
 0x5b1   : > { %v9541_v59 = vsel %vm4364_vm8, %v9494_v17, %v6789_v10  ;;  %v4523_v19 = vsel %vm769_vm4, %v4520_v47, %v10853_v3 }
 0x5b2   : > { %4731 = vrot.lane.b32.xlu1 %v9524_v63, %s10891_s17  ;;  %4565 = vrot.lane.b32.xlu2 %v4479_v53, %s10890_s30  ;;  %v4450_v16 = vrot.slane %v9541_v59, 2  ;;  %v4842_v53 = vld [vmem:[%s10792_s10 + $0x58] sm:$0xff] }
 0x5b3   : > { %v9606_v52 = vand.u32 4294901760, %v4842_v53  ;;  %5277 = vmatpush.msrb.mxu3 %v9604_v20  ;;  %4893 = vmatpush.msra.mxu0 %v9604_v20 }
 0x5b4   : > { %v9555_v1 = vsel %vm711_vm10, %v4448_v40, %v4450_v16  ;;  %v10960_v40 = vld [vmem:[#allocation16_spill] sm:$0xff] }
 0x5b5   : > { %4653 = vrot.lane.b32.xlu0 %v4521_v15, %s10887_s1  ;;  %10959 = vst [vmem:[#allocation14_spill] sm:$0xff] %v9555_v1  ;;  %v4340_v25 = vadd.f32 %v4305_v48, %v10960_v40  ;;  %v9618_v47 = vsub.f32 %v4842_v53, %v9606_v52  ;;  %5279 = vmatpush.msrb.mxu3 %v9606_v52 }
 0x5b6   : > { %v7036_v9 = vpop.eup %7035  ;;  %4895 = vmatpush.msra.mxu0 %v9606_v52 }
 0x5b7   : > { %v6790_v23 = vadd.f32 -1.0, %v7036_v9  ;;  %v9583_v10 = vmul.f32 0.0, %v4340_v25  ;;  %v9612_v9 = vsub.f32 %v4844_v6, %v9602_v58  ;;  %v10849_v25 = vand.u32 4294901760, %v9615_v27 }
 0x5b8   : > { %v10848_v36 = vand.u32 4294901760, %v9618_v47 }
 0x5b9   : > { %v9564_v24 = vsel %vm4365_vm7, %v9526_v38, %v6790_v23  ;;  %10962 = vst [vmem:[#allocation16_spill] sm:$0xff] %v9583_v10  ;;  %v4379_v15 = vmin.f32 %v9583_v10, 0.0  ;;  %v4485_v23 = vsel %vm743_vm3, %v4482_v41, %v10856_v28  ;;  %v10850_v40 = vand.u32 4294901760, %v9612_v9  ;;  %5166 = vmatpush.msrb.mxu2 %v9612_v9 }
 0x5ba   : > { %4692 = vrot.lane.b32.xlu1 %v4545_v31, %s10888_s27  ;;  %4567 = vrot.lane.b32.xlu2 %v4467_v29, %s10890_s30  ;;  %v10852_v0 = vrot.slane %v9564_v24, 2  ;;  %v10851_v31 = vrot.slane %v9524_v63, 3  ;;  %v10855_v29 = vrot.slane %v9541_v59, 5  ;;  %v5034_v6 = vsub.f32 %v9615_v27, %v10849_v25  ;;  %v4838_v25 = vld [vmem:[%s10792_s10 + $0x38] sm:$0xff] }
 0x5bb   : > { %v4397_v41 = vmul.f32 1.442695, %v4379_v15  ;;  %v5040_v4 = vsub.f32 %v9618_v47, %v10848_v36  ;;  %5169 = vmatpush.msrb.mxu2 %v9615_v27  ;;  %v4841_v15 = vld [vmem:[%s10792_s10 + $0x50] sm:$0xff]  ;;  %vm4366_vm9 = vcmp.gt.f32.partialorder %v9583_v10, 0.0  ;;  %v10989_v55 = vrot.slane %v9564_v24, 7 }
 0x5bc   : > { %v9581_v32 = vsel %vm711_vm10, %v4450_v16, %v10852_v0  ;;  %v4059_v16 = vpop.f32.mrf.mxu0  ;;  %v5035_v51 = vand.u32 4294901760, %v5034_v6  ;;  %v9662_v36 = vand.u32 4294901760, %v4841_v15 }
 0x5bd   : > { %4592 = vrot.lane.b32.xlu0 %v4483_v8, %s10893_s23  ;;  %10961 = vst [vmem:[#allocation15_spill] sm:$0xff] %v9581_v32  ;;  %v4060_v48 = vadd.f32 %v4059_v16, %v3980_v2  ;;  %v4150_v8 = vpop.f32.mrf.mxu1  ;;  %v4237_v2 = vpop.f32.mrf.mxu2  ;;  %v10854_v16 = vrot.slane %v9541_v59, 7  ;;  %5172 = vmatpush.msrb.mxu2 %v9618_v47  ;;  %7037 = vpow2.f32 %v4397_v41  ;;  %v5041_v6 = vand.u32 4294901760, %v5040_v4 }
 0x5be   : > { %v9680_v3 = vsub.f32 %v4841_v15, %v9662_v36  ;;  %5281 = vmatpush.msrb.mxu3 %v9662_v36  ;;  %4897 = vmatpush.msra.mxu0 %v9662_v36  ;;  %v10967_v32 = vrot.slane %v9541_v59, 4 }
 0x5bf   : > { %v4151_v53 = vadd.f32 %v4150_v8, %v4060_v48  ;;  %v4839_v48 = vld [vmem:[%s10792_s10 + $0x40] sm:$0xff] }
 0x5c0   : > { %v9672_v0 = vand.u32 4294901760, %v4839_v48  ;;  %v10858_v15 = vand.u32 4294901760, %v9680_v3  ;;  %5175 = vmatpush.msrb.mxu2 %v9680_v3 }
 0x5c2   : > { %4622 = vrot.lane.b32.xlu1 %v4503_v21, %s10889_s19  ;;  %4655 = vrot.lane.b32.xlu2 %v4523_v19, %s10887_s1  ;;  %v5028_v21 = vsub.f32 %v9612_v9, %v10850_v40  ;;  %v4469_v19 = vsel %vm730_vm0, %v4466_v30, %v10851_v31  ;;  %v4505_v30 = vsel %vm756_vm1, %v4502_v42, %v10855_v29  ;;  %v9674_v42 = vand.u32 4294901760, %v4838_v25 }
 0x5c3   : > { %v4238_v40 = vadd.f32 %v4237_v2, %v4151_v53  ;;  %v4547_v53 = vsel %vm619_vm2, %v4544_v57, %v10854_v16  ;;  %v9694_v41 = vsub.f32 %v4839_v48, %v9672_v0  ;;  %v4836_v57 = vld [vmem:[%s10792_s10 + $0x28] sm:$0xff]  ;;  %v7038_v16 = vpop.eup %7037 }
 0x5c4   : > { %v5029_v8 = vand.u32 4294901760, %v5028_v21  ;;  %v4837_v21 = vld [vmem:[%s10792_s10 + $0x30] sm:$0xff]  ;;  %v9697_v4 = vsub.f32 %v4838_v25, %v9674_v42  ;;  %v3885_v25 = vadd.f32 %v9403_v13, %v9435_v62  ;;  %v9723_v62 = vand.u32 4294901760, %v4836_v57 }
 0x5c5   : > { %4594 = vrot.lane.b32.xlu0 %v4485_v23, %s10893_s23  ;;  %v4840_v23 = vld [vmem:[%s10792_s10 + $0x48] sm:$0xff]  ;;  %v9683_v2 = vand.u32 4294901760, %v4837_v21  ;;  %v6791_v35 = vadd.f32 -1.0, %v7038_v16 }
 0x5c6   : > { %v9670_v31 = vand.u32 4294901760, %v4840_v23  ;;  %5030 = vmatpush.msra.mxu1 %v5029_v8 }
 0x5c8   : > { %5036 = vmatpush.msra.mxu1 %v5035_v51  ;;  %5283 = vmatpush.msrb.mxu3 %v9670_v31  ;;  %v3984_v51 = vadd.f32 %v9431_v12, %v3885_v25  ;;  %v10868_v25 = vrot.slane %v9564_v24, 5 }
 0x5c9   : > { %4899 = vmatpush.msra.mxu0 %v9670_v31 }
 0x5ca   : > { %4624 = vrot.lane.b32.xlu1 %v4505_v30, %s10889_s19  ;;  %4569 = vrot.lane.b32.xlu2 %v4469_v19, %s10890_s30  ;;  %v9691_v19 = vsub.f32 %v4840_v23, %v9670_v31  ;;  %v9703_v30 = vsub.f32 %v4837_v21, %v9683_v2  ;;  %v4835_v23 = vld [vmem:[%s10792_s10 + $0x20] sm:$0xff]  ;;  %v4308_v21 = vpop.f32.mrf.mxu3 }
 0x5cb   : > { %5042 = vmatpush.msra.mxu1 %v5041_v6  ;;  %v9725_v29 = vand.u32 4294901760, %v4835_v23  ;;  %v4309_v28 = vadd.f32 %v4308_v21, %v4238_v40  ;;  %v10963_v6 = vand.u32 4294901760, %v9694_v41  ;;  %v10964_v40 = vand.u32 4294901760, %v9697_v4  ;;  %5285 = vmatpush.msrb.mxu3 %v9672_v0 }
 0x5cc   : > { %v10860_v48 = vand.u32 4294901760, %v9691_v19  ;;  %5178 = vmatpush.msrb.mxu2 %v9691_v19  ;;  %4901 = vmatpush.msra.mxu0 %v9672_v0  ;;  %v10965_v14 = vand.u32 4294901760, %v9703_v30 }
 0x5cd   : > { %4694 = vrot.lane.b32.xlu0 %v4547_v53, %s10888_s27  ;;  %v5046_v53 = vsub.f32 %v9680_v3, %v10858_v15  ;;  %v5058_v38 = vsub.f32 %v9694_v41, %v10963_v6  ;;  %v4834_v15 = vld [vmem:[%s10792_s10 + $0x18] sm:$0xff]  ;;  %v5064_v21 = vsub.f32 %v9697_v4, %v10964_v40  ;;  %v9747_v6 = vsub.f32 %v4835_v23, %v9725_v29  ;;  %v4833_v23 = vld [vmem:[%s10792_s10 + $0x10] sm:$0xff] }
 0x5ce   : > { %v5052_v8 = vsub.f32 %v9691_v19, %v10860_v48  ;;  %v9743_v48 = vsub.f32 %v4836_v57, %v9723_v62  ;;  %v5070_v57 = vsub.f32 %v9703_v30, %v10965_v14  ;;  %5181 = vmatpush.msrb.mxu2 %v9694_v41  ;;  %v9764_v61 = vand.u32 4294901760, %v4834_v15  ;;  %5287 = vmatpush.msrb.mxu3 %v9674_v42 }
 0x5cf   : > { %v5047_v17 = vand.u32 4294901760, %v5046_v53  ;;  %v5059_v33 = vand.u32 4294901760, %v5058_v38  ;;  %v10966_v53 = vld [vmem:[#allocation17_spill] sm:$0xff]  ;;  %v10968_v14 = vrot.slane %v9524_v63, 4  ;;  %4903 = vmatpush.msra.mxu0 %v9674_v42  ;;  %v4064_v38 = vpop.f32.mrf.mxu0 }
 0x5d0   : > { %v5053_v40 = vand.u32 4294901760, %v5052_v8  ;;  %v10864_v12 = vand.u32 4294901760, %v9743_v48  ;;  %v4341_v8 = vadd.f32 %v4309_v28, %v10966_v53  ;;  %v5065_v28 = vand.u32 4294901760, %v5064_v21  ;;  %5184 = vmatpush.msrb.mxu2 %v9697_v4  ;;  %5289 = vmatpush.msrb.mxu3 %v9683_v2 }
 0x5d1   : > { %5048 = vmatpush.msra.mxu1 %v5047_v17  ;;  %v4487_v1 = vsel %vm743_vm3, %v10968_v14, %v10967_v32  ;;  %v9774_v17 = vand.u32 4294901760, %v4833_v23  ;;  %v9782_v32 = vsub.f32 %v4834_v15, %v9764_v61  ;;  %v4065_v16 = vadd.f32 %v4064_v38, %v3984_v51  ;;  %4905 = vmatpush.msra.mxu0 %v9683_v2 }
 0x5d2   : > { %4735 = vrot.lane.b32.xlu1 %v9564_v24, %s10891_s17  ;;  %4733 = vrot.lane.b32.xlu2 %v9541_v59, %s10891_s17  ;;  %v5076_v53 = vsub.f32 %v9743_v48, %v10864_v12  ;;  %v10969_v21 = vand.u32 4294901760, %v9747_v6  ;;  %v9795_v15 = vmul.f32 0.0, %v4341_v8  ;;  %v9799_v38 = vsel %vm4366_vm9, %v9583_v10, %v6791_v35 }
 0x5d3   : > { %5054 = vmatpush.msra.mxu1 %v5053_v40  ;;  %v9787_v14 = vsub.f32 %v4833_v23, %v9774_v17  ;;  %5187 = vmatpush.msrb.mxu2 %v9703_v30  ;;  %v4241_v23 = vpop.f32.mrf.mxu2  ;;  %v10971_v12 = vrot.slane %v9541_v59, 6  ;;  %v10972_v51 = vrot.slane %v9524_v63, 6  ;;  %v10973_v18 = vand.u32 4294901760, %v9782_v32 }
 0x5d4   : > { %v5082_v40 = vsub.f32 %v9747_v6, %v10969_v21  ;;  %5291 = vmatpush.msrb.mxu3 %v9723_v62  ;;  %v10970_v21 = vrot.slane %v9541_v59, 5  ;;  %v5077_v10 = vand.u32 4294901760, %v5076_v53  ;;  %4907 = vmatpush.msra.mxu0 %v9723_v62  ;;  %v4380_v53 = vmin.f32 %v9795_v15, 0.0 }
 0x5d5   : > { %4596 = vrot.lane.b32.xlu0 %v4487_v1, %s10893_s23  ;;  %5060 = vmatpush.msra.mxu1 %v5059_v33  ;;  %v5071_v1 = vand.u32 4294901760, %v5070_v57  ;;  %v4156_v57 = vpop.f32.mrf.mxu1  ;;  %v4525_v35 = vsel %vm769_vm4, %v10972_v51, %v10971_v12  ;;  %v5088_v33 = vsub.f32 %v9782_v32, %v10973_v18  ;;  %v10975_v51 = vrot.slane %v9564_v24, 7 }
 0x5d6   : > { %v4507_v8 = vsel %vm756_vm1, %v10970_v21, %v10868_v25  ;;  %v4157_v46 = vadd.f32 %v4156_v57, %v4065_v16  ;;  %v5083_v21 = vand.u32 4294901760, %v5082_v40  ;;  %5190 = vmatpush.msrb.mxu2 %v9743_v48  ;;  %v10974_v25 = vand.u32 4294901760, %v9787_v14  ;;  %5293 = vmatpush.msrb.mxu3 %v9725_v29 }
 0x5d7   : > { %5066 = vmatpush.msra.mxu1 %v5065_v28  ;;  %v10869_v28 = vrot.slane %v9799_v38, 2  ;;  %v10976_v16 = vrot.slane %v9541_v59, 7  ;;  %4909 = vmatpush.msra.mxu0 %v9725_v29  ;;  %v3893_v40 = vadd.f32 %v9403_v13, %v9440_v26  ;;  %v10977_v26 = vrot.slane %v9564_v24, 2 }
 0x5d8   : > { %v5094_v12 = vsub.f32 %v9787_v14, %v10974_v25  ;;  %v4242_v18 = vadd.f32 %v4241_v23, %v4157_v46  ;;  %v5089_v25 = vand.u32 4294901760, %v5088_v33  ;;  %5193 = vmatpush.msrb.mxu2 %v9747_v6  ;;  %5295 = vmatpush.msrb.mxu3 %v9764_v61  ;;  %v4312_v46 = vpop.f32.mrf.mxu3  ;;  %vm4367_vm8 = vcmp.gt.f32.partialorder %v9795_v15, 0.0 }
 0x5d9   : > { %5072 = vmatpush.msra.mxu1 %v5071_v1  ;;  %v4549_v57 = vsel %vm619_vm2, %v10976_v16, %v10975_v51  ;;  %v10872_v1 = vrot.slane %v9541_v59, 3  ;;  %4911 = vmatpush.msra.mxu0 %v9764_v61  ;;  %v9852_v33 = vsel %vm711_vm10, %v10977_v26, %v10869_v28  ;;  %v4399_v51 = vmul.f32 1.442695, %v4380_v53 }
 0x5da   : > { %4626 = vrot.lane.b32.xlu1 %v4507_v8, %s10889_s19  ;;  %4657 = vrot.lane.b32.xlu2 %v4525_v35, %s10887_s1  ;;  %v5095_v8 = vand.u32 4294901760, %v5094_v12  ;;  %v4832_v35 = vld [vmem:[%s10792_s10 + $0x8] sm:$0xff]  ;;  %10978 = vst [vmem:[#allocation17_spill] sm:$0xff] %v9852_v33  ;;  %v3988_v53 = vadd.f32 %v9437_v34, %v3893_v40  ;;  %v10981_v26 = vrot.slane %v9541_v59, 4  ;;  %v10982_v34 = vld [vmem:[#allocation18_spill] sm:$0xff]  ;;  %v10987_v33 = vand.u32 4294901760, %v9618_v47 }
 0x5db   : > { %5078 = vmatpush.msra.mxu1 %v5077_v10  ;;  %v4831_v10 = vld [vmem:[%s10792_s10] sm:$0xff]  ;;  %5196 = vmatpush.msrb.mxu2 %v9782_v32  ;;  %v9855_v12 = vand.u32 4294901760, %v4832_v35  ;;  %7039 = vpow2.f32 %v4399_v51  ;;  %v4245_v28 = vpop.f32.mrf.mxu2  ;;  %v10990_v47 = vand.u32 4294901760, %v9680_v3 }
 0x5dc   : > { %v9857_v16 = vand.u32 4294901760, %v4831_v10  ;;  %5297 = vmatpush.msrb.mxu3 %v9774_v17  ;;  %4913 = vmatpush.msra.mxu0 %v9774_v17 }
 0x5dd   : > { %4696 = vrot.lane.b32.xlu0 %v4549_v57, %s10888_s27  ;;  %5084 = vmatpush.msra.mxu1 %v5083_v21  ;;  %v4313_v21 = vadd.f32 %v4312_v46, %v4242_v18  ;;  %v10979_v57 = vrot.slane %v9524_v63, 3  ;;  %v9871_v18 = vsub.f32 %v4832_v35, %v9855_v12  ;;  %v10980_v63 = vrot.slane %v9564_v24, 4 }
 0x5de   : > { %v9874_v46 = vsub.f32 %v4831_v10, %v9857_v16  ;;  %5199 = vmatpush.msrb.mxu2 %v9787_v14  ;;  %5299 = vmatpush.msrb.mxu3 %v9855_v12  ;;  %v4069_v10 = vpop.f32.mrf.mxu0 }
 0x5df   : > { %v4471_v23 = vsel %vm730_vm0, %v10979_v57, %v10872_v1  ;;  %5090 = vmatpush.msra.mxu1 %v5089_v25  ;;  %v4489_v25 = vsel %vm743_vm3, %v10981_v26, %v10980_v63  ;;  %v4342_v40 = vadd.f32 %v4313_v21, %v10982_v34  ;;  %4915 = vmatpush.msra.mxu0 %v9855_v12  ;;  %v10873_v57 = vrot.slane %v9799_v38, 5 }
 0x5e0   : > { %v10870_v35 = vand.u32 4294901760, %v9874_v46  ;;  %5202 = vmatpush.msrb.mxu2 %v9871_v18  ;;  %v4070_v63 = vadd.f32 %v4069_v10, %v3988_v53  ;;  %5301 = vmatpush.msrb.mxu3 %v9857_v16  ;;  %v10983_v26 = vand.u32 4294901760, %v9612_v9  ;;  %v4162_v10 = vpop.f32.mrf.mxu1  ;;  %v10985_v1 = vrot.slane %v9541_v59, 6 }
 0x5e1   : > { %5096 = vmatpush.msra.mxu1 %v5095_v8  ;;  %v4526_v8 = vrot.slane %v9564_v24, 6  ;;  %4917 = vmatpush.msra.mxu0 %v9857_v16  ;;  %v7040_v53 = vpop.eup %7039 }
 0x5e2   : > { %4737 = vrot.lane.b32.xlu1 %v9799_v38, %s10891_s17  ;;  %4571 = vrot.lane.b32.xlu2 %v4471_v23, %s10890_s30  ;;  %v10871_v23 = vand.u32 4294901760, %v9871_v18  ;;  %v5106_v21 = vsub.f32 %v9874_v46, %v10870_v35  ;;  %v10984_v35 = vrot.slane %v9564_v24, 5 }
 0x5e3   : > { %5205 = vmatpush.msrb.mxu2 %v9874_v46  ;;  %5386 = vmatpush.msrb.mxu0 %v10983_v26  ;;  %v4527_v9 = vsel %vm769_vm4, %v10985_v1, %v4526_v8 }
 0x5e4   : > { %v5100_v51 = vsub.f32 %v9871_v18, %v10871_v23  ;;  %v4509_v23 = vsel %vm756_vm1, %v10984_v35, %v10873_v57  ;;  %v5107_v26 = vand.u32 4294901760, %v5106_v21  ;;  %v10988_v57 = vrot.slane %v9799_v38, 7  ;;  %v4650_v21 = vpop.permute.xlu0 %4649 }
 0x5e5   : > { %4598 = vrot.lane.b32.xlu0 %v4489_v25, %s10893_s23  ;;  %v9902_v25 = vmul.f32 0.0, %v4342_v40  ;;  %v10986_v40 = vand.u32 4294901760, %v9615_v27 }
 0x5e6   : > { %v5101_v34 = vand.u32 4294901760, %v5100_v51  ;;  %v4163_v51 = vadd.f32 %v4162_v10, %v4070_v63  ;;  %v4551_v1 = vsel %vm619_vm2, %v10989_v55, %v10988_v57  ;;  %v6792_v63 = vadd.f32 -1.0, %v7040_v53 }
 0x5e7   : > { %5390 = vmatpush.msrb.mxu0 %v10986_v40  ;;  %v4381_v27 = vmin.f32 %v9902_v25, 0.0  ;;  %v4490_v55 = vrot.slane %v9799_v38, 4  ;;  %v10991_v53 = vand.u32 4294901760, %v9691_v19  ;;  %v10992_v10 = vrot.slane %v9541_v59, 3  ;;  %v10994_v40 = vld [vmem:[#allocation21_spill] sm:$0xff] }
 0x5e8   : > { %5102 = vmatpush.msra.mxu1 %v5101_v34  ;;  %v4246_v35 = vadd.f32 %v4245_v28, %v4163_v51  ;;  %v4316_v28 = vpop.f32.mrf.mxu3  ;;  %v9939_v34 = vsel %vm947_vm14, %v8843_v39, %v4650_v21  ;;  %v9942_v3 = vsel %vm4367_vm8, %v9795_v15, %v6792_v63  ;;  %v10993_v19 = vand.u32 4294901760, %v9694_v41 }
 0x5e9   : > { %5394 = vmatpush.msrb.mxu0 %v10987_v33  ;;  %v4401_v57 = vmul.f32 1.442695, %v4381_v27  ;;  %v4528_v41 = vrot.slane %v9799_v38, 6  ;;  %v10996_v21 = vand.u32 4294901760, %v9697_v4  ;;  %vm4368_vm7 = vcmp.gt.f32.partialorder %v9902_v25, 0.0 }
 0x5ea   : > { %4628 = vrot.lane.b32.xlu1 %v4509_v23, %s10889_s19  ;;  %4659 = vrot.lane.b32.xlu2 %v4527_v9, %s10887_s1  ;;  %v4472_v23 = vrot.slane %v9564_v24, 3  ;;  %v4317_v33 = vadd.f32 %v4316_v28, %v4246_v35 }
 0x5eb   : > { %5108 = vmatpush.msra.mxu1 %v5107_v26  ;;  %5398 = vmatpush.msrb.mxu0 %v10990_v47  ;;  %7041 = vpow2.f32 %v4401_v57  ;;  %v4074_v47 = vpop.f32.mrf.mxu0  ;;  %v4552_v57 = vrot.slane %v9942_v3, 7 }
 0x5ec   : > { %v4473_v9 = vsel %vm730_vm0, %v10992_v10, %v4472_v23  ;;  %v4343_v59 = vadd.f32 %v4317_v33, %v10994_v40 }
 0x5ed   : > { %4698 = vrot.lane.b32.xlu0 %v4551_v1, %s10888_s27  ;;  %5495 = vmatpush.msrb.mxu1 %v9602_v58  ;;  %v4687_v58 = vpop.permute.xlu1 %4686 }
 0x5ee   : > { %5402 = vmatpush.msrb.mxu0 %v10991_v53  ;;  %v4805_v26 = vsel %vm955_vm15, %v9939_v34, %v4687_v58  ;;  %v9977_v33 = vmul.f32 0.0, %v4343_v59  ;;  %v10997_v53 = vand.u32 4294901760, %v9703_v30  ;;  %v3909_v30 = vadd.f32 %v9403_v13, %v9448_v54 }
 0x5ef   : > { %5497 = vmatpush.msrb.mxu1 %v9604_v20  ;;  %v3901_v20 = vadd.f32 %v9403_v13, %v9444_v49  ;;  %v10995_v49 = vrot.slane %v9564_v24, 4  ;;  %v11000_v54 = vand.u32 4294901760, %v9743_v48  ;;  %v4492_v48 = vrot.slane %v9942_v3, 4 }
 0x5f0   : > { %5406 = vmatpush.msrb.mxu0 %v10993_v19  ;;  %v4382_v13 = vmin.f32 %v9977_v33, 0.0  ;;  %vm4369_vm9 = vcmp.gt.f32.partialorder %v9977_v33, 0.0 }
 0x5f1   : > { %5499 = vmatpush.msrb.mxu1 %v9606_v52  ;;  %v4491_v35 = vsel %vm743_vm3, %v10995_v49, %v4490_v55  ;;  %v4510_v52 = vrot.slane %v9942_v3, 5  ;;  %v3992_v27 = vadd.f32 %v9442_v37, %v3901_v20  ;;  %v10998_v37 = vrot.slane %v9799_v38, 5  ;;  %v7042_v58 = vpop.eup %7041  ;;  %v4249_v20 = vpop.f32.mrf.mxu2 }
 0x5f2   : > { %4739 = vrot.lane.b32.xlu1 %v9942_v3, %s10891_s17  ;;  %4573 = vrot.lane.b32.xlu2 %v4473_v9, %s10890_s30  ;;  %v4168_v9 = vpop.f32.mrf.mxu1  ;;  %v3996_v49 = vadd.f32 %v9446_v45, %v3909_v30  ;;  %v4320_v45 = vpop.f32.mrf.mxu3  ;;  %v4493_v24 = vsel %vm743_vm3, %v4490_v55, %v4492_v48  ;;  %v4476_v55 = vrot.slane %v9942_v3, 3 }
 0x5f3   : > { %5501 = vmatpush.msrb.mxu1 %v9662_v36  ;;  %5410 = vmatpush.msrb.mxu0 %v10996_v21  ;;  %v4511_v4 = vsel %vm756_vm1, %v10998_v37, %v4510_v52  ;;  %v4075_v10 = vadd.f32 %v4074_v47, %v3992_v27  ;;  %v4403_v21 = vmul.f32 1.442695, %v4382_v13  ;;  %v11002_v47 = vand.u32 4294901760, %v9782_v32 }
 0x5f4   : > { %v4728_v51 = vpop.permute.xlu2 %4727  ;;  %v4530_v13 = vrot.slane %v9942_v3, 6 }
 0x5f5   : > { %v4818_v1 = vsel %vm963_vm5, %v4805_v26, %v4728_v51  ;;  %4600 = vrot.lane.b32.xlu0 %v4491_v35, %s10893_s23  ;;  %5503 = vmatpush.msrb.mxu1 %v9670_v31  ;;  %v4529_v31 = vsel %vm769_vm4, %v4526_v8, %v4528_v41  ;;  %v10999_v8 = vrot.slane %v9799_v38, 7  ;;  %v6793_v51 = vadd.f32 -1.0, %v7042_v58  ;;  %v11005_v58 = vld [vmem:[#allocation23_spill] sm:$0xff] }
 0x5f6   : > { %v4850_v63 = vsel %vm989_vm6, %v4818_v1, 0  ;;  %5414 = vmatpush.msrb.mxu0 %v10997_v53  ;;  %v4169_v35 = vadd.f32 %v4168_v9, %v4075_v10  ;;  %v11001_v1 = vand.u32 4294901760, %v9747_v6  ;;  %v4079_v53 = vpop.f32.mrf.mxu0  ;;  %7043 = vpow2.f32 %v4403_v21 }
 0x5f7   : > { %v9974_v28 = vand.u32 4294901760, %v4850_v63  ;;  %5505 = vmatpush.msrb.mxu1 %v9672_v0  ;;  %v4553_v40 = vsel %vm619_vm2, %v10999_v8, %v4552_v57  ;;  %v4474_v0 = vrot.slane %v9799_v38, 3  ;;  %v11006_v9 = vand.u32 4294901760, %v9874_v46 }
 0x5f8   : > { %5418 = vmatpush.msrb.mxu0 %v11000_v54 }
 0x5f9   : > { %v4919_v36 = vsub.f32 %v4850_v63, %v9974_v28  ;;  %5110 = vmatmul.f32.vlgmr.msra.gmra.mxu1 %v9974_v28  ;;  %v4250_v63 = vadd.f32 %v4249_v20, %v4169_v35  ;;  %v4475_v6 = vsel %vm730_vm0, %v4472_v23, %v4474_v0 }
 0x5fa   : > { %4630 = vrot.lane.b32.xlu1 %v4511_v4, %s10889_s19  ;;  %4661 = vrot.lane.b32.xlu2 %v4529_v31, %s10887_s1  ;;  %v4174_v23 = vpop.f32.mrf.mxu1  ;;  %v4253_v4 = vpop.f32.mrf.mxu2 }
 0x5fb   : > { %v4920_v19 = vand.u32 4294901760, %v4919_v36  ;;  %5208 = vmatmul.f32.vlgmr.msrb.gmra.mxu2 %v4919_v36  ;;  %5507 = vmatpush.msrb.mxu1 %v9674_v42  ;;  %v10021_v42 = vsel %vm4368_vm7, %v9902_v25, %v6793_v51  ;;  %v4321_v32 = vadd.f32 %v4320_v45, %v4250_v63  ;;  %v4324_v46 = vpop.f32.mrf.mxu3  ;;  %v11007_v63 = vrot.slane %v9473_v7, 2 }
 0x5fc   : > { %v9999_v26 = vpop.permute.xlu2 %4651  ;;  %5422 = vmatpush.msrb.mxu0 %v11001_v1  ;;  %v4512_v31 = vrot.slane %v10021_v42, 5 }
 0x5fd   : > { %v4921_v59 = vsub.f32 %v4919_v36, %v4920_v19  ;;  %4700 = vrot.lane.b32.xlu0 %v4553_v40, %s10888_s27  ;;  %5305 = vmatmul.f32.vlgmr.msrb.gmra.mxu3 %v4920_v19  ;;  %v4080_v36 = vadd.f32 %v4079_v53, %v3996_v49  ;;  %v4344_v30 = vadd.f32 %v4321_v32, %v11005_v58  ;;  %v4494_v19 = vrot.slane %v10021_v42, 4 }
 0x5fe   : > { %5509 = vmatpush.msrb.mxu1 %v9683_v2  ;;  %5426 = vmatpush.msrb.mxu0 %v11002_v47  ;;  %v11003_v2 = vand.u32 4294901760, %v9787_v14  ;;  %v11004_v14 = vand.u32 4294901760, %v9871_v18  ;;  %v7044_v18 = vpop.eup %7043  ;;  %v4084_v54 = vpop.f32.mrf.mxu0  ;;  %v4463_v21 = vsel %vm711_vm10, 0.0, %v11007_v63 }
 0x5ff   : > { %v4922_v27 = vand.u32 4294901760, %v4921_v59  ;;  %v10065_v8 = vmul.f32 0.0, %v4344_v30  ;;  %v6794_v40 = vadd.f32 -1.0, %v7044_v18 }
 0x600   : > { %5511 = vmatpush.msrb.mxu1 %v9723_v62  ;;  %5430 = vmatpush.msrb.mxu0 %v11003_v2  ;;  %v4175_v62 = vadd.f32 %v4174_v23, %v4080_v36 }
 0x601   : > { %4923 = vmatmul.f32.vlgmr.msra.gmra.mxu0 %v4922_v27  ;;  %v4383_v49 = vmin.f32 %v10065_v8, 0.0  ;;  %v10078_v35 = vsel %vm4369_vm9, %v9977_v33, %v6794_v40 }
 0x602   : > { %4741 = vrot.lane.b32.xlu1 %v10021_v42, %s10891_s17  ;;  %4575 = vrot.lane.b32.xlu2 %v4475_v6, %s10890_s30  ;;  %v4254_v10 = vadd.f32 %v4253_v4, %v4175_v62  ;;  %v4257_v27 = vpop.f32.mrf.mxu2 }
 0x603   : > { %5513 = vmatpush.msrb.mxu1 %v9725_v29  ;;  %5434 = vmatpush.msrb.mxu0 %v11004_v14  ;;  %v4513_v29 = vsel %vm756_vm1, %v4510_v52, %v4512_v31  ;;  %v4405_v6 = vmul.f32 1.442695, %v4383_v49  ;;  %v4328_v58 = vpop.f32.mrf.mxu3 }
 0x604   : > { %v10034_v37 = vpop.permute.xlu2 %4618  ;;  %v4325_v52 = vadd.f32 %v4324_v46, %v4254_v10 }
 0x605   : > { %4602 = vrot.lane.b32.xlu0 %v4493_v24, %s10893_s23  ;;  %5515 = vmatpush.msrb.mxu1 %v9764_v61  ;;  %v7106_v61 = vld [vmem:[%s10791_s9] ss:$0 sm:$0xff]  ;;  %7045 = vpow2.f32 %v4405_v6  ;;  %v11008_v6 = vld [vmem:[#allocation26_spill] sm:$0xff] }
 0x606   : > { %5438 = vmatpush.msrb.mxu0 %v11006_v9  ;;  %v3917_v20 = vadd.f32 %v7106_v61, %v9452_v60  ;;  %v4345_v51 = vadd.f32 %v4325_v52, %v8917_v22  ;;  %v4180_v22 = vpop.f32.mrf.mxu1  ;;  %v4089_v14 = vpop.f32.mrf.mxu0 }
 0x607   : > { %5517 = vmatpush.msrb.mxu1 %v9774_v17 }
 0x608   : > { %v4000_v60 = vadd.f32 %v9450_v50, %v3917_v20  ;;  %v3925_v50 = vadd.f32 %v7106_v61, %v9456_v11  ;;  %v10093_v47 = vmul.f32 %v4345_v51, %v8893_v44  ;;  %v4495_v20 = vsel %vm743_vm3, %v4492_v48, %v4494_v19 }
 0x609   : > { %5519 = vmatpush.msrb.mxu1 %v9855_v12  ;;  %v4554_v12 = vrot.slane %v10021_v42, 7 }
 0x60a   : > { %4632 = vrot.lane.b32.xlu1 %v4513_v29, %s10889_s19  ;;  %4579 = vrot.lane.b32.xlu2 %v4476_v55, %s10890_s30  ;;  %v4085_v1 = vadd.f32 %v4084_v54, %v4000_v60  ;;  %v4004_v2 = vadd.f32 %v9454_v5, %v3925_v50  ;;  %v4384_v62 = vmin.f32 %v10093_v47, 0.0  ;;  %v4477_v5 = vsel %vm730_vm0, %v4474_v0, %v4476_v55  ;;  %v4261_v40 = vpop.f32.mrf.mxu2 }
 0x60b   : > { %5521 = vmatpush.msrb.mxu1 %v9857_v16  ;;  %v4531_v16 = vsel %vm769_vm4, %v4528_v41, %v4530_v13  ;;  %v4555_v45 = vsel %vm619_vm2, %v4552_v57, %v4554_v12  ;;  %v4514_v57 = vrot.slane %v10078_v35, 5  ;;  %v4532_v55 = vrot.slane %v10021_v42, 6  ;;  %v7046_v60 = vpop.eup %7045 }
 0x60c   : > { %v10067_v17 = vpop.permute.xlu2 %4565  ;;  %v4181_v32 = vadd.f32 %v4180_v22, %v4085_v1  ;;  %v4090_v10 = vadd.f32 %v4089_v14, %v4004_v2  ;;  %v4407_v46 = vmul.f32 1.442695, %v4384_v62  ;;  %v4556_v50 = vrot.slane %v10078_v35, 7 }
 0x60d   : > { %4606 = vrot.lane.b32.xlu0 %v4494_v19, %s10893_s23  ;;  %v4515_v48 = vsel %vm756_vm1, %v4512_v31, %v4514_v57  ;;  %v4533_v19 = vsel %vm769_vm4, %v4530_v13, %v4532_v55  ;;  %v6795_v1 = vadd.f32 -1.0, %v7046_v60  ;;  %v4794_v22 = vsel %vm947_vm14, %v8843_v39, %v9999_v26 }
 0x60e   : > { %v4258_v4 = vadd.f32 %v4257_v27, %v4181_v32  ;;  %v4186_v52 = vpop.f32.mrf.mxu1  ;;  %7047 = vpow2.f32 %v4407_v46  ;;  %vm4370_vm0 = vcmp.gt.f32.partialorder %v10065_v8, 0.0  ;;  %v4557_v3 = vsel %vm619_vm2, %v4554_v12, %v4556_v50 }
 0x60f   : > { %v4689_v59 = vpop.permute.xlu0 %4688  ;;  %v4187_v54 = vadd.f32 %v4186_v52, %v4090_v10  ;;  %v4435_v26 = vsel %vm4370_vm0, %v10065_v8, %v6795_v1  ;;  %vm4371_vm1 = vcmp.gt.f32.partialorder %v10093_v47, 0.0 }
 0x610   : > { %v4806_v41 = vsel %vm955_vm15, %v9939_v34, %v4689_v59  ;;  %v4329_v29 = vadd.f32 %v4328_v58, %v4258_v4  ;;  %v11009_v4 = vld [vmem:[#allocation25_spill] sm:$0xff] }
 0x612   : > { %4743 = vrot.lane.b32.xlu1 %v10078_v35, %s10891_s17  ;;  %4663 = vrot.lane.b32.xlu2 %v4531_v16, %s10887_s1  ;;  %v10132_v49 = vadd.f32 %v4329_v29, %v8995_v56  ;;  %v4262_v16 = vadd.f32 %v4261_v40, %v4187_v54  ;;  %v4332_v56 = vpop.f32.mrf.mxu3 }
 0x614   : > { %v4730_v53 = vpop.permute.xlu1 %4729  ;;  %v4568_v11 = vpop.permute.xlu2 %4567  ;;  %v4333_v27 = vadd.f32 %v4332_v56, %v4262_v16  ;;  %v4385_v13 = vmin.f32 %v10132_v49, 0.0  ;;  %vm4372_vm3 = vcmp.gt.f32.partialorder %v10132_v49, 0.0 }
 0x615   : > { %v4819_v36 = vsel %vm963_vm5, %v4806_v41, %v4730_v53  ;;  %v10104_v7 = vsel %vm923_vm11, %v4463_v21, %v4568_v11  ;;  %4702 = vrot.lane.b32.xlu0 %v4555_v45, %s10888_s27  ;;  %v4534_v41 = vrot.slane %v10078_v35, 6  ;;  %v7048_v11 = vpop.eup %7047  ;;  %v4558_v35 = vrot.slane %v4435_v26, 7 }
 0x616   : > { %v4853_v34 = vsel %vm989_vm6, %v4819_v36, 0  ;;  %v10164_v36 = vadd.f32 %v4333_v27, %v11008_v6  ;;  %v4409_v2 = vmul.f32 1.442695, %v4385_v13 }
 0x617   : > { %v10109_v24 = vand.u32 4294901760, %v4853_v34  ;;  %v10111_v23 = vpop.permute.xlu0 %4590 }
 0x618   : > { %7049 = vpow2.f32 %v4409_v2  ;;  %v4386_v10 = vmin.f32 %v10164_v36, 0.0 }
 0x619   : > { %v4927_v30 = vsub.f32 %v4853_v34, %v10109_v24  ;;  %5114 = vmatmul.f32.gmra.mxu1 %v10109_v24  ;;  %v6796_v34 = vadd.f32 -1.0, %v7048_v11 }
 0x61a   : > { %4636 = vrot.lane.b32.xlu1 %v4514_v57, %s10889_s19  ;;  %4577 = vrot.lane.b32.xlu2 %v4477_v5, %s10890_s30  ;;  %v4783_v57 = vsel %vm939_vm13, %v11009_v4, %v10034_v37  ;;  %v4559_v5 = vsel %vm619_vm2, %v4556_v50, %v4558_v35  ;;  %v4411_v54 = vmul.f32 1.442695, %v4386_v10 }
 0x61b   : > { %5213 = vmatmul.f32.gmra.mxu2 %v4927_v30  ;;  %v4928_v9 = vand.u32 4294901760, %v4927_v30 }
 0x61c   : > { %v10122_v18 = vpop.permute.xlu1 %4620  ;;  %v10124_v61 = vpop.permute.xlu2 %4655  ;;  %7051 = vpow2.f32 %v4411_v54 }
 0x61d   : > { %4604 = vrot.lane.b32.xlu0 %v4495_v20, %s10893_s23  ;;  %5311 = vmatmul.f32.gmra.mxu3 %v4928_v9  ;;  %v4929_v0 = vsub.f32 %v4927_v30, %v4928_v9  ;;  %v4536_v9 = vrot.slane %v4435_v26, 6  ;;  %v4436_v20 = vsel %vm4371_vm1, %v10093_v47, %v6796_v34 }
 0x61e   : > { %v4560_v60 = vrot.slane %v4436_v20, 7 }
 0x61f   : > { %v4691_v59 = vpop.permute.xlu0 %4690  ;;  %v4930_v51 = vand.u32 4294901760, %v4929_v0 }
 0x620   : > { %v4807_v63 = vsel %vm955_vm15, %v4794_v22, %v4691_v59  ;;  %v4537_v59 = vsel %vm769_vm4, %v4534_v41, %v4536_v9 }
 0x621   : > { %4931 = vmatmul.f32.gmra.mxu0 %v4930_v51  ;;  %v7050_v51 = vpop.eup %7049 }
 0x622   : > { %4634 = vrot.lane.b32.xlu1 %v4515_v48, %s10889_s19  ;;  %4665 = vrot.lane.b32.xlu2 %v4533_v19, %s10887_s1  ;;  %v4561_v48 = vsel %vm619_vm2, %v4558_v35, %v4560_v60  ;;  %v6797_v1 = vadd.f32 -1.0, %v7050_v51  ;;  %vm4373_vm2 = vcmp.gt.f32.partialorder %v10164_v36, 0.0 }
 0x624   : > { %v4732_v31 = vpop.permute.xlu1 %4731  ;;  %v4570_v21 = vpop.permute.xlu2 %4569 }
 0x625   : > { %v4820_v53 = vsel %vm963_vm5, %v4807_v63, %v4732_v31  ;;  %v10156_v39 = vsel %vm923_vm11, %v9513_v43, %v4570_v21  ;;  %4704 = vrot.lane.b32.xlu0 %v4557_v3, %s10888_s27  ;;  %v4535_v43 = vsel %vm769_vm4, %v4532_v55, %v4534_v41  ;;  %v4437_v31 = vsel %vm4372_vm3, %v10132_v49, %v6797_v1  ;;  %v7052_v21 = vpop.eup %7051  ;;  %v11010_v41 = vld [vmem:[#allocation24_spill] sm:$0xff] }
 0x626   : > { %v4856_v45 = vsel %vm989_vm6, %v4820_v53, 0  ;;  %v6798_v13 = vadd.f32 -1.0, %v7052_v21  ;;  %v4774_v53 = vsel %vm931_vm12, %v11010_v41, %v10111_v23 }
 0x627   : > { %v10161_v42 = vand.u32 4294901760, %v4856_v45  ;;  %v4654_v12 = vpop.permute.xlu0 %4653  ;;  %v4784_v11 = vsel %vm939_vm13, %v4774_v53, %v10122_v18 }
 0x628   : > { %v4795_v14 = vsel %vm947_vm14, %v4783_v57, %v4654_v12  ;;  %v4796_v6 = vsel %vm947_vm14, %v4784_v11, %v10124_v61 }
 0x629   : > { %v4935_v32 = vsub.f32 %v4856_v45, %v10161_v42  ;;  %5118 = vmatmul.f32.gmra.mxu1 %v10161_v42  ;;  %v4438_v45 = vsel %vm4373_vm2, %v10164_v36, %v6798_v13 }
 0x62a   : > { %4745 = vrot.lane.b32.xlu1 %v4435_v26, %s10891_s17  ;;  %4667 = vrot.lane.b32.xlu2 %v4535_v43, %s10887_s1 }
 0x62b   : > { %5218 = vmatmul.f32.gmra.mxu2 %v4935_v32  ;;  %v4936_v62 = vand.u32 4294901760, %v4935_v32 }
 0x62c   : > { %v4693_v58 = vpop.permute.xlu1 %4692  ;;  %v4734_v30 = vpop.permute.xlu2 %4733 }
 0x62d   : > { %v4808_v29 = vsel %vm955_vm15, %v4795_v14, %v4693_v58  ;;  %4706 = vrot.lane.b32.xlu0 %v4559_v5, %s10888_s27  ;;  %5317 = vmatmul.f32.gmra.mxu3 %v4936_v62  ;;  %v4937_v37 = vsub.f32 %v4935_v32, %v4936_v62  ;;  %v4766_v14 = vsel %vm923_vm11, 0.0, %v10067_v17 }
 0x62e   : > { %v4821_v46 = vsel %vm963_vm5, %v4808_v29, %v4734_v30 }
 0x62f   : > { %v4859_v52 = vsel %vm989_vm6, %v4821_v46, 0  ;;  %v4593_v40 = vpop.permute.xlu0 %4592  ;;  %v4938_v0 = vand.u32 4294901760, %v4937_v37 }
 0x630   : > { %v10183_v55 = vand.u32 4294901760, %v4859_v52  ;;  %v4775_v58 = vsel %vm931_vm12, %v4766_v14, %v4593_v40 }
 0x631   : > { %4939 = vmatmul.f32.gmra.mxu0 %v4938_v0 }
 0x632   : > { %v4943_v16 = vsub.f32 %v4859_v52, %v10183_v55  ;;  %4747 = vrot.lane.b32.xlu1 %v4436_v20, %s10891_s17  ;;  %4669 = vrot.lane.b32.xlu2 %v4537_v59, %s10887_s1 }
 0x633   : > { %5122 = vmatmul.f32.gmra.mxu1 %v10183_v55 }
 0x634   : > { %v4623_v50 = vpop.permute.xlu1 %4622  ;;  %5223 = vmatmul.f32.gmra.mxu2 %v4943_v16  ;;  %v4944_v19 = vand.u32 4294901760, %v4943_v16  ;;  %v4658_v27 = vpop.permute.xlu2 %4657 }
 0x635   : > { %4708 = vrot.lane.b32.xlu0 %v4561_v48, %s10888_s27  ;;  %v4785_v10 = vsel %vm939_vm13, %v4775_v58, %v4623_v50 }
 0x636   : > { %5323 = vmatmul.f32.gmra.mxu3 %v4944_v19  ;;  %v4945_v56 = vsub.f32 %v4943_v16, %v4944_v19 }
 0x637   : > { %v4595_v22 = vpop.permute.xlu0 %4594 }
 0x638   : > { %v4946_v63 = vand.u32 4294901760, %v4945_v56  ;;  %v4776_v48 = vsel %vm931_vm12, %v10104_v7, %v4595_v22 }
 0x63a   : > { %4749 = vrot.lane.b32.xlu1 %v4437_v31, %s10891_s17  ;;  %4671 = vrot.lane.b32.xlu2 %v4536_v9, %s10887_s1  ;;  %v4797_v9 = vsel %vm947_vm14, %v4785_v10, %v4658_v27  ;;  %v11011_v10 = vld [vmem:[#allocation13_spill] sm:$0xff] }
 0x63b   : > { %4947 = vmatmul.f32.gmra.mxu0 %v4946_v63 }
 0x63c   : > { %v4625_v3 = vpop.permute.xlu1 %4624  ;;  %v10204_v12 = vpop.permute.xlu2 %4571 }
 0x63d   : > { %4710 = vrot.lane.b32.xlu0 %v4560_v60, %s10888_s27  ;;  %v4786_v19 = vsel %vm939_vm13, %v4776_v48, %v4625_v3  ;;  %s6635_s27 = scalar_lea.hbm %s10798_s16, %s6826_s20 }
 0x63e   : > { %s6639_s29 = sshll.u32 %s6635_s27, 4  ;;  %s6640_s29 = int_to_ptr.hbm [resolvable:$true] %s6639_s29 }
 0x63f   : > { %v4695_v26 = vpop.permute.xlu0 %4694  ;;  %s7121_s2 = sshra.s32 %s6640_s29, 4  ;;  %s7122_s2 = int_to_ptr.hbm [resolvable:$true] %s7121_s2 }
 0x640   : > { %v4809_v35 = vsel %vm955_vm15, %v4796_v6, %v4695_v26  ;;  %p7128_p1 = scmp.lt.s32.totalorder %s7122_s2, %s10798_s16 }
 0x642   : > { %4751 = vrot.lane.b32.xlu1 %v4438_v45, %s10891_s17 }
 0x644   : > { %v4736_v2 = vpop.permute.xlu1 %4735  ;;  %v4660_v57 = vpop.permute.xlu2 %4659 }
 0x645   : > { %v4822_v23 = vsel %vm963_vm5, %v4809_v35, %v4736_v2  ;;  %v4798_v1 = vsel %vm947_vm14, %v4786_v19, %v4660_v57 }
 0x646   : > { %v4862_v32 = vsel %vm989_vm6, %v4822_v23, 0 }
 0x647   : > { %v10212_v43 = vand.u32 4294901760, %v4862_v32  ;;  %v4597_v18 = vpop.permute.xlu0 %4596 }
 0x648   : > { %v4777_v45 = vsel %vm931_vm12, %v10156_v39, %v4597_v18 }
 0x649   : > { %v4951_v34 = vsub.f32 %v4862_v32, %v10212_v43  ;;  %5126 = vmatmul.f32.gmra.mxu1 %v10212_v43 }
 0x64b   : > { %5228 = vmatmul.f32.gmra.mxu2 %v4951_v34  ;;  %v4952_v4 = vand.u32 4294901760, %v4951_v34 }
 0x64c   : > { %v4627_v62 = vpop.permute.xlu1 %4626  ;;  %v10223_v46 = vpop.permute.xlu2 %4573 }
 0x64d   : > { %5329 = vmatmul.f32.gmra.mxu3 %v4952_v4  ;;  %v4953_v61 = vsub.f32 %v4951_v34, %v4952_v4  ;;  %v4787_v6 = vsel %vm939_vm13, %v4777_v45, %v4627_v62 }
 0x64f   : > { %v4697_v30 = vpop.permute.xlu0 %4696  ;;  %v4954_v5 = vand.u32 4294901760, %v4953_v61 }
 0x650   : > { %v4810_v29 = vsel %vm955_vm15, %v4797_v9, %v4697_v30  ;;  %v4769_v9 = vsel %vm923_vm11, %v11011_v10, %v10204_v12 }
 0x651   : > { %4955 = vmatmul.f32.gmra.mxu0 %v4954_v5 }
 0x654   : > { %v4738_v37 = vpop.permute.xlu1 %4737  ;;  %v4662_v50 = vpop.permute.xlu2 %4661 }
 0x655   : > { %v4823_v20 = vsel %vm963_vm5, %v4810_v29, %v4738_v37  ;;  %v4799_v35 = vsel %vm947_vm14, %v4787_v6, %v4662_v50 }
 0x656   : > { %v4865_v52 = vsel %vm989_vm6, %v4823_v20, 0 }
 0x657   : > { %v10226_v0 = vand.u32 4294901760, %v4865_v52  ;;  %v4599_v17 = vpop.permute.xlu0 %4598 }
 0x658   : > { %v4778_v37 = vsel %vm931_vm12, %v4769_v9, %v4599_v17 }
 0x659   : > { %v4959_v40 = vsub.f32 %v4865_v52, %v10226_v0  ;;  %5130 = vmatmul.f32.gmra.mxu1 %v10226_v0 }
 0x65b   : > { %5233 = vmatmul.f32.gmra.mxu2 %v4959_v40  ;;  %v4960_v60 = vand.u32 4294901760, %v4959_v40 }
 0x65c   : > { %v4629_v54 = vpop.permute.xlu1 %4628  ;;  %v10241_v7 = vpop.permute.xlu2 %4575 }
 0x65d   : > { %5335 = vmatmul.f32.gmra.mxu3 %v4960_v60  ;;  %v4961_v59 = vsub.f32 %v4959_v40, %v4960_v60  ;;  %v4788_v20 = vsel %vm939_vm13, %v4778_v37, %v4629_v54 }
 0x65f   : > { %v4699_v51 = vpop.permute.xlu0 %4698  ;;  %v4962_v16 = vand.u32 4294901760, %v4961_v59 }
 0x660   : > { %v4811_v56 = vsel %vm955_vm15, %v4798_v1, %v4699_v51 }
 0x661   : > { %4963 = vmatmul.f32.gmra.mxu0 %v4962_v16 }
 0x664   : > { %v4740_v27 = vpop.permute.xlu1 %4739  ;;  %v10247_v2 = vpop.permute.xlu2 %4579 }
 0x665   : > { %v4824_v63 = vsel %vm963_vm5, %v4811_v56, %v4740_v27 }
 0x666   : > { %v4868_v31 = vsel %vm989_vm6, %v4824_v63, 0 }
 0x667   : > { %v10237_v21 = vand.u32 4294901760, %v4868_v31  ;;  %v4601_v13 = vpop.permute.xlu0 %4600 }
 0x669   : > { %v4967_v41 = vsub.f32 %v4868_v31, %v10237_v21  ;;  %5134 = vmatmul.f32.gmra.mxu1 %v10237_v21  ;;  %v11012_v31 = vld [vmem:[#allocation14_spill] sm:$0xff] }
 0x66b   : > { %5238 = vmatmul.f32.gmra.mxu2 %v4967_v41  ;;  %v4968_v22 = vand.u32 4294901760, %v4967_v41 }
 0x66c   : > { %v4631_v3 = vpop.permute.xlu1 %4630  ;;  %v4664_v58 = vpop.permute.xlu2 %4663 }
 0x66d   : > { %5341 = vmatmul.f32.gmra.mxu3 %v4968_v22  ;;  %v4969_v53 = vsub.f32 %v4967_v41, %v4968_v22  ;;  %v4800_v52 = vsel %vm947_vm14, %v4788_v20, %v4664_v58  ;;  %v4770_v41 = vsel %vm923_vm11, %v11012_v31, %v10223_v46 }
 0x66e   : > { %v4779_v22 = vsel %vm931_vm12, %v4770_v41, %v4601_v13 }
 0x66f   : > { %v4701_v26 = vpop.permute.xlu0 %4700  ;;  %v4970_v11 = vand.u32 4294901760, %v4969_v53  ;;  %v4789_v53 = vsel %vm939_vm13, %v4779_v22, %v4631_v3 }
 0x670   : > { %v4812_v23 = vsel %vm955_vm15, %v4799_v35, %v4701_v26 }
 0x671   : > { %4971 = vmatmul.f32.gmra.mxu0 %v4970_v11 }
 0x674   : > { %v4742_v32 = vpop.permute.xlu1 %4741  ;;  %v4578_v60 = vpop.permute.xlu2 %4577 }
 0x675   : > { %v4825_v34 = vsel %vm963_vm5, %v4812_v23, %v4742_v32 }
 0x676   : > { %v4871_v4 = vsel %vm989_vm6, %v4825_v34, 0 }
 0x677   : > { %v10252_v57 = vand.u32 4294901760, %v4871_v4  ;;  %v4603_v61 = vpop.permute.xlu0 %4602 }
 0x679   : > { %v4975_v14 = vsub.f32 %v4871_v4, %v10252_v57  ;;  %5138 = vmatmul.f32.gmra.mxu1 %v10252_v57  ;;  %v11013_v4 = vld [vmem:[#allocation15_spill] sm:$0xff] }
 0x67a   : > { %v4771_v46 = vsel %vm923_vm11, %v11013_v4, %v10241_v7  ;;  %v11014_v7 = vld [vmem:[#allocation17_spill] sm:$0xff] }
 0x67b   : > { %5243 = vmatmul.f32.gmra.mxu2 %v4975_v14  ;;  %v4976_v39 = vand.u32 4294901760, %v4975_v14  ;;  %v4780_v13 = vsel %vm931_vm12, %v4771_v46, %v4603_v61  ;;  %v4772_v61 = vsel %vm923_vm11, %v11014_v7, %v4578_v60 }
 0x67c   : > { %v4633_v18 = vpop.permute.xlu1 %4632  ;;  %v4666_v1 = vpop.permute.xlu2 %4665 }
 0x67d   : > { %5347 = vmatmul.f32.gmra.mxu3 %v4976_v39  ;;  %v4977_v62 = vsub.f32 %v4975_v14, %v4976_v39  ;;  %v4801_v26 = vsel %vm947_vm14, %v4789_v53, %v4666_v1  ;;  %v4790_v14 = vsel %vm939_vm13, %v4780_v13, %v4633_v18 }
 0x67f   : > { %v10256_v30 = vpop.permute.xlu0 %4606  ;;  %v4978_v5 = vand.u32 4294901760, %v4977_v62 }
 0x681   : > { %4979 = vmatmul.f32.gmra.mxu0 %v4978_v5 }
 0x684   : > { %v4744_v29 = vpop.permute.xlu1 %4743  ;;  %v4668_v11 = vpop.permute.xlu2 %4667 }
 0x685   : > { %v4802_v39 = vsel %vm947_vm14, %v4790_v14, %v4668_v11  ;;  %v10332_v14 = vpop.f32.mrf.mxu1 }
 0x687   : > { %v4703_v40 = vpop.permute.xlu0 %4702 }
 0x688   : > { %v4813_v59 = vsel %vm955_vm15, %v4800_v52, %v4703_v40 }
 0x689   : > { %v4826_v51 = vsel %vm963_vm5, %v4813_v59, %v4744_v29 }
 0x68a   : > { %v4874_v16 = vsel %vm989_vm6, %v4826_v51, 0 }
 0x68b   : > { %v10267_v50 = vand.u32 4294901760, %v4874_v16 }
 0x68c   : > { %v10269_v48 = vpop.permute.xlu1 %4636  ;;  %v4670_v29 = vpop.permute.xlu2 %4669 }
 0x68d   : > { %5142 = vmatmul.f32.gmra.mxu1 %v10267_v50  ;;  %v4983_v12 = vsub.f32 %v4874_v16, %v10267_v50 }
 0x68f   : > { %5248 = vmatmul.f32.gmra.mxu2 %v4983_v12  ;;  %v4605_v17 = vpop.permute.xlu0 %4604  ;;  %v4984_v54 = vand.u32 4294901760, %v4983_v12 }
 0x690   : > { %v4781_v20 = vsel %vm931_vm12, %v4772_v61, %v4605_v17 }
 0x691   : > { %5353 = vmatmul.f32.gmra.mxu3 %v4984_v54  ;;  %v4985_v19 = vsub.f32 %v4983_v12, %v4984_v54 }
 0x693   : > { %v4986_v56 = vand.u32 4294901760, %v4985_v19 }
 0x694   : > { %v4635_v27 = vpop.permute.xlu1 %4634  ;;  %v4672_v41 = vpop.permute.xlu2 %4671 }
 0x695   : > { %4987 = vmatmul.f32.gmra.mxu0 %v4986_v56  ;;  %v4791_v59 = vsel %vm939_vm13, %v4781_v20, %v4635_v27 }
 0x696   : > { %v4803_v16 = vsel %vm947_vm14, %v4791_v59, %v4670_v29 }
 0x697   : > { %v4705_v63 = vpop.permute.xlu0 %4704 }
 0x698   : > { %v4814_v45 = vsel %vm955_vm15, %v4801_v26, %v4705_v63  ;;  %v11015_v63 = vrot.slane %v9799_v38, 2 }
 0x69a   : > { %v4773_v31 = vsel %vm923_vm11, %v11015_v63, %v10247_v2  ;;  %v10408_v63 = vld [vmem:[%s10793_s11] ss:$0 sm:$0xff] }
 0x69b   : > { %v4782_v22 = vsel %vm931_vm12, %v4773_v31, %v10256_v30 }
 0x69c   : > { %v4746_v6 = vpop.permute.xlu1 %4745  ;;  %v4792_v11 = vsel %vm939_vm13, %v4782_v22, %v10269_v48 }
 0x69d   : > { %v4827_v35 = vsel %vm963_vm5, %v4814_v45, %v4746_v6  ;;  %v4804_v45 = vsel %vm947_vm14, %v4792_v11, %v4672_v41  ;;  %v5209_v41 = vpop.f32.mrf.mxu2 }
 0x69e   : > { %v4877_v23 = vsel %vm989_vm6, %v4827_v35, 0 }
 0x69f   : > { %v10282_v32 = vand.u32 4294901760, %v4877_v23  ;;  %v4707_v34 = vpop.permute.xlu0 %4706 }
 0x6a0   : > { %v4815_v58 = vsel %vm955_vm15, %v4802_v39, %v4707_v34  ;;  %v5654_v39 = vld [vmem:[%s10794_s12 + $0x8] sm:$0xff] }
 0x6a1   : > { %v4991_v3 = vsub.f32 %v4877_v23, %v10282_v32  ;;  %5146 = vmatmul.f32.gmra.mxu1 %v10282_v32 }
 0x6a3   : > { %5253 = vmatmul.f32.gmra.mxu2 %v4991_v3  ;;  %v4992_v62 = vand.u32 4294901760, %v4991_v3 }
 0x6a4   : > { %v4748_v5 = vpop.permute.xlu1 %4747 }
 0x6a5   : > { %v4828_v10 = vsel %vm963_vm5, %v4815_v58, %v4748_v5  ;;  %5359 = vmatmul.f32.gmra.mxu3 %v4992_v62  ;;  %v4993_v9 = vsub.f32 %v4991_v3, %v4992_v62  ;;  %v5712_v62 = vand.u32 4294901760, %v5654_v39  ;;  %v10339_v58 = vpop.f32.mrf.mxu0 }
 0x6a6   : > { %v4880_v37 = vsel %vm989_vm6, %v4828_v10, 0  ;;  %v4925_v22 = vadd.f32 %v10408_v63, %v10339_v58 }
 0x6a7   : > { %v10298_v18 = vand.u32 4294901760, %v4880_v37  ;;  %v4709_v52 = vpop.permute.xlu0 %4708  ;;  %v4994_v40 = vand.u32 4294901760, %v4993_v9  ;;  %5713 = vmatpush.msra.mxu2 %v5712_v62  ;;  %v5836_v5 = vsub.f32 %v5654_v39, %v5712_v62  ;;  %6001 = vmatpush.msra.mxu1 %v5712_v62 }
 0x6a8   : > { %v4816_v12 = vsel %vm955_vm15, %v4803_v16, %v4709_v52 }
 0x6a9   : > { %v4999_v51 = vsub.f32 %v4880_v37, %v10298_v18  ;;  %4995 = vmatmul.f32.gmra.mxu0 %v4994_v40  ;;  %5150 = vmatmul.f32.gmra.mxu1 %v10298_v18 }
 0x6aa   : > { %5916 = vmatpush.msra.mxu0 %v5836_v5 }
 0x6ab   : > { %5258 = vmatmul.f32.gmra.mxu2 %v4999_v51  ;;  %v5000_v60 = vand.u32 4294901760, %v4999_v51 }
 0x6ac   : > { %v4750_v54 = vpop.permute.xlu1 %4749 }
 0x6ad   : > { %v4829_v17 = vsel %vm963_vm5, %v4816_v12, %v4750_v54  ;;  %5365 = vmatmul.f32.gmra.mxu3 %v5000_v60  ;;  %v5001_v19 = vsub.f32 %v4999_v51, %v5000_v60 }
 0x6ae   : > { %v4883_v1 = vsel %vm989_vm6, %v4829_v17, 0 }
 0x6af   : > { %v10307_v56 = vand.u32 4294901760, %v4883_v1  ;;  %v5002_v27 = vand.u32 4294901760, %v5001_v19  ;;  %v4711_v26 = vpop.permute.xlu0 %4710 }
 0x6b0   : > { %v4817_v38 = vsel %vm955_vm15, %v4804_v45, %v4711_v26  ;;  %v5112_v26 = vadd.f32 %v10332_v14, %v4925_v22 }
 0x6b1   : > { %v5007_v53 = vsub.f32 %v4883_v1, %v10307_v56  ;;  %5003 = vmatmul.f32.gmra.mxu0 %v5002_v27  ;;  %5154 = vmatmul.f32.gmra.mxu1 %v10307_v56 }
 0x6b3   : > { %5263 = vmatmul.f32.gmra.mxu2 %v5007_v53  ;;  %v5008_v6 = vand.u32 4294901760, %v5007_v53 }
 0x6b4   : > { %v4752_v2 = vpop.permute.xlu1 %4751 }
 0x6b5   : > { %v4830_v35 = vsel %vm963_vm5, %v4817_v38, %v4752_v2  ;;  %5371 = vmatmul.f32.gmra.mxu3 %v5008_v6  ;;  %v5009_v30 = vsub.f32 %v5007_v53, %v5008_v6  ;;  %v5306_v53 = vpop.f32.mrf.mxu3  ;;  %v5214_v6 = vpop.f32.mrf.mxu2  ;;  %v5210_v38 = vadd.f32 %v5209_v41, %v5112_v26 }
 0x6b6   : > { %v4886_v23 = vsel %vm989_vm6, %v4830_v35, 0 }
 0x6b7   : > { %v10323_v34 = vand.u32 4294901760, %v4886_v23  ;;  %v5010_v4 = vand.u32 4294901760, %v5009_v30  ;;  %v5307_v30 = vadd.f32 %v5306_v53, %v5210_v38 }
 0x6b9   : > { %v5015_v46 = vsub.f32 %v4886_v23, %v10323_v34  ;;  %5011 = vmatmul.f32.gmra.mxu0 %v5010_v4  ;;  %5158 = vmatmul.f32.gmra.mxu1 %v10323_v34 }
 0x6bb   : > { %5268 = vmatmul.f32.gmra.mxu2 %v5015_v46  ;;  %v5016_v48 = vand.u32 4294901760, %v5015_v46 }
 0x6bd   : > { %5377 = vmatmul.f32.gmra.mxu3 %v5016_v48  ;;  %v5017_v13 = vsub.f32 %v5015_v46, %v5016_v48  ;;  %v5312_v35 = vpop.f32.mrf.mxu3  ;;  %v5219_v48 = vpop.f32.mrf.mxu2 }
 0x6bf   : > { %v5018_v3 = vand.u32 4294901760, %v5017_v13 }
 0x6c1   : > { %5019 = vmatmul.f32.gmra.mxu0 %v5018_v3  ;;  %5523 = vmatmul.f32.vlgmr.msrb.gmra.mxu1 %v9974_v28 }
 0x6c5   : > { %v5318_v39 = vpop.f32.mrf.mxu3 }
 0x6c9   : > { %5440 = vmatmul.f32.vlgmr.msrb.gmra.mxu0 %v9974_v28  ;;  %5527 = vmatmul.f32.gmra.mxu1 %v10109_v24  ;;  %v10341_v28 = vpop.f32.mrf.mxu1 }
 0x6cd   : > { %v5324_v41 = vpop.f32.mrf.mxu3 }
 0x6d1   : > { %5444 = vmatmul.f32.gmra.mxu0 %v10109_v24  ;;  %5531 = vmatmul.f32.gmra.mxu1 %v10161_v42  ;;  %v5837_v24 = vand.u32 4294901760, %v5836_v5  ;;  %v10347_v10 = vpop.f32.mrf.mxu1 }
 0x6d3   : > { %v5838_v9 = vsub.f32 %v5836_v5, %v5837_v24 }
 0x6d5   : > { %v5839_v7 = vand.u32 4294901760, %v5838_v9 }
 0x6d7   : > { %5840 = vmatpush.msra.mxu3 %v5839_v7 }
 0x6d9   : > { %5448 = vmatmul.f32.gmra.mxu0 %v10161_v42  ;;  %5535 = vmatmul.f32.gmra.mxu1 %v10183_v55  ;;  %v10345_v42 = vpop.f32.mrf.mxu0  ;;  %v10353_v29 = vpop.f32.mrf.mxu1 }
 0x6da   : > { %v4933_v2 = vadd.f32 %v10408_v63, %v10345_v42 }
 0x6dc   : > { %v5116_v23 = vadd.f32 %v10341_v28, %v4933_v2 }
 0x6de   : > { %v5215_v13 = vadd.f32 %v5214_v6, %v5116_v23 }
 0x6e0   : > { %v5313_v58 = vadd.f32 %v5312_v35, %v5215_v13  ;;  %v5330_v13 = vpop.f32.mrf.mxu3 }
 0x6e1   : > { %5452 = vmatmul.f32.gmra.mxu0 %v10183_v55  ;;  %5539 = vmatmul.f32.gmra.mxu1 %v10212_v43  ;;  %v10351_v61 = vpop.f32.mrf.mxu0  ;;  %v10359_v37 = vpop.f32.mrf.mxu1 }
 0x6e2   : > { %v4941_v3 = vadd.f32 %v10408_v63, %v10351_v61 }
 0x6e4   : > { %v5120_v5 = vadd.f32 %v10347_v10, %v4941_v3 }
 0x6e6   : > { %v5220_v28 = vadd.f32 %v5219_v48, %v5120_v5 }
 0x6e8   : > { %v5319_v61 = vadd.f32 %v5318_v39, %v5220_v28 }
 0x6e9   : > { %5456 = vmatmul.f32.gmra.mxu0 %v10212_v43  ;;  %5543 = vmatmul.f32.gmra.mxu1 %v10226_v0  ;;  %v10357_v55 = vpop.f32.mrf.mxu0  ;;  %v10365_v20 = vpop.f32.mrf.mxu1 }
 0x6f1   : > { %5460 = vmatmul.f32.gmra.mxu0 %v10226_v0  ;;  %5547 = vmatmul.f32.gmra.mxu1 %v10237_v21  ;;  %v10363_v43 = vpop.f32.mrf.mxu0  ;;  %v10371_v0 = vpop.f32.mrf.mxu1 }
 0x6f9   : > { %5464 = vmatmul.f32.gmra.mxu0 %v10237_v21  ;;  %5551 = vmatmul.f32.gmra.mxu1 %v10252_v57  ;;  %v10369_v52 = vpop.f32.mrf.mxu0  ;;  %v10377_v21 = vpop.f32.mrf.mxu1 }
 0x701   : > { %5468 = vmatmul.f32.gmra.mxu0 %v10252_v57  ;;  %5555 = vmatmul.f32.gmra.mxu1 %v10267_v50  ;;  %v10375_v40 = vpop.f32.mrf.mxu0  ;;  %v5653_v57 = vld [vmem:[%s10794_s12] sm:$0xff] }
 0x702   : > { %v5714_v16 = vand.u32 4294901760, %v5653_v57 }
 0x704   : > { %5715 = vmatpush.msra.mxu2 %v5714_v16  ;;  %6003 = vmatpush.msra.mxu1 %v5714_v16 }
 0x706   : > { %6100 = vmatpush.msrb.mxu2 %v5837_v24 }
 0x709   : > { %5472 = vmatmul.f32.gmra.mxu0 %v10267_v50  ;;  %5559 = vmatmul.f32.gmra.mxu1 %v10282_v32  ;;  %v10384_v59 = vpop.f32.mrf.mxu0  ;;  %v5842_v50 = vsub.f32 %v5653_v57, %v5714_v16  ;;  %v4949_v57 = vadd.f32 %v10408_v63, %v10357_v55  ;;  %v4957_v55 = vadd.f32 %v10408_v63, %v10363_v43 }
 0x70a   : > { %v10386_v51 = vpop.f32.mrf.mxu1 }
 0x70b   : > { %v5843_v60 = vand.u32 4294901760, %v5842_v50  ;;  %5919 = vmatpush.msra.mxu0 %v5842_v50  ;;  %v5128_v48 = vadd.f32 %v10359_v37, %v4957_v55 }
 0x70d   : > { %6104 = vmatpush.msrb.mxu2 %v5843_v60 }
 0x711   : > { %5476 = vmatmul.f32.gmra.mxu0 %v10282_v32  ;;  %5563 = vmatmul.f32.gmra.mxu1 %v10298_v18  ;;  %v5844_v32 = vsub.f32 %v5842_v50, %v5843_v60  ;;  %v5224_v50 = vpop.f32.mrf.mxu2 }
 0x712   : > { %v10390_v12 = vpop.f32.mrf.mxu0 }
 0x713   : > { %v5845_v17 = vand.u32 4294901760, %v5844_v32 }
 0x715   : > { %5846 = vmatpush.msra.mxu3 %v5845_v17  ;;  %v5124_v17 = vadd.f32 %v10353_v29, %v4949_v57 }
 0x717   : > { %6173 = vmatpush.msrb.mxu3 %v5712_v62  ;;  %v5225_v38 = vadd.f32 %v5224_v50, %v5124_v17 }
 0x719   : > { %5480 = vmatmul.f32.gmra.mxu0 %v10298_v18  ;;  %5567 = vmatmul.f32.gmra.mxu1 %v10307_v56 }
 0x71a   : > { %6175 = vmatpush.msrb.mxu3 %v5714_v16 }
 0x71e   : > { %v10392_v54 = vpop.f32.mrf.mxu1 }
 0x721   : > { %5484 = vmatmul.f32.gmra.mxu0 %v10307_v56  ;;  %5571 = vmatmul.f32.gmra.mxu1 %v10323_v34 }
 0x726   : > { %v10396_v18 = vpop.f32.mrf.mxu0  ;;  %v10398_v19 = vpop.f32.mrf.mxu1 }
 0x729   : > { %5488 = vmatmul.f32.gmra.mxu0 %v10323_v34 }
 0x72e   : > { %v10401_v1 = vpop.f32.mrf.mxu0  ;;  %v10403_v27 = vpop.f32.mrf.mxu1 }
 0x736   : > { %v10410_v56 = vpop.f32.mrf.mxu0  ;;  %v10412_v31 = vpop.f32.mrf.mxu1 }
 0x73e   : > { %v10417_v11 = vpop.f32.mrf.mxu0  ;;  %v5524_v45 = vpop.f32.mrf.mxu1 }
 0x746   : > { %v5441_v34 = vpop.f32.mrf.mxu0  ;;  %v5528_v4 = vpop.f32.mrf.mxu1 }
 0x747   : > { %v5442_v46 = vadd.f32 %v5441_v34, %v5307_v30  ;;  %v5229_v30 = vpop.f32.mrf.mxu2 }
 0x749   : > { %v5525_v14 = vadd.f32 %v5524_v45, %v5442_v46  ;;  %v5325_v46 = vadd.f32 %v5324_v41, %v5225_v38  ;;  %v5336_v41 = vpop.f32.mrf.mxu3 }
 0x74b   : > { %v5588_v62 = vmin.f32 %v5525_v14, 0.0  ;;  %vm5575_vm4 = vcmp.gt.f32.partialorder %v5525_v14, 0.0 }
 0x74d   : > { %v5601_v24 = vmul.f32 1.442695, %v5588_v62 }
 0x74e   : > { %v5445_v42 = vpop.f32.mrf.mxu0  ;;  %v5532_v9 = vpop.f32.mrf.mxu1 }
 0x74f   : > { %7053 = vpow2.f32 %v5601_v24  ;;  %v5446_v7 = vadd.f32 %v5445_v42, %v5313_v58  ;;  %v5230_v42 = vadd.f32 %v5229_v30, %v5128_v48  ;;  %v5234_v28 = vpop.f32.mrf.mxu2 }
 0x751   : > { %v5529_v16 = vadd.f32 %v5528_v4, %v5446_v7 }
 0x753   : > { %v5589_v60 = vmin.f32 %v5529_v16, 0.0  ;;  %vm5576_vm10 = vcmp.gt.f32.partialorder %v5529_v16, 0.0 }
 0x755   : > { %v7054_v32 = vpop.eup %7053  ;;  %v5603_v22 = vmul.f32 1.442695, %v5589_v60 }
 0x756   : > { %v6799_v53 = vadd.f32 -1.0, %v7054_v32  ;;  %v5449_v10 = vpop.f32.mrf.mxu0  ;;  %v5536_v26 = vpop.f32.mrf.mxu1 }
 0x757   : > { %7055 = vpow2.f32 %v5603_v22  ;;  %v5450_v45 = vadd.f32 %v5449_v10, %v5319_v61  ;;  %v5331_v61 = vadd.f32 %v5330_v13, %v5230_v42 }
 0x758   : > { %v5640_v6 = vsel %vm5575_vm4, %v5525_v14, %v6799_v53 }
 0x759   : > { %v5660_v2 = vsel %vm923_vm11, %v5640_v6, 0  ;;  %v5533_v35 = vadd.f32 %v5532_v9, %v5450_v45  ;;  %v4965_v9 = vadd.f32 %v10408_v63, %v10369_v52 }
 0x75a   : > { %v10431_v23 = vand.u32 4294901760, %v5660_v2 }
 0x75b   : > { %v5590_v29 = vmin.f32 %v5533_v35, 0.0  ;;  %v5132_v17 = vadd.f32 %v10365_v20, %v4965_v9  ;;  %vm5577_vm15 = vcmp.gt.f32.partialorder %v5533_v35, 0.0 }
 0x75c   : > { %v5717_v34 = vsub.f32 %v5660_v2, %v10431_v23  ;;  %5848 = vmatmul.f32.vlgmr.msra.gmra.mxu3 %v10431_v23  ;;  %v4973_v2 = vadd.f32 %v10408_v63, %v10375_v40 }
 0x75d   : > { %v7056_v4 = vpop.eup %7055  ;;  %v5605_v3 = vmul.f32 1.442695, %v5590_v29  ;;  %v5235_v55 = vadd.f32 %v5234_v28, %v5132_v17  ;;  %v5239_v29 = vpop.f32.mrf.mxu2 }
 0x75e   : > { %v6800_v14 = vadd.f32 -1.0, %v7056_v4  ;;  %v5453_v39 = vpop.f32.mrf.mxu0  ;;  %v5540_v43 = vpop.f32.mrf.mxu1  ;;  %5922 = vmatmul.f32.vlgmr.msra.gmra.mxu0 %v5717_v34  ;;  %v5718_v62 = vand.u32 4294901760, %v5717_v34 }
 0x75f   : > { %7057 = vpow2.f32 %v5605_v3  ;;  %v5454_v58 = vadd.f32 %v5453_v39, %v5325_v46  ;;  %v5337_v13 = vadd.f32 %v5336_v41, %v5235_v55  ;;  %v5136_v3 = vadd.f32 %v10371_v0, %v4973_v2 }
 0x760   : > { %v5641_v5 = vsel %vm5576_vm10, %v5529_v16, %v6800_v14  ;;  %6007 = vmatmul.f32.vlgmr.msra.gmra.mxu1 %v5718_v62  ;;  %v5719_v24 = vsub.f32 %v5717_v34, %v5718_v62  ;;  %v5342_v14 = vpop.f32.mrf.mxu3  ;;  %v4989_v2 = vadd.f32 %v10408_v63, %v10390_v12 }
 0x761   : > { %v5537_v7 = vadd.f32 %v5536_v26, %v5454_v58  ;;  %v5663_v37 = vsel %vm923_vm11, %v5641_v5, 0  ;;  %v5240_v9 = vadd.f32 %v5239_v29, %v5136_v3 }
 0x762   : > { %v5720_v57 = vand.u32 4294901760, %v5719_v24  ;;  %v10439_v50 = vand.u32 4294901760, %v5663_v37  ;;  %v5144_v3 = vadd.f32 %v10386_v51, %v4989_v2 }
 0x763   : > { %v5591_v60 = vmin.f32 %v5537_v7, 0.0  ;;  %vm5578_vm5 = vcmp.gt.f32.partialorder %v5537_v7, 0.0  ;;  %v5343_v17 = vadd.f32 %v5342_v14, %v5240_v9  ;;  %v4997_v9 = vadd.f32 %v10408_v63, %v10396_v18 }
 0x764   : > { %5721 = vmatmul.f32.vlgmr.msra.gmra.mxu2 %v5720_v57  ;;  %5852 = vmatmul.f32.gmra.mxu3 %v10439_v50  ;;  %v5725_v32 = vsub.f32 %v5663_v37, %v10439_v50  ;;  %v4981_v37 = vadd.f32 %v10408_v63, %v10384_v59 }
 0x765   : > { %v7058_v16 = vpop.eup %7057  ;;  %v5607_v22 = vmul.f32 1.442695, %v5591_v60  ;;  %v5244_v57 = vpop.f32.mrf.mxu2 }
 0x766   : > { %v6801_v52 = vadd.f32 -1.0, %v7058_v16  ;;  %v5457_v53 = vpop.f32.mrf.mxu0  ;;  %v5544_v10 = vpop.f32.mrf.mxu1  ;;  %5927 = vmatmul.f32.gmra.mxu0 %v5725_v32  ;;  %v5726_v26 = vand.u32 4294901760, %v5725_v32  ;;  %v5140_v41 = vadd.f32 %v10377_v21, %v4981_v37 }
 0x767   : > { %7059 = vpow2.f32 %v5607_v22  ;;  %v5458_v45 = vadd.f32 %v5457_v53, %v5331_v61 }
 0x768   : > { %v5642_v6 = vsel %vm5577_vm15, %v5533_v35, %v6801_v52  ;;  %6013 = vmatmul.f32.gmra.mxu1 %v5726_v26  ;;  %v5727_v38 = vsub.f32 %v5725_v32, %v5726_v26  ;;  %v5348_v22 = vpop.f32.mrf.mxu3  ;;  %v5245_v55 = vadd.f32 %v5244_v57, %v5140_v41 }
 0x769   : > { %v5541_v30 = vadd.f32 %v5540_v43, %v5458_v45  ;;  %v5666_v20 = vsel %vm923_vm11, %v5642_v6, 0 }
 0x76a   : > { %v5728_v34 = vand.u32 4294901760, %v5727_v38  ;;  %v10447_v4 = vand.u32 4294901760, %v5666_v20 }
 0x76b   : > { %v5592_v46 = vmin.f32 %v5541_v30, 0.0  ;;  %vm5579_vm6 = vcmp.gt.f32.partialorder %v5541_v30, 0.0 }
 0x76c   : > { %5729 = vmatmul.f32.gmra.mxu2 %v5728_v34  ;;  %5856 = vmatmul.f32.gmra.mxu3 %v10447_v4  ;;  %v5733_v48 = vsub.f32 %v5666_v20, %v10447_v4 }
 0x76d   : > { %v7060_v35 = vpop.eup %7059  ;;  %v5609_v39 = vmul.f32 1.442695, %v5592_v46  ;;  %v5249_v29 = vpop.f32.mrf.mxu2 }
 0x76e   : > { %v6802_v40 = vadd.f32 -1.0, %v7060_v35  ;;  %v5461_v43 = vpop.f32.mrf.mxu0  ;;  %v5548_v62 = vpop.f32.mrf.mxu1  ;;  %5932 = vmatmul.f32.gmra.mxu0 %v5733_v48  ;;  %v5734_v58 = vand.u32 4294901760, %v5733_v48 }
 0x76f   : > { %7061 = vpow2.f32 %v5609_v39  ;;  %v5462_v5 = vadd.f32 %v5461_v43, %v5337_v13  ;;  %v5349_v13 = vadd.f32 %v5348_v22, %v5245_v55 }
 0x770   : > { %v5643_v24 = vsel %vm5578_vm5, %v5537_v7, %v6802_v40  ;;  %6019 = vmatmul.f32.gmra.mxu1 %v5734_v58  ;;  %v5735_v42 = vsub.f32 %v5733_v48, %v5734_v58  ;;  %v5354_v39 = vpop.f32.mrf.mxu3 }
 0x771   : > { %v5545_v28 = vadd.f32 %v5544_v10, %v5462_v5  ;;  %v5669_v0 = vsel %vm923_vm11, %v5643_v24, 0 }
 0x772   : > { %v5736_v60 = vand.u32 4294901760, %v5735_v42  ;;  %v10455_v32 = vand.u32 4294901760, %v5669_v0  ;;  %v5250_v42 = vadd.f32 %v5249_v29, %v5144_v3 }
 0x773   : > { %v5593_v16 = vmin.f32 %v5545_v28, 0.0  ;;  %vm5580_vm8 = vcmp.gt.f32.partialorder %v5545_v28, 0.0 }
 0x774   : > { %5737 = vmatmul.f32.gmra.mxu2 %v5736_v60  ;;  %5860 = vmatmul.f32.gmra.mxu3 %v10455_v32  ;;  %v5741_v61 = vsub.f32 %v5669_v0, %v10455_v32 }
 0x775   : > { %v7062_v7 = vpop.eup %7061  ;;  %v5611_v52 = vmul.f32 1.442695, %v5593_v16  ;;  %v5254_v0 = vpop.f32.mrf.mxu2 }
 0x776   : > { %v6803_v59 = vadd.f32 -1.0, %v7062_v7  ;;  %v5465_v53 = vpop.f32.mrf.mxu0  ;;  %v5552_v10 = vpop.f32.mrf.mxu1  ;;  %5937 = vmatmul.f32.gmra.mxu0 %v5741_v61  ;;  %v5742_v26 = vand.u32 4294901760, %v5741_v61  ;;  %v5355_v7 = vadd.f32 %v5354_v39, %v5250_v42 }
 0x777   : > { %7063 = vpow2.f32 %v5611_v52  ;;  %v5466_v45 = vadd.f32 %v5465_v53, %v5343_v17  ;;  %v5148_v17 = vadd.f32 %v10392_v54, %v4997_v9 }
 0x778   : > { %v5644_v6 = vsel %vm5579_vm6, %v5541_v30, %v6803_v59  ;;  %6025 = vmatmul.f32.gmra.mxu1 %v5742_v26  ;;  %v5743_v38 = vsub.f32 %v5741_v61, %v5742_v26  ;;  %v5360_v22 = vpop.f32.mrf.mxu3 }
 0x779   : > { %v5672_v20 = vsel %vm923_vm11, %v5644_v6, 0  ;;  %v5549_v21 = vadd.f32 %v5548_v62, %v5466_v45  ;;  %v5255_v45 = vadd.f32 %v5254_v0, %v5148_v17  ;;  %v5005_v6 = vadd.f32 %v10408_v63, %v10401_v1 }
 0x77a   : > { %v5744_v34 = vand.u32 4294901760, %v5743_v38  ;;  %v10463_v46 = vand.u32 4294901760, %v5672_v20 }
 0x77b   : > { %v5594_v48 = vmin.f32 %v5549_v21, 0.0  ;;  %vm5581_vm7 = vcmp.gt.f32.partialorder %v5549_v21, 0.0 }
 0x77c   : > { %5745 = vmatmul.f32.gmra.mxu2 %v5744_v34  ;;  %5864 = vmatmul.f32.gmra.mxu3 %v10463_v46  ;;  %v5749_v35 = vsub.f32 %v5672_v20, %v10463_v46 }
 0x77d   : > { %v7064_v30 = vpop.eup %7063  ;;  %v5613_v14 = vmul.f32 1.442695, %v5594_v48  ;;  %v5259_v34 = vpop.f32.mrf.mxu2 }
 0x77e   : > { %v6804_v12 = vadd.f32 -1.0, %v7064_v30  ;;  %v5469_v40 = vpop.f32.mrf.mxu0  ;;  %5942 = vmatmul.f32.gmra.mxu0 %v5749_v35  ;;  %v5750_v43 = vand.u32 4294901760, %v5749_v35  ;;  %v5556_v5 = vpop.f32.mrf.mxu1  ;;  %v5152_v30 = vadd.f32 %v10398_v19, %v5005_v6 }
 0x77f   : > { %7065 = vpow2.f32 %v5613_v14  ;;  %v5470_v62 = vadd.f32 %v5469_v40, %v5349_v13 }
 0x780   : > { %v5645_v58 = vsel %vm5580_vm8, %v5545_v28, %v6804_v12  ;;  %6031 = vmatmul.f32.gmra.mxu1 %v5750_v43  ;;  %v5751_v24 = vsub.f32 %v5749_v35, %v5750_v43  ;;  %v5361_v35 = vadd.f32 %v5360_v22, %v5255_v45  ;;  %v5366_v12 = vpop.f32.mrf.mxu3 }
 0x781   : > { %v5675_v37 = vsel %vm923_vm11, %v5645_v58, 0  ;;  %v5553_v51 = vadd.f32 %v5552_v10, %v5470_v62  ;;  %v5260_v62 = vadd.f32 %v5259_v34, %v5152_v30  ;;  %v5013_v58 = vadd.f32 %v10408_v63, %v10410_v56 }
 0x782   : > { %v5752_v57 = vand.u32 4294901760, %v5751_v24  ;;  %v10471_v60 = vand.u32 4294901760, %v5675_v37 }
 0x783   : > { %v5595_v16 = vmin.f32 %v5553_v51, 0.0  ;;  %vm5582_vm9 = vcmp.gt.f32.partialorder %v5553_v51, 0.0 }
 0x784   : > { %5753 = vmatmul.f32.gmra.mxu2 %v5752_v57  ;;  %5868 = vmatmul.f32.gmra.mxu3 %v10471_v60  ;;  %v5757_v28 = vsub.f32 %v5675_v37, %v10471_v60  ;;  %v5367_v57 = vadd.f32 %v5366_v12, %v5260_v62 }
 0x785   : > { %v7066_v61 = vpop.eup %7065  ;;  %v5615_v41 = vmul.f32 1.442695, %v5595_v16  ;;  %v5156_v16 = vadd.f32 %v10403_v27, %v5013_v58 }
 0x786   : > { %v6805_v18 = vadd.f32 -1.0, %v7066_v61  ;;  %v5473_v52 = vpop.f32.mrf.mxu0  ;;  %5947 = vmatmul.f32.gmra.mxu0 %v5757_v28  ;;  %v5758_v59 = vand.u32 4294901760, %v5757_v28  ;;  %v5560_v54 = vpop.f32.mrf.mxu1 }
 0x787   : > { %7067 = vpow2.f32 %v5615_v41  ;;  %v5474_v53 = vadd.f32 %v5473_v52, %v5355_v7  ;;  %v5264_v61 = vpop.f32.mrf.mxu2 }
 0x788   : > { %v5646_v10 = vsel %vm5581_vm7, %v5549_v21, %v6805_v18  ;;  %6037 = vmatmul.f32.gmra.mxu1 %v5758_v59  ;;  %v5759_v26 = vsub.f32 %v5757_v28, %v5758_v59  ;;  %v5265_v52 = vadd.f32 %v5264_v61, %v5156_v16  ;;  %v5021_v59 = vadd.f32 %v10408_v63, %v10417_v11  ;;  %v5372_v27 = vpop.f32.mrf.mxu3 }
 0x789   : > { %v5678_v38 = vsel %vm923_vm11, %v5646_v10, 0  ;;  %v5557_v55 = vadd.f32 %v5556_v5, %v5474_v53 }
 0x78a   : > { %v5760_v2 = vand.u32 4294901760, %v5759_v26  ;;  %v10479_v20 = vand.u32 4294901760, %v5678_v38 }
 0x78b   : > { %v5596_v29 = vmin.f32 %v5557_v55, 0.0  ;;  %vm5583_vm0 = vcmp.gt.f32.partialorder %v5557_v55, 0.0 }
 0x78c   : > { %5761 = vmatmul.f32.gmra.mxu2 %v5760_v2  ;;  %5872 = vmatmul.f32.gmra.mxu3 %v10479_v20  ;;  %v5765_v21 = vsub.f32 %v5678_v38, %v10479_v20  ;;  %v5160_v2 = vadd.f32 %v10412_v31, %v5021_v59 }
 0x78d   : > { %v7068_v48 = vpop.eup %7067  ;;  %v5617_v13 = vmul.f32 1.442695, %v5596_v29 }
 0x78e   : > { %v6806_v1 = vadd.f32 -1.0, %v7068_v48  ;;  %v5477_v3 = vpop.f32.mrf.mxu0  ;;  %5952 = vmatmul.f32.gmra.mxu0 %v5765_v21  ;;  %v5766_v14 = vand.u32 4294901760, %v5765_v21  ;;  %v5564_v37 = vpop.f32.mrf.mxu1 }
 0x78f   : > { %7069 = vpow2.f32 %v5617_v13  ;;  %v5478_v39 = vadd.f32 %v5477_v3, %v5361_v35  ;;  %v5269_v35 = vpop.f32.mrf.mxu2 }
 0x790   : > { %v5647_v40 = vsel %vm5582_vm9, %v5553_v51, %v6806_v1  ;;  %6043 = vmatmul.f32.gmra.mxu1 %v5766_v14  ;;  %v5767_v43 = vsub.f32 %v5765_v21, %v5766_v14  ;;  %v5270_v1 = vadd.f32 %v5269_v35, %v5160_v2 }
 0x791   : > { %v5681_v5 = vsel %vm923_vm11, %v5647_v40, 0  ;;  %v5561_v24 = vadd.f32 %v5560_v54, %v5478_v39  ;;  %v5373_v54 = vadd.f32 %v5372_v27, %v5265_v52  ;;  %v5378_v40 = vpop.f32.mrf.mxu3 }
 0x792   : > { %v5768_v19 = vand.u32 4294901760, %v5767_v43  ;;  %v10487_v42 = vand.u32 4294901760, %v5681_v5  ;;  %v5379_v58 = vadd.f32 %v5378_v40, %v5270_v1  ;;  %v10532_v1 = vld [vmem:[%s10795_s13] ss:$0 sm:$0xff] }
 0x793   : > { %v5597_v9 = vmin.f32 %v5561_v24, 0.0  ;;  %vm5584_vm1 = vcmp.gt.f32.partialorder %v5561_v24, 0.0 }
 0x794   : > { %5769 = vmatmul.f32.gmra.mxu2 %v5768_v19  ;;  %5876 = vmatmul.f32.gmra.mxu3 %v10487_v42  ;;  %v5773_v0 = vsub.f32 %v5681_v5, %v10487_v42 }
 0x795   : > { %v7070_v51 = vpop.eup %7069  ;;  %v5619_v28 = vmul.f32 1.442695, %v5597_v9 }
 0x796   : > { %v6807_v56 = vadd.f32 -1.0, %v7070_v51  ;;  %v5481_v7 = vpop.f32.mrf.mxu0  ;;  %5957 = vmatmul.f32.gmra.mxu0 %v5773_v0  ;;  %v5774_v17 = vand.u32 4294901760, %v5773_v0  ;;  %v5568_v63 = vpop.f32.mrf.mxu1 }
 0x797   : > { %7071 = vpow2.f32 %v5619_v28  ;;  %v5482_v41 = vadd.f32 %v5481_v7, %v5367_v57 }
 0x798   : > { %v5648_v22 = vsel %vm5583_vm0, %v5557_v55, %v6807_v56  ;;  %6049 = vmatmul.f32.gmra.mxu1 %v5774_v17  ;;  %v5775_v18 = vsub.f32 %v5773_v0, %v5774_v17 }
 0x799   : > { %v5684_v53 = vsel %vm923_vm11, %v5648_v22, 0  ;;  %v5565_v10 = vadd.f32 %v5564_v37, %v5482_v41 }
 0x79a   : > { %v5776_v26 = vand.u32 4294901760, %v5775_v18  ;;  %v10495_v45 = vand.u32 4294901760, %v5684_v53 }
 0x79b   : > { %v5598_v6 = vmin.f32 %v5565_v10, 0.0  ;;  %vm5585_vm3 = vcmp.gt.f32.partialorder %v5565_v10, 0.0 }
 0x79c   : > { %5777 = vmatmul.f32.gmra.mxu2 %v5776_v26  ;;  %5880 = vmatmul.f32.gmra.mxu3 %v10495_v45  ;;  %v5781_v38 = vsub.f32 %v5684_v53, %v10495_v45 }
 0x79d   : > { %v7072_v55 = vpop.eup %7071  ;;  %v5621_v29 = vmul.f32 1.442695, %v5598_v6 }
 0x79e   : > { %v6808_v34 = vadd.f32 -1.0, %v7072_v55  ;;  %v5485_v11 = vpop.f32.mrf.mxu0  ;;  %5962 = vmatmul.f32.gmra.mxu0 %v5781_v38  ;;  %v5782_v21 = vand.u32 4294901760, %v5781_v38  ;;  %v5572_v51 = vpop.f32.mrf.mxu1 }
 0x79f   : > { %7073 = vpow2.f32 %v5621_v29  ;;  %v5486_v48 = vadd.f32 %v5485_v11, %v5373_v54 }
 0x7a0   : > { %v5649_v30 = vsel %vm5584_vm1, %v5561_v24, %v6808_v34  ;;  %6055 = vmatmul.f32.gmra.mxu1 %v5782_v21  ;;  %v5783_v13 = vsub.f32 %v5781_v38, %v5782_v21 }
 0x7a1   : > { %v5687_v3 = vsel %vm923_vm11, %v5649_v30, 0  ;;  %v5569_v14 = vadd.f32 %v5568_v63, %v5486_v48 }
 0x7a2   : > { %v5784_v39 = vand.u32 4294901760, %v5783_v13  ;;  %v10501_v12 = vand.u32 4294901760, %v5687_v3 }
 0x7a3   : > { %v5599_v31 = vmin.f32 %v5569_v14, 0.0  ;;  %vm5586_vm2 = vcmp.gt.f32.partialorder %v5569_v14, 0.0 }
 0x7a4   : > { %5785 = vmatmul.f32.gmra.mxu2 %v5784_v39  ;;  %5884 = vmatmul.f32.gmra.mxu3 %v10501_v12  ;;  %v5789_v43 = vsub.f32 %v5687_v3, %v10501_v12 }
 0x7a5   : > { %v7074_v62 = vpop.eup %7073  ;;  %v5623_v5 = vmul.f32 1.442695, %v5599_v31 }
 0x7a6   : > { %v6809_v24 = vadd.f32 -1.0, %v7074_v62  ;;  %v5489_v19 = vpop.f32.mrf.mxu0  ;;  %5967 = vmatmul.f32.gmra.mxu0 %v5789_v43  ;;  %v5790_v9 = vand.u32 4294901760, %v5789_v43 }
 0x7a7   : > { %7075 = vpow2.f32 %v5623_v5  ;;  %v5490_v37 = vadd.f32 %v5489_v19, %v5379_v58 }
 0x7a8   : > { %v5650_v0 = vsel %vm5585_vm3, %v5565_v10, %v6809_v24  ;;  %6061 = vmatmul.f32.gmra.mxu1 %v5790_v9  ;;  %v5791_v57 = vsub.f32 %v5789_v43, %v5790_v9 }
 0x7a9   : > { %v5690_v16 = vsel %vm923_vm11, %v5650_v0, 0  ;;  %v5573_v28 = vadd.f32 %v5572_v51, %v5490_v37 }
 0x7aa   : > { %v5792_v61 = vand.u32 4294901760, %v5791_v57  ;;  %v10506_v56 = vand.u32 4294901760, %v5690_v16 }
 0x7ab   : > { %v5600_v7 = vmin.f32 %v5573_v28, 0.0  ;;  %vm5587_vm4 = vcmp.gt.f32.partialorder %v5573_v28, 0.0 }
 0x7ac   : > { %5793 = vmatmul.f32.gmra.mxu2 %v5792_v61  ;;  %5888 = vmatmul.f32.gmra.mxu3 %v10506_v56  ;;  %v5797_v17 = vsub.f32 %v5690_v16, %v10506_v56 }
 0x7ad   : > { %v7076_v41 = vpop.eup %7075  ;;  %v5625_v22 = vmul.f32 1.442695, %v5600_v7 }
 0x7ae   : > { %v6810_v18 = vadd.f32 -1.0, %v7076_v41  ;;  %5972 = vmatmul.f32.gmra.mxu0 %v5797_v17  ;;  %v5798_v52 = vand.u32 4294901760, %v5797_v17 }
 0x7af   : > { %7077 = vpow2.f32 %v5625_v22 }
 0x7b0   : > { %v5651_v59 = vsel %vm5586_vm2, %v5569_v14, %v6810_v18  ;;  %6067 = vmatmul.f32.gmra.mxu1 %v5798_v52  ;;  %v5799_v53 = vsub.f32 %v5797_v17, %v5798_v52 }
 0x7b1   : > { %v5693_v10 = vsel %vm923_vm11, %v5651_v59, 0 }
 0x7b2   : > { %v5800_v27 = vand.u32 4294901760, %v5799_v53  ;;  %v10511_v26 = vand.u32 4294901760, %v5693_v10 }
 0x7b4   : > { %5801 = vmatmul.f32.gmra.mxu2 %v5800_v27  ;;  %5892 = vmatmul.f32.gmra.mxu3 %v10511_v26  ;;  %v5805_v6 = vsub.f32 %v5693_v10, %v10511_v26 }
 0x7b5   : > { %v7078_v38 = vpop.eup %7077 }
 0x7b6   : > { %v6811_v55 = vadd.f32 -1.0, %v7078_v38  ;;  %5977 = vmatmul.f32.gmra.mxu0 %v5805_v6  ;;  %v5806_v54 = vand.u32 4294901760, %v5805_v6 }
 0x7b8   : > { %v5652_v2 = vsel %vm5587_vm4, %v5573_v28, %v6811_v55  ;;  %6073 = vmatmul.f32.gmra.mxu1 %v5806_v54  ;;  %v5807_v29 = vsub.f32 %v5805_v6, %v5806_v54 }
 0x7b9   : > { %v5696_v34 = vsel %vm923_vm11, %v5652_v2, 0 }
 0x7ba   : > { %v5808_v63 = vand.u32 4294901760, %v5807_v29  ;;  %v10516_v11 = vand.u32 4294901760, %v5696_v34 }
 0x7bc   : > { %5809 = vmatmul.f32.gmra.mxu2 %v5808_v63  ;;  %5896 = vmatmul.f32.gmra.mxu3 %v10516_v11  ;;  %v5813_v21 = vsub.f32 %v5696_v34, %v10516_v11 }
 0x7be   : > { %5982 = vmatmul.f32.gmra.mxu0 %v5813_v21  ;;  %v5814_v48 = vand.u32 4294901760, %v5813_v21 }
 0x7c0   : > { %6079 = vmatmul.f32.gmra.mxu1 %v5814_v48  ;;  %v5815_v35 = vsub.f32 %v5813_v21, %v5814_v48 }
 0x7c2   : > { %v5816_v30 = vand.u32 4294901760, %v5815_v35 }
 0x7c4   : > { %5817 = vmatmul.f32.gmra.mxu2 %v5816_v30  ;;  %6177 = vmatmul.f32.vlgmr.msrb.gmra.mxu3 %v10431_v23 }
 0x7cc   : > { %6106 = vmatmul.f32.vlgmr.msrb.gmra.mxu2 %v10431_v23  ;;  %6181 = vmatmul.f32.gmra.mxu3 %v10439_v50 }
 0x7d4   : > { %6110 = vmatmul.f32.gmra.mxu2 %v10439_v50  ;;  %6185 = vmatmul.f32.gmra.mxu3 %v10447_v4 }
 0x7dc   : > { %6114 = vmatmul.f32.gmra.mxu2 %v10447_v4  ;;  %6189 = vmatmul.f32.gmra.mxu3 %v10455_v32 }
 0x7dd   : > { %v6008_v27 = vpop.f32.mrf.mxu1 }
 0x7df   : > { %v5849_v13 = vpop.f32.mrf.mxu3 }
 0x7e4   : > { %6118 = vmatmul.f32.gmra.mxu2 %v10455_v32  ;;  %6193 = vmatmul.f32.gmra.mxu3 %v10463_v46 }
 0x7e5   : > { %v6014_v2 = vpop.f32.mrf.mxu1 }
 0x7e7   : > { %v5722_v23 = vpop.f32.mrf.mxu2  ;;  %v5853_v3 = vpop.f32.mrf.mxu3 }
 0x7e8   : > { %v5723_v50 = vadd.f32 %v10532_v1, %v5722_v23 }
 0x7ea   : > { %v10535_v14 = vadd.f32 %v5849_v13, %v5723_v50 }
 0x7ec   : > { %6122 = vmatmul.f32.gmra.mxu2 %v10463_v46  ;;  %6197 = vmatmul.f32.gmra.mxu3 %v10471_v60 }
 0x7ed   : > { %v6020_v30 = vpop.f32.mrf.mxu1 }
 0x7ef   : > { %v5730_v4 = vpop.f32.mrf.mxu2  ;;  %v10539_v39 = vpop.f32.mrf.mxu3 }
 0x7f0   : > { %v5731_v32 = vadd.f32 %v10532_v1, %v5730_v4 }
 0x7f2   : > { %v10542_v31 = vadd.f32 %v5853_v3, %v5731_v32 }
 0x7f4   : > { %6126 = vmatmul.f32.gmra.mxu2 %v10471_v60  ;;  %6201 = vmatmul.f32.gmra.mxu3 %v10479_v20 }
 0x7f7   : > { %v10546_v40 = vpop.f32.mrf.mxu2  ;;  %v5861_v43 = vpop.f32.mrf.mxu3 }
 0x7fc   : > { %6130 = vmatmul.f32.gmra.mxu2 %v10479_v20  ;;  %6205 = vmatmul.f32.gmra.mxu3 %v10487_v42 }
 0x7ff   : > { %v5746_v46 = vpop.f32.mrf.mxu2  ;;  %v5865_v62 = vpop.f32.mrf.mxu3 }
 0x800   : > { %v5747_v58 = vadd.f32 %v10532_v1, %v5746_v46 }
 0x802   : > { %v10551_v5 = vadd.f32 %v5861_v43, %v5747_v58  ;;  %v5739_v58 = vadd.f32 %v10532_v1, %v10546_v40 }
 0x804   : > { %6134 = vmatmul.f32.gmra.mxu2 %v10487_v42  ;;  %6209 = vmatmul.f32.gmra.mxu3 %v10495_v45 }
 0x807   : > { %v5754_v60 = vpop.f32.mrf.mxu2  ;;  %v5869_v24 = vpop.f32.mrf.mxu3 }
 0x808   : > { %v5755_v19 = vadd.f32 %v10532_v1, %v5754_v60 }
 0x80a   : > { %v10556_v9 = vadd.f32 %v5865_v62, %v5755_v19  ;;  %v6026_v62 = vpop.f32.mrf.mxu1  ;;  %v11016_v19 = vld [vmem:[#allocation19_spill] sm:$0xff] }
 0x80c   : > { %6138 = vmatmul.f32.gmra.mxu2 %v10495_v45  ;;  %6213 = vmatmul.f32.gmra.mxu3 %v10501_v12 }
 0x80f   : > { %v5762_v20 = vpop.f32.mrf.mxu2  ;;  %v5873_v37 = vpop.f32.mrf.mxu3 }
 0x810   : > { %v5763_v0 = vadd.f32 %v10532_v1, %v5762_v20 }
 0x812   : > { %v10561_v51 = vadd.f32 %v5869_v24, %v5763_v0 }
 0x814   : > { %6142 = vmatmul.f32.gmra.mxu2 %v10501_v12  ;;  %6217 = vmatmul.f32.gmra.mxu3 %v10506_v56 }
 0x817   : > { %v5770_v42 = vpop.f32.mrf.mxu2  ;;  %v5877_v57 = vpop.f32.mrf.mxu3 }
 0x818   : > { %v5771_v16 = vadd.f32 %v10532_v1, %v5770_v42 }
 0x81a   : > { %v10566_v28 = vadd.f32 %v5873_v37, %v5771_v16  ;;  %v5858_v37 = vadd.f32 %v10539_v39, %v5739_v58  ;;  %v11019_v58 = vld [vmem:[#allocation11_spill] sm:$0xff] }
 0x81c   : > { %6146 = vmatmul.f32.gmra.mxu2 %v10506_v56  ;;  %6221 = vmatmul.f32.gmra.mxu3 %v10511_v26  ;;  %v5923_v56 = vpop.f32.mrf.mxu0 }
 0x81d   : > { %v5924_v3 = vadd.f32 %v5923_v56, %v10535_v14 }
 0x81f   : > { %v5778_v45 = vpop.f32.mrf.mxu2  ;;  %v5881_v61 = vpop.f32.mrf.mxu3  ;;  %v6009_v4 = vadd.f32 %v6008_v27, %v5924_v3 }
 0x820   : > { %v5779_v7 = vadd.f32 %v10532_v1, %v5778_v45 }
 0x822   : > { %v10571_v17 = vadd.f32 %v5877_v57, %v5779_v7 }
 0x824   : > { %6150 = vmatmul.f32.gmra.mxu2 %v10511_v26  ;;  %6225 = vmatmul.f32.gmra.mxu3 %v10516_v11  ;;  %v5928_v38 = vpop.f32.mrf.mxu0 }
 0x825   : > { %v5929_v24 = vadd.f32 %v5928_v38, %v10542_v31 }
 0x827   : > { %v5786_v12 = vpop.f32.mrf.mxu2  ;;  %v5885_v41 = vpop.f32.mrf.mxu3  ;;  %v6015_v57 = vadd.f32 %v6014_v2, %v5929_v24  ;;  %v11018_v2 = vld [vmem:[#allocation22_spill] sm:$0xff] }
 0x828   : > { %v5787_v22 = vadd.f32 %v10532_v1, %v5786_v12 }
 0x82a   : > { %v10576_v18 = vadd.f32 %v5881_v61, %v5787_v22  ;;  %v6032_v22 = vpop.f32.mrf.mxu1 }
 0x82c   : > { %6154 = vmatmul.f32.gmra.mxu2 %v10516_v11  ;;  %v5933_v11 = vpop.f32.mrf.mxu0 }
 0x82f   : > { %v5794_v52 = vpop.f32.mrf.mxu2  ;;  %v5889_v59 = vpop.f32.mrf.mxu3 }
 0x830   : > { %v5795_v53 = vadd.f32 %v10532_v1, %v5794_v52 }
 0x832   : > { %v10580_v10 = vadd.f32 %v5885_v41, %v5795_v53  ;;  %v5934_v41 = vadd.f32 %v5933_v11, %v5858_v37 }
 0x834   : > { %v5938_v50 = vpop.f32.mrf.mxu0  ;;  %v6021_v31 = vadd.f32 %v6020_v30, %v5934_v41 }
 0x837   : > { %v5802_v6 = vpop.f32.mrf.mxu2  ;;  %v5893_v26 = vpop.f32.mrf.mxu3 }
 0x838   : > { %v5803_v55 = vadd.f32 %v10532_v1, %v5802_v6 }
 0x83a   : > { %v10583_v54 = vadd.f32 %v5889_v59, %v5803_v55  ;;  %v5939_v55 = vadd.f32 %v5938_v50, %v10551_v5 }
 0x83c   : > { %v5943_v0 = vpop.f32.mrf.mxu0  ;;  %v6027_v11 = vadd.f32 %v6026_v62, %v5939_v55 }
 0x83f   : > { %v5810_v29 = vpop.f32.mrf.mxu2  ;;  %v5897_v34 = vpop.f32.mrf.mxu3 }
 0x840   : > { %v5811_v63 = vadd.f32 %v10532_v1, %v5810_v29 }
 0x842   : > { %v10586_v21 = vadd.f32 %v5893_v26, %v5811_v63 }
 0x844   : > { %v5948_v53 = vpop.f32.mrf.mxu0 }
 0x847   : > { %v5818_v48 = vpop.f32.mrf.mxu2  ;;  %v6178_v35 = vpop.f32.mrf.mxu3 }
 0x848   : > { %v5819_v13 = vadd.f32 %v10532_v1, %v5818_v48  ;;  %v11017_v1 = vld [vmem:[#allocation20_spill] sm:$0xff] }
 0x84a   : > { %v10589_v23 = vadd.f32 %v5897_v34, %v5819_v13  ;;  %v6038_v34 = vpop.f32.mrf.mxu1 }
 0x84f   : > { %v6107_v32 = vpop.f32.mrf.mxu2  ;;  %v6182_v43 = vpop.f32.mrf.mxu3 }
 0x850   : > { %v6108_v46 = vadd.f32 %v6107_v32, %v6009_v4  ;;  %v5953_v4 = vpop.f32.mrf.mxu0 }
 0x852   : > { %v6179_v60 = vadd.f32 %v6178_v35, %v6108_v46  ;;  %v5944_v46 = vadd.f32 %v5943_v0, %v10556_v9 }
 0x854   : > { %v6229_v20 = vadd.f32 %v6179_v60, %v11016_v19  ;;  %v6033_v50 = vadd.f32 %v6032_v22, %v5944_v46 }
 0x856   : > { %v6242_v42 = vmul.f32 0.0, %v6229_v20  ;;  %v6044_v20 = vpop.f32.mrf.mxu1 }
 0x857   : > { %v6111_v14 = vpop.f32.mrf.mxu2  ;;  %v6186_v16 = vpop.f32.mrf.mxu3 }
 0x858   : > { %v6268_v45 = vmin.f32 %v6242_v42, 0.0  ;;  %v6112_v61 = vadd.f32 %v6111_v14, %v6015_v57 }
 0x85a   : > { %v6281_v7 = vmul.f32 1.442695, %v6268_v45  ;;  %v6183_v12 = vadd.f32 %v6182_v43, %v6112_v61  ;;  %v5958_v45 = vpop.f32.mrf.mxu0  ;;  %v11020_v61 = vld [vmem:[#allocation12_spill] sm:$0xff] }
 0x85c   : > { %7079 = vpow2.f32 %v6281_v7  ;;  %v6230_v40 = vadd.f32 %v6183_v12, %v11017_v1 }
 0x85e   : > { %v6243_v56 = vmul.f32 0.0, %v6230_v40 }
 0x85f   : > { %v6115_v52 = vpop.f32.mrf.mxu2  ;;  %v6190_v59 = vpop.f32.mrf.mxu3 }
 0x860   : > { %v6269_v39 = vmin.f32 %v6243_v56, 0.0  ;;  %v6116_v27 = vadd.f32 %v6115_v52, %v6021_v31  ;;  %v6050_v56 = vpop.f32.mrf.mxu1 }
 0x862   : > { %v7080_v6 = vpop.eup %7079  ;;  %v6283_v26 = vmul.f32 1.442695, %v6269_v39  ;;  %v6187_v38 = vadd.f32 %v6186_v16, %v6116_v27  ;;  %v5949_v16 = vadd.f32 %v5948_v53, %v10561_v51  ;;  %v11021_v39 = vld [vmem:[#allocation16_spill] sm:$0xff]  ;;  %v5963_v51 = vpop.f32.mrf.mxu0 }
 0x864   : > { %7081 = vpow2.f32 %v6283_v26  ;;  %v6231_v29 = vadd.f32 %v6187_v38, %v11018_v2  ;;  %v6039_v0 = vadd.f32 %v6038_v34, %v5949_v16 }
 0x866   : > { %v6244_v63 = vmul.f32 0.0, %v6231_v29 }
 0x867   : > { %v6119_v48 = vpop.f32.mrf.mxu2  ;;  %v6194_v35 = vpop.f32.mrf.mxu3 }
 0x868   : > { %v6270_v13 = vmin.f32 %v6244_v63, 0.0  ;;  %v6120_v30 = vadd.f32 %v6119_v48, %v6027_v11  ;;  %v5959_v11 = vadd.f32 %v5958_v45, %v10571_v17  ;;  %v6056_v48 = vpop.f32.mrf.mxu1 }
 0x86a   : > { %v7082_v3 = vpop.eup %7081  ;;  %v6285_v32 = vmul.f32 1.442695, %v6270_v13  ;;  %v6191_v43 = vadd.f32 %v6190_v59, %v6120_v30  ;;  %v5954_v59 = vadd.f32 %v5953_v4, %v10566_v28  ;;  %v6051_v13 = vadd.f32 %v6050_v56, %v5959_v11 }
 0x86b   : > { %v5968_v3 = vpop.f32.mrf.mxu0 }
 0x86c   : > { %7083 = vpow2.f32 %v6285_v32  ;;  %v6232_v60 = vadd.f32 %v6191_v43, %v11019_v58  ;;  %v6045_v6 = vadd.f32 %v6044_v20, %v5954_v59  ;;  %v5969_v16 = vadd.f32 %v5968_v3, %v10580_v10 }
 0x86e   : > { %v6245_v5 = vmul.f32 0.0, %v6232_v60 }
 0x86f   : > { %v6123_v24 = vpop.f32.mrf.mxu2  ;;  %v6198_v19 = vpop.f32.mrf.mxu3 }
 0x870   : > { %v6271_v37 = vmin.f32 %v6245_v5, 0.0  ;;  %v6124_v62 = vadd.f32 %v6123_v24, %v6033_v50  ;;  %v5964_v5 = vadd.f32 %v5963_v51, %v10576_v18  ;;  %v6062_v17 = vpop.f32.mrf.mxu1 }
 0x872   : > { %v7084_v42 = vpop.eup %7083  ;;  %v6287_v57 = vmul.f32 1.442695, %v6271_v37  ;;  %v6195_v14 = vadd.f32 %v6194_v35, %v6124_v62 }
 0x873   : > { %v5973_v42 = vpop.f32.mrf.mxu0 }
 0x874   : > { %7085 = vpow2.f32 %v6287_v57  ;;  %v6233_v7 = vadd.f32 %v6195_v14, %v11020_v61 }
 0x876   : > { %v6246_v9 = vmul.f32 0.0, %v6233_v7  ;;  %v6063_v7 = vadd.f32 %v6062_v17, %v5969_v16 }
 0x877   : > { %v6127_v12 = vpop.f32.mrf.mxu2  ;;  %v6202_v41 = vpop.f32.mrf.mxu3 }
 0x878   : > { %v6272_v1 = vmin.f32 %v6246_v9, 0.0  ;;  %v6128_v22 = vadd.f32 %v6127_v12, %v6039_v0 }
 0x87a   : > { %v7086_v40 = vpop.eup %7085  ;;  %v6289_v31 = vmul.f32 1.442695, %v6272_v1  ;;  %v6199_v52 = vadd.f32 %v6198_v19, %v6128_v22  ;;  %v6057_v19 = vadd.f32 %v6056_v48, %v5964_v5  ;;  %v6374_v48 = vld [vmem:[%s10796_s14 + $0x20] sm:$0xff] }
 0x87b   : > { %v5974_v40 = vadd.f32 %v5973_v42, %v10583_v54  ;;  %v5978_v56 = vpop.f32.mrf.mxu0 }
 0x87c   : > { %7087 = vpow2.f32 %v6289_v31  ;;  %v6234_v27 = vadd.f32 %v6199_v52, %v11021_v39  ;;  %v5979_v51 = vadd.f32 %v5978_v56, %v10586_v21  ;;  %v6375_v21 = vld [vmem:[%s10796_s14 + $0x28] sm:$0xff] }
 0x87d   : > { %v10632_v11 = vand.u32 4294901760, %v6375_v21 }
 0x87e   : > { %v6247_v53 = vmul.f32 0.0, %v6234_v27 }
 0x87f   : > { %v6131_v26 = vpop.f32.mrf.mxu2  ;;  %v6206_v38 = vpop.f32.mrf.mxu3 }
 0x880   : > { %v6273_v55 = vmin.f32 %v6247_v53, 0.0  ;;  %v6132_v2 = vadd.f32 %v6131_v26, %v6045_v6 }
 0x882   : > { %v7088_v29 = vpop.eup %7087  ;;  %v6291_v34 = vmul.f32 1.442695, %v6273_v55  ;;  %v6203_v63 = vadd.f32 %v6202_v41, %v6132_v2  ;;  %v6376_v2 = vld [vmem:[%s10796_s14 + $0x30] sm:$0xff] }
 0x883   : > { %v5983_v29 = vpop.f32.mrf.mxu0 }
 0x884   : > { %7089 = vpow2.f32 %v6291_v34  ;;  %v6235_v35 = vadd.f32 %v6203_v63, %v9795_v15 }
 0x886   : > { %v6248_v28 = vmul.f32 0.0, %v6235_v35  ;;  %v6373_v35 = vld [vmem:[%s10796_s14 + $0x18] sm:$0xff] }
 0x887   : > { %v6135_v30 = vpop.f32.mrf.mxu2  ;;  %v6210_v43 = vpop.f32.mrf.mxu3 }
 0x888   : > { %v6274_v4 = vmin.f32 %v6248_v28, 0.0  ;;  %v6136_v32 = vadd.f32 %v6135_v30, %v6051_v13  ;;  %v10640_v30 = vand.u32 4294901760, %v6374_v48 }
 0x88a   : > { %v7090_v46 = vpop.eup %7089  ;;  %v6293_v58 = vmul.f32 1.442695, %v6274_v4  ;;  %v6207_v60 = vadd.f32 %v6206_v38, %v6136_v32  ;;  %v5984_v32 = vadd.f32 %v5983_v29, %v10589_v23 }
 0x88c   : > { %7091 = vpow2.f32 %v6293_v58  ;;  %v6236_v50 = vadd.f32 %v6207_v60, %v9902_v25  ;;  %v6068_v25 = vpop.f32.mrf.mxu1  ;;  %v10655_v58 = vsub.f32 %v6375_v21, %v10632_v11  ;;  %v10658_v60 = vsub.f32 %v6374_v48, %v10640_v30  ;;  %v6370_v48 = vld [vmem:[%s10796_s14] sm:$0xff] }
 0x88d   : > { %v6069_v59 = vadd.f32 %v6068_v25, %v5974_v40 }
 0x88e   : > { %v6249_v24 = vmul.f32 0.0, %v6236_v50 }
 0x88f   : > { %v6139_v20 = vpop.f32.mrf.mxu2  ;;  %v6214_v45 = vpop.f32.mrf.mxu3 }
 0x890   : > { %v6275_v15 = vmin.f32 %v6249_v24, 0.0  ;;  %v6140_v37 = vadd.f32 %v6139_v20, %v6057_v19 }
 0x892   : > { %v7092_v62 = vpop.eup %7091  ;;  %v6295_v57 = vmul.f32 1.442695, %v6275_v15  ;;  %v6211_v14 = vadd.f32 %v6210_v43, %v6140_v37  ;;  %v6440_v15 = vand.u32 4294901760, %v10655_v58  ;;  %v6446_v37 = vand.u32 4294901760, %v10658_v60 }
 0x893   : > { %v6372_v62 = vld [vmem:[%s10796_s14 + $0x10] sm:$0xff] }
 0x894   : > { %7093 = vpow2.f32 %v6295_v57  ;;  %v6237_v61 = vadd.f32 %v6211_v14, %v9977_v33  ;;  %v6074_v6 = vpop.f32.mrf.mxu1  ;;  %v6447_v25 = vsub.f32 %v10658_v60, %v6446_v37 }
 0x895   : > { %v6075_v54 = vadd.f32 %v6074_v6, %v5979_v51 }
 0x896   : > { %v6250_v18 = vmul.f32 0.0, %v6237_v61 }
 0x897   : > { %v6143_v9 = vpop.f32.mrf.mxu2  ;;  %v6218_v10 = vpop.f32.mrf.mxu3 }
 0x898   : > { %v6276_v0 = vmin.f32 %v6250_v18, 0.0  ;;  %v6144_v12 = vadd.f32 %v6143_v9, %v6063_v7 }
 0x89a   : > { %v7094_v41 = vpop.eup %7093  ;;  %v6297_v1 = vmul.f32 1.442695, %v6276_v0  ;;  %v6215_v22 = vadd.f32 %v6214_v45, %v6144_v12  ;;  %v10694_v0 = vand.u32 4294901760, %v6372_v62 }
 0x89c   : > { %7095 = vpow2.f32 %v6297_v1  ;;  %v6238_v31 = vadd.f32 %v6215_v22, %v10065_v8  ;;  %v6377_v8 = vld [vmem:[%s10796_s14 + $0x38] sm:$0xff]  ;;  %v6080_v42 = vpop.f32.mrf.mxu1 }
 0x89d   : > { %v10628_v63 = vand.u32 4294901760, %v6377_v8  ;;  %v6081_v61 = vadd.f32 %v6080_v42, %v5984_v32 }
 0x89e   : > { %v6251_v52 = vmul.f32 0.0, %v6238_v31 }
 0x89f   : > { %v6147_v39 = vpop.f32.mrf.mxu2  ;;  %v6222_v28 = vpop.f32.mrf.mxu3  ;;  %v10647_v43 = vsub.f32 %v6377_v8, %v10628_v63  ;;  %6394 = vmatpush.msrb.mxu0 %v10628_v63  ;;  %6526 = vmatpush.msra.mxu3 %v10628_v63 }
 0x8a0   : > { %v6277_v33 = vmin.f32 %v6251_v52, 0.0  ;;  %v6148_v27 = vadd.f32 %v6147_v39, %v6069_v59  ;;  %vm6264_vm10 = vcmp.gt.f32.partialorder %v6251_v52, 0.0  ;;  %v6448_v59 = vand.u32 4294901760, %v6447_v25 }
 0x8a1   : > { %6489 = vmatpush.msra.mxu2 %v10647_v43  ;;  %v6428_v24 = vand.u32 4294901760, %v10647_v43  ;;  %v6457_v39 = vsub.f32 %v6372_v62, %v10694_v0 }
 0x8a2   : > { %v7096_v53 = vpop.eup %7095  ;;  %v6299_v26 = vmul.f32 1.442695, %v6277_v33  ;;  %v6219_v38 = vadd.f32 %v6218_v10, %v6148_v27 }
 0x8a3   : > { %v6429_v14 = vsub.f32 %v10647_v43, %v6428_v24  ;;  %v6458_v29 = vand.u32 4294901760, %v6457_v39 }
 0x8a4   : > { %7097 = vpow2.f32 %v6299_v26  ;;  %v6239_v55 = vadd.f32 %v6219_v38, %v10093_v47  ;;  %v10630_v47 = vand.u32 4294901760, %v6376_v2 }
 0x8a5   : > { %v6430_v9 = vand.u32 4294901760, %v6429_v14 }
 0x8a6   : > { %v10626_v34 = vmul.f32 %v6239_v55, %v8893_v44  ;;  %v10642_v44 = vand.u32 4294901760, %v6373_v35  ;;  %v10652_v46 = vsub.f32 %v6376_v2, %v10630_v47  ;;  %6396 = vmatpush.msrb.mxu0 %v10630_v47  ;;  %6528 = vmatpush.msra.mxu3 %v10630_v47 }
 0x8a7   : > { %v6151_v13 = vpop.f32.mrf.mxu2  ;;  %6431 = vmatpush.msrb.mxu1 %v6430_v9  ;;  %v6226_v31 = vpop.f32.mrf.mxu3 }
 0x8a8   : > { %v6278_v3 = vmin.f32 %v10626_v34, 0.0  ;;  %v6152_v4 = vadd.f32 %v6151_v13, %v6075_v54  ;;  %v10661_v5 = vsub.f32 %v6373_v35, %v10642_v44  ;;  %v6434_v20 = vand.u32 4294901760, %v10652_v46  ;;  %6492 = vmatpush.msra.mxu2 %v10652_v46  ;;  %6398 = vmatpush.msrb.mxu0 %v10632_v11 }
 0x8a9   : > { %6530 = vmatpush.msra.mxu3 %v10632_v11  ;;  %vm6265_vm15 = vcmp.gt.f32.partialorder %v10626_v34, 0.0  ;;  %v6459_v13 = vsub.f32 %v6457_v39, %v6458_v29 }
 0x8aa   : > { %v7098_v23 = vpop.eup %7097  ;;  %v6301_v50 = vmul.f32 1.442695, %v6278_v3  ;;  %v6223_v17 = vadd.f32 %v6222_v28, %v6152_v4  ;;  %v6452_v16 = vand.u32 4294901760, %v10661_v5  ;;  %v6435_v18 = vsub.f32 %v10652_v46, %v6434_v20  ;;  %6495 = vmatpush.msra.mxu2 %v10655_v58  ;;  %6400 = vmatpush.msrb.mxu0 %v10640_v30 }
 0x8ab   : > { %v6821_v19 = vadd.f32 -1.0, %v7098_v23  ;;  %6532 = vmatpush.msra.mxu3 %v10640_v30  ;;  %v6407_v28 = vand.u32 4294901760, %v6370_v48  ;;  %v6460_v32 = vand.u32 4294901760, %v6459_v13 }
 0x8ac   : > { %7099 = vpow2.f32 %v6301_v50  ;;  %v6240_v57 = vadd.f32 %v6223_v17, %v10132_v49  ;;  %v6441_v49 = vsub.f32 %v10655_v58, %v6440_v15  ;;  %v6436_v41 = vand.u32 4294901760, %v6435_v18  ;;  %6498 = vmatpush.msra.mxu2 %v10658_v60  ;;  %6402 = vmatpush.msrb.mxu0 %v10642_v44 }
 0x8ad   : > { %v6329_v45 = vsel %vm6264_vm10, %v6251_v52, %v6821_v19  ;;  %v6453_v56 = vsub.f32 %v10661_v5, %v6452_v16  ;;  %6534 = vmatpush.msra.mxu3 %v10642_v44  ;;  %v6469_v4 = vsub.f32 %v6370_v48, %v6407_v28 }
 0x8ae   : > { %6342 = vst.msk [vmem:[#allocation2 + $0x48] sm:$0xff] %vm923_vm11, %v6329_v45  ;;  %v6279_v7 = vmin.f32 %v6240_v57, 0.0  ;;  %v6442_v40 = vand.u32 4294901760, %v6441_v49  ;;  %6437 = vmatpush.msrb.mxu1 %v6436_v41  ;;  %6501 = vmatpush.msra.mxu2 %v10661_v5  ;;  %vm6266_vm5 = vcmp.gt.f32.partialorder %v6240_v57, 0.0 }
 0x8af   : > { %v6155_v12 = vpop.f32.mrf.mxu2  ;;  %6404 = vmatpush.msrb.mxu0 %v10694_v0  ;;  %6536 = vmatpush.msra.mxu3 %v10694_v0  ;;  %v6454_v51 = vand.u32 4294901760, %v6453_v56  ;;  %v6470_v50 = vand.u32 4294901760, %v6469_v4 }
 0x8b0   : > { %v6303_v1 = vmul.f32 1.442695, %v6279_v7  ;;  %v6156_v22 = vadd.f32 %v6155_v12, %v6081_v61  ;;  %6443 = vmatpush.msrb.mxu1 %v6442_v40  ;;  %6504 = vmatpush.msra.mxu2 %v6457_v39 }
 0x8b1   : > { %v6471_v19 = vsub.f32 %v6469_v4, %v6470_v50 }
 0x8b2   : > { %v7100_v10 = vpop.eup %7099  ;;  %7101 = vpow2.f32 %v6303_v1  ;;  %v6227_v52 = vadd.f32 %v6226_v31, %v6156_v22  ;;  %6449 = vmatpush.msrb.mxu1 %v6448_v59 }
 0x8b3   : > { %v6822_v33 = vadd.f32 -1.0, %v7100_v10  ;;  %v6472_v42 = vand.u32 4294901760, %v6471_v19 }
 0x8b4   : > { %v6241_v27 = vadd.f32 %v6227_v52, %v10164_v36  ;;  %6455 = vmatpush.msrb.mxu1 %v6454_v51 }
 0x8b5   : > { %v6330_v53 = vsel %vm6265_vm15, %v10626_v34, %v6822_v33  ;;  %v6371_v34 = vld [vmem:[%s10796_s14 + $0x8] sm:$0xff] }
 0x8b6   : > { %6343 = vst.msk [vmem:[#allocation2 + $0x50] sm:$0xff] %vm923_vm11, %v6330_v53  ;;  %v6280_v6 = vmin.f32 %v6241_v27, 0.0  ;;  %v6405_v35 = vand.u32 4294901760, %v6371_v34  ;;  %6461 = vmatpush.msrb.mxu1 %v6460_v32 }
 0x8b8   : > { %v7102_v26 = vpop.eup %7101  ;;  %v6305_v38 = vmul.f32 1.442695, %v6280_v6  ;;  %v6463_v3 = vsub.f32 %v6371_v34, %v6405_v35  ;;  %6406 = vmatpush.msrb.mxu0 %v6405_v35  ;;  %6538 = vmatpush.msra.mxu3 %v6405_v35 }
 0x8b9   : > { %v6823_v55 = vadd.f32 -1.0, %v7102_v26 }
 0x8ba   : > { %7103 = vpow2.f32 %v6305_v38  ;;  %6507 = vmatpush.msra.mxu2 %v6463_v3  ;;  %v6464_v23 = vand.u32 4294901760, %v6463_v3  ;;  %6408 = vmatpush.msrb.mxu0 %v6407_v28 }
 0x8bb   : > { %v6331_v54 = vsel %vm6266_vm5, %v6240_v57, %v6823_v55  ;;  %6540 = vmatpush.msra.mxu3 %v6407_v28 }
 0x8bc   : > { %6344 = vst.msk [vmem:[#allocation2 + $0x58] sm:$0xff] %vm923_vm11, %v6331_v54  ;;  %v6465_v17 = vsub.f32 %v6463_v3, %v6464_v23  ;;  %6510 = vmatpush.msra.mxu2 %v6469_v4  ;;  %6559 = vmatpush.msra.mxu0 %v6428_v24 }
 0x8be   : > { %v6466_v62 = vand.u32 4294901760, %v6465_v17  ;;  %6563 = vmatpush.msra.mxu0 %v6434_v20 }
 0x8c0   : > { %v7104_v8 = vpop.eup %7103  ;;  %6467 = vmatpush.msrb.mxu1 %v6466_v62  ;;  %6567 = vmatpush.msra.mxu0 %v6440_v15 }
 0x8c2   : > { %6473 = vmatpush.msrb.mxu1 %v6472_v42  ;;  %6571 = vmatpush.msra.mxu0 %v6446_v37  ;;  %v6938_v37 = vld [vmem:[%s10797_s15] ss:$0 sm:$0xff] }
 0x8c3   : > { %v6354_v36 = vld [vmem:[#allocation2 + $0x51] ss:$2 sm:$0xff]  ;;  %v6352_v2 = vld [vmem:[#allocation2 + $0x50] ss:$2 sm:$0xff] }
 0x8c4   : > { %v6350_v21 = vld [vmem:[#allocation2 + $0x4f] ss:$2 sm:$0xff]  ;;  %6364 = vrot.lane.b32.xlu1 %v6354_v36, %s10889_s19  ;;  %6360 = vrot.lane.b32.xlu0 %v6352_v2, %s10893_s23  ;;  %s578_s23 = sand.u32 1, %s7169_s22   ;;  %s7123_s19 = scalar_lea.hbm %s7122_s2, 8 }
 0x8c5   : > { %6356 = vrot.lane.b32.xlu2 %v6350_v21, %s10890_s30  ;;  %6602 = vmatpush.msra.mxu1 %v10628_v63  ;;  %v6348_v63 = vld [vmem:[#allocation2 + $0x4e] ss:$2 sm:$0xff]  ;;  %s6737_s25 = sshll.u32 %s578_s23, 3  ;;  %s6624_s24 = scalar_lea.sflag [#allocation4], %s578_s23 }
 0x8c6   : > { %6575 = vmatpush.msra.mxu0 %v6452_v16  ;;  %s580_s17 = scalar_lea.vmem [#allocation3], %s6737_s25  ;;  %p7124_p12 = scmp.ne.s32.totalorder %s7122_s2, %s7123_s19 }
 0x8c7   : > { %6604 = vmatpush.msra.mxu1 %v10630_v47  ;;  %s6637_s28 = sshll.u32 %s580_s17, 4  ;;  %s7127_s25 = scalar_lea.hbm %s10798_s16, 16  ;;  %s6638_s28 = int_to_ptr.vmem [resolvable:$true] %s6637_s28 }
 0x8c8   : > { %6579 = vmatpush.msra.mxu0 %v6458_v29  ;;  %p7125_p13 = pnand %p7124_p12, %p7320_p4  ;;  %p7129_p2 = scmp.lt.s32.totalorder %s7127_s25, %s7123_s19 }
 0x8c9   : > { %6606 = vmatpush.msra.mxu1 %v10632_v11 }
 0x8ca   : > { %6583 = vmatpush.msra.mxu0 %v6464_v23  ;;  %p7126_p0 = pneg %p7125_p13  ;;  %p7130_p3 = por %p7129_p2, %p7128_p1 }
 0x8cb   : > { %6608 = vmatpush.msra.mxu1 %v10640_v30 }
 0x8cc   : > { %6587 = vmatpush.msra.mxu0 %v6470_v50  ;;  %p7131_p5 = pnand %p7130_p3, %p7126_p0 }
 0x8cd   : > { %6610 = vmatpush.msra.mxu1 %v10642_v44 }
 0x8cf   : > { %6612 = vmatpush.msra.mxu1 %v10694_v0 }
 0x8d1   : > { %6614 = vmatpush.msra.mxu1 %v6405_v35 }
 0x8d3   : > { %6616 = vmatpush.msra.mxu1 %v6407_v28 }
 0x91f   : > { %v6357_v43 = vpop.permute.xlu2 %6356 }
 0x920   : > { %v6367_v46 = vsel %vm923_vm11, %v6348_v63, %v6357_v43 }
 0x936   : > { %v6365_v58 = vpop.permute.xlu1 %6364  ;;  %v6361_v60 = vpop.permute.xlu0 %6360 }
 0x937   : > { %v6368_v47 = vsel %vm931_vm12, %v6367_v46, %v6361_v60 }
 0x938   : > { %v6369_v11 = vsel %vm939_vm13, %v6368_v47, %v6365_v58 }
 0x939   : > { %v6383_v30 = vsel %vm947_vm14, %v6369_v11, 0 }
 0x93a   : > { %v6409_v5 = vand.u32 4294901760, %v6383_v30 }
 0x93c   : > { %v6410_v24 = vsub.f32 %v6383_v30, %v6409_v5  ;;  %6475 = vmatmul.f32.vlgmr.msrb.gmra.mxu1 %v6409_v5 }
 0x93e   : > { %v6411_v44 = vand.u32 4294901760, %v6410_v24  ;;  %6513 = vmatmul.f32.vlgmr.msra.gmra.mxu2 %v6410_v24 }
 0x940   : > { %v6412_v20 = vsub.f32 %v6410_v24, %v6411_v44  ;;  %6544 = vmatmul.f32.vlgmr.msra.gmra.mxu3 %v6411_v44 }
 0x942   : > { %v6413_v15 = vand.u32 4294901760, %v6412_v20 }
 0x944   : > { %6414 = vmatmul.f32.vlgmr.msrb.gmra.mxu0 %v6413_v15  ;;  %6618 = vmatmul.f32.vlgmr.msra.gmra.mxu1 %v6409_v5 }
 0x94c   : > { %6589 = vmatmul.f32.vlgmr.msra.gmra.mxu0 %v6409_v5 }
 0x9b9   : > { %v6476_v57 = vpop.f32.mrf.mxu1 }
 0x9c1   : > { %v6415_v14 = vpop.f32.mrf.mxu0  ;;  %v6514_v61 = vpop.f32.mrf.mxu2 }
 0x9c2   : > { %v6416_v16 = vadd.f32 %v6938_v37, %v6415_v14  ;;  %v6619_v0 = vpop.f32.mrf.mxu1 }
 0x9c3   : > { %v6545_v49 = vpop.f32.mrf.mxu3 }
 0x9c4   : > { %v6477_v45 = vadd.f32 %v6476_v57, %v6416_v16 }
 0x9c6   : > { %v6515_v18 = vadd.f32 %v6514_v61, %v6477_v45 }
 0x9c8   : > { %v6546_v7 = vadd.f32 %v6545_v49, %v6515_v18 }
 0x9c9   : > { %v6590_v9 = vpop.f32.mrf.mxu0 }
 0x9ca   : > { %v6591_v25 = vadd.f32 %v6590_v9, %v6546_v7 }
 0x9cc   : > { %v6620_v12 = vadd.f32 %v6619_v0, %v6591_v25 }
 0x9ce   : > { %6622 = vst.msk [vmem:[%s580_s17] sm:$0xff] %vm931_vm12, %v6620_v12 }
 0x9cf   : > { %7134 = shalt.err (!%p7131_p5)
}
 0x9d0   : > { %6859 = dma.vmem_to_hbm [thread:$0]  (%p7320_p4), %s6638_s28, 128, %s6640_s29, %s6624_s24  }
 0x9d1 PF: > { %p6865_p6 = scmp.ge.s32.totalorder %s7185_s26, 2  ;;  %s6651_s27 = sand.u32 1, %s7165_s21  }
 0x9d2   : > { %s6652_s17 = scalar_lea.sflag [#allocation4], %s6651_s27 }
 0x9d3   : > { %p6862_p7 = pnand %p6865_p6, %p7327_p8 }
 0x9d5   : > { %p6863_p9 = pneg %p6862_p7 }
 0x9d7   : > { %7160 = dma.done.wait (%p6863_p9), %s6652_s17, 128  }
 0x9d8   : > { %7162 = vsyncadd (%p6863_p9), %s6652_s17, 4294967168  ;;  %s29_s26 = sadd.s32 1, %s7185_s26   ;;  %s11023_s2 = sld [smem:[#allocation6_spill]] }
 0x9d9   : > { %p26_p10 = scmp.ge.s32.totalorder %s29_s26, 4   ;;  %s11024_s23 = sld [smem:[#allocation10_spill]] }
 0x9da   : > { %s11025_s24 = sld [smem:[#allocation7_spill]]  ;;  %s11027_s21 = smov %s7169_s22 }
 0x9db   : > { %s11026_s25 = sld [smem:[#allocation8_spill]]  ;;  %28 = sbr.rel (!%p26_p10) target bundleno = 8 (0x8), region = 126 }
 0x9de   : > { %s11028_s22 = smov %s11023_s2 }
 0x9e0   :  { %6658 = vsyncpa [#allocation4], 1 }
 0x9e1   :  { %6660 = vsyncpa [#allocation4 + $0x1], 1 }

</bundles_post_ra>
